<compile_context>
chip_gen: v7x
topology: tpu7x:2x2x1
jax: 0.10.0
libtpu: 0.0.40
codegen_flags: <defaults>
</compile_context>

<pallas_src>
import functools
import math

import jax
import jax.numpy as jnp
from jax.experimental import pallas as pl
from jax.experimental.pallas import tpu as pltpu

KERNEL_SIZE = 3
N_LABELS = 2
BN_EPS = 1e-5

_VMEM = pl.BlockSpec(memory_space=pltpu.MemorySpace.VMEM)


# ----------------------------------------------------------------------------
# In-kernel helpers
# ----------------------------------------------------------------------------
def _conv3(x_f32, w_ref, is_first, is_last, b=None):
    """Conv1d(kernel=3, padding=1, zero pad) over batch-flattened rows.

    x_f32   : (R, Cin) f32 value, R = N * L, batches stored contiguously.
    w_ref   : (3, Cin, Cout) bf16 ref, tap-major (tap k multiplies x[l + k - 1]).
    is_first/is_last : (R, 1) bool masks for the per-batch sequence boundaries
                       (hoisted by the caller; JAX does not CSE iota/broadcast).
    Zero padding is realised by masking the +-1 row halos built with pltpu.roll.
    Returns the f32 (R, Cout) accumulator; one MXU matmul per tap.
    """
    R = x_f32.shape[0]
    prev = jnp.where(is_first, 0.0, pltpu.roll(x_f32, 1, axis=0))        # x[l-1]
    nxt = jnp.where(is_last, 0.0, pltpu.roll(x_f32, R - 1, axis=0))      # x[l+1]
    acc = jnp.dot(x_f32.astype(jnp.bfloat16), w_ref[1],
                  preferred_element_type=jnp.float32)
    acc = acc + jnp.dot(prev.astype(jnp.bfloat16), w_ref[0],
                        preferred_element_type=jnp.float32)
    acc = acc + jnp.dot(nxt.astype(jnp.bfloat16), w_ref[2],
                        preferred_element_type=jnp.float32)
    if b is not None:
        acc = acc + b                                  # (1, Cout) f32 broadcast
    return acc


def _bn_relu(h, gamma, beta, ones_r):
    """BatchNorm1d training-mode normalization (biased var over all N*L rows) + ReLU.

    Channel sums run on the MXU (all-ones matmul) instead of cross-sublane XLU
    reduces; variance stays centered (two-pass) for numerical safety.
    ones_r : (8, R) f32 of ones, hoisted by the caller.
    """
    inv_n = 1.0 / h.shape[0]
    mean = jnp.dot(ones_r, h, preferred_element_type=jnp.float32)[0:1, :] * inv_n
    c = h - mean
    var = jnp.dot(ones_r, c * c, preferred_element_type=jnp.float32)[0:1, :] * inv_n
    var = jnp.maximum(var, 0.0)
    y = c * jax.lax.rsqrt(var + BN_EPS) * gamma + beta
    return jnp.maximum(y, 0.0)


def _boundary_masks(R, L):
    row = jax.lax.broadcasted_iota(jnp.int32, (R, 1), 0) % L
    return row == 0, row == (L - 1)


# ----------------------------------------------------------------------------
# Fused kernels
# ----------------------------------------------------------------------------
def _unet_block_kernel(x_ref, w1_ref, g1_ref, be1_ref,
                       w2_ref, g2_ref, be2_ref, o_ref, *, L):
    # conv1 + BN + ReLU + conv2 + BN + ReLU; intermediates stay in VMEM/vregs.
    # Conv biases are omitted: training-mode BN cancels them exactly.
    R = x_ref.shape[0]
    is_first, is_last = _boundary_masks(R, L)
    ones_r = jnp.ones((8, R), jnp.float32)
    h = _conv3(x_ref[...].astype(jnp.float32), w1_ref, is_first, is_last)
    h = _bn_relu(h, g1_ref[...], be1_ref[...], ones_r)
    h = _conv3(h, w2_ref, is_first, is_last)
    h = _bn_relu(h, g2_ref[...], be2_ref[...], ones_r)
    o_ref[...] = h.astype(o_ref.dtype)


def _decoder_stage_kernel(xu_ref, skip_ref, wu_ref, bu_ref,
                          w1a_ref, w1b_ref, g1_ref, be1_ref,
                          w2_ref, g2_ref, be2_ref, o_ref, *, L):
    # xu_ref is the already row-duplicated (nearest-upsampled) activation at
    # resolution L.  torch.cat([upconv(x), skip], channel) followed by conv1 is
    # realised as two matmul groups; the concatenated tensor never exists.
    R = xu_ref.shape[0]
    is_first, is_last = _boundary_masks(R, L)
    ones_r = jnp.ones((8, R), jnp.float32)
    y = _conv3(xu_ref[...].astype(jnp.float32), wu_ref, is_first, is_last,
               b=bu_ref[...])                               # upsample conv (bias kept)
    h = _conv3(y, w1a_ref, is_first, is_last) \
        + _conv3(skip_ref[...].astype(jnp.float32), w1b_ref, is_first, is_last)
    h = _bn_relu(h, g1_ref[...], be1_ref[...], ones_r)
    h = _conv3(h, w2_ref, is_first, is_last)
    h = _bn_relu(h, g2_ref[...], be2_ref[...], ones_r)
    o_ref[...] = h.astype(o_ref.dtype)


def _output_kernel(x_ref, w_ref, b_ref, o_ref, *, L):
    # Output conv (Cout = N_LABELS) + stable log_softmax over the 2 classes.
    R = x_ref.shape[0]
    is_first, is_last = _boundary_masks(R, L)
    y = _conv3(x_ref[...].astype(jnp.float32), w_ref, is_first, is_last,
               b=b_ref[...])                                # (R, N_LABELS) f32
    m = jnp.max(y, axis=-1, keepdims=True)
    lse = m + jnp.log(jnp.sum(jnp.exp(y - m), axis=-1, keepdims=True))
    o_ref[...] = y - lse


# ----------------------------------------------------------------------------
# pallas_call wrappers
# ----------------------------------------------------------------------------
def _cost(flops, bytes_accessed, transcendentals=0):
    return pl.CostEstimate(flops=int(flops), transcendentals=int(transcendentals),
                           bytes_accessed=int(bytes_accessed))


def unet_block(h, p, L):
    """Fused UNetBlock (2x conv+BN+ReLU) in one pallas_call. h: (N*L, Cin) bf16."""
    R, Cin = h.shape
    C = p['w1'].shape[-1]
    flops = 2 * R * KERNEL_SIZE * (Cin * C + C * C) + 4 * 8 * R * C
    byts = 2 * R * (Cin + C) + 2 * KERNEL_SIZE * (Cin * C + C * C) + 16 * C
    return pl.pallas_call(
        functools.partial(_unet_block_kernel, L=L),
        out_shape=jax.ShapeDtypeStruct((R, C), jnp.bfloat16),
        in_specs=[_VMEM] * 7,
        out_specs=_VMEM,
        cost_estimate=_cost(flops, byts, transcendentals=2 * C),
    )(h, p['w1'], p['g1'], p['be1'], p['w2'], p['g2'], p['be2'])


def decoder_stage(x_up, skip, pu, pd, L):
    """Fused decoder stage: up-conv + concat-free conv1 + BN/ReLU + conv2 + BN/ReLU.

    x_up : (N*L, 2C) bf16, nearest-upsampled activation (row-duplicated).
    skip : (N*L, C)  bf16 encoder skip.
    """
    R, Cin = x_up.shape
    C = pu['w'].shape[-1]
    flops = 2 * R * KERNEL_SIZE * (Cin * C + Cin * C + C * C) + 4 * 8 * R * C
    byts = 2 * R * (Cin + C + C) + 2 * KERNEL_SIZE * (2 * Cin * C + C * C) + 20 * C
    return pl.pallas_call(
        functools.partial(_decoder_stage_kernel, L=L),
        out_shape=jax.ShapeDtypeStruct((R, C), jnp.bfloat16),
        in_specs=[_VMEM] * 11,
        out_specs=_VMEM,
        cost_estimate=_cost(flops, byts, transcendentals=2 * C),
    )(x_up, skip, pu['w'], pu['b'],
      pd['w1a'], pd['w1b'], pd['g1'], pd['be1'],
      pd['w2'], pd['g2'], pd['be2'])


def output_stage(h, po, L):
    """Output conv + 2-class log_softmax; writes the (N*L, 2) f32 result directly."""
    R, Cin = h.shape
    flops = 2 * R * KERNEL_SIZE * Cin * N_LABELS
    byts = 2 * R * Cin + 4 * R * N_LABELS + 2 * KERNEL_SIZE * Cin * N_LABELS
    return pl.pallas_call(
        functools.partial(_output_kernel, L=L),
        out_shape=jax.ShapeDtypeStruct((R, N_LABELS), jnp.float32),
        in_specs=[_VMEM] * 3,
        out_specs=_VMEM,
        cost_estimate=_cost(flops, byts, transcendentals=3 * R),
    )(h, po['w'], po['b'])


def max_pool_flat(h, N, L, s):
    # torch F.max_pool1d(kernel_size=s, stride=s): pure data movement -> JAX glue.
    # TODO(synk): fuse as a second output of the encoder-block kernel.
    C = h.shape[-1]
    return jnp.max(h.reshape(N, L // s, s, C), axis=2).reshape(N * (L // s), C)


# ----------------------------------------------------------------------------
# Parameters (deterministic init, PyTorch-like uniform bounds)
# weight layout is (k, Cin, Cout) == torch Conv1d weight (Cout, Cin, k) transposed.
# ----------------------------------------------------------------------------
def _init_conv(key, cin, cout):
    kw, kb = jax.random.split(key)
    bound = 1.0 / math.sqrt(cin * KERNEL_SIZE)
    w = jax.random.uniform(kw, (KERNEL_SIZE, cin, cout), jnp.float32, -bound, bound)
    b = jax.random.uniform(kb, (cout,), jnp.float32, -bound, bound)
    return w, b


def _init_block(key, cin, cout):
    k1, k2 = jax.random.split(key)
    w1, b1 = _init_conv(k1, cin, cout)
    w2, b2 = _init_conv(k2, cout, cout)
    ones = jnp.ones((cout,), jnp.float32)
    zeros = jnp.zeros((cout,), jnp.float32)
    return dict(w1=w1, b1=b1, g1=ones, be1=zeros,
                w2=w2, b2=b2, g2=ones, be2=zeros)


def init_unet_params(key):
    keys = iter(jax.random.split(key, 16))
    params = {'enc': [], 'up': [], 'dec': []}
    cin, cout = 2, 16
    for _ in range(5):                              # encoders: 2->16->32->64->128->256
        params['enc'].append(_init_block(next(keys), cin, cout))
        cin, cout = cout, cout * 2
    cout = cin // 2
    for _ in range(4):                              # decoders
        params['up'].append(_init_conv(next(keys), cin, cout))
        params['dec'].append(_init_block(next(keys), cin, cout))
        cin, cout = cout, cout // 2
    params['out'] = _init_conv(next(keys), cin, N_LABELS)
    return params


def prepare_unet_params(params):
    """One-time, outside-jit conversion to the kernel layout.

    Conv weights -> bf16 (3, Cin, Cout); gamma/beta/kept-biases -> (1, C) f32;
    decoder conv1 weight pre-split into w1a (acts on the up-conv output) and
    w1b (acts on the skip), matching the torch.cat([up, skip], dim=1) order.
    Encoder/decoder conv biases before BN are dropped (BN cancels them exactly).
    """
    def wcast(w):
        return w.astype(jnp.bfloat16)

    def vec(v):
        return jnp.asarray(v, jnp.float32).reshape(1, -1)

    prep = {'enc': [], 'up': [], 'dec': []}
    for p in params['enc']:
        prep['enc'].append(dict(w1=wcast(p['w1']), g1=vec(p['g1']), be1=vec(p['be1']),
                                w2=wcast(p['w2']), g2=vec(p['g2']), be2=vec(p['be2'])))
    for (wu, bu), p in zip(params['up'], params['dec']):
        C = wu.shape[-1]
        prep['up'].append(dict(w=wcast(wu), b=vec(bu)))
        prep['dec'].append(dict(w1a=wcast(p['w1'][:, :C, :]),     # up-conv half
                                w1b=wcast(p['w1'][:, C:, :]),     # skip half
                                g1=vec(p['g1']), be1=vec(p['be1']),
                                w2=wcast(p['w2']), g2=vec(p['g2']), be2=vec(p['be2'])))
    wo, bo = params['out']
    prep['out'] = dict(w=wcast(wo), b=vec(bo))
    return prep


# ----------------------------------------------------------------------------
# UNet forward
# ----------------------------------------------------------------------------
def unet_forward(x, kparams, scale_factor=2):
    """x: (N, L, 2) channels-last float (torch input would be (N, 2, L) NCL).

    kparams: output of prepare_unet_params (kernel-ready layout, built once).
    Returns (N, L, N_LABELS) f32 log-probabilities.
    """
    N, L, Cin = x.shape
    assert L % (scale_factor ** 4) == 0, "L must be divisible by scale_factor**4"
    h = x.reshape(N * L, Cin).astype(jnp.bfloat16)
    skips = []
    Lc = L
    for i in range(4):                              # encoders 0..3 + max-pool
        h = unet_block(h, kparams['enc'][i], Lc)
        skips.append((h, Lc))
        h = max_pool_flat(h, N, Lc, scale_factor)
        Lc //= scale_factor
    h = unet_block(h, kparams['enc'][4], Lc)        # bottleneck encoder
    for i in range(4):                              # fused decoder stages
        skip, Lskip = skips[-1 - i]
        # Nearest upsample == per-row duplication (batch blocks stay contiguous).
        # Linear cost; replaces the old quadratic (N*L, N*Ls) MXU operator.
        # TODO(synk): do this duplication in-kernel to save one HBM round trip.
        h = jnp.repeat(h, scale_factor, axis=0)
        h = decoder_stage(h, skip, kparams['up'][i], kparams['dec'][i], Lskip)
        Lc = Lskip
    logp = output_stage(h, kparams['out'], Lc)      # (N*L, N_LABELS) f32 log-probs
    return logp.reshape(N, Lc, N_LABELS)


if __name__ == "__main__":
    key = jax.random.PRNGKey(0)
    kp, kx = jax.random.split(key)

    scale_factor = 2
    N, L, Cin = 2, 32, 2                            # torch input would be (2, 2, 32) NCL
    params = init_unet_params(kp)
    kparams = prepare_unet_params(params)           # one-time conversion, outside jit
    x = jax.random.normal(kx, (N, L, Cin), jnp.float32)

    fwd = jax.jit(functools.partial(unet_forward, scale_factor=scale_factor))
    out = fwd(x, kparams)
    jax.block_until_ready(out)
    assert out.shape == (N, L, N_LABELS), out.shape
    assert bool(jnp.all(jnp.isfinite(out))), "non-finite output"
    print("KERNEL_OK")
</pallas_src>

<mosaic_0001>
module attributes {stable_mosaic.version = 11 : i64} {
  func.func @_unet_block_kernel(%arg0: memref<64x2xbf16, #tpu.memory_space<vmem>>, %arg1: memref<3x2x16xbf16, #tpu.memory_space<vmem>>, %arg2: memref<1x16xf32, #tpu.memory_space<vmem>>, %arg3: memref<1x16xf32, #tpu.memory_space<vmem>>, %arg4: memref<3x16x16xbf16, #tpu.memory_space<vmem>>, %arg5: memref<1x16xf32, #tpu.memory_space<vmem>>, %arg6: memref<1x16xf32, #tpu.memory_space<vmem>>, %arg7: memref<64x16xbf16, #tpu.memory_space<vmem>>) attributes {dimension_semantics = [], scalar_prefetch = 0 : i64, scratch_operands = 0 : i64, tpu.core_type = #tpu.core_type<tc>} {
    %0 = tpu.iota {dimensions = array<i32: 0>} : vector<64x1xi32>
    %c32_i32 = arith.constant 32 : i32
    %c0_i32 = arith.constant 0 : i32
    %1 = arith.cmpi eq, %c32_i32, %c0_i32 : i32
    %c1_i32 = arith.constant 1 : i32
    %2 = arith.select %1, %c1_i32, %c32_i32 : i32
    %3 = vector.broadcast %2 : i32 to vector<64x1xi32>
    %4 = arith.remsi %0, %3 : vector<64x1xi32>
    %c0_i32_0 = arith.constant 0 : i32
    %5 = vector.broadcast %c0_i32_0 : i32 to vector<64x1xi32>
    %6 = arith.cmpi ne, %4, %5 : vector<64x1xi32>
    %c0_i32_1 = arith.constant 0 : i32
    %7 = vector.broadcast %c0_i32_1 : i32 to vector<64x1xi32>
    %8 = arith.cmpi slt, %4, %7 : vector<64x1xi32>
    %c0_i32_2 = arith.constant 0 : i32
    %9 = arith.cmpi slt, %2, %c0_i32_2 : i32
    %10 = vector.broadcast %9 : i1 to vector<64x1xi1>
    %11 = vector.broadcast %10 : vector<64x1xi1> to vector<64x1xi1>
    %12 = arith.xori %8, %11 : vector<64x1xi1>
    %13 = arith.andi %12, %6 : vector<64x1xi1>
    %14 = vector.broadcast %2 : i32 to vector<64x1xi32>
    %15 = arith.addi %4, %14 : vector<64x1xi32>
    %16 = arith.select %13, %15, %4 : vector<64x1xi1>, vector<64x1xi32>
    %c0_i32_3 = arith.constant 0 : i32
    %17 = vector.broadcast %c0_i32_3 : i32 to vector<64x1xi32>
    %18 = arith.cmpi eq, %16, %17 : vector<64x1xi32>
    %c31_i32 = arith.constant 31 : i32
    %19 = vector.broadcast %c31_i32 : i32 to vector<64x1xi32>
    %20 = arith.cmpi eq, %16, %19 : vector<64x1xi32>
    %cst = arith.constant 1.000000e+00 : f32
    %21 = vector.broadcast %cst : f32 to vector<8x64xf32>
    %c0 = arith.constant 0 : index
    %c0_4 = arith.constant 0 : index
    %22 = vector.load %arg0[%c0, %c0_4] : memref<64x2xbf16, #tpu.memory_space<vmem>>, vector<64x2xbf16>
    %23 = arith.extf %22 : vector<64x2xbf16> to vector<64x2xf32>
    %c1_i32_5 = arith.constant 1 : i32
    %24 = tpu.dynamic_rotate %23 by %c1_i32_5 dim 0 : vector<64x2xf32>, i32 -> vector<64x2xf32>
    %cst_6 = arith.constant 0.000000e+00 : f32
    %25 = vector.shape_cast %18 : vector<64x1xi1> to vector<64x1xi1>
    %26 = vector.broadcast %25 : vector<64x1xi1> to vector<64x2xi1>
    %27 = vector.broadcast %cst_6 : f32 to vector<64x2xf32>
    %28 = arith.select %26, %27, %24 : vector<64x2xi1>, vector<64x2xf32>
    %c63_i32 = arith.constant 63 : i32
    %29 = tpu.dynamic_rotate %23 by %c63_i32 dim 0 : vector<64x2xf32>, i32 -> vector<64x2xf32>
    %cst_7 = arith.constant 0.000000e+00 : f32
    %30 = vector.shape_cast %20 : vector<64x1xi1> to vector<64x1xi1>
    %31 = vector.broadcast %30 : vector<64x1xi1> to vector<64x2xi1>
    %32 = vector.broadcast %cst_7 : f32 to vector<64x2xf32>
    %33 = arith.select %31, %32, %29 : vector<64x2xi1>, vector<64x2xf32>
    %34 = arith.truncf %23 : vector<64x2xf32> to vector<64x2xbf16>
    %c1 = arith.constant 1 : index
    %c0_8 = arith.constant 0 : index
    %c0_9 = arith.constant 0 : index
    %35 = vector.load %arg1[%c1, %c0_8, %c0_9] : memref<3x2x16xbf16, #tpu.memory_space<vmem>>, vector<1x2x16xbf16>
    %36 = vector.shape_cast %35 : vector<1x2x16xbf16> to vector<2x16xbf16>
    %cst_10 = arith.constant dense<0.000000e+00> : vector<64x16xf32>
    %37 = tpu.matmul %34, %36, %cst_10 {dimension_numbers = #tpu.dot_dimension_numbers<[1], [0], [0], [1], [0, 0, 1, 1], [], []>} : vector<64x2xbf16>, vector<2x16xbf16>, vector<64x16xf32> -> vector<64x16xf32>
    %38 = arith.truncf %28 : vector<64x2xf32> to vector<64x2xbf16>
    %c0_11 = arith.constant 0 : index
    %c0_12 = arith.constant 0 : index
    %c0_13 = arith.constant 0 : index
    %39 = vector.load %arg1[%c0_11, %c0_12, %c0_13] : memref<3x2x16xbf16, #tpu.memory_space<vmem>>, vector<1x2x16xbf16>
    %40 = vector.shape_cast %39 : vector<1x2x16xbf16> to vector<2x16xbf16>
    %cst_14 = arith.constant dense<0.000000e+00> : vector<64x16xf32>
    %41 = tpu.matmul %38, %40, %cst_14 {dimension_numbers = #tpu.dot_dimension_numbers<[1], [0], [0], [1], [0, 0, 1, 1], [], []>} : vector<64x2xbf16>, vector<2x16xbf16>, vector<64x16xf32> -> vector<64x16xf32>
    %42 = arith.addf %37, %41 : vector<64x16xf32>
    %43 = arith.truncf %33 : vector<64x2xf32> to vector<64x2xbf16>
    %c2 = arith.constant 2 : index
    %c0_15 = arith.constant 0 : index
    %c0_16 = arith.constant 0 : index
    %44 = vector.load %arg1[%c2, %c0_15, %c0_16] : memref<3x2x16xbf16, #tpu.memory_space<vmem>>, vector<1x2x16xbf16>
    %45 = vector.shape_cast %44 : vector<1x2x16xbf16> to vector<2x16xbf16>
    %cst_17 = arith.constant dense<0.000000e+00> : vector<64x16xf32>
    %46 = tpu.matmul %43, %45, %cst_17 {dimension_numbers = #tpu.dot_dimension_numbers<[1], [0], [0], [1], [0, 0, 1, 1], [], []>} : vector<64x2xbf16>, vector<2x16xbf16>, vector<64x16xf32> -> vector<64x16xf32>
    %47 = arith.addf %42, %46 : vector<64x16xf32>
    %c0_18 = arith.constant 0 : index
    %c0_19 = arith.constant 0 : index
    %48 = vector.load %arg2[%c0_18, %c0_19] : memref<1x16xf32, #tpu.memory_space<vmem>>, vector<1x16xf32>
    %c0_20 = arith.constant 0 : index
    %c0_21 = arith.constant 0 : index
    %49 = vector.load %arg3[%c0_20, %c0_21] : memref<1x16xf32, #tpu.memory_space<vmem>>, vector<1x16xf32>
    %cst_22 = arith.constant dense<0.000000e+00> : vector<8x16xf32>
    %50 = tpu.matmul %21, %47, %cst_22 {dimension_numbers = #tpu.dot_dimension_numbers<[1], [0], [0], [1], [0, 0, 1, 1], [], []>} : vector<8x64xf32>, vector<64x16xf32>, vector<8x16xf32> -> vector<8x16xf32>
    %51 = vector.extract_strided_slice %50 {offsets = [0, 0], sizes = [1, 16], strides = [1, 1]} : vector<8x16xf32> to vector<1x16xf32>
    %cst_23 = arith.constant 1.562500e-02 : f32
    %52 = vector.broadcast %cst_23 : f32 to vector<1x16xf32>
    %53 = arith.mulf %51, %52 : vector<1x16xf32>
    %54 = vector.broadcast %53 : vector<1x16xf32> to vector<64x16xf32>
    %55 = arith.subf %47, %54 : vector<64x16xf32>
    %56 = arith.mulf %55, %55 : vector<64x16xf32>
    %cst_24 = arith.constant dense<0.000000e+00> : vector<8x16xf32>
    %57 = tpu.matmul %21, %56, %cst_24 {dimension_numbers = #tpu.dot_dimension_numbers<[1], [0], [0], [1], [0, 0, 1, 1], [], []>} : vector<8x64xf32>, vector<64x16xf32>, vector<8x16xf32> -> vector<8x16xf32>
    %58 = vector.extract_strided_slice %57 {offsets = [0, 0], sizes = [1, 16], strides = [1, 1]} : vector<8x16xf32> to vector<1x16xf32>
    %cst_25 = arith.constant 1.562500e-02 : f32
    %59 = vector.broadcast %cst_25 : f32 to vector<1x16xf32>
    %60 = arith.mulf %58, %59 : vector<1x16xf32>
    %cst_26 = arith.constant 0.000000e+00 : f32
    %61 = vector.broadcast %cst_26 : f32 to vector<1x16xf32>
    %62 = arith.maximumf %60, %61 : vector<1x16xf32>
    %cst_27 = arith.constant 9.99999974E-6 : f32
    %63 = vector.broadcast %cst_27 : f32 to vector<1x16xf32>
    %64 = arith.addf %62, %63 : vector<1x16xf32>
    %65 = math.rsqrt %64 : vector<1x16xf32>
    %66 = vector.broadcast %65 : vector<1x16xf32> to vector<64x16xf32>
    %67 = arith.mulf %55, %66 : vector<64x16xf32>
    %68 = vector.broadcast %48 : vector<1x16xf32> to vector<64x16xf32>
    %69 = arith.mulf %67, %68 : vector<64x16xf32>
    %70 = vector.broadcast %49 : vector<1x16xf32> to vector<64x16xf32>
    %71 = arith.addf %69, %70 : vector<64x16xf32>
    %cst_28 = arith.constant 0.000000e+00 : f32
    %72 = vector.broadcast %cst_28 : f32 to vector<64x16xf32>
    %73 = arith.maximumf %71, %72 : vector<64x16xf32>
    %c1_i32_29 = arith.constant 1 : i32
    %74 = tpu.dynamic_rotate %73 by %c1_i32_29 dim 0 : vector<64x16xf32>, i32 -> vector<64x16xf32>
    %cst_30 = arith.constant 0.000000e+00 : f32
    %75 = vector.shape_cast %18 : vector<64x1xi1> to vector<64x1xi1>
    %76 = vector.broadcast %75 : vector<64x1xi1> to vector<64x16xi1>
    %77 = vector.broadcast %cst_30 : f32 to vector<64x16xf32>
    %78 = arith.select %76, %77, %74 : vector<64x16xi1>, vector<64x16xf32>
    %c63_i32_31 = arith.constant 63 : i32
    %79 = tpu.dynamic_rotate %73 by %c63_i32_31 dim 0 : vector<64x16xf32>, i32 -> vector<64x16xf32>
    %cst_32 = arith.constant 0.000000e+00 : f32
    %80 = vector.shape_cast %20 : vector<64x1xi1> to vector<64x1xi1>
    %81 = vector.broadcast %80 : vector<64x1xi1> to vector<64x16xi1>
    %82 = vector.broadcast %cst_32 : f32 to vector<64x16xf32>
    %83 = arith.select %81, %82, %79 : vector<64x16xi1>, vector<64x16xf32>
    %84 = arith.truncf %73 : vector<64x16xf32> to vector<64x16xbf16>
    %c1_33 = arith.constant 1 : index
    %c0_34 = arith.constant 0 : index
    %c0_35 = arith.constant 0 : index
    %85 = vector.load %arg4[%c1_33, %c0_34, %c0_35] : memref<3x16x16xbf16, #tpu.memory_space<vmem>>, vector<1x16x16xbf16>
    %86 = vector.shape_cast %85 : vector<1x16x16xbf16> to vector<16x16xbf16>
    %cst_36 = arith.constant dense<0.000000e+00> : vector<64x16xf32>
    %87 = tpu.matmul %84, %86, %cst_36 {dimension_numbers = #tpu.dot_dimension_numbers<[1], [0], [0], [1], [0, 0, 1, 1], [], []>} : vector<64x16xbf16>, vector<16x16xbf16>, vector<64x16xf32> -> vector<64x16xf32>
    %88 = arith.truncf %78 : vector<64x16xf32> to vector<64x16xbf16>
    %c0_37 = arith.constant 0 : index
    %c0_38 = arith.constant 0 : index
    %c0_39 = arith.constant 0 : index
    %89 = vector.load %arg4[%c0_37, %c0_38, %c0_39] : memref<3x16x16xbf16, #tpu.memory_space<vmem>>, vector<1x16x16xbf16>
    %90 = vector.shape_cast %89 : vector<1x16x16xbf16> to vector<16x16xbf16>
    %cst_40 = arith.constant dense<0.000000e+00> : vector<64x16xf32>
    %91 = tpu.matmul %88, %90, %cst_40 {dimension_numbers = #tpu.dot_dimension_numbers<[1], [0], [0], [1], [0, 0, 1, 1], [], []>} : vector<64x16xbf16>, vector<16x16xbf16>, vector<64x16xf32> -> vector<64x16xf32>
    %92 = arith.addf %87, %91 : vector<64x16xf32>
    %93 = arith.truncf %83 : vector<64x16xf32> to vector<64x16xbf16>
    %c2_41 = arith.constant 2 : index
    %c0_42 = arith.constant 0 : index
    %c0_43 = arith.constant 0 : index
    %94 = vector.load %arg4[%c2_41, %c0_42, %c0_43] : memref<3x16x16xbf16, #tpu.memory_space<vmem>>, vector<1x16x16xbf16>
    %95 = vector.shape_cast %94 : vector<1x16x16xbf16> to vector<16x16xbf16>
    %cst_44 = arith.constant dense<0.000000e+00> : vector<64x16xf32>
    %96 = tpu.matmul %93, %95, %cst_44 {dimension_numbers = #tpu.dot_dimension_numbers<[1], [0], [0], [1], [0, 0, 1, 1], [], []>} : vector<64x16xbf16>, vector<16x16xbf16>, vector<64x16xf32> -> vector<64x16xf32>
    %97 = arith.addf %92, %96 : vector<64x16xf32>
    %c0_45 = arith.constant 0 : index
    %c0_46 = arith.constant 0 : index
    %98 = vector.load %arg5[%c0_45, %c0_46] : memref<1x16xf32, #tpu.memory_space<vmem>>, vector<1x16xf32>
    %c0_47 = arith.constant 0 : index
    %c0_48 = arith.constant 0 : index
    %99 = vector.load %arg6[%c0_47, %c0_48] : memref<1x16xf32, #tpu.memory_space<vmem>>, vector<1x16xf32>
    %cst_49 = arith.constant dense<0.000000e+00> : vector<8x16xf32>
    %100 = tpu.matmul %21, %97, %cst_49 {dimension_numbers = #tpu.dot_dimension_numbers<[1], [0], [0], [1], [0, 0, 1, 1], [], []>} : vector<8x64xf32>, vector<64x16xf32>, vector<8x16xf32> -> vector<8x16xf32>
    %101 = vector.extract_strided_slice %100 {offsets = [0, 0], sizes = [1, 16], strides = [1, 1]} : vector<8x16xf32> to vector<1x16xf32>
    %cst_50 = arith.constant 1.562500e-02 : f32
    %102 = vector.broadcast %cst_50 : f32 to vector<1x16xf32>
    %103 = arith.mulf %101, %102 : vector<1x16xf32>
    %104 = vector.broadcast %103 : vector<1x16xf32> to vector<64x16xf32>
    %105 = arith.subf %97, %104 : vector<64x16xf32>
    %106 = arith.mulf %105, %105 : vector<64x16xf32>
    %cst_51 = arith.constant dense<0.000000e+00> : vector<8x16xf32>
    %107 = tpu.matmul %21, %106, %cst_51 {dimension_numbers = #tpu.dot_dimension_numbers<[1], [0], [0], [1], [0, 0, 1, 1], [], []>} : vector<8x64xf32>, vector<64x16xf32>, vector<8x16xf32> -> vector<8x16xf32>
    %108 = vector.extract_strided_slice %107 {offsets = [0, 0], sizes = [1, 16], strides = [1, 1]} : vector<8x16xf32> to vector<1x16xf32>
    %cst_52 = arith.constant 1.562500e-02 : f32
    %109 = vector.broadcast %cst_52 : f32 to vector<1x16xf32>
    %110 = arith.mulf %108, %109 : vector<1x16xf32>
    %cst_53 = arith.constant 0.000000e+00 : f32
    %111 = vector.broadcast %cst_53 : f32 to vector<1x16xf32>
    %112 = arith.maximumf %110, %111 : vector<1x16xf32>
    %cst_54 = arith.constant 9.99999974E-6 : f32
    %113 = vector.broadcast %cst_54 : f32 to vector<1x16xf32>
    %114 = arith.addf %112, %113 : vector<1x16xf32>
    %115 = math.rsqrt %114 : vector<1x16xf32>
    %116 = vector.broadcast %115 : vector<1x16xf32> to vector<64x16xf32>
    %117 = arith.mulf %105, %116 : vector<64x16xf32>
    %118 = vector.broadcast %98 : vector<1x16xf32> to vector<64x16xf32>
    %119 = arith.mulf %117, %118 : vector<64x16xf32>
    %120 = vector.broadcast %99 : vector<1x16xf32> to vector<64x16xf32>
    %121 = arith.addf %119, %120 : vector<64x16xf32>
    %cst_55 = arith.constant 0.000000e+00 : f32
    %122 = vector.broadcast %cst_55 : f32 to vector<64x16xf32>
    %123 = arith.maximumf %121, %122 : vector<64x16xf32>
    %124 = arith.truncf %123 : vector<64x16xf32> to vector<64x16xbf16>
    %c0_56 = arith.constant 0 : index
    %c0_57 = arith.constant 0 : index
    %125 = vector.load %arg7[%c0_56, %c0_57] : memref<64x16xbf16, #tpu.memory_space<vmem>>, vector<64x16xbf16>
    tpu.vector_store %arg7[%c0_56, %c0_57], %124 {strides = array<i32>} : memref<64x16xbf16, #tpu.memory_space<vmem>>, vector<64x16xbf16>,
    return
  }
}

module attributes {stable_mosaic.version = 11 : i64} {
  func.func @_unet_block_kernel(%arg0: memref<32x16xbf16, #tpu.memory_space<vmem>>, %arg1: memref<3x16x32xbf16, #tpu.memory_space<vmem>>, %arg2: memref<1x32xf32, #tpu.memory_space<vmem>>, %arg3: memref<1x32xf32, #tpu.memory_space<vmem>>, %arg4: memref<3x32x32xbf16, #tpu.memory_space<vmem>>, %arg5: memref<1x32xf32, #tpu.memory_space<vmem>>, %arg6: memref<1x32xf32, #tpu.memory_space<vmem>>, %arg7: memref<32x32xbf16, #tpu.memory_space<vmem>>) attributes {dimension_semantics = [], scalar_prefetch = 0 : i64, scratch_operands = 0 : i64, tpu.core_type = #tpu.core_type<tc>} {
    %0 = tpu.iota {dimensions = array<i32: 0>} : vector<32x1xi32>
    %c16_i32 = arith.constant 16 : i32
    %c0_i32 = arith.constant 0 : i32
    %1 = arith.cmpi eq, %c16_i32, %c0_i32 : i32
    %c1_i32 = arith.constant 1 : i32
    %2 = arith.select %1, %c1_i32, %c16_i32 : i32
    %3 = vector.broadcast %2 : i32 to vector<32x1xi32>
    %4 = arith.remsi %0, %3 : vector<32x1xi32>
    %c0_i32_0 = arith.constant 0 : i32
    %5 = vector.broadcast %c0_i32_0 : i32 to vector<32x1xi32>
    %6 = arith.cmpi ne, %4, %5 : vector<32x1xi32>
    %c0_i32_1 = arith.constant 0 : i32
    %7 = vector.broadcast %c0_i32_1 : i32 to vector<32x1xi32>
    %8 = arith.cmpi slt, %4, %7 : vector<32x1xi32>
    %c0_i32_2 = arith.constant 0 : i32
    %9 = arith.cmpi slt, %2, %c0_i32_2 : i32
    %10 = vector.broadcast %9 : i1 to vector<32x1xi1>
    %11 = vector.broadcast %10 : vector<32x1xi1> to vector<32x1xi1>
    %12 = arith.xori %8, %11 : vector<32x1xi1>
    %13 = arith.andi %12, %6 : vector<32x1xi1>
    %14 = vector.broadcast %2 : i32 to vector<32x1xi32>
    %15 = arith.addi %4, %14 : vector<32x1xi32>
    %16 = arith.select %13, %15, %4 : vector<32x1xi1>, vector<32x1xi32>
    %c0_i32_3 = arith.constant 0 : i32
    %17 = vector.broadcast %c0_i32_3 : i32 to vector<32x1xi32>
    %18 = arith.cmpi eq, %16, %17 : vector<32x1xi32>
    %c15_i32 = arith.constant 15 : i32
    %19 = vector.broadcast %c15_i32 : i32 to vector<32x1xi32>
    %20 = arith.cmpi eq, %16, %19 : vector<32x1xi32>
    %cst = arith.constant 1.000000e+00 : f32
    %21 = vector.broadcast %cst : f32 to vector<8x32xf32>
    %c0 = arith.constant 0 : index
    %c0_4 = arith.constant 0 : index
    %22 = vector.load %arg0[%c0, %c0_4] : memref<32x16xbf16, #tpu.memory_space<vmem>>, vector<32x16xbf16>
    %23 = arith.extf %22 : vector<32x16xbf16> to vector<32x16xf32>
    %c1_i32_5 = arith.constant 1 : i32
    %24 = tpu.dynamic_rotate %23 by %c1_i32_5 dim 0 : vector<32x16xf32>, i32 -> vector<32x16xf32>
    %cst_6 = arith.constant 0.000000e+00 : f32
    %25 = vector.shape_cast %18 : vector<32x1xi1> to vector<32x1xi1>
    %26 = vector.broadcast %25 : vector<32x1xi1> to vector<32x16xi1>
    %27 = vector.broadcast %cst_6 : f32 to vector<32x16xf32>
    %28 = arith.select %26, %27, %24 : vector<32x16xi1>, vector<32x16xf32>
    %c31_i32 = arith.constant 31 : i32
    %29 = tpu.dynamic_rotate %23 by %c31_i32 dim 0 : vector<32x16xf32>, i32 -> vector<32x16xf32>
    %cst_7 = arith.constant 0.000000e+00 : f32
    %30 = vector.shape_cast %20 : vector<32x1xi1> to vector<32x1xi1>
    %31 = vector.broadcast %30 : vector<32x1xi1> to vector<32x16xi1>
    %32 = vector.broadcast %cst_7 : f32 to vector<32x16xf32>
    %33 = arith.select %31, %32, %29 : vector<32x16xi1>, vector<32x16xf32>
    %34 = arith.truncf %23 : vector<32x16xf32> to vector<32x16xbf16>
    %c1 = arith.constant 1 : index
    %c0_8 = arith.constant 0 : index
    %c0_9 = arith.constant 0 : index
    %35 = vector.load %arg1[%c1, %c0_8, %c0_9] : memref<3x16x32xbf16, #tpu.memory_space<vmem>>, vector<1x16x32xbf16>
    %36 = vector.shape_cast %35 : vector<1x16x32xbf16> to vector<16x32xbf16>
    %cst_10 = arith.constant dense<0.000000e+00> : vector<32x32xf32>
    %37 = tpu.matmul %34, %36, %cst_10 {dimension_numbers = #tpu.dot_dimension_numbers<[1], [0], [0], [1], [0, 0, 1, 1], [], []>} : vector<32x16xbf16>, vector<16x32xbf16>, vector<32x32xf32> -> vector<32x32xf32>
    %38 = arith.truncf %28 : vector<32x16xf32> to vector<32x16xbf16>
    %c0_11 = arith.constant 0 : index
    %c0_12 = arith.constant 0 : index
    %c0_13 = arith.constant 0 : index
    %39 = vector.load %arg1[%c0_11, %c0_12, %c0_13] : memref<3x16x32xbf16, #tpu.memory_space<vmem>>, vector<1x16x32xbf16>
    %40 = vector.shape_cast %39 : vector<1x16x32xbf16> to vector<16x32xbf16>
    %cst_14 = arith.constant dense<0.000000e+00> : vector<32x32xf32>
    %41 = tpu.matmul %38, %40, %cst_14 {dimension_numbers = #tpu.dot_dimension_numbers<[1], [0], [0], [1], [0, 0, 1, 1], [], []>} : vector<32x16xbf16>, vector<16x32xbf16>, vector<32x32xf32> -> vector<32x32xf32>
    %42 = arith.addf %37, %41 : vector<32x32xf32>
    %43 = arith.truncf %33 : vector<32x16xf32> to vector<32x16xbf16>
    %c2 = arith.constant 2 : index
    %c0_15 = arith.constant 0 : index
    %c0_16 = arith.constant 0 : index
    %44 = vector.load %arg1[%c2, %c0_15, %c0_16] : memref<3x16x32xbf16, #tpu.memory_space<vmem>>, vector<1x16x32xbf16>
    %45 = vector.shape_cast %44 : vector<1x16x32xbf16> to vector<16x32xbf16>
    %cst_17 = arith.constant dense<0.000000e+00> : vector<32x32xf32>
    %46 = tpu.matmul %43, %45, %cst_17 {dimension_numbers = #tpu.dot_dimension_numbers<[1], [0], [0], [1], [0, 0, 1, 1], [], []>} : vector<32x16xbf16>, vector<16x32xbf16>, vector<32x32xf32> -> vector<32x32xf32>
    %47 = arith.addf %42, %46 : vector<32x32xf32>
    %c0_18 = arith.constant 0 : index
    %c0_19 = arith.constant 0 : index
    %48 = vector.load %arg2[%c0_18, %c0_19] : memref<1x32xf32, #tpu.memory_space<vmem>>, vector<1x32xf32>
    %c0_20 = arith.constant 0 : index
    %c0_21 = arith.constant 0 : index
    %49 = vector.load %arg3[%c0_20, %c0_21] : memref<1x32xf32, #tpu.memory_space<vmem>>, vector<1x32xf32>
    %cst_22 = arith.constant dense<0.000000e+00> : vector<8x32xf32>
    %50 = tpu.matmul %21, %47, %cst_22 {dimension_numbers = #tpu.dot_dimension_numbers<[1], [0], [0], [1], [0, 0, 1, 1], [], []>} : vector<8x32xf32>, vector<32x32xf32>, vector<8x32xf32> -> vector<8x32xf32>
    %51 = vector.extract_strided_slice %50 {offsets = [0, 0], sizes = [1, 32], strides = [1, 1]} : vector<8x32xf32> to vector<1x32xf32>
    %cst_23 = arith.constant 3.125000e-02 : f32
    %52 = vector.broadcast %cst_23 : f32 to vector<1x32xf32>
    %53 = arith.mulf %51, %52 : vector<1x32xf32>
    %54 = vector.broadcast %53 : vector<1x32xf32> to vector<32x32xf32>
    %55 = arith.subf %47, %54 : vector<32x32xf32>
    %56 = arith.mulf %55, %55 : vector<32x32xf32>
    %cst_24 = arith.constant dense<0.000000e+00> : vector<8x32xf32>
    %57 = tpu.matmul %21, %56, %cst_24 {dimension_numbers = #tpu.dot_dimension_numbers<[1], [0], [0], [1], [0, 0, 1, 1], [], []>} : vector<8x32xf32>, vector<32x32xf32>, vector<8x32xf32> -> vector<8x32xf32>
    %58 = vector.extract_strided_slice %57 {offsets = [0, 0], sizes = [1, 32], strides = [1, 1]} : vector<8x32xf32> to vector<1x32xf32>
    %cst_25 = arith.constant 3.125000e-02 : f32
    %59 = vector.broadcast %cst_25 : f32 to vector<1x32xf32>
    %60 = arith.mulf %58, %59 : vector<1x32xf32>
    %cst_26 = arith.constant 0.000000e+00 : f32
    %61 = vector.broadcast %cst_26 : f32 to vector<1x32xf32>
    %62 = arith.maximumf %60, %61 : vector<1x32xf32>
    %cst_27 = arith.constant 9.99999974E-6 : f32
    %63 = vector.broadcast %cst_27 : f32 to vector<1x32xf32>
    %64 = arith.addf %62, %63 : vector<1x32xf32>
    %65 = math.rsqrt %64 : vector<1x32xf32>
    %66 = vector.broadcast %65 : vector<1x32xf32> to vector<32x32xf32>
    %67 = arith.mulf %55, %66 : vector<32x32xf32>
    %68 = vector.broadcast %48 : vector<1x32xf32> to vector<32x32xf32>
    %69 = arith.mulf %67, %68 : vector<32x32xf32>
    %70 = vector.broadcast %49 : vector<1x32xf32> to vector<32x32xf32>
    %71 = arith.addf %69, %70 : vector<32x32xf32>
    %cst_28 = arith.constant 0.000000e+00 : f32
    %72 = vector.broadcast %cst_28 : f32 to vector<32x32xf32>
    %73 = arith.maximumf %71, %72 : vector<32x32xf32>
    %c1_i32_29 = arith.constant 1 : i32
    %74 = tpu.dynamic_rotate %73 by %c1_i32_29 dim 0 : vector<32x32xf32>, i32 -> vector<32x32xf32>
    %cst_30 = arith.constant 0.000000e+00 : f32
    %75 = vector.shape_cast %18 : vector<32x1xi1> to vector<32x1xi1>
    %76 = vector.broadcast %75 : vector<32x1xi1> to vector<32x32xi1>
    %77 = vector.broadcast %cst_30 : f32 to vector<32x32xf32>
    %78 = arith.select %76, %77, %74 : vector<32x32xi1>, vector<32x32xf32>
    %c31_i32_31 = arith.constant 31 : i32
    %79 = tpu.dynamic_rotate %73 by %c31_i32_31 dim 0 : vector<32x32xf32>, i32 -> vector<32x32xf32>
    %cst_32 = arith.constant 0.000000e+00 : f32
    %80 = vector.shape_cast %20 : vector<32x1xi1> to vector<32x1xi1>
    %81 = vector.broadcast %80 : vector<32x1xi1> to vector<32x32xi1>
    %82 = vector.broadcast %cst_32 : f32 to vector<32x32xf32>
    %83 = arith.select %81, %82, %79 : vector<32x32xi1>, vector<32x32xf32>
    %84 = arith.truncf %73 : vector<32x32xf32> to vector<32x32xbf16>
    %c1_33 = arith.constant 1 : index
    %c0_34 = arith.constant 0 : index
    %c0_35 = arith.constant 0 : index
    %85 = vector.load %arg4[%c1_33, %c0_34, %c0_35] : memref<3x32x32xbf16, #tpu.memory_space<vmem>>, vector<1x32x32xbf16>
    %86 = vector.shape_cast %85 : vector<1x32x32xbf16> to vector<32x32xbf16>
    %cst_36 = arith.constant dense<0.000000e+00> : vector<32x32xf32>
    %87 = tpu.matmul %84, %86, %cst_36 {dimension_numbers = #tpu.dot_dimension_numbers<[1], [0], [0], [1], [0, 0, 1, 1], [], []>} : vector<32x32xbf16>, vector<32x32xbf16>, vector<32x32xf32> -> vector<32x32xf32>
    %88 = arith.truncf %78 : vector<32x32xf32> to vector<32x32xbf16>
    %c0_37 = arith.constant 0 : index
    %c0_38 = arith.constant 0 : index
    %c0_39 = arith.constant 0 : index
    %89 = vector.load %arg4[%c0_37, %c0_38, %c0_39] : memref<3x32x32xbf16, #tpu.memory_space<vmem>>, vector<1x32x32xbf16>
    %90 = vector.shape_cast %89 : vector<1x32x32xbf16> to vector<32x32xbf16>
    %cst_40 = arith.constant dense<0.000000e+00> : vector<32x32xf32>
    %91 = tpu.matmul %88, %90, %cst_40 {dimension_numbers = #tpu.dot_dimension_numbers<[1], [0], [0], [1], [0, 0, 1, 1], [], []>} : vector<32x32xbf16>, vector<32x32xbf16>, vector<32x32xf32> -> vector<32x32xf32>
    %92 = arith.addf %87, %91 : vector<32x32xf32>
    %93 = arith.truncf %83 : vector<32x32xf32> to vector<32x32xbf16>
    %c2_41 = arith.constant 2 : index
    %c0_42 = arith.constant 0 : index
    %c0_43 = arith.constant 0 : index
    %94 = vector.load %arg4[%c2_41, %c0_42, %c0_43] : memref<3x32x32xbf16, #tpu.memory_space<vmem>>, vector<1x32x32xbf16>
    %95 = vector.shape_cast %94 : vector<1x32x32xbf16> to vector<32x32xbf16>
    %cst_44 = arith.constant dense<0.000000e+00> : vector<32x32xf32>
    %96 = tpu.matmul %93, %95, %cst_44 {dimension_numbers = #tpu.dot_dimension_numbers<[1], [0], [0], [1], [0, 0, 1, 1], [], []>} : vector<32x32xbf16>, vector<32x32xbf16>, vector<32x32xf32> -> vector<32x32xf32>
    %97 = arith.addf %92, %96 : vector<32x32xf32>
    %c0_45 = arith.constant 0 : index
    %c0_46 = arith.constant 0 : index
    %98 = vector.load %arg5[%c0_45, %c0_46] : memref<1x32xf32, #tpu.memory_space<vmem>>, vector<1x32xf32>
    %c0_47 = arith.constant 0 : index
    %c0_48 = arith.constant 0 : index
    %99 = vector.load %arg6[%c0_47, %c0_48] : memref<1x32xf32, #tpu.memory_space<vmem>>, vector<1x32xf32>
    %cst_49 = arith.constant dense<0.000000e+00> : vector<8x32xf32>
    %100 = tpu.matmul %21, %97, %cst_49 {dimension_numbers = #tpu.dot_dimension_numbers<[1], [0], [0], [1], [0, 0, 1, 1], [], []>} : vector<8x32xf32>, vector<32x32xf32>, vector<8x32xf32> -> vector<8x32xf32>
    %101 = vector.extract_strided_slice %100 {offsets = [0, 0], sizes = [1, 32], strides = [1, 1]} : vector<8x32xf32> to vector<1x32xf32>
    %cst_50 = arith.constant 3.125000e-02 : f32
    %102 = vector.broadcast %cst_50 : f32 to vector<1x32xf32>
    %103 = arith.mulf %101, %102 : vector<1x32xf32>
    %104 = vector.broadcast %103 : vector<1x32xf32> to vector<32x32xf32>
    %105 = arith.subf %97, %104 : vector<32x32xf32>
    %106 = arith.mulf %105, %105 : vector<32x32xf32>
    %cst_51 = arith.constant dense<0.000000e+00> : vector<8x32xf32>
    %107 = tpu.matmul %21, %106, %cst_51 {dimension_numbers = #tpu.dot_dimension_numbers<[1], [0], [0], [1], [0, 0, 1, 1], [], []>} : vector<8x32xf32>, vector<32x32xf32>, vector<8x32xf32> -> vector<8x32xf32>
    %108 = vector.extract_strided_slice %107 {offsets = [0, 0], sizes = [1, 32], strides = [1, 1]} : vector<8x32xf32> to vector<1x32xf32>
    %cst_52 = arith.constant 3.125000e-02 : f32
    %109 = vector.broadcast %cst_52 : f32 to vector<1x32xf32>
    %110 = arith.mulf %108, %109 : vector<1x32xf32>
    %cst_53 = arith.constant 0.000000e+00 : f32
    %111 = vector.broadcast %cst_53 : f32 to vector<1x32xf32>
    %112 = arith.maximumf %110, %111 : vector<1x32xf32>
    %cst_54 = arith.constant 9.99999974E-6 : f32
    %113 = vector.broadcast %cst_54 : f32 to vector<1x32xf32>
    %114 = arith.addf %112, %113 : vector<1x32xf32>
    %115 = math.rsqrt %114 : vector<1x32xf32>
    %116 = vector.broadcast %115 : vector<1x32xf32> to vector<32x32xf32>
    %117 = arith.mulf %105, %116 : vector<32x32xf32>
    %118 = vector.broadcast %98 : vector<1x32xf32> to vector<32x32xf32>
    %119 = arith.mulf %117, %118 : vector<32x32xf32>
    %120 = vector.broadcast %99 : vector<1x32xf32> to vector<32x32xf32>
    %121 = arith.addf %119, %120 : vector<32x32xf32>
    %cst_55 = arith.constant 0.000000e+00 : f32
    %122 = vector.broadcast %cst_55 : f32 to vector<32x32xf32>
    %123 = arith.maximumf %121, %122 : vector<32x32xf32>
    %124 = arith.truncf %123 : vector<32x32xf32> to vector<32x32xbf16>
    %c0_56 = arith.constant 0 : index
    %c0_57 = arith.constant 0 : index
    %125 = vector.load %arg7[%c0_56, %c0_57] : memref<32x32xbf16, #tpu.memory_space<vmem>>, vector<32x32xbf16>
    tpu.vector_store %arg7[%c0_56, %c0_57], %124 {strides = array<i32>} : memref<32x32xbf16, #tpu.memory_space<vmem>>, vector<32x32xbf16>,
    return
  }
}

module attributes {stable_mosaic.version = 11 : i64} {
  func.func @_unet_block_kernel(%arg0: memref<8x64xbf16, #tpu.memory_space<vmem>>, %arg1: memref<3x64x128xbf16, #tpu.memory_space<vmem>>, %arg2: memref<1x128xf32, #tpu.memory_space<vmem>>, %arg3: memref<1x128xf32, #tpu.memory_space<vmem>>, %arg4: memref<3x128x128xbf16, #tpu.memory_space<vmem>>, %arg5: memref<1x128xf32, #tpu.memory_space<vmem>>, %arg6: memref<1x128xf32, #tpu.memory_space<vmem>>, %arg7: memref<8x128xbf16, #tpu.memory_space<vmem>>) attributes {dimension_semantics = [], scalar_prefetch = 0 : i64, scratch_operands = 0 : i64, tpu.core_type = #tpu.core_type<tc>} {
    %0 = tpu.iota {dimensions = array<i32: 0>} : vector<8x1xi32>
    %c4_i32 = arith.constant 4 : i32
    %c0_i32 = arith.constant 0 : i32
    %1 = arith.cmpi eq, %c4_i32, %c0_i32 : i32
    %c1_i32 = arith.constant 1 : i32
    %2 = arith.select %1, %c1_i32, %c4_i32 : i32
    %3 = vector.broadcast %2 : i32 to vector<8x1xi32>
    %4 = arith.remsi %0, %3 : vector<8x1xi32>
    %c0_i32_0 = arith.constant 0 : i32
    %5 = vector.broadcast %c0_i32_0 : i32 to vector<8x1xi32>
    %6 = arith.cmpi ne, %4, %5 : vector<8x1xi32>
    %c0_i32_1 = arith.constant 0 : i32
    %7 = vector.broadcast %c0_i32_1 : i32 to vector<8x1xi32>
    %8 = arith.cmpi slt, %4, %7 : vector<8x1xi32>
    %c0_i32_2 = arith.constant 0 : i32
    %9 = arith.cmpi slt, %2, %c0_i32_2 : i32
    %10 = vector.broadcast %9 : i1 to vector<8x1xi1>
    %11 = vector.broadcast %10 : vector<8x1xi1> to vector<8x1xi1>
    %12 = arith.xori %8, %11 : vector<8x1xi1>
    %13 = arith.andi %12, %6 : vector<8x1xi1>
    %14 = vector.broadcast %2 : i32 to vector<8x1xi32>
    %15 = arith.addi %4, %14 : vector<8x1xi32>
    %16 = arith.select %13, %15, %4 : vector<8x1xi1>, vector<8x1xi32>
    %c0_i32_3 = arith.constant 0 : i32
    %17 = vector.broadcast %c0_i32_3 : i32 to vector<8x1xi32>
    %18 = arith.cmpi eq, %16, %17 : vector<8x1xi32>
    %c3_i32 = arith.constant 3 : i32
    %19 = vector.broadcast %c3_i32 : i32 to vector<8x1xi32>
    %20 = arith.cmpi eq, %16, %19 : vector<8x1xi32>
    %cst = arith.constant 1.000000e+00 : f32
    %21 = vector.broadcast %cst : f32 to vector<8x8xf32>
    %c0 = arith.constant 0 : index
    %c0_4 = arith.constant 0 : index
    %22 = vector.load %arg0[%c0, %c0_4] : memref<8x64xbf16, #tpu.memory_space<vmem>>, vector<8x64xbf16>
    %23 = arith.extf %22 : vector<8x64xbf16> to vector<8x64xf32>
    %c1_i32_5 = arith.constant 1 : i32
    %24 = tpu.dynamic_rotate %23 by %c1_i32_5 dim 0 : vector<8x64xf32>, i32 -> vector<8x64xf32>
    %cst_6 = arith.constant 0.000000e+00 : f32
    %25 = vector.shape_cast %18 : vector<8x1xi1> to vector<8x1xi1>
    %26 = vector.broadcast %25 : vector<8x1xi1> to vector<8x64xi1>
    %27 = vector.broadcast %cst_6 : f32 to vector<8x64xf32>
    %28 = arith.select %26, %27, %24 : vector<8x64xi1>, vector<8x64xf32>
    %c7_i32 = arith.constant 7 : i32
    %29 = tpu.dynamic_rotate %23 by %c7_i32 dim 0 : vector<8x64xf32>, i32 -> vector<8x64xf32>
    %cst_7 = arith.constant 0.000000e+00 : f32
    %30 = vector.shape_cast %20 : vector<8x1xi1> to vector<8x1xi1>
    %31 = vector.broadcast %30 : vector<8x1xi1> to vector<8x64xi1>
    %32 = vector.broadcast %cst_7 : f32 to vector<8x64xf32>
    %33 = arith.select %31, %32, %29 : vector<8x64xi1>, vector<8x64xf32>
    %34 = arith.truncf %23 : vector<8x64xf32> to vector<8x64xbf16>
    %c1 = arith.constant 1 : index
    %c0_8 = arith.constant 0 : index
    %c0_9 = arith.constant 0 : index
    %35 = vector.load %arg1[%c1, %c0_8, %c0_9] : memref<3x64x128xbf16, #tpu.memory_space<vmem>>, vector<1x64x128xbf16>
    %36 = vector.shape_cast %35 : vector<1x64x128xbf16> to vector<64x128xbf16>
    %cst_10 = arith.constant dense<0.000000e+00> : vector<8x128xf32>
    %37 = tpu.matmul %34, %36, %cst_10 {dimension_numbers = #tpu.dot_dimension_numbers<[1], [0], [0], [1], [0, 0, 1, 1], [], []>} : vector<8x64xbf16>, vector<64x128xbf16>, vector<8x128xf32> -> vector<8x128xf32>
    %38 = arith.truncf %28 : vector<8x64xf32> to vector<8x64xbf16>
    %c0_11 = arith.constant 0 : index
    %c0_12 = arith.constant 0 : index
    %c0_13 = arith.constant 0 : index
    %39 = vector.load %arg1[%c0_11, %c0_12, %c0_13] : memref<3x64x128xbf16, #tpu.memory_space<vmem>>, vector<1x64x128xbf16>
    %40 = vector.shape_cast %39 : vector<1x64x128xbf16> to vector<64x128xbf16>
    %cst_14 = arith.constant dense<0.000000e+00> : vector<8x128xf32>
    %41 = tpu.matmul %38, %40, %cst_14 {dimension_numbers = #tpu.dot_dimension_numbers<[1], [0], [0], [1], [0, 0, 1, 1], [], []>} : vector<8x64xbf16>, vector<64x128xbf16>, vector<8x128xf32> -> vector<8x128xf32>
    %42 = arith.addf %37, %41 : vector<8x128xf32>
    %43 = arith.truncf %33 : vector<8x64xf32> to vector<8x64xbf16>
    %c2 = arith.constant 2 : index
    %c0_15 = arith.constant 0 : index
    %c0_16 = arith.constant 0 : index
    %44 = vector.load %arg1[%c2, %c0_15, %c0_16] : memref<3x64x128xbf16, #tpu.memory_space<vmem>>, vector<1x64x128xbf16>
    %45 = vector.shape_cast %44 : vector<1x64x128xbf16> to vector<64x128xbf16>
    %cst_17 = arith.constant dense<0.000000e+00> : vector<8x128xf32>
    %46 = tpu.matmul %43, %45, %cst_17 {dimension_numbers = #tpu.dot_dimension_numbers<[1], [0], [0], [1], [0, 0, 1, 1], [], []>} : vector<8x64xbf16>, vector<64x128xbf16>, vector<8x128xf32> -> vector<8x128xf32>
    %47 = arith.addf %42, %46 : vector<8x128xf32>
    %c0_18 = arith.constant 0 : index
    %c0_19 = arith.constant 0 : index
    %48 = vector.load %arg2[%c0_18, %c0_19] : memref<1x128xf32, #tpu.memory_space<vmem>>, vector<1x128xf32>
    %c0_20 = arith.constant 0 : index
    %c0_21 = arith.constant 0 : index
    %49 = vector.load %arg3[%c0_20, %c0_21] : memref<1x128xf32, #tpu.memory_space<vmem>>, vector<1x128xf32>
    %cst_22 = arith.constant dense<0.000000e+00> : vector<8x128xf32>
    %50 = tpu.matmul %21, %47, %cst_22 {dimension_numbers = #tpu.dot_dimension_numbers<[1], [0], [0], [1], [0, 0, 1, 1], [], []>} : vector<8x8xf32>, vector<8x128xf32>, vector<8x128xf32> -> vector<8x128xf32>
    %51 = vector.extract_strided_slice %50 {offsets = [0, 0], sizes = [1, 128], strides = [1, 1]} : vector<8x128xf32> to vector<1x128xf32>
    %cst_23 = arith.constant 1.250000e-01 : f32
    %52 = vector.broadcast %cst_23 : f32 to vector<1x128xf32>
    %53 = arith.mulf %51, %52 : vector<1x128xf32>
    %54 = vector.broadcast %53 : vector<1x128xf32> to vector<8x128xf32>
    %55 = arith.subf %47, %54 : vector<8x128xf32>
    %56 = arith.mulf %55, %55 : vector<8x128xf32>
    %cst_24 = arith.constant dense<0.000000e+00> : vector<8x128xf32>
    %57 = tpu.matmul %21, %56, %cst_24 {dimension_numbers = #tpu.dot_dimension_numbers<[1], [0], [0], [1], [0, 0, 1, 1], [], []>} : vector<8x8xf32>, vector<8x128xf32>, vector<8x128xf32> -> vector<8x128xf32>
    %58 = vector.extract_strided_slice %57 {offsets = [0, 0], sizes = [1, 128], strides = [1, 1]} : vector<8x128xf32> to vector<1x128xf32>
    %cst_25 = arith.constant 1.250000e-01 : f32
    %59 = vector.broadcast %cst_25 : f32 to vector<1x128xf32>
    %60 = arith.mulf %58, %59 : vector<1x128xf32>
    %cst_26 = arith.constant 0.000000e+00 : f32
    %61 = vector.broadcast %cst_26 : f32 to vector<1x128xf32>
    %62 = arith.maximumf %60, %61 : vector<1x128xf32>
    %cst_27 = arith.constant 9.99999974E-6 : f32
    %63 = vector.broadcast %cst_27 : f32 to vector<1x128xf32>
    %64 = arith.addf %62, %63 : vector<1x128xf32>
    %65 = math.rsqrt %64 : vector<1x128xf32>
    %66 = vector.broadcast %65 : vector<1x128xf32> to vector<8x128xf32>
    %67 = arith.mulf %55, %66 : vector<8x128xf32>
    %68 = vector.broadcast %48 : vector<1x128xf32> to vector<8x128xf32>
    %69 = arith.mulf %67, %68 : vector<8x128xf32>
    %70 = vector.broadcast %49 : vector<1x128xf32> to vector<8x128xf32>
    %71 = arith.addf %69, %70 : vector<8x128xf32>
    %cst_28 = arith.constant 0.000000e+00 : f32
    %72 = vector.broadcast %cst_28 : f32 to vector<8x128xf32>
    %73 = arith.maximumf %71, %72 : vector<8x128xf32>
    %c1_i32_29 = arith.constant 1 : i32
    %74 = tpu.dynamic_rotate %73 by %c1_i32_29 dim 0 : vector<8x128xf32>, i32 -> vector<8x128xf32>
    %cst_30 = arith.constant 0.000000e+00 : f32
    %75 = vector.shape_cast %18 : vector<8x1xi1> to vector<8x1xi1>
    %76 = vector.broadcast %75 : vector<8x1xi1> to vector<8x128xi1>
    %77 = vector.broadcast %cst_30 : f32 to vector<8x128xf32>
    %78 = arith.select %76, %77, %74 : vector<8x128xi1>, vector<8x128xf32>
    %c7_i32_31 = arith.constant 7 : i32
    %79 = tpu.dynamic_rotate %73 by %c7_i32_31 dim 0 : vector<8x128xf32>, i32 -> vector<8x128xf32>
    %cst_32 = arith.constant 0.000000e+00 : f32
    %80 = vector.shape_cast %20 : vector<8x1xi1> to vector<8x1xi1>
    %81 = vector.broadcast %80 : vector<8x1xi1> to vector<8x128xi1>
    %82 = vector.broadcast %cst_32 : f32 to vector<8x128xf32>
    %83 = arith.select %81, %82, %79 : vector<8x128xi1>, vector<8x128xf32>
    %84 = arith.truncf %73 : vector<8x128xf32> to vector<8x128xbf16>
    %c1_33 = arith.constant 1 : index
    %c0_34 = arith.constant 0 : index
    %c0_35 = arith.constant 0 : index
    %85 = vector.load %arg4[%c1_33, %c0_34, %c0_35] : memref<3x128x128xbf16, #tpu.memory_space<vmem>>, vector<1x128x128xbf16>
    %86 = vector.shape_cast %85 : vector<1x128x128xbf16> to vector<128x128xbf16>
    %cst_36 = arith.constant dense<0.000000e+00> : vector<8x128xf32>
    %87 = tpu.matmul %84, %86, %cst_36 {dimension_numbers = #tpu.dot_dimension_numbers<[1], [0], [0], [1], [0, 0, 1, 1], [], []>} : vector<8x128xbf16>, vector<128x128xbf16>, vector<8x128xf32> -> vector<8x128xf32>
    %88 = arith.truncf %78 : vector<8x128xf32> to vector<8x128xbf16>
    %c0_37 = arith.constant 0 : index
    %c0_38 = arith.constant 0 : index
    %c0_39 = arith.constant 0 : index
    %89 = vector.load %arg4[%c0_37, %c0_38, %c0_39] : memref<3x128x128xbf16, #tpu.memory_space<vmem>>, vector<1x128x128xbf16>
    %90 = vector.shape_cast %89 : vector<1x128x128xbf16> to vector<128x128xbf16>
    %cst_40 = arith.constant dense<0.000000e+00> : vector<8x128xf32>
    %91 = tpu.matmul %88, %90, %cst_40 {dimension_numbers = #tpu.dot_dimension_numbers<[1], [0], [0], [1], [0, 0, 1, 1], [], []>} : vector<8x128xbf16>, vector<128x128xbf16>, vector<8x128xf32> -> vector<8x128xf32>
    %92 = arith.addf %87, %91 : vector<8x128xf32>
    %93 = arith.truncf %83 : vector<8x128xf32> to vector<8x128xbf16>
    %c2_41 = arith.constant 2 : index
    %c0_42 = arith.constant 0 : index
    %c0_43 = arith.constant 0 : index
    %94 = vector.load %arg4[%c2_41, %c0_42, %c0_43] : memref<3x128x128xbf16, #tpu.memory_space<vmem>>, vector<1x128x128xbf16>
    %95 = vector.shape_cast %94 : vector<1x128x128xbf16> to vector<128x128xbf16>
    %cst_44 = arith.constant dense<0.000000e+00> : vector<8x128xf32>
    %96 = tpu.matmul %93, %95, %cst_44 {dimension_numbers = #tpu.dot_dimension_numbers<[1], [0], [0], [1], [0, 0, 1, 1], [], []>} : vector<8x128xbf16>, vector<128x128xbf16>, vector<8x128xf32> -> vector<8x128xf32>
    %97 = arith.addf %92, %96 : vector<8x128xf32>
    %c0_45 = arith.constant 0 : index
    %c0_46 = arith.constant 0 : index
    %98 = vector.load %arg5[%c0_45, %c0_46] : memref<1x128xf32, #tpu.memory_space<vmem>>, vector<1x128xf32>
    %c0_47 = arith.constant 0 : index
    %c0_48 = arith.constant 0 : index
    %99 = vector.load %arg6[%c0_47, %c0_48] : memref<1x128xf32, #tpu.memory_space<vmem>>, vector<1x128xf32>
    %cst_49 = arith.constant dense<0.000000e+00> : vector<8x128xf32>
    %100 = tpu.matmul %21, %97, %cst_49 {dimension_numbers = #tpu.dot_dimension_numbers<[1], [0], [0], [1], [0, 0, 1, 1], [], []>} : vector<8x8xf32>, vector<8x128xf32>, vector<8x128xf32> -> vector<8x128xf32>
    %101 = vector.extract_strided_slice %100 {offsets = [0, 0], sizes = [1, 128], strides = [1, 1]} : vector<8x128xf32> to vector<1x128xf32>
    %cst_50 = arith.constant 1.250000e-01 : f32
    %102 = vector.broadcast %cst_50 : f32 to vector<1x128xf32>
    %103 = arith.mulf %101, %102 : vector<1x128xf32>
    %104 = vector.broadcast %103 : vector<1x128xf32> to vector<8x128xf32>
    %105 = arith.subf %97, %104 : vector<8x128xf32>
    %106 = arith.mulf %105, %105 : vector<8x128xf32>
    %cst_51 = arith.constant dense<0.000000e+00> : vector<8x128xf32>
    %107 = tpu.matmul %21, %106, %cst_51 {dimension_numbers = #tpu.dot_dimension_numbers<[1], [0], [0], [1], [0, 0, 1, 1], [], []>} : vector<8x8xf32>, vector<8x128xf32>, vector<8x128xf32> -> vector<8x128xf32>
    %108 = vector.extract_strided_slice %107 {offsets = [0, 0], sizes = [1, 128], strides = [1, 1]} : vector<8x128xf32> to vector<1x128xf32>
    %cst_52 = arith.constant 1.250000e-01 : f32
    %109 = vector.broadcast %cst_52 : f32 to vector<1x128xf32>
    %110 = arith.mulf %108, %109 : vector<1x128xf32>
    %cst_53 = arith.constant 0.000000e+00 : f32
    %111 = vector.broadcast %cst_53 : f32 to vector<1x128xf32>
    %112 = arith.maximumf %110, %111 : vector<1x128xf32>
    %cst_54 = arith.constant 9.99999974E-6 : f32
    %113 = vector.broadcast %cst_54 : f32 to vector<1x128xf32>
    %114 = arith.addf %112, %113 : vector<1x128xf32>
    %115 = math.rsqrt %114 : vector<1x128xf32>
    %116 = vector.broadcast %115 : vector<1x128xf32> to vector<8x128xf32>
    %117 = arith.mulf %105, %116 : vector<8x128xf32>
    %118 = vector.broadcast %98 : vector<1x128xf32> to vector<8x128xf32>
    %119 = arith.mulf %117, %118 : vector<8x128xf32>
    %120 = vector.broadcast %99 : vector<1x128xf32> to vector<8x128xf32>
    %121 = arith.addf %119, %120 : vector<8x128xf32>
    %cst_55 = arith.constant 0.000000e+00 : f32
    %122 = vector.broadcast %cst_55 : f32 to vector<8x128xf32>
    %123 = arith.maximumf %121, %122 : vector<8x128xf32>
    %124 = arith.truncf %123 : vector<8x128xf32> to vector<8x128xbf16>
    %c0_56 = arith.constant 0 : index
    %c0_57 = arith.constant 0 : index
    %125 = vector.load %arg7[%c0_56, %c0_57] : memref<8x128xbf16, #tpu.memory_space<vmem>>, vector<8x128xbf16>
    tpu.vector_store %arg7[%c0_56, %c0_57], %124 {strides = array<i32>} : memref<8x128xbf16, #tpu.memory_space<vmem>>, vector<8x128xbf16>,
    return
  }
}

module attributes {stable_mosaic.version = 11 : i64} {
  func.func @_unet_block_kernel(%arg0: memref<16x32xbf16, #tpu.memory_space<vmem>>, %arg1: memref<3x32x64xbf16, #tpu.memory_space<vmem>>, %arg2: memref<1x64xf32, #tpu.memory_space<vmem>>, %arg3: memref<1x64xf32, #tpu.memory_space<vmem>>, %arg4: memref<3x64x64xbf16, #tpu.memory_space<vmem>>, %arg5: memref<1x64xf32, #tpu.memory_space<vmem>>, %arg6: memref<1x64xf32, #tpu.memory_space<vmem>>, %arg7: memref<16x64xbf16, #tpu.memory_space<vmem>>) attributes {dimension_semantics = [], scalar_prefetch = 0 : i64, scratch_operands = 0 : i64, tpu.core_type = #tpu.core_type<tc>} {
    %0 = tpu.iota {dimensions = array<i32: 0>} : vector<16x1xi32>
    %c8_i32 = arith.constant 8 : i32
    %c0_i32 = arith.constant 0 : i32
    %1 = arith.cmpi eq, %c8_i32, %c0_i32 : i32
    %c1_i32 = arith.constant 1 : i32
    %2 = arith.select %1, %c1_i32, %c8_i32 : i32
    %3 = vector.broadcast %2 : i32 to vector<16x1xi32>
    %4 = arith.remsi %0, %3 : vector<16x1xi32>
    %c0_i32_0 = arith.constant 0 : i32
    %5 = vector.broadcast %c0_i32_0 : i32 to vector<16x1xi32>
    %6 = arith.cmpi ne, %4, %5 : vector<16x1xi32>
    %c0_i32_1 = arith.constant 0 : i32
    %7 = vector.broadcast %c0_i32_1 : i32 to vector<16x1xi32>
    %8 = arith.cmpi slt, %4, %7 : vector<16x1xi32>
    %c0_i32_2 = arith.constant 0 : i32
    %9 = arith.cmpi slt, %2, %c0_i32_2 : i32
    %10 = vector.broadcast %9 : i1 to vector<16x1xi1>
    %11 = vector.broadcast %10 : vector<16x1xi1> to vector<16x1xi1>
    %12 = arith.xori %8, %11 : vector<16x1xi1>
    %13 = arith.andi %12, %6 : vector<16x1xi1>
    %14 = vector.broadcast %2 : i32 to vector<16x1xi32>
    %15 = arith.addi %4, %14 : vector<16x1xi32>
    %16 = arith.select %13, %15, %4 : vector<16x1xi1>, vector<16x1xi32>
    %c0_i32_3 = arith.constant 0 : i32
    %17 = vector.broadcast %c0_i32_3 : i32 to vector<16x1xi32>
    %18 = arith.cmpi eq, %16, %17 : vector<16x1xi32>
    %c7_i32 = arith.constant 7 : i32
    %19 = vector.broadcast %c7_i32 : i32 to vector<16x1xi32>
    %20 = arith.cmpi eq, %16, %19 : vector<16x1xi32>
    %cst = arith.constant 1.000000e+00 : f32
    %21 = vector.broadcast %cst : f32 to vector<8x16xf32>
    %c0 = arith.constant 0 : index
    %c0_4 = arith.constant 0 : index
    %22 = vector.load %arg0[%c0, %c0_4] : memref<16x32xbf16, #tpu.memory_space<vmem>>, vector<16x32xbf16>
    %23 = arith.extf %22 : vector<16x32xbf16> to vector<16x32xf32>
    %c1_i32_5 = arith.constant 1 : i32
    %24 = tpu.dynamic_rotate %23 by %c1_i32_5 dim 0 : vector<16x32xf32>, i32 -> vector<16x32xf32>
    %cst_6 = arith.constant 0.000000e+00 : f32
    %25 = vector.shape_cast %18 : vector<16x1xi1> to vector<16x1xi1>
    %26 = vector.broadcast %25 : vector<16x1xi1> to vector<16x32xi1>
    %27 = vector.broadcast %cst_6 : f32 to vector<16x32xf32>
    %28 = arith.select %26, %27, %24 : vector<16x32xi1>, vector<16x32xf32>
    %c15_i32 = arith.constant 15 : i32
    %29 = tpu.dynamic_rotate %23 by %c15_i32 dim 0 : vector<16x32xf32>, i32 -> vector<16x32xf32>
    %cst_7 = arith.constant 0.000000e+00 : f32
    %30 = vector.shape_cast %20 : vector<16x1xi1> to vector<16x1xi1>
    %31 = vector.broadcast %30 : vector<16x1xi1> to vector<16x32xi1>
    %32 = vector.broadcast %cst_7 : f32 to vector<16x32xf32>
    %33 = arith.select %31, %32, %29 : vector<16x32xi1>, vector<16x32xf32>
    %34 = arith.truncf %23 : vector<16x32xf32> to vector<16x32xbf16>
    %c1 = arith.constant 1 : index
    %c0_8 = arith.constant 0 : index
    %c0_9 = arith.constant 0 : index
    %35 = vector.load %arg1[%c1, %c0_8, %c0_9] : memref<3x32x64xbf16, #tpu.memory_space<vmem>>, vector<1x32x64xbf16>
    %36 = vector.shape_cast %35 : vector<1x32x64xbf16> to vector<32x64xbf16>
    %cst_10 = arith.constant dense<0.000000e+00> : vector<16x64xf32>
    %37 = tpu.matmul %34, %36, %cst_10 {dimension_numbers = #tpu.dot_dimension_numbers<[1], [0], [0], [1], [0, 0, 1, 1], [], []>} : vector<16x32xbf16>, vector<32x64xbf16>, vector<16x64xf32> -> vector<16x64xf32>
    %38 = arith.truncf %28 : vector<16x32xf32> to vector<16x32xbf16>
    %c0_11 = arith.constant 0 : index
    %c0_12 = arith.constant 0 : index
    %c0_13 = arith.constant 0 : index
    %39 = vector.load %arg1[%c0_11, %c0_12, %c0_13] : memref<3x32x64xbf16, #tpu.memory_space<vmem>>, vector<1x32x64xbf16>
    %40 = vector.shape_cast %39 : vector<1x32x64xbf16> to vector<32x64xbf16>
    %cst_14 = arith.constant dense<0.000000e+00> : vector<16x64xf32>
    %41 = tpu.matmul %38, %40, %cst_14 {dimension_numbers = #tpu.dot_dimension_numbers<[1], [0], [0], [1], [0, 0, 1, 1], [], []>} : vector<16x32xbf16>, vector<32x64xbf16>, vector<16x64xf32> -> vector<16x64xf32>
    %42 = arith.addf %37, %41 : vector<16x64xf32>
    %43 = arith.truncf %33 : vector<16x32xf32> to vector<16x32xbf16>
    %c2 = arith.constant 2 : index
    %c0_15 = arith.constant 0 : index
    %c0_16 = arith.constant 0 : index
    %44 = vector.load %arg1[%c2, %c0_15, %c0_16] : memref<3x32x64xbf16, #tpu.memory_space<vmem>>, vector<1x32x64xbf16>
    %45 = vector.shape_cast %44 : vector<1x32x64xbf16> to vector<32x64xbf16>
    %cst_17 = arith.constant dense<0.000000e+00> : vector<16x64xf32>
    %46 = tpu.matmul %43, %45, %cst_17 {dimension_numbers = #tpu.dot_dimension_numbers<[1], [0], [0], [1], [0, 0, 1, 1], [], []>} : vector<16x32xbf16>, vector<32x64xbf16>, vector<16x64xf32> -> vector<16x64xf32>
    %47 = arith.addf %42, %46 : vector<16x64xf32>
    %c0_18 = arith.constant 0 : index
    %c0_19 = arith.constant 0 : index
    %48 = vector.load %arg2[%c0_18, %c0_19] : memref<1x64xf32, #tpu.memory_space<vmem>>, vector<1x64xf32>
    %c0_20 = arith.constant 0 : index
    %c0_21 = arith.constant 0 : index
    %49 = vector.load %arg3[%c0_20, %c0_21] : memref<1x64xf32, #tpu.memory_space<vmem>>, vector<1x64xf32>
    %cst_22 = arith.constant dense<0.000000e+00> : vector<8x64xf32>
    %50 = tpu.matmul %21, %47, %cst_22 {dimension_numbers = #tpu.dot_dimension_numbers<[1], [0], [0], [1], [0, 0, 1, 1], [], []>} : vector<8x16xf32>, vector<16x64xf32>, vector<8x64xf32> -> vector<8x64xf32>
    %51 = vector.extract_strided_slice %50 {offsets = [0, 0], sizes = [1, 64], strides = [1, 1]} : vector<8x64xf32> to vector<1x64xf32>
    %cst_23 = arith.constant 6.250000e-02 : f32
    %52 = vector.broadcast %cst_23 : f32 to vector<1x64xf32>
    %53 = arith.mulf %51, %52 : vector<1x64xf32>
    %54 = vector.broadcast %53 : vector<1x64xf32> to vector<16x64xf32>
    %55 = arith.subf %47, %54 : vector<16x64xf32>
    %56 = arith.mulf %55, %55 : vector<16x64xf32>
    %cst_24 = arith.constant dense<0.000000e+00> : vector<8x64xf32>
    %57 = tpu.matmul %21, %56, %cst_24 {dimension_numbers = #tpu.dot_dimension_numbers<[1], [0], [0], [1], [0, 0, 1, 1], [], []>} : vector<8x16xf32>, vector<16x64xf32>, vector<8x64xf32> -> vector<8x64xf32>
    %58 = vector.extract_strided_slice %57 {offsets = [0, 0], sizes = [1, 64], strides = [1, 1]} : vector<8x64xf32> to vector<1x64xf32>
    %cst_25 = arith.constant 6.250000e-02 : f32
    %59 = vector.broadcast %cst_25 : f32 to vector<1x64xf32>
    %60 = arith.mulf %58, %59 : vector<1x64xf32>
    %cst_26 = arith.constant 0.000000e+00 : f32
    %61 = vector.broadcast %cst_26 : f32 to vector<1x64xf32>
    %62 = arith.maximumf %60, %61 : vector<1x64xf32>
    %cst_27 = arith.constant 9.99999974E-6 : f32
    %63 = vector.broadcast %cst_27 : f32 to vector<1x64xf32>
    %64 = arith.addf %62, %63 : vector<1x64xf32>
    %65 = math.rsqrt %64 : vector<1x64xf32>
    %66 = vector.broadcast %65 : vector<1x64xf32> to vector<16x64xf32>
    %67 = arith.mulf %55, %66 : vector<16x64xf32>
    %68 = vector.broadcast %48 : vector<1x64xf32> to vector<16x64xf32>
    %69 = arith.mulf %67, %68 : vector<16x64xf32>
    %70 = vector.broadcast %49 : vector<1x64xf32> to vector<16x64xf32>
    %71 = arith.addf %69, %70 : vector<16x64xf32>
    %cst_28 = arith.constant 0.000000e+00 : f32
    %72 = vector.broadcast %cst_28 : f32 to vector<16x64xf32>
    %73 = arith.maximumf %71, %72 : vector<16x64xf32>
    %c1_i32_29 = arith.constant 1 : i32
    %74 = tpu.dynamic_rotate %73 by %c1_i32_29 dim 0 : vector<16x64xf32>, i32 -> vector<16x64xf32>
    %cst_30 = arith.constant 0.000000e+00 : f32
    %75 = vector.shape_cast %18 : vector<16x1xi1> to vector<16x1xi1>
    %76 = vector.broadcast %75 : vector<16x1xi1> to vector<16x64xi1>
    %77 = vector.broadcast %cst_30 : f32 to vector<16x64xf32>
    %78 = arith.select %76, %77, %74 : vector<16x64xi1>, vector<16x64xf32>
    %c15_i32_31 = arith.constant 15 : i32
    %79 = tpu.dynamic_rotate %73 by %c15_i32_31 dim 0 : vector<16x64xf32>, i32 -> vector<16x64xf32>
    %cst_32 = arith.constant 0.000000e+00 : f32
    %80 = vector.shape_cast %20 : vector<16x1xi1> to vector<16x1xi1>
    %81 = vector.broadcast %80 : vector<16x1xi1> to vector<16x64xi1>
    %82 = vector.broadcast %cst_32 : f32 to vector<16x64xf32>
    %83 = arith.select %81, %82, %79 : vector<16x64xi1>, vector<16x64xf32>
    %84 = arith.truncf %73 : vector<16x64xf32> to vector<16x64xbf16>
    %c1_33 = arith.constant 1 : index
    %c0_34 = arith.constant 0 : index
    %c0_35 = arith.constant 0 : index
    %85 = vector.load %arg4[%c1_33, %c0_34, %c0_35] : memref<3x64x64xbf16, #tpu.memory_space<vmem>>, vector<1x64x64xbf16>
    %86 = vector.shape_cast %85 : vector<1x64x64xbf16> to vector<64x64xbf16>
    %cst_36 = arith.constant dense<0.000000e+00> : vector<16x64xf32>
    %87 = tpu.matmul %84, %86, %cst_36 {dimension_numbers = #tpu.dot_dimension_numbers<[1], [0], [0], [1], [0, 0, 1, 1], [], []>} : vector<16x64xbf16>, vector<64x64xbf16>, vector<16x64xf32> -> vector<16x64xf32>
    %88 = arith.truncf %78 : vector<16x64xf32> to vector<16x64xbf16>
    %c0_37 = arith.constant 0 : index
    %c0_38 = arith.constant 0 : index
    %c0_39 = arith.constant 0 : index
    %89 = vector.load %arg4[%c0_37, %c0_38, %c0_39] : memref<3x64x64xbf16, #tpu.memory_space<vmem>>, vector<1x64x64xbf16>
    %90 = vector.shape_cast %89 : vector<1x64x64xbf16> to vector<64x64xbf16>
    %cst_40 = arith.constant dense<0.000000e+00> : vector<16x64xf32>
    %91 = tpu.matmul %88, %90, %cst_40 {dimension_numbers = #tpu.dot_dimension_numbers<[1], [0], [0], [1], [0, 0, 1, 1], [], []>} : vector<16x64xbf16>, vector<64x64xbf16>, vector<16x64xf32> -> vector<16x64xf32>
    %92 = arith.addf %87, %91 : vector<16x64xf32>
    %93 = arith.truncf %83 : vector<16x64xf32> to vector<16x64xbf16>
    %c2_41 = arith.constant 2 : index
    %c0_42 = arith.constant 0 : index
    %c0_43 = arith.constant 0 : index
    %94 = vector.load %arg4[%c2_41, %c0_42, %c0_43] : memref<3x64x64xbf16, #tpu.memory_space<vmem>>, vector<1x64x64xbf16>
    %95 = vector.shape_cast %94 : vector<1x64x64xbf16> to vector<64x64xbf16>
    %cst_44 = arith.constant dense<0.000000e+00> : vector<16x64xf32>
    %96 = tpu.matmul %93, %95, %cst_44 {dimension_numbers = #tpu.dot_dimension_numbers<[1], [0], [0], [1], [0, 0, 1, 1], [], []>} : vector<16x64xbf16>, vector<64x64xbf16>, vector<16x64xf32> -> vector<16x64xf32>
    %97 = arith.addf %92, %96 : vector<16x64xf32>
    %c0_45 = arith.constant 0 : index
    %c0_46 = arith.constant 0 : index
    %98 = vector.load %arg5[%c0_45, %c0_46] : memref<1x64xf32, #tpu.memory_space<vmem>>, vector<1x64xf32>
    %c0_47 = arith.constant 0 : index
    %c0_48 = arith.constant 0 : index
    %99 = vector.load %arg6[%c0_47, %c0_48] : memref<1x64xf32, #tpu.memory_space<vmem>>, vector<1x64xf32>
    %cst_49 = arith.constant dense<0.000000e+00> : vector<8x64xf32>
    %100 = tpu.matmul %21, %97, %cst_49 {dimension_numbers = #tpu.dot_dimension_numbers<[1], [0], [0], [1], [0, 0, 1, 1], [], []>} : vector<8x16xf32>, vector<16x64xf32>, vector<8x64xf32> -> vector<8x64xf32>
    %101 = vector.extract_strided_slice %100 {offsets = [0, 0], sizes = [1, 64], strides = [1, 1]} : vector<8x64xf32> to vector<1x64xf32>
    %cst_50 = arith.constant 6.250000e-02 : f32
    %102 = vector.broadcast %cst_50 : f32 to vector<1x64xf32>
    %103 = arith.mulf %101, %102 : vector<1x64xf32>
    %104 = vector.broadcast %103 : vector<1x64xf32> to vector<16x64xf32>
    %105 = arith.subf %97, %104 : vector<16x64xf32>
    %106 = arith.mulf %105, %105 : vector<16x64xf32>
    %cst_51 = arith.constant dense<0.000000e+00> : vector<8x64xf32>
    %107 = tpu.matmul %21, %106, %cst_51 {dimension_numbers = #tpu.dot_dimension_numbers<[1], [0], [0], [1], [0, 0, 1, 1], [], []>} : vector<8x16xf32>, vector<16x64xf32>, vector<8x64xf32> -> vector<8x64xf32>
    %108 = vector.extract_strided_slice %107 {offsets = [0, 0], sizes = [1, 64], strides = [1, 1]} : vector<8x64xf32> to vector<1x64xf32>
    %cst_52 = arith.constant 6.250000e-02 : f32
    %109 = vector.broadcast %cst_52 : f32 to vector<1x64xf32>
    %110 = arith.mulf %108, %109 : vector<1x64xf32>
    %cst_53 = arith.constant 0.000000e+00 : f32
    %111 = vector.broadcast %cst_53 : f32 to vector<1x64xf32>
    %112 = arith.maximumf %110, %111 : vector<1x64xf32>
    %cst_54 = arith.constant 9.99999974E-6 : f32
    %113 = vector.broadcast %cst_54 : f32 to vector<1x64xf32>
    %114 = arith.addf %112, %113 : vector<1x64xf32>
    %115 = math.rsqrt %114 : vector<1x64xf32>
    %116 = vector.broadcast %115 : vector<1x64xf32> to vector<16x64xf32>
    %117 = arith.mulf %105, %116 : vector<16x64xf32>
    %118 = vector.broadcast %98 : vector<1x64xf32> to vector<16x64xf32>
    %119 = arith.mulf %117, %118 : vector<16x64xf32>
    %120 = vector.broadcast %99 : vector<1x64xf32> to vector<16x64xf32>
    %121 = arith.addf %119, %120 : vector<16x64xf32>
    %cst_55 = arith.constant 0.000000e+00 : f32
    %122 = vector.broadcast %cst_55 : f32 to vector<16x64xf32>
    %123 = arith.maximumf %121, %122 : vector<16x64xf32>
    %124 = arith.truncf %123 : vector<16x64xf32> to vector<16x64xbf16>
    %c0_56 = arith.constant 0 : index
    %c0_57 = arith.constant 0 : index
    %125 = vector.load %arg7[%c0_56, %c0_57] : memref<16x64xbf16, #tpu.memory_space<vmem>>, vector<16x64xbf16>
    tpu.vector_store %arg7[%c0_56, %c0_57], %124 {strides = array<i32>} : memref<16x64xbf16, #tpu.memory_space<vmem>>, vector<16x64xbf16>,
    return
  }
}

module attributes {stable_mosaic.version = 11 : i64} {
  func.func @_unet_block_kernel(%arg0: memref<4x128xbf16, #tpu.memory_space<vmem>>, %arg1: memref<3x128x256xbf16, #tpu.memory_space<vmem>>, %arg2: memref<1x256xf32, #tpu.memory_space<vmem>>, %arg3: memref<1x256xf32, #tpu.memory_space<vmem>>, %arg4: memref<3x256x256xbf16, #tpu.memory_space<vmem>>, %arg5: memref<1x256xf32, #tpu.memory_space<vmem>>, %arg6: memref<1x256xf32, #tpu.memory_space<vmem>>, %arg7: memref<4x256xbf16, #tpu.memory_space<vmem>>) attributes {dimension_semantics = [], scalar_prefetch = 0 : i64, scratch_operands = 0 : i64, tpu.core_type = #tpu.core_type<tc>} {
    %0 = tpu.iota {dimensions = array<i32: 0>} : vector<4x1xi32>
    %c2_i32 = arith.constant 2 : i32
    %c0_i32 = arith.constant 0 : i32
    %1 = arith.cmpi eq, %c2_i32, %c0_i32 : i32
    %c1_i32 = arith.constant 1 : i32
    %2 = arith.select %1, %c1_i32, %c2_i32 : i32
    %3 = vector.broadcast %2 : i32 to vector<4x1xi32>
    %4 = arith.remsi %0, %3 : vector<4x1xi32>
    %c0_i32_0 = arith.constant 0 : i32
    %5 = vector.broadcast %c0_i32_0 : i32 to vector<4x1xi32>
    %6 = arith.cmpi ne, %4, %5 : vector<4x1xi32>
    %c0_i32_1 = arith.constant 0 : i32
    %7 = vector.broadcast %c0_i32_1 : i32 to vector<4x1xi32>
    %8 = arith.cmpi slt, %4, %7 : vector<4x1xi32>
    %c0_i32_2 = arith.constant 0 : i32
    %9 = arith.cmpi slt, %2, %c0_i32_2 : i32
    %10 = vector.broadcast %9 : i1 to vector<4x1xi1>
    %11 = vector.broadcast %10 : vector<4x1xi1> to vector<4x1xi1>
    %12 = arith.xori %8, %11 : vector<4x1xi1>
    %13 = arith.andi %12, %6 : vector<4x1xi1>
    %14 = vector.broadcast %2 : i32 to vector<4x1xi32>
    %15 = arith.addi %4, %14 : vector<4x1xi32>
    %16 = arith.select %13, %15, %4 : vector<4x1xi1>, vector<4x1xi32>
    %c0_i32_3 = arith.constant 0 : i32
    %17 = vector.broadcast %c0_i32_3 : i32 to vector<4x1xi32>
    %18 = arith.cmpi eq, %16, %17 : vector<4x1xi32>
    %c1_i32_4 = arith.constant 1 : i32
    %19 = vector.broadcast %c1_i32_4 : i32 to vector<4x1xi32>
    %20 = arith.cmpi eq, %16, %19 : vector<4x1xi32>
    %cst = arith.constant 1.000000e+00 : f32
    %21 = vector.broadcast %cst : f32 to vector<8x4xf32>
    %c0 = arith.constant 0 : index
    %c0_5 = arith.constant 0 : index
    %22 = vector.load %arg0[%c0, %c0_5] : memref<4x128xbf16, #tpu.memory_space<vmem>>, vector<4x128xbf16>
    %23 = arith.extf %22 : vector<4x128xbf16> to vector<4x128xf32>
    %c1_i32_6 = arith.constant 1 : i32
    %24 = tpu.dynamic_rotate %23 by %c1_i32_6 dim 0 : vector<4x128xf32>, i32 -> vector<4x128xf32>
    %cst_7 = arith.constant 0.000000e+00 : f32
    %25 = vector.shape_cast %18 : vector<4x1xi1> to vector<4x1xi1>
    %26 = vector.broadcast %25 : vector<4x1xi1> to vector<4x128xi1>
    %27 = vector.broadcast %cst_7 : f32 to vector<4x128xf32>
    %28 = arith.select %26, %27, %24 : vector<4x128xi1>, vector<4x128xf32>
    %c3_i32 = arith.constant 3 : i32
    %29 = tpu.dynamic_rotate %23 by %c3_i32 dim 0 : vector<4x128xf32>, i32 -> vector<4x128xf32>
    %cst_8 = arith.constant 0.000000e+00 : f32
    %30 = vector.shape_cast %20 : vector<4x1xi1> to vector<4x1xi1>
    %31 = vector.broadcast %30 : vector<4x1xi1> to vector<4x128xi1>
    %32 = vector.broadcast %cst_8 : f32 to vector<4x128xf32>
    %33 = arith.select %31, %32, %29 : vector<4x128xi1>, vector<4x128xf32>
    %34 = arith.truncf %23 : vector<4x128xf32> to vector<4x128xbf16>
    %c1 = arith.constant 1 : index
    %c0_9 = arith.constant 0 : index
    %c0_10 = arith.constant 0 : index
    %35 = vector.load %arg1[%c1, %c0_9, %c0_10] : memref<3x128x256xbf16, #tpu.memory_space<vmem>>, vector<1x128x256xbf16>
    %36 = vector.shape_cast %35 : vector<1x128x256xbf16> to vector<128x256xbf16>
    %cst_11 = arith.constant dense<0.000000e+00> : vector<4x256xf32>
    %37 = tpu.matmul %34, %36, %cst_11 {dimension_numbers = #tpu.dot_dimension_numbers<[1], [0], [0], [1], [0, 0, 1, 1], [], []>} : vector<4x128xbf16>, vector<128x256xbf16>, vector<4x256xf32> -> vector<4x256xf32>
    %38 = arith.truncf %28 : vector<4x128xf32> to vector<4x128xbf16>
    %c0_12 = arith.constant 0 : index
    %c0_13 = arith.constant 0 : index
    %c0_14 = arith.constant 0 : index
    %39 = vector.load %arg1[%c0_12, %c0_13, %c0_14] : memref<3x128x256xbf16, #tpu.memory_space<vmem>>, vector<1x128x256xbf16>
    %40 = vector.shape_cast %39 : vector<1x128x256xbf16> to vector<128x256xbf16>
    %cst_15 = arith.constant dense<0.000000e+00> : vector<4x256xf32>
    %41 = tpu.matmul %38, %40, %cst_15 {dimension_numbers = #tpu.dot_dimension_numbers<[1], [0], [0], [1], [0, 0, 1, 1], [], []>} : vector<4x128xbf16>, vector<128x256xbf16>, vector<4x256xf32> -> vector<4x256xf32>
    %42 = arith.addf %37, %41 : vector<4x256xf32>
    %43 = arith.truncf %33 : vector<4x128xf32> to vector<4x128xbf16>
    %c2 = arith.constant 2 : index
    %c0_16 = arith.constant 0 : index
    %c0_17 = arith.constant 0 : index
    %44 = vector.load %arg1[%c2, %c0_16, %c0_17] : memref<3x128x256xbf16, #tpu.memory_space<vmem>>, vector<1x128x256xbf16>
    %45 = vector.shape_cast %44 : vector<1x128x256xbf16> to vector<128x256xbf16>
    %cst_18 = arith.constant dense<0.000000e+00> : vector<4x256xf32>
    %46 = tpu.matmul %43, %45, %cst_18 {dimension_numbers = #tpu.dot_dimension_numbers<[1], [0], [0], [1], [0, 0, 1, 1], [], []>} : vector<4x128xbf16>, vector<128x256xbf16>, vector<4x256xf32> -> vector<4x256xf32>
    %47 = arith.addf %42, %46 : vector<4x256xf32>
    %c0_19 = arith.constant 0 : index
    %c0_20 = arith.constant 0 : index
    %48 = vector.load %arg2[%c0_19, %c0_20] : memref<1x256xf32, #tpu.memory_space<vmem>>, vector<1x256xf32>
    %c0_21 = arith.constant 0 : index
    %c0_22 = arith.constant 0 : index
    %49 = vector.load %arg3[%c0_21, %c0_22] : memref<1x256xf32, #tpu.memory_space<vmem>>, vector<1x256xf32>
    %cst_23 = arith.constant dense<0.000000e+00> : vector<8x256xf32>
    %50 = tpu.matmul %21, %47, %cst_23 {dimension_numbers = #tpu.dot_dimension_numbers<[1], [0], [0], [1], [0, 0, 1, 1], [], []>} : vector<8x4xf32>, vector<4x256xf32>, vector<8x256xf32> -> vector<8x256xf32>
    %51 = vector.extract_strided_slice %50 {offsets = [0, 0], sizes = [1, 256], strides = [1, 1]} : vector<8x256xf32> to vector<1x256xf32>
    %cst_24 = arith.constant 2.500000e-01 : f32
    %52 = vector.broadcast %cst_24 : f32 to vector<1x256xf32>
    %53 = arith.mulf %51, %52 : vector<1x256xf32>
    %54 = vector.broadcast %53 : vector<1x256xf32> to vector<4x256xf32>
    %55 = arith.subf %47, %54 : vector<4x256xf32>
    %56 = arith.mulf %55, %55 : vector<4x256xf32>
    %cst_25 = arith.constant dense<0.000000e+00> : vector<8x256xf32>
    %57 = tpu.matmul %21, %56, %cst_25 {dimension_numbers = #tpu.dot_dimension_numbers<[1], [0], [0], [1], [0, 0, 1, 1], [], []>} : vector<8x4xf32>, vector<4x256xf32>, vector<8x256xf32> -> vector<8x256xf32>
    %58 = vector.extract_strided_slice %57 {offsets = [0, 0], sizes = [1, 256], strides = [1, 1]} : vector<8x256xf32> to vector<1x256xf32>
    %cst_26 = arith.constant 2.500000e-01 : f32
    %59 = vector.broadcast %cst_26 : f32 to vector<1x256xf32>
    %60 = arith.mulf %58, %59 : vector<1x256xf32>
    %cst_27 = arith.constant 0.000000e+00 : f32
    %61 = vector.broadcast %cst_27 : f32 to vector<1x256xf32>
    %62 = arith.maximumf %60, %61 : vector<1x256xf32>
    %cst_28 = arith.constant 9.99999974E-6 : f32
    %63 = vector.broadcast %cst_28 : f32 to vector<1x256xf32>
    %64 = arith.addf %62, %63 : vector<1x256xf32>
    %65 = math.rsqrt %64 : vector<1x256xf32>
    %66 = vector.broadcast %65 : vector<1x256xf32> to vector<4x256xf32>
    %67 = arith.mulf %55, %66 : vector<4x256xf32>
    %68 = vector.broadcast %48 : vector<1x256xf32> to vector<4x256xf32>
    %69 = arith.mulf %67, %68 : vector<4x256xf32>
    %70 = vector.broadcast %49 : vector<1x256xf32> to vector<4x256xf32>
    %71 = arith.addf %69, %70 : vector<4x256xf32>
    %cst_29 = arith.constant 0.000000e+00 : f32
    %72 = vector.broadcast %cst_29 : f32 to vector<4x256xf32>
    %73 = arith.maximumf %71, %72 : vector<4x256xf32>
    %c1_i32_30 = arith.constant 1 : i32
    %74 = tpu.dynamic_rotate %73 by %c1_i32_30 dim 0 : vector<4x256xf32>, i32 -> vector<4x256xf32>
    %cst_31 = arith.constant 0.000000e+00 : f32
    %75 = vector.shape_cast %18 : vector<4x1xi1> to vector<4x1xi1>
    %76 = vector.broadcast %75 : vector<4x1xi1> to vector<4x256xi1>
    %77 = vector.broadcast %cst_31 : f32 to vector<4x256xf32>
    %78 = arith.select %76, %77, %74 : vector<4x256xi1>, vector<4x256xf32>
    %c3_i32_32 = arith.constant 3 : i32
    %79 = tpu.dynamic_rotate %73 by %c3_i32_32 dim 0 : vector<4x256xf32>, i32 -> vector<4x256xf32>
    %cst_33 = arith.constant 0.000000e+00 : f32
    %80 = vector.shape_cast %20 : vector<4x1xi1> to vector<4x1xi1>
    %81 = vector.broadcast %80 : vector<4x1xi1> to vector<4x256xi1>
    %82 = vector.broadcast %cst_33 : f32 to vector<4x256xf32>
    %83 = arith.select %81, %82, %79 : vector<4x256xi1>, vector<4x256xf32>
    %84 = arith.truncf %73 : vector<4x256xf32> to vector<4x256xbf16>
    %c1_34 = arith.constant 1 : index
    %c0_35 = arith.constant 0 : index
    %c0_36 = arith.constant 0 : index
    %85 = vector.load %arg4[%c1_34, %c0_35, %c0_36] : memref<3x256x256xbf16, #tpu.memory_space<vmem>>, vector<1x256x256xbf16>
    %86 = vector.shape_cast %85 : vector<1x256x256xbf16> to vector<256x256xbf16>
    %cst_37 = arith.constant dense<0.000000e+00> : vector<4x256xf32>
    %87 = tpu.matmul %84, %86, %cst_37 {dimension_numbers = #tpu.dot_dimension_numbers<[1], [0], [0], [1], [0, 0, 1, 1], [], []>} : vector<4x256xbf16>, vector<256x256xbf16>, vector<4x256xf32> -> vector<4x256xf32>
    %88 = arith.truncf %78 : vector<4x256xf32> to vector<4x256xbf16>
    %c0_38 = arith.constant 0 : index
    %c0_39 = arith.constant 0 : index
    %c0_40 = arith.constant 0 : index
    %89 = vector.load %arg4[%c0_38, %c0_39, %c0_40] : memref<3x256x256xbf16, #tpu.memory_space<vmem>>, vector<1x256x256xbf16>
    %90 = vector.shape_cast %89 : vector<1x256x256xbf16> to vector<256x256xbf16>
    %cst_41 = arith.constant dense<0.000000e+00> : vector<4x256xf32>
    %91 = tpu.matmul %88, %90, %cst_41 {dimension_numbers = #tpu.dot_dimension_numbers<[1], [0], [0], [1], [0, 0, 1, 1], [], []>} : vector<4x256xbf16>, vector<256x256xbf16>, vector<4x256xf32> -> vector<4x256xf32>
    %92 = arith.addf %87, %91 : vector<4x256xf32>
    %93 = arith.truncf %83 : vector<4x256xf32> to vector<4x256xbf16>
    %c2_42 = arith.constant 2 : index
    %c0_43 = arith.constant 0 : index
    %c0_44 = arith.constant 0 : index
    %94 = vector.load %arg4[%c2_42, %c0_43, %c0_44] : memref<3x256x256xbf16, #tpu.memory_space<vmem>>, vector<1x256x256xbf16>
    %95 = vector.shape_cast %94 : vector<1x256x256xbf16> to vector<256x256xbf16>
    %cst_45 = arith.constant dense<0.000000e+00> : vector<4x256xf32>
    %96 = tpu.matmul %93, %95, %cst_45 {dimension_numbers = #tpu.dot_dimension_numbers<[1], [0], [0], [1], [0, 0, 1, 1], [], []>} : vector<4x256xbf16>, vector<256x256xbf16>, vector<4x256xf32> -> vector<4x256xf32>
    %97 = arith.addf %92, %96 : vector<4x256xf32>
    %c0_46 = arith.constant 0 : index
    %c0_47 = arith.constant 0 : index
    %98 = vector.load %arg5[%c0_46, %c0_47] : memref<1x256xf32, #tpu.memory_space<vmem>>, vector<1x256xf32>
    %c0_48 = arith.constant 0 : index
    %c0_49 = arith.constant 0 : index
    %99 = vector.load %arg6[%c0_48, %c0_49] : memref<1x256xf32, #tpu.memory_space<vmem>>, vector<1x256xf32>
    %cst_50 = arith.constant dense<0.000000e+00> : vector<8x256xf32>
    %100 = tpu.matmul %21, %97, %cst_50 {dimension_numbers = #tpu.dot_dimension_numbers<[1], [0], [0], [1], [0, 0, 1, 1], [], []>} : vector<8x4xf32>, vector<4x256xf32>, vector<8x256xf32> -> vector<8x256xf32>
    %101 = vector.extract_strided_slice %100 {offsets = [0, 0], sizes = [1, 256], strides = [1, 1]} : vector<8x256xf32> to vector<1x256xf32>
    %cst_51 = arith.constant 2.500000e-01 : f32
    %102 = vector.broadcast %cst_51 : f32 to vector<1x256xf32>
    %103 = arith.mulf %101, %102 : vector<1x256xf32>
    %104 = vector.broadcast %103 : vector<1x256xf32> to vector<4x256xf32>
    %105 = arith.subf %97, %104 : vector<4x256xf32>
    %106 = arith.mulf %105, %105 : vector<4x256xf32>
    %cst_52 = arith.constant dense<0.000000e+00> : vector<8x256xf32>
    %107 = tpu.matmul %21, %106, %cst_52 {dimension_numbers = #tpu.dot_dimension_numbers<[1], [0], [0], [1], [0, 0, 1, 1], [], []>} : vector<8x4xf32>, vector<4x256xf32>, vector<8x256xf32> -> vector<8x256xf32>
    %108 = vector.extract_strided_slice %107 {offsets = [0, 0], sizes = [1, 256], strides = [1, 1]} : vector<8x256xf32> to vector<1x256xf32>
    %cst_53 = arith.constant 2.500000e-01 : f32
    %109 = vector.broadcast %cst_53 : f32 to vector<1x256xf32>
    %110 = arith.mulf %108, %109 : vector<1x256xf32>
    %cst_54 = arith.constant 0.000000e+00 : f32
    %111 = vector.broadcast %cst_54 : f32 to vector<1x256xf32>
    %112 = arith.maximumf %110, %111 : vector<1x256xf32>
    %cst_55 = arith.constant 9.99999974E-6 : f32
    %113 = vector.broadcast %cst_55 : f32 to vector<1x256xf32>
    %114 = arith.addf %112, %113 : vector<1x256xf32>
    %115 = math.rsqrt %114 : vector<1x256xf32>
    %116 = vector.broadcast %115 : vector<1x256xf32> to vector<4x256xf32>
    %117 = arith.mulf %105, %116 : vector<4x256xf32>
    %118 = vector.broadcast %98 : vector<1x256xf32> to vector<4x256xf32>
    %119 = arith.mulf %117, %118 : vector<4x256xf32>
    %120 = vector.broadcast %99 : vector<1x256xf32> to vector<4x256xf32>
    %121 = arith.addf %119, %120 : vector<4x256xf32>
    %cst_56 = arith.constant 0.000000e+00 : f32
    %122 = vector.broadcast %cst_56 : f32 to vector<4x256xf32>
    %123 = arith.maximumf %121, %122 : vector<4x256xf32>
    %124 = arith.truncf %123 : vector<4x256xf32> to vector<4x256xbf16>
    %c0_57 = arith.constant 0 : index
    %c0_58 = arith.constant 0 : index
    %125 = vector.load %arg7[%c0_57, %c0_58] : memref<4x256xbf16, #tpu.memory_space<vmem>>, vector<4x256xbf16>
    tpu.vector_store %arg7[%c0_57, %c0_58], %124 {strides = array<i32>} : memref<4x256xbf16, #tpu.memory_space<vmem>>, vector<4x256xbf16>,
    return
  }
}

module attributes {stable_mosaic.version = 11 : i64} {
  func.func @_decoder_stage_kernel(%arg0: memref<8x256xbf16, #tpu.memory_space<vmem>>, %arg1: memref<8x128xbf16, #tpu.memory_space<vmem>>, %arg2: memref<3x256x128xbf16, #tpu.memory_space<vmem>>, %arg3: memref<1x128xf32, #tpu.memory_space<vmem>>, %arg4: memref<3x128x128xbf16, #tpu.memory_space<vmem>>, %arg5: memref<3x128x128xbf16, #tpu.memory_space<vmem>>, %arg6: memref<1x128xf32, #tpu.memory_space<vmem>>, %arg7: memref<1x128xf32, #tpu.memory_space<vmem>>, %arg8: memref<3x128x128xbf16, #tpu.memory_space<vmem>>, %arg9: memref<1x128xf32, #tpu.memory_space<vmem>>, %arg10: memref<1x128xf32, #tpu.memory_space<vmem>>, %arg11: memref<8x128xbf16, #tpu.memory_space<vmem>>) attributes {dimension_semantics = [], scalar_prefetch = 0 : i64, scratch_operands = 0 : i64, tpu.core_type = #tpu.core_type<tc>} {
    %0 = tpu.iota {dimensions = array<i32: 0>} : vector<8x1xi32>
    %c4_i32 = arith.constant 4 : i32
    %c0_i32 = arith.constant 0 : i32
    %1 = arith.cmpi eq, %c4_i32, %c0_i32 : i32
    %c1_i32 = arith.constant 1 : i32
    %2 = arith.select %1, %c1_i32, %c4_i32 : i32
    %3 = vector.broadcast %2 : i32 to vector<8x1xi32>
    %4 = arith.remsi %0, %3 : vector<8x1xi32>
    %c0_i32_0 = arith.constant 0 : i32
    %5 = vector.broadcast %c0_i32_0 : i32 to vector<8x1xi32>
    %6 = arith.cmpi ne, %4, %5 : vector<8x1xi32>
    %c0_i32_1 = arith.constant 0 : i32
    %7 = vector.broadcast %c0_i32_1 : i32 to vector<8x1xi32>
    %8 = arith.cmpi slt, %4, %7 : vector<8x1xi32>
    %c0_i32_2 = arith.constant 0 : i32
    %9 = arith.cmpi slt, %2, %c0_i32_2 : i32
    %10 = vector.broadcast %9 : i1 to vector<8x1xi1>
    %11 = vector.broadcast %10 : vector<8x1xi1> to vector<8x1xi1>
    %12 = arith.xori %8, %11 : vector<8x1xi1>
    %13 = arith.andi %12, %6 : vector<8x1xi1>
    %14 = vector.broadcast %2 : i32 to vector<8x1xi32>
    %15 = arith.addi %4, %14 : vector<8x1xi32>
    %16 = arith.select %13, %15, %4 : vector<8x1xi1>, vector<8x1xi32>
    %c0_i32_3 = arith.constant 0 : i32
    %17 = vector.broadcast %c0_i32_3 : i32 to vector<8x1xi32>
    %18 = arith.cmpi eq, %16, %17 : vector<8x1xi32>
    %c3_i32 = arith.constant 3 : i32
    %19 = vector.broadcast %c3_i32 : i32 to vector<8x1xi32>
    %20 = arith.cmpi eq, %16, %19 : vector<8x1xi32>
    %cst = arith.constant 1.000000e+00 : f32
    %21 = vector.broadcast %cst : f32 to vector<8x8xf32>
    %c0 = arith.constant 0 : index
    %c0_4 = arith.constant 0 : index
    %22 = vector.load %arg0[%c0, %c0_4] : memref<8x256xbf16, #tpu.memory_space<vmem>>, vector<8x256xbf16>
    %23 = arith.extf %22 : vector<8x256xbf16> to vector<8x256xf32>
    %c0_5 = arith.constant 0 : index
    %c0_6 = arith.constant 0 : index
    %24 = vector.load %arg3[%c0_5, %c0_6] : memref<1x128xf32, #tpu.memory_space<vmem>>, vector<1x128xf32>
    %c1_i32_7 = arith.constant 1 : i32
    %25 = tpu.dynamic_rotate %23 by %c1_i32_7 dim 0 : vector<8x256xf32>, i32 -> vector<8x256xf32>
    %cst_8 = arith.constant 0.000000e+00 : f32
    %26 = vector.shape_cast %18 : vector<8x1xi1> to vector<8x1xi1>
    %27 = vector.broadcast %26 : vector<8x1xi1> to vector<8x256xi1>
    %28 = vector.broadcast %cst_8 : f32 to vector<8x256xf32>
    %29 = arith.select %27, %28, %25 : vector<8x256xi1>, vector<8x256xf32>
    %c7_i32 = arith.constant 7 : i32
    %30 = tpu.dynamic_rotate %23 by %c7_i32 dim 0 : vector<8x256xf32>, i32 -> vector<8x256xf32>
    %cst_9 = arith.constant 0.000000e+00 : f32
    %31 = vector.shape_cast %20 : vector<8x1xi1> to vector<8x1xi1>
    %32 = vector.broadcast %31 : vector<8x1xi1> to vector<8x256xi1>
    %33 = vector.broadcast %cst_9 : f32 to vector<8x256xf32>
    %34 = arith.select %32, %33, %30 : vector<8x256xi1>, vector<8x256xf32>
    %35 = arith.truncf %23 : vector<8x256xf32> to vector<8x256xbf16>
    %c1 = arith.constant 1 : index
    %c0_10 = arith.constant 0 : index
    %c0_11 = arith.constant 0 : index
    %36 = vector.load %arg2[%c1, %c0_10, %c0_11] : memref<3x256x128xbf16, #tpu.memory_space<vmem>>, vector<1x256x128xbf16>
    %37 = vector.shape_cast %36 : vector<1x256x128xbf16> to vector<256x128xbf16>
    %cst_12 = arith.constant dense<0.000000e+00> : vector<8x128xf32>
    %38 = tpu.matmul %35, %37, %cst_12 {dimension_numbers = #tpu.dot_dimension_numbers<[1], [0], [0], [1], [0, 0, 1, 1], [], []>} : vector<8x256xbf16>, vector<256x128xbf16>, vector<8x128xf32> -> vector<8x128xf32>
    %39 = arith.truncf %29 : vector<8x256xf32> to vector<8x256xbf16>
    %c0_13 = arith.constant 0 : index
    %c0_14 = arith.constant 0 : index
    %c0_15 = arith.constant 0 : index
    %40 = vector.load %arg2[%c0_13, %c0_14, %c0_15] : memref<3x256x128xbf16, #tpu.memory_space<vmem>>, vector<1x256x128xbf16>
    %41 = vector.shape_cast %40 : vector<1x256x128xbf16> to vector<256x128xbf16>
    %cst_16 = arith.constant dense<0.000000e+00> : vector<8x128xf32>
    %42 = tpu.matmul %39, %41, %cst_16 {dimension_numbers = #tpu.dot_dimension_numbers<[1], [0], [0], [1], [0, 0, 1, 1], [], []>} : vector<8x256xbf16>, vector<256x128xbf16>, vector<8x128xf32> -> vector<8x128xf32>
    %43 = arith.addf %38, %42 : vector<8x128xf32>
    %44 = arith.truncf %34 : vector<8x256xf32> to vector<8x256xbf16>
    %c2 = arith.constant 2 : index
    %c0_17 = arith.constant 0 : index
    %c0_18 = arith.constant 0 : index
    %45 = vector.load %arg2[%c2, %c0_17, %c0_18] : memref<3x256x128xbf16, #tpu.memory_space<vmem>>, vector<1x256x128xbf16>
    %46 = vector.shape_cast %45 : vector<1x256x128xbf16> to vector<256x128xbf16>
    %cst_19 = arith.constant dense<0.000000e+00> : vector<8x128xf32>
    %47 = tpu.matmul %44, %46, %cst_19 {dimension_numbers = #tpu.dot_dimension_numbers<[1], [0], [0], [1], [0, 0, 1, 1], [], []>} : vector<8x256xbf16>, vector<256x128xbf16>, vector<8x128xf32> -> vector<8x128xf32>
    %48 = arith.addf %43, %47 : vector<8x128xf32>
    %49 = vector.broadcast %24 : vector<1x128xf32> to vector<8x128xf32>
    %50 = arith.addf %48, %49 : vector<8x128xf32>
    %c1_i32_20 = arith.constant 1 : i32
    %51 = tpu.dynamic_rotate %50 by %c1_i32_20 dim 0 : vector<8x128xf32>, i32 -> vector<8x128xf32>
    %cst_21 = arith.constant 0.000000e+00 : f32
    %52 = vector.shape_cast %18 : vector<8x1xi1> to vector<8x1xi1>
    %53 = vector.broadcast %52 : vector<8x1xi1> to vector<8x128xi1>
    %54 = vector.broadcast %cst_21 : f32 to vector<8x128xf32>
    %55 = arith.select %53, %54, %51 : vector<8x128xi1>, vector<8x128xf32>
    %c7_i32_22 = arith.constant 7 : i32
    %56 = tpu.dynamic_rotate %50 by %c7_i32_22 dim 0 : vector<8x128xf32>, i32 -> vector<8x128xf32>
    %cst_23 = arith.constant 0.000000e+00 : f32
    %57 = vector.shape_cast %20 : vector<8x1xi1> to vector<8x1xi1>
    %58 = vector.broadcast %57 : vector<8x1xi1> to vector<8x128xi1>
    %59 = vector.broadcast %cst_23 : f32 to vector<8x128xf32>
    %60 = arith.select %58, %59, %56 : vector<8x128xi1>, vector<8x128xf32>
    %61 = arith.truncf %50 : vector<8x128xf32> to vector<8x128xbf16>
    %c1_24 = arith.constant 1 : index
    %c0_25 = arith.constant 0 : index
    %c0_26 = arith.constant 0 : index
    %62 = vector.load %arg4[%c1_24, %c0_25, %c0_26] : memref<3x128x128xbf16, #tpu.memory_space<vmem>>, vector<1x128x128xbf16>
    %63 = vector.shape_cast %62 : vector<1x128x128xbf16> to vector<128x128xbf16>
    %cst_27 = arith.constant dense<0.000000e+00> : vector<8x128xf32>
    %64 = tpu.matmul %61, %63, %cst_27 {dimension_numbers = #tpu.dot_dimension_numbers<[1], [0], [0], [1], [0, 0, 1, 1], [], []>} : vector<8x128xbf16>, vector<128x128xbf16>, vector<8x128xf32> -> vector<8x128xf32>
    %65 = arith.truncf %55 : vector<8x128xf32> to vector<8x128xbf16>
    %c0_28 = arith.constant 0 : index
    %c0_29 = arith.constant 0 : index
    %c0_30 = arith.constant 0 : index
    %66 = vector.load %arg4[%c0_28, %c0_29, %c0_30] : memref<3x128x128xbf16, #tpu.memory_space<vmem>>, vector<1x128x128xbf16>
    %67 = vector.shape_cast %66 : vector<1x128x128xbf16> to vector<128x128xbf16>
    %cst_31 = arith.constant dense<0.000000e+00> : vector<8x128xf32>
    %68 = tpu.matmul %65, %67, %cst_31 {dimension_numbers = #tpu.dot_dimension_numbers<[1], [0], [0], [1], [0, 0, 1, 1], [], []>} : vector<8x128xbf16>, vector<128x128xbf16>, vector<8x128xf32> -> vector<8x128xf32>
    %69 = arith.addf %64, %68 : vector<8x128xf32>
    %70 = arith.truncf %60 : vector<8x128xf32> to vector<8x128xbf16>
    %c2_32 = arith.constant 2 : index
    %c0_33 = arith.constant 0 : index
    %c0_34 = arith.constant 0 : index
    %71 = vector.load %arg4[%c2_32, %c0_33, %c0_34] : memref<3x128x128xbf16, #tpu.memory_space<vmem>>, vector<1x128x128xbf16>
    %72 = vector.shape_cast %71 : vector<1x128x128xbf16> to vector<128x128xbf16>
    %cst_35 = arith.constant dense<0.000000e+00> : vector<8x128xf32>
    %73 = tpu.matmul %70, %72, %cst_35 {dimension_numbers = #tpu.dot_dimension_numbers<[1], [0], [0], [1], [0, 0, 1, 1], [], []>} : vector<8x128xbf16>, vector<128x128xbf16>, vector<8x128xf32> -> vector<8x128xf32>
    %74 = arith.addf %69, %73 : vector<8x128xf32>
    %c0_36 = arith.constant 0 : index
    %c0_37 = arith.constant 0 : index
    %75 = vector.load %arg1[%c0_36, %c0_37] : memref<8x128xbf16, #tpu.memory_space<vmem>>, vector<8x128xbf16>
    %76 = arith.extf %75 : vector<8x128xbf16> to vector<8x128xf32>
    %c1_i32_38 = arith.constant 1 : i32
    %77 = tpu.dynamic_rotate %76 by %c1_i32_38 dim 0 : vector<8x128xf32>, i32 -> vector<8x128xf32>
    %cst_39 = arith.constant 0.000000e+00 : f32
    %78 = vector.shape_cast %18 : vector<8x1xi1> to vector<8x1xi1>
    %79 = vector.broadcast %78 : vector<8x1xi1> to vector<8x128xi1>
    %80 = vector.broadcast %cst_39 : f32 to vector<8x128xf32>
    %81 = arith.select %79, %80, %77 : vector<8x128xi1>, vector<8x128xf32>
    %c7_i32_40 = arith.constant 7 : i32
    %82 = tpu.dynamic_rotate %76 by %c7_i32_40 dim 0 : vector<8x128xf32>, i32 -> vector<8x128xf32>
    %cst_41 = arith.constant 0.000000e+00 : f32
    %83 = vector.shape_cast %20 : vector<8x1xi1> to vector<8x1xi1>
    %84 = vector.broadcast %83 : vector<8x1xi1> to vector<8x128xi1>
    %85 = vector.broadcast %cst_41 : f32 to vector<8x128xf32>
    %86 = arith.select %84, %85, %82 : vector<8x128xi1>, vector<8x128xf32>
    %87 = arith.truncf %76 : vector<8x128xf32> to vector<8x128xbf16>
    %c1_42 = arith.constant 1 : index
    %c0_43 = arith.constant 0 : index
    %c0_44 = arith.constant 0 : index
    %88 = vector.load %arg5[%c1_42, %c0_43, %c0_44] : memref<3x128x128xbf16, #tpu.memory_space<vmem>>, vector<1x128x128xbf16>
    %89 = vector.shape_cast %88 : vector<1x128x128xbf16> to vector<128x128xbf16>
    %cst_45 = arith.constant dense<0.000000e+00> : vector<8x128xf32>
    %90 = tpu.matmul %87, %89, %cst_45 {dimension_numbers = #tpu.dot_dimension_numbers<[1], [0], [0], [1], [0, 0, 1, 1], [], []>} : vector<8x128xbf16>, vector<128x128xbf16>, vector<8x128xf32> -> vector<8x128xf32>
    %91 = arith.truncf %81 : vector<8x128xf32> to vector<8x128xbf16>
    %c0_46 = arith.constant 0 : index
    %c0_47 = arith.constant 0 : index
    %c0_48 = arith.constant 0 : index
    %92 = vector.load %arg5[%c0_46, %c0_47, %c0_48] : memref<3x128x128xbf16, #tpu.memory_space<vmem>>, vector<1x128x128xbf16>
    %93 = vector.shape_cast %92 : vector<1x128x128xbf16> to vector<128x128xbf16>
    %cst_49 = arith.constant dense<0.000000e+00> : vector<8x128xf32>
    %94 = tpu.matmul %91, %93, %cst_49 {dimension_numbers = #tpu.dot_dimension_numbers<[1], [0], [0], [1], [0, 0, 1, 1], [], []>} : vector<8x128xbf16>, vector<128x128xbf16>, vector<8x128xf32> -> vector<8x128xf32>
    %95 = arith.addf %90, %94 : vector<8x128xf32>
    %96 = arith.truncf %86 : vector<8x128xf32> to vector<8x128xbf16>
    %c2_50 = arith.constant 2 : index
    %c0_51 = arith.constant 0 : index
    %c0_52 = arith.constant 0 : index
    %97 = vector.load %arg5[%c2_50, %c0_51, %c0_52] : memref<3x128x128xbf16, #tpu.memory_space<vmem>>, vector<1x128x128xbf16>
    %98 = vector.shape_cast %97 : vector<1x128x128xbf16> to vector<128x128xbf16>
    %cst_53 = arith.constant dense<0.000000e+00> : vector<8x128xf32>
    %99 = tpu.matmul %96, %98, %cst_53 {dimension_numbers = #tpu.dot_dimension_numbers<[1], [0], [0], [1], [0, 0, 1, 1], [], []>} : vector<8x128xbf16>, vector<128x128xbf16>, vector<8x128xf32> -> vector<8x128xf32>
    %100 = arith.addf %95, %99 : vector<8x128xf32>
    %101 = arith.addf %74, %100 : vector<8x128xf32>
    %c0_54 = arith.constant 0 : index
    %c0_55 = arith.constant 0 : index
    %102 = vector.load %arg6[%c0_54, %c0_55] : memref<1x128xf32, #tpu.memory_space<vmem>>, vector<1x128xf32>
    %c0_56 = arith.constant 0 : index
    %c0_57 = arith.constant 0 : index
    %103 = vector.load %arg7[%c0_56, %c0_57] : memref<1x128xf32, #tpu.memory_space<vmem>>, vector<1x128xf32>
    %cst_58 = arith.constant dense<0.000000e+00> : vector<8x128xf32>
    %104 = tpu.matmul %21, %101, %cst_58 {dimension_numbers = #tpu.dot_dimension_numbers<[1], [0], [0], [1], [0, 0, 1, 1], [], []>} : vector<8x8xf32>, vector<8x128xf32>, vector<8x128xf32> -> vector<8x128xf32>
    %105 = vector.extract_strided_slice %104 {offsets = [0, 0], sizes = [1, 128], strides = [1, 1]} : vector<8x128xf32> to vector<1x128xf32>
    %cst_59 = arith.constant 1.250000e-01 : f32
    %106 = vector.broadcast %cst_59 : f32 to vector<1x128xf32>
    %107 = arith.mulf %105, %106 : vector<1x128xf32>
    %108 = vector.broadcast %107 : vector<1x128xf32> to vector<8x128xf32>
    %109 = arith.subf %101, %108 : vector<8x128xf32>
    %110 = arith.mulf %109, %109 : vector<8x128xf32>
    %cst_60 = arith.constant dense<0.000000e+00> : vector<8x128xf32>
    %111 = tpu.matmul %21, %110, %cst_60 {dimension_numbers = #tpu.dot_dimension_numbers<[1], [0], [0], [1], [0, 0, 1, 1], [], []>} : vector<8x8xf32>, vector<8x128xf32>, vector<8x128xf32> -> vector<8x128xf32>
    %112 = vector.extract_strided_slice %111 {offsets = [0, 0], sizes = [1, 128], strides = [1, 1]} : vector<8x128xf32> to vector<1x128xf32>
    %cst_61 = arith.constant 1.250000e-01 : f32
    %113 = vector.broadcast %cst_61 : f32 to vector<1x128xf32>
    %114 = arith.mulf %112, %113 : vector<1x128xf32>
    %cst_62 = arith.constant 0.000000e+00 : f32
    %115 = vector.broadcast %cst_62 : f32 to vector<1x128xf32>
    %116 = arith.maximumf %114, %115 : vector<1x128xf32>
    %cst_63 = arith.constant 9.99999974E-6 : f32
    %117 = vector.broadcast %cst_63 : f32 to vector<1x128xf32>
    %118 = arith.addf %116, %117 : vector<1x128xf32>
    %119 = math.rsqrt %118 : vector<1x128xf32>
    %120 = vector.broadcast %119 : vector<1x128xf32> to vector<8x128xf32>
    %121 = arith.mulf %109, %120 : vector<8x128xf32>
    %122 = vector.broadcast %102 : vector<1x128xf32> to vector<8x128xf32>
    %123 = arith.mulf %121, %122 : vector<8x128xf32>
    %124 = vector.broadcast %103 : vector<1x128xf32> to vector<8x128xf32>
    %125 = arith.addf %123, %124 : vector<8x128xf32>
    %cst_64 = arith.constant 0.000000e+00 : f32
    %126 = vector.broadcast %cst_64 : f32 to vector<8x128xf32>
    %127 = arith.maximumf %125, %126 : vector<8x128xf32>
    %c1_i32_65 = arith.constant 1 : i32
    %128 = tpu.dynamic_rotate %127 by %c1_i32_65 dim 0 : vector<8x128xf32>, i32 -> vector<8x128xf32>
    %cst_66 = arith.constant 0.000000e+00 : f32
    %129 = vector.shape_cast %18 : vector<8x1xi1> to vector<8x1xi1>
    %130 = vector.broadcast %129 : vector<8x1xi1> to vector<8x128xi1>
    %131 = vector.broadcast %cst_66 : f32 to vector<8x128xf32>
    %132 = arith.select %130, %131, %128 : vector<8x128xi1>, vector<8x128xf32>
    %c7_i32_67 = arith.constant 7 : i32
    %133 = tpu.dynamic_rotate %127 by %c7_i32_67 dim 0 : vector<8x128xf32>, i32 -> vector<8x128xf32>
    %cst_68 = arith.constant 0.000000e+00 : f32
    %134 = vector.shape_cast %20 : vector<8x1xi1> to vector<8x1xi1>
    %135 = vector.broadcast %134 : vector<8x1xi1> to vector<8x128xi1>
    %136 = vector.broadcast %cst_68 : f32 to vector<8x128xf32>
    %137 = arith.select %135, %136, %133 : vector<8x128xi1>, vector<8x128xf32>
    %138 = arith.truncf %127 : vector<8x128xf32> to vector<8x128xbf16>
    %c1_69 = arith.constant 1 : index
    %c0_70 = arith.constant 0 : index
    %c0_71 = arith.constant 0 : index
    %139 = vector.load %arg8[%c1_69, %c0_70, %c0_71] : memref<3x128x128xbf16, #tpu.memory_space<vmem>>, vector<1x128x128xbf16>
    %140 = vector.shape_cast %139 : vector<1x128x128xbf16> to vector<128x128xbf16>
    %cst_72 = arith.constant dense<0.000000e+00> : vector<8x128xf32>
    %141 = tpu.matmul %138, %140, %cst_72 {dimension_numbers = #tpu.dot_dimension_numbers<[1], [0], [0], [1], [0, 0, 1, 1], [], []>} : vector<8x128xbf16>, vector<128x128xbf16>, vector<8x128xf32> -> vector<8x128xf32>
    %142 = arith.truncf %132 : vector<8x128xf32> to vector<8x128xbf16>
    %c0_73 = arith.constant 0 : index
    %c0_74 = arith.constant 0 : index
    %c0_75 = arith.constant 0 : index
    %143 = vector.load %arg8[%c0_73, %c0_74, %c0_75] : memref<3x128x128xbf16, #tpu.memory_space<vmem>>, vector<1x128x128xbf16>
    %144 = vector.shape_cast %143 : vector<1x128x128xbf16> to vector<128x128xbf16>
    %cst_76 = arith.constant dense<0.000000e+00> : vector<8x128xf32>
    %145 = tpu.matmul %142, %144, %cst_76 {dimension_numbers = #tpu.dot_dimension_numbers<[1], [0], [0], [1], [0, 0, 1, 1], [], []>} : vector<8x128xbf16>, vector<128x128xbf16>, vector<8x128xf32> -> vector<8x128xf32>
    %146 = arith.addf %141, %145 : vector<8x128xf32>
    %147 = arith.truncf %137 : vector<8x128xf32> to vector<8x128xbf16>
    %c2_77 = arith.constant 2 : index
    %c0_78 = arith.constant 0 : index
    %c0_79 = arith.constant 0 : index
    %148 = vector.load %arg8[%c2_77, %c0_78, %c0_79] : memref<3x128x128xbf16, #tpu.memory_space<vmem>>, vector<1x128x128xbf16>
    %149 = vector.shape_cast %148 : vector<1x128x128xbf16> to vector<128x128xbf16>
    %cst_80 = arith.constant dense<0.000000e+00> : vector<8x128xf32>
    %150 = tpu.matmul %147, %149, %cst_80 {dimension_numbers = #tpu.dot_dimension_numbers<[1], [0], [0], [1], [0, 0, 1, 1], [], []>} : vector<8x128xbf16>, vector<128x128xbf16>, vector<8x128xf32> -> vector<8x128xf32>
    %151 = arith.addf %146, %150 : vector<8x128xf32>
    %c0_81 = arith.constant 0 : index
    %c0_82 = arith.constant 0 : index
    %152 = vector.load %arg9[%c0_81, %c0_82] : memref<1x128xf32, #tpu.memory_space<vmem>>, vector<1x128xf32>
    %c0_83 = arith.constant 0 : index
    %c0_84 = arith.constant 0 : index
    %153 = vector.load %arg10[%c0_83, %c0_84] : memref<1x128xf32, #tpu.memory_space<vmem>>, vector<1x128xf32>
    %cst_85 = arith.constant dense<0.000000e+00> : vector<8x128xf32>
    %154 = tpu.matmul %21, %151, %cst_85 {dimension_numbers = #tpu.dot_dimension_numbers<[1], [0], [0], [1], [0, 0, 1, 1], [], []>} : vector<8x8xf32>, vector<8x128xf32>, vector<8x128xf32> -> vector<8x128xf32>
    %155 = vector.extract_strided_slice %154 {offsets = [0, 0], sizes = [1, 128], strides = [1, 1]} : vector<8x128xf32> to vector<1x128xf32>
    %cst_86 = arith.constant 1.250000e-01 : f32
    %156 = vector.broadcast %cst_86 : f32 to vector<1x128xf32>
    %157 = arith.mulf %155, %156 : vector<1x128xf32>
    %158 = vector.broadcast %157 : vector<1x128xf32> to vector<8x128xf32>
    %159 = arith.subf %151, %158 : vector<8x128xf32>
    %160 = arith.mulf %159, %159 : vector<8x128xf32>
    %cst_87 = arith.constant dense<0.000000e+00> : vector<8x128xf32>
    %161 = tpu.matmul %21, %160, %cst_87 {dimension_numbers = #tpu.dot_dimension_numbers<[1], [0], [0], [1], [0, 0, 1, 1], [], []>} : vector<8x8xf32>, vector<8x128xf32>, vector<8x128xf32> -> vector<8x128xf32>
    %162 = vector.extract_strided_slice %161 {offsets = [0, 0], sizes = [1, 128], strides = [1, 1]} : vector<8x128xf32> to vector<1x128xf32>
    %cst_88 = arith.constant 1.250000e-01 : f32
    %163 = vector.broadcast %cst_88 : f32 to vector<1x128xf32>
    %164 = arith.mulf %162, %163 : vector<1x128xf32>
    %cst_89 = arith.constant 0.000000e+00 : f32
    %165 = vector.broadcast %cst_89 : f32 to vector<1x128xf32>
    %166 = arith.maximumf %164, %165 : vector<1x128xf32>
    %cst_90 = arith.constant 9.99999974E-6 : f32
    %167 = vector.broadcast %cst_90 : f32 to vector<1x128xf32>
    %168 = arith.addf %166, %167 : vector<1x128xf32>
    %169 = math.rsqrt %168 : vector<1x128xf32>
    %170 = vector.broadcast %169 : vector<1x128xf32> to vector<8x128xf32>
    %171 = arith.mulf %159, %170 : vector<8x128xf32>
    %172 = vector.broadcast %152 : vector<1x128xf32> to vector<8x128xf32>
    %173 = arith.mulf %171, %172 : vector<8x128xf32>
    %174 = vector.broadcast %153 : vector<1x128xf32> to vector<8x128xf32>
    %175 = arith.addf %173, %174 : vector<8x128xf32>
    %cst_91 = arith.constant 0.000000e+00 : f32
    %176 = vector.broadcast %cst_91 : f32 to vector<8x128xf32>
    %177 = arith.maximumf %175, %176 : vector<8x128xf32>
    %178 = arith.truncf %177 : vector<8x128xf32> to vector<8x128xbf16>
    %c0_92 = arith.constant 0 : index
    %c0_93 = arith.constant 0 : index
    %179 = vector.load %arg11[%c0_92, %c0_93] : memref<8x128xbf16, #tpu.memory_space<vmem>>, vector<8x128xbf16>
    tpu.vector_store %arg11[%c0_92, %c0_93], %178 {strides = array<i32>} : memref<8x128xbf16, #tpu.memory_space<vmem>>, vector<8x128xbf16>,
    return
  }
}

module attributes {stable_mosaic.version = 11 : i64} {
  func.func @_decoder_stage_kernel(%arg0: memref<16x128xbf16, #tpu.memory_space<vmem>>, %arg1: memref<16x64xbf16, #tpu.memory_space<vmem>>, %arg2: memref<3x128x64xbf16, #tpu.memory_space<vmem>>, %arg3: memref<1x64xf32, #tpu.memory_space<vmem>>, %arg4: memref<3x64x64xbf16, #tpu.memory_space<vmem>>, %arg5: memref<3x64x64xbf16, #tpu.memory_space<vmem>>, %arg6: memref<1x64xf32, #tpu.memory_space<vmem>>, %arg7: memref<1x64xf32, #tpu.memory_space<vmem>>, %arg8: memref<3x64x64xbf16, #tpu.memory_space<vmem>>, %arg9: memref<1x64xf32, #tpu.memory_space<vmem>>, %arg10: memref<1x64xf32, #tpu.memory_space<vmem>>, %arg11: memref<16x64xbf16, #tpu.memory_space<vmem>>) attributes {dimension_semantics = [], scalar_prefetch = 0 : i64, scratch_operands = 0 : i64, tpu.core_type = #tpu.core_type<tc>} {
    %0 = tpu.iota {dimensions = array<i32: 0>} : vector<16x1xi32>
    %c8_i32 = arith.constant 8 : i32
    %c0_i32 = arith.constant 0 : i32
    %1 = arith.cmpi eq, %c8_i32, %c0_i32 : i32
    %c1_i32 = arith.constant 1 : i32
    %2 = arith.select %1, %c1_i32, %c8_i32 : i32
    %3 = vector.broadcast %2 : i32 to vector<16x1xi32>
    %4 = arith.remsi %0, %3 : vector<16x1xi32>
    %c0_i32_0 = arith.constant 0 : i32
    %5 = vector.broadcast %c0_i32_0 : i32 to vector<16x1xi32>
    %6 = arith.cmpi ne, %4, %5 : vector<16x1xi32>
    %c0_i32_1 = arith.constant 0 : i32
    %7 = vector.broadcast %c0_i32_1 : i32 to vector<16x1xi32>
    %8 = arith.cmpi slt, %4, %7 : vector<16x1xi32>
    %c0_i32_2 = arith.constant 0 : i32
    %9 = arith.cmpi slt, %2, %c0_i32_2 : i32
    %10 = vector.broadcast %9 : i1 to vector<16x1xi1>
    %11 = vector.broadcast %10 : vector<16x1xi1> to vector<16x1xi1>
    %12 = arith.xori %8, %11 : vector<16x1xi1>
    %13 = arith.andi %12, %6 : vector<16x1xi1>
    %14 = vector.broadcast %2 : i32 to vector<16x1xi32>
    %15 = arith.addi %4, %14 : vector<16x1xi32>
    %16 = arith.select %13, %15, %4 : vector<16x1xi1>, vector<16x1xi32>
    %c0_i32_3 = arith.constant 0 : i32
    %17 = vector.broadcast %c0_i32_3 : i32 to vector<16x1xi32>
    %18 = arith.cmpi eq, %16, %17 : vector<16x1xi32>
    %c7_i32 = arith.constant 7 : i32
    %19 = vector.broadcast %c7_i32 : i32 to vector<16x1xi32>
    %20 = arith.cmpi eq, %16, %19 : vector<16x1xi32>
    %cst = arith.constant 1.000000e+00 : f32
    %21 = vector.broadcast %cst : f32 to vector<8x16xf32>
    %c0 = arith.constant 0 : index
    %c0_4 = arith.constant 0 : index
    %22 = vector.load %arg0[%c0, %c0_4] : memref<16x128xbf16, #tpu.memory_space<vmem>>, vector<16x128xbf16>
    %23 = arith.extf %22 : vector<16x128xbf16> to vector<16x128xf32>
    %c0_5 = arith.constant 0 : index
    %c0_6 = arith.constant 0 : index
    %24 = vector.load %arg3[%c0_5, %c0_6] : memref<1x64xf32, #tpu.memory_space<vmem>>, vector<1x64xf32>
    %c1_i32_7 = arith.constant 1 : i32
    %25 = tpu.dynamic_rotate %23 by %c1_i32_7 dim 0 : vector<16x128xf32>, i32 -> vector<16x128xf32>
    %cst_8 = arith.constant 0.000000e+00 : f32
    %26 = vector.shape_cast %18 : vector<16x1xi1> to vector<16x1xi1>
    %27 = vector.broadcast %26 : vector<16x1xi1> to vector<16x128xi1>
    %28 = vector.broadcast %cst_8 : f32 to vector<16x128xf32>
    %29 = arith.select %27, %28, %25 : vector<16x128xi1>, vector<16x128xf32>
    %c15_i32 = arith.constant 15 : i32
    %30 = tpu.dynamic_rotate %23 by %c15_i32 dim 0 : vector<16x128xf32>, i32 -> vector<16x128xf32>
    %cst_9 = arith.constant 0.000000e+00 : f32
    %31 = vector.shape_cast %20 : vector<16x1xi1> to vector<16x1xi1>
    %32 = vector.broadcast %31 : vector<16x1xi1> to vector<16x128xi1>
    %33 = vector.broadcast %cst_9 : f32 to vector<16x128xf32>
    %34 = arith.select %32, %33, %30 : vector<16x128xi1>, vector<16x128xf32>
    %35 = arith.truncf %23 : vector<16x128xf32> to vector<16x128xbf16>
    %c1 = arith.constant 1 : index
    %c0_10 = arith.constant 0 : index
    %c0_11 = arith.constant 0 : index
    %36 = vector.load %arg2[%c1, %c0_10, %c0_11] : memref<3x128x64xbf16, #tpu.memory_space<vmem>>, vector<1x128x64xbf16>
    %37 = vector.shape_cast %36 : vector<1x128x64xbf16> to vector<128x64xbf16>
    %cst_12 = arith.constant dense<0.000000e+00> : vector<16x64xf32>
    %38 = tpu.matmul %35, %37, %cst_12 {dimension_numbers = #tpu.dot_dimension_numbers<[1], [0], [0], [1], [0, 0, 1, 1], [], []>} : vector<16x128xbf16>, vector<128x64xbf16>, vector<16x64xf32> -> vector<16x64xf32>
    %39 = arith.truncf %29 : vector<16x128xf32> to vector<16x128xbf16>
    %c0_13 = arith.constant 0 : index
    %c0_14 = arith.constant 0 : index
    %c0_15 = arith.constant 0 : index
    %40 = vector.load %arg2[%c0_13, %c0_14, %c0_15] : memref<3x128x64xbf16, #tpu.memory_space<vmem>>, vector<1x128x64xbf16>
    %41 = vector.shape_cast %40 : vector<1x128x64xbf16> to vector<128x64xbf16>
    %cst_16 = arith.constant dense<0.000000e+00> : vector<16x64xf32>
    %42 = tpu.matmul %39, %41, %cst_16 {dimension_numbers = #tpu.dot_dimension_numbers<[1], [0], [0], [1], [0, 0, 1, 1], [], []>} : vector<16x128xbf16>, vector<128x64xbf16>, vector<16x64xf32> -> vector<16x64xf32>
    %43 = arith.addf %38, %42 : vector<16x64xf32>
    %44 = arith.truncf %34 : vector<16x128xf32> to vector<16x128xbf16>
    %c2 = arith.constant 2 : index
    %c0_17 = arith.constant 0 : index
    %c0_18 = arith.constant 0 : index
    %45 = vector.load %arg2[%c2, %c0_17, %c0_18] : memref<3x128x64xbf16, #tpu.memory_space<vmem>>, vector<1x128x64xbf16>
    %46 = vector.shape_cast %45 : vector<1x128x64xbf16> to vector<128x64xbf16>
    %cst_19 = arith.constant dense<0.000000e+00> : vector<16x64xf32>
    %47 = tpu.matmul %44, %46, %cst_19 {dimension_numbers = #tpu.dot_dimension_numbers<[1], [0], [0], [1], [0, 0, 1, 1], [], []>} : vector<16x128xbf16>, vector<128x64xbf16>, vector<16x64xf32> -> vector<16x64xf32>
    %48 = arith.addf %43, %47 : vector<16x64xf32>
    %49 = vector.broadcast %24 : vector<1x64xf32> to vector<16x64xf32>
    %50 = arith.addf %48, %49 : vector<16x64xf32>
    %c1_i32_20 = arith.constant 1 : i32
    %51 = tpu.dynamic_rotate %50 by %c1_i32_20 dim 0 : vector<16x64xf32>, i32 -> vector<16x64xf32>
    %cst_21 = arith.constant 0.000000e+00 : f32
    %52 = vector.shape_cast %18 : vector<16x1xi1> to vector<16x1xi1>
    %53 = vector.broadcast %52 : vector<16x1xi1> to vector<16x64xi1>
    %54 = vector.broadcast %cst_21 : f32 to vector<16x64xf32>
    %55 = arith.select %53, %54, %51 : vector<16x64xi1>, vector<16x64xf32>
    %c15_i32_22 = arith.constant 15 : i32
    %56 = tpu.dynamic_rotate %50 by %c15_i32_22 dim 0 : vector<16x64xf32>, i32 -> vector<16x64xf32>
    %cst_23 = arith.constant 0.000000e+00 : f32
    %57 = vector.shape_cast %20 : vector<16x1xi1> to vector<16x1xi1>
    %58 = vector.broadcast %57 : vector<16x1xi1> to vector<16x64xi1>
    %59 = vector.broadcast %cst_23 : f32 to vector<16x64xf32>
    %60 = arith.select %58, %59, %56 : vector<16x64xi1>, vector<16x64xf32>
    %61 = arith.truncf %50 : vector<16x64xf32> to vector<16x64xbf16>
    %c1_24 = arith.constant 1 : index
    %c0_25 = arith.constant 0 : index
    %c0_26 = arith.constant 0 : index
    %62 = vector.load %arg4[%c1_24, %c0_25, %c0_26] : memref<3x64x64xbf16, #tpu.memory_space<vmem>>, vector<1x64x64xbf16>
    %63 = vector.shape_cast %62 : vector<1x64x64xbf16> to vector<64x64xbf16>
    %cst_27 = arith.constant dense<0.000000e+00> : vector<16x64xf32>
    %64 = tpu.matmul %61, %63, %cst_27 {dimension_numbers = #tpu.dot_dimension_numbers<[1], [0], [0], [1], [0, 0, 1, 1], [], []>} : vector<16x64xbf16>, vector<64x64xbf16>, vector<16x64xf32> -> vector<16x64xf32>
    %65 = arith.truncf %55 : vector<16x64xf32> to vector<16x64xbf16>
    %c0_28 = arith.constant 0 : index
    %c0_29 = arith.constant 0 : index
    %c0_30 = arith.constant 0 : index
    %66 = vector.load %arg4[%c0_28, %c0_29, %c0_30] : memref<3x64x64xbf16, #tpu.memory_space<vmem>>, vector<1x64x64xbf16>
    %67 = vector.shape_cast %66 : vector<1x64x64xbf16> to vector<64x64xbf16>
    %cst_31 = arith.constant dense<0.000000e+00> : vector<16x64xf32>
    %68 = tpu.matmul %65, %67, %cst_31 {dimension_numbers = #tpu.dot_dimension_numbers<[1], [0], [0], [1], [0, 0, 1, 1], [], []>} : vector<16x64xbf16>, vector<64x64xbf16>, vector<16x64xf32> -> vector<16x64xf32>
    %69 = arith.addf %64, %68 : vector<16x64xf32>
    %70 = arith.truncf %60 : vector<16x64xf32> to vector<16x64xbf16>
    %c2_32 = arith.constant 2 : index
    %c0_33 = arith.constant 0 : index
    %c0_34 = arith.constant 0 : index
    %71 = vector.load %arg4[%c2_32, %c0_33, %c0_34] : memref<3x64x64xbf16, #tpu.memory_space<vmem>>, vector<1x64x64xbf16>
    %72 = vector.shape_cast %71 : vector<1x64x64xbf16> to vector<64x64xbf16>
    %cst_35 = arith.constant dense<0.000000e+00> : vector<16x64xf32>
    %73 = tpu.matmul %70, %72, %cst_35 {dimension_numbers = #tpu.dot_dimension_numbers<[1], [0], [0], [1], [0, 0, 1, 1], [], []>} : vector<16x64xbf16>, vector<64x64xbf16>, vector<16x64xf32> -> vector<16x64xf32>
    %74 = arith.addf %69, %73 : vector<16x64xf32>
    %c0_36 = arith.constant 0 : index
    %c0_37 = arith.constant 0 : index
    %75 = vector.load %arg1[%c0_36, %c0_37] : memref<16x64xbf16, #tpu.memory_space<vmem>>, vector<16x64xbf16>
    %76 = arith.extf %75 : vector<16x64xbf16> to vector<16x64xf32>
    %c1_i32_38 = arith.constant 1 : i32
    %77 = tpu.dynamic_rotate %76 by %c1_i32_38 dim 0 : vector<16x64xf32>, i32 -> vector<16x64xf32>
    %cst_39 = arith.constant 0.000000e+00 : f32
    %78 = vector.shape_cast %18 : vector<16x1xi1> to vector<16x1xi1>
    %79 = vector.broadcast %78 : vector<16x1xi1> to vector<16x64xi1>
    %80 = vector.broadcast %cst_39 : f32 to vector<16x64xf32>
    %81 = arith.select %79, %80, %77 : vector<16x64xi1>, vector<16x64xf32>
    %c15_i32_40 = arith.constant 15 : i32
    %82 = tpu.dynamic_rotate %76 by %c15_i32_40 dim 0 : vector<16x64xf32>, i32 -> vector<16x64xf32>
    %cst_41 = arith.constant 0.000000e+00 : f32
    %83 = vector.shape_cast %20 : vector<16x1xi1> to vector<16x1xi1>
    %84 = vector.broadcast %83 : vector<16x1xi1> to vector<16x64xi1>
    %85 = vector.broadcast %cst_41 : f32 to vector<16x64xf32>
    %86 = arith.select %84, %85, %82 : vector<16x64xi1>, vector<16x64xf32>
    %87 = arith.truncf %76 : vector<16x64xf32> to vector<16x64xbf16>
    %c1_42 = arith.constant 1 : index
    %c0_43 = arith.constant 0 : index
    %c0_44 = arith.constant 0 : index
    %88 = vector.load %arg5[%c1_42, %c0_43, %c0_44] : memref<3x64x64xbf16, #tpu.memory_space<vmem>>, vector<1x64x64xbf16>
    %89 = vector.shape_cast %88 : vector<1x64x64xbf16> to vector<64x64xbf16>
    %cst_45 = arith.constant dense<0.000000e+00> : vector<16x64xf32>
    %90 = tpu.matmul %87, %89, %cst_45 {dimension_numbers = #tpu.dot_dimension_numbers<[1], [0], [0], [1], [0, 0, 1, 1], [], []>} : vector<16x64xbf16>, vector<64x64xbf16>, vector<16x64xf32> -> vector<16x64xf32>
    %91 = arith.truncf %81 : vector<16x64xf32> to vector<16x64xbf16>
    %c0_46 = arith.constant 0 : index
    %c0_47 = arith.constant 0 : index
    %c0_48 = arith.constant 0 : index
    %92 = vector.load %arg5[%c0_46, %c0_47, %c0_48] : memref<3x64x64xbf16, #tpu.memory_space<vmem>>, vector<1x64x64xbf16>
    %93 = vector.shape_cast %92 : vector<1x64x64xbf16> to vector<64x64xbf16>
    %cst_49 = arith.constant dense<0.000000e+00> : vector<16x64xf32>
    %94 = tpu.matmul %91, %93, %cst_49 {dimension_numbers = #tpu.dot_dimension_numbers<[1], [0], [0], [1], [0, 0, 1, 1], [], []>} : vector<16x64xbf16>, vector<64x64xbf16>, vector<16x64xf32> -> vector<16x64xf32>
    %95 = arith.addf %90, %94 : vector<16x64xf32>
    %96 = arith.truncf %86 : vector<16x64xf32> to vector<16x64xbf16>
    %c2_50 = arith.constant 2 : index
    %c0_51 = arith.constant 0 : index
    %c0_52 = arith.constant 0 : index
    %97 = vector.load %arg5[%c2_50, %c0_51, %c0_52] : memref<3x64x64xbf16, #tpu.memory_space<vmem>>, vector<1x64x64xbf16>
    %98 = vector.shape_cast %97 : vector<1x64x64xbf16> to vector<64x64xbf16>
    %cst_53 = arith.constant dense<0.000000e+00> : vector<16x64xf32>
    %99 = tpu.matmul %96, %98, %cst_53 {dimension_numbers = #tpu.dot_dimension_numbers<[1], [0], [0], [1], [0, 0, 1, 1], [], []>} : vector<16x64xbf16>, vector<64x64xbf16>, vector<16x64xf32> -> vector<16x64xf32>
    %100 = arith.addf %95, %99 : vector<16x64xf32>
    %101 = arith.addf %74, %100 : vector<16x64xf32>
    %c0_54 = arith.constant 0 : index
    %c0_55 = arith.constant 0 : index
    %102 = vector.load %arg6[%c0_54, %c0_55] : memref<1x64xf32, #tpu.memory_space<vmem>>, vector<1x64xf32>
    %c0_56 = arith.constant 0 : index
    %c0_57 = arith.constant 0 : index
    %103 = vector.load %arg7[%c0_56, %c0_57] : memref<1x64xf32, #tpu.memory_space<vmem>>, vector<1x64xf32>
    %cst_58 = arith.constant dense<0.000000e+00> : vector<8x64xf32>
    %104 = tpu.matmul %21, %101, %cst_58 {dimension_numbers = #tpu.dot_dimension_numbers<[1], [0], [0], [1], [0, 0, 1, 1], [], []>} : vector<8x16xf32>, vector<16x64xf32>, vector<8x64xf32> -> vector<8x64xf32>
    %105 = vector.extract_strided_slice %104 {offsets = [0, 0], sizes = [1, 64], strides = [1, 1]} : vector<8x64xf32> to vector<1x64xf32>
    %cst_59 = arith.constant 6.250000e-02 : f32
    %106 = vector.broadcast %cst_59 : f32 to vector<1x64xf32>
    %107 = arith.mulf %105, %106 : vector<1x64xf32>
    %108 = vector.broadcast %107 : vector<1x64xf32> to vector<16x64xf32>
    %109 = arith.subf %101, %108 : vector<16x64xf32>
    %110 = arith.mulf %109, %109 : vector<16x64xf32>
    %cst_60 = arith.constant dense<0.000000e+00> : vector<8x64xf32>
    %111 = tpu.matmul %21, %110, %cst_60 {dimension_numbers = #tpu.dot_dimension_numbers<[1], [0], [0], [1], [0, 0, 1, 1], [], []>} : vector<8x16xf32>, vector<16x64xf32>, vector<8x64xf32> -> vector<8x64xf32>
    %112 = vector.extract_strided_slice %111 {offsets = [0, 0], sizes = [1, 64], strides = [1, 1]} : vector<8x64xf32> to vector<1x64xf32>
    %cst_61 = arith.constant 6.250000e-02 : f32
    %113 = vector.broadcast %cst_61 : f32 to vector<1x64xf32>
    %114 = arith.mulf %112, %113 : vector<1x64xf32>
    %cst_62 = arith.constant 0.000000e+00 : f32
    %115 = vector.broadcast %cst_62 : f32 to vector<1x64xf32>
    %116 = arith.maximumf %114, %115 : vector<1x64xf32>
    %cst_63 = arith.constant 9.99999974E-6 : f32
    %117 = vector.broadcast %cst_63 : f32 to vector<1x64xf32>
    %118 = arith.addf %116, %117 : vector<1x64xf32>
    %119 = math.rsqrt %118 : vector<1x64xf32>
    %120 = vector.broadcast %119 : vector<1x64xf32> to vector<16x64xf32>
    %121 = arith.mulf %109, %120 : vector<16x64xf32>
    %122 = vector.broadcast %102 : vector<1x64xf32> to vector<16x64xf32>
    %123 = arith.mulf %121, %122 : vector<16x64xf32>
    %124 = vector.broadcast %103 : vector<1x64xf32> to vector<16x64xf32>
    %125 = arith.addf %123, %124 : vector<16x64xf32>
    %cst_64 = arith.constant 0.000000e+00 : f32
    %126 = vector.broadcast %cst_64 : f32 to vector<16x64xf32>
    %127 = arith.maximumf %125, %126 : vector<16x64xf32>
    %c1_i32_65 = arith.constant 1 : i32
    %128 = tpu.dynamic_rotate %127 by %c1_i32_65 dim 0 : vector<16x64xf32>, i32 -> vector<16x64xf32>
    %cst_66 = arith.constant 0.000000e+00 : f32
    %129 = vector.shape_cast %18 : vector<16x1xi1> to vector<16x1xi1>
    %130 = vector.broadcast %129 : vector<16x1xi1> to vector<16x64xi1>
    %131 = vector.broadcast %cst_66 : f32 to vector<16x64xf32>
    %132 = arith.select %130, %131, %128 : vector<16x64xi1>, vector<16x64xf32>
    %c15_i32_67 = arith.constant 15 : i32
    %133 = tpu.dynamic_rotate %127 by %c15_i32_67 dim 0 : vector<16x64xf32>, i32 -> vector<16x64xf32>
    %cst_68 = arith.constant 0.000000e+00 : f32
    %134 = vector.shape_cast %20 : vector<16x1xi1> to vector<16x1xi1>
    %135 = vector.broadcast %134 : vector<16x1xi1> to vector<16x64xi1>
    %136 = vector.broadcast %cst_68 : f32 to vector<16x64xf32>
    %137 = arith.select %135, %136, %133 : vector<16x64xi1>, vector<16x64xf32>
    %138 = arith.truncf %127 : vector<16x64xf32> to vector<16x64xbf16>
    %c1_69 = arith.constant 1 : index
    %c0_70 = arith.constant 0 : index
    %c0_71 = arith.constant 0 : index
    %139 = vector.load %arg8[%c1_69, %c0_70, %c0_71] : memref<3x64x64xbf16, #tpu.memory_space<vmem>>, vector<1x64x64xbf16>
    %140 = vector.shape_cast %139 : vector<1x64x64xbf16> to vector<64x64xbf16>
    %cst_72 = arith.constant dense<0.000000e+00> : vector<16x64xf32>
    %141 = tpu.matmul %138, %140, %cst_72 {dimension_numbers = #tpu.dot_dimension_numbers<[1], [0], [0], [1], [0, 0, 1, 1], [], []>} : vector<16x64xbf16>, vector<64x64xbf16>, vector<16x64xf32> -> vector<16x64xf32>
    %142 = arith.truncf %132 : vector<16x64xf32> to vector<16x64xbf16>
    %c0_73 = arith.constant 0 : index
    %c0_74 = arith.constant 0 : index
    %c0_75 = arith.constant 0 : index
    %143 = vector.load %arg8[%c0_73, %c0_74, %c0_75] : memref<3x64x64xbf16, #tpu.memory_space<vmem>>, vector<1x64x64xbf16>
    %144 = vector.shape_cast %143 : vector<1x64x64xbf16> to vector<64x64xbf16>
    %cst_76 = arith.constant dense<0.000000e+00> : vector<16x64xf32>
    %145 = tpu.matmul %142, %144, %cst_76 {dimension_numbers = #tpu.dot_dimension_numbers<[1], [0], [0], [1], [0, 0, 1, 1], [], []>} : vector<16x64xbf16>, vector<64x64xbf16>, vector<16x64xf32> -> vector<16x64xf32>
    %146 = arith.addf %141, %145 : vector<16x64xf32>
    %147 = arith.truncf %137 : vector<16x64xf32> to vector<16x64xbf16>
    %c2_77 = arith.constant 2 : index
    %c0_78 = arith.constant 0 : index
    %c0_79 = arith.constant 0 : index
    %148 = vector.load %arg8[%c2_77, %c0_78, %c0_79] : memref<3x64x64xbf16, #tpu.memory_space<vmem>>, vector<1x64x64xbf16>
    %149 = vector.shape_cast %148 : vector<1x64x64xbf16> to vector<64x64xbf16>
    %cst_80 = arith.constant dense<0.000000e+00> : vector<16x64xf32>
    %150 = tpu.matmul %147, %149, %cst_80 {dimension_numbers = #tpu.dot_dimension_numbers<[1], [0], [0], [1], [0, 0, 1, 1], [], []>} : vector<16x64xbf16>, vector<64x64xbf16>, vector<16x64xf32> -> vector<16x64xf32>
    %151 = arith.addf %146, %150 : vector<16x64xf32>
    %c0_81 = arith.constant 0 : index
    %c0_82 = arith.constant 0 : index
    %152 = vector.load %arg9[%c0_81, %c0_82] : memref<1x64xf32, #tpu.memory_space<vmem>>, vector<1x64xf32>
    %c0_83 = arith.constant 0 : index
    %c0_84 = arith.constant 0 : index
    %153 = vector.load %arg10[%c0_83, %c0_84] : memref<1x64xf32, #tpu.memory_space<vmem>>, vector<1x64xf32>
    %cst_85 = arith.constant dense<0.000000e+00> : vector<8x64xf32>
    %154 = tpu.matmul %21, %151, %cst_85 {dimension_numbers = #tpu.dot_dimension_numbers<[1], [0], [0], [1], [0, 0, 1, 1], [], []>} : vector<8x16xf32>, vector<16x64xf32>, vector<8x64xf32> -> vector<8x64xf32>
    %155 = vector.extract_strided_slice %154 {offsets = [0, 0], sizes = [1, 64], strides = [1, 1]} : vector<8x64xf32> to vector<1x64xf32>
    %cst_86 = arith.constant 6.250000e-02 : f32
    %156 = vector.broadcast %cst_86 : f32 to vector<1x64xf32>
    %157 = arith.mulf %155, %156 : vector<1x64xf32>
    %158 = vector.broadcast %157 : vector<1x64xf32> to vector<16x64xf32>
    %159 = arith.subf %151, %158 : vector<16x64xf32>
    %160 = arith.mulf %159, %159 : vector<16x64xf32>
    %cst_87 = arith.constant dense<0.000000e+00> : vector<8x64xf32>
    %161 = tpu.matmul %21, %160, %cst_87 {dimension_numbers = #tpu.dot_dimension_numbers<[1], [0], [0], [1], [0, 0, 1, 1], [], []>} : vector<8x16xf32>, vector<16x64xf32>, vector<8x64xf32> -> vector<8x64xf32>
    %162 = vector.extract_strided_slice %161 {offsets = [0, 0], sizes = [1, 64], strides = [1, 1]} : vector<8x64xf32> to vector<1x64xf32>
    %cst_88 = arith.constant 6.250000e-02 : f32
    %163 = vector.broadcast %cst_88 : f32 to vector<1x64xf32>
    %164 = arith.mulf %162, %163 : vector<1x64xf32>
    %cst_89 = arith.constant 0.000000e+00 : f32
    %165 = vector.broadcast %cst_89 : f32 to vector<1x64xf32>
    %166 = arith.maximumf %164, %165 : vector<1x64xf32>
    %cst_90 = arith.constant 9.99999974E-6 : f32
    %167 = vector.broadcast %cst_90 : f32 to vector<1x64xf32>
    %168 = arith.addf %166, %167 : vector<1x64xf32>
    %169 = math.rsqrt %168 : vector<1x64xf32>
    %170 = vector.broadcast %169 : vector<1x64xf32> to vector<16x64xf32>
    %171 = arith.mulf %159, %170 : vector<16x64xf32>
    %172 = vector.broadcast %152 : vector<1x64xf32> to vector<16x64xf32>
    %173 = arith.mulf %171, %172 : vector<16x64xf32>
    %174 = vector.broadcast %153 : vector<1x64xf32> to vector<16x64xf32>
    %175 = arith.addf %173, %174 : vector<16x64xf32>
    %cst_91 = arith.constant 0.000000e+00 : f32
    %176 = vector.broadcast %cst_91 : f32 to vector<16x64xf32>
    %177 = arith.maximumf %175, %176 : vector<16x64xf32>
    %178 = arith.truncf %177 : vector<16x64xf32> to vector<16x64xbf16>
    %c0_92 = arith.constant 0 : index
    %c0_93 = arith.constant 0 : index
    %179 = vector.load %arg11[%c0_92, %c0_93] : memref<16x64xbf16, #tpu.memory_space<vmem>>, vector<16x64xbf16>
    tpu.vector_store %arg11[%c0_92, %c0_93], %178 {strides = array<i32>} : memref<16x64xbf16, #tpu.memory_space<vmem>>, vector<16x64xbf16>,
    return
  }
}

module attributes {stable_mosaic.version = 11 : i64} {
  func.func @_decoder_stage_kernel(%arg0: memref<32x64xbf16, #tpu.memory_space<vmem>>, %arg1: memref<32x32xbf16, #tpu.memory_space<vmem>>, %arg2: memref<3x64x32xbf16, #tpu.memory_space<vmem>>, %arg3: memref<1x32xf32, #tpu.memory_space<vmem>>, %arg4: memref<3x32x32xbf16, #tpu.memory_space<vmem>>, %arg5: memref<3x32x32xbf16, #tpu.memory_space<vmem>>, %arg6: memref<1x32xf32, #tpu.memory_space<vmem>>, %arg7: memref<1x32xf32, #tpu.memory_space<vmem>>, %arg8: memref<3x32x32xbf16, #tpu.memory_space<vmem>>, %arg9: memref<1x32xf32, #tpu.memory_space<vmem>>, %arg10: memref<1x32xf32, #tpu.memory_space<vmem>>, %arg11: memref<32x32xbf16, #tpu.memory_space<vmem>>) attributes {dimension_semantics = [], scalar_prefetch = 0 : i64, scratch_operands = 0 : i64, tpu.core_type = #tpu.core_type<tc>} {
    %0 = tpu.iota {dimensions = array<i32: 0>} : vector<32x1xi32>
    %c16_i32 = arith.constant 16 : i32
    %c0_i32 = arith.constant 0 : i32
    %1 = arith.cmpi eq, %c16_i32, %c0_i32 : i32
    %c1_i32 = arith.constant 1 : i32
    %2 = arith.select %1, %c1_i32, %c16_i32 : i32
    %3 = vector.broadcast %2 : i32 to vector<32x1xi32>
    %4 = arith.remsi %0, %3 : vector<32x1xi32>
    %c0_i32_0 = arith.constant 0 : i32
    %5 = vector.broadcast %c0_i32_0 : i32 to vector<32x1xi32>
    %6 = arith.cmpi ne, %4, %5 : vector<32x1xi32>
    %c0_i32_1 = arith.constant 0 : i32
    %7 = vector.broadcast %c0_i32_1 : i32 to vector<32x1xi32>
    %8 = arith.cmpi slt, %4, %7 : vector<32x1xi32>
    %c0_i32_2 = arith.constant 0 : i32
    %9 = arith.cmpi slt, %2, %c0_i32_2 : i32
    %10 = vector.broadcast %9 : i1 to vector<32x1xi1>
    %11 = vector.broadcast %10 : vector<32x1xi1> to vector<32x1xi1>
    %12 = arith.xori %8, %11 : vector<32x1xi1>
    %13 = arith.andi %12, %6 : vector<32x1xi1>
    %14 = vector.broadcast %2 : i32 to vector<32x1xi32>
    %15 = arith.addi %4, %14 : vector<32x1xi32>
    %16 = arith.select %13, %15, %4 : vector<32x1xi1>, vector<32x1xi32>
    %c0_i32_3 = arith.constant 0 : i32
    %17 = vector.broadcast %c0_i32_3 : i32 to vector<32x1xi32>
    %18 = arith.cmpi eq, %16, %17 : vector<32x1xi32>
    %c15_i32 = arith.constant 15 : i32
    %19 = vector.broadcast %c15_i32 : i32 to vector<32x1xi32>
    %20 = arith.cmpi eq, %16, %19 : vector<32x1xi32>
    %cst = arith.constant 1.000000e+00 : f32
    %21 = vector.broadcast %cst : f32 to vector<8x32xf32>
    %c0 = arith.constant 0 : index
    %c0_4 = arith.constant 0 : index
    %22 = vector.load %arg0[%c0, %c0_4] : memref<32x64xbf16, #tpu.memory_space<vmem>>, vector<32x64xbf16>
    %23 = arith.extf %22 : vector<32x64xbf16> to vector<32x64xf32>
    %c0_5 = arith.constant 0 : index
    %c0_6 = arith.constant 0 : index
    %24 = vector.load %arg3[%c0_5, %c0_6] : memref<1x32xf32, #tpu.memory_space<vmem>>, vector<1x32xf32>
    %c1_i32_7 = arith.constant 1 : i32
    %25 = tpu.dynamic_rotate %23 by %c1_i32_7 dim 0 : vector<32x64xf32>, i32 -> vector<32x64xf32>
    %cst_8 = arith.constant 0.000000e+00 : f32
    %26 = vector.shape_cast %18 : vector<32x1xi1> to vector<32x1xi1>
    %27 = vector.broadcast %26 : vector<32x1xi1> to vector<32x64xi1>
    %28 = vector.broadcast %cst_8 : f32 to vector<32x64xf32>
    %29 = arith.select %27, %28, %25 : vector<32x64xi1>, vector<32x64xf32>
    %c31_i32 = arith.constant 31 : i32
    %30 = tpu.dynamic_rotate %23 by %c31_i32 dim 0 : vector<32x64xf32>, i32 -> vector<32x64xf32>
    %cst_9 = arith.constant 0.000000e+00 : f32
    %31 = vector.shape_cast %20 : vector<32x1xi1> to vector<32x1xi1>
    %32 = vector.broadcast %31 : vector<32x1xi1> to vector<32x64xi1>
    %33 = vector.broadcast %cst_9 : f32 to vector<32x64xf32>
    %34 = arith.select %32, %33, %30 : vector<32x64xi1>, vector<32x64xf32>
    %35 = arith.truncf %23 : vector<32x64xf32> to vector<32x64xbf16>
    %c1 = arith.constant 1 : index
    %c0_10 = arith.constant 0 : index
    %c0_11 = arith.constant 0 : index
    %36 = vector.load %arg2[%c1, %c0_10, %c0_11] : memref<3x64x32xbf16, #tpu.memory_space<vmem>>, vector<1x64x32xbf16>
    %37 = vector.shape_cast %36 : vector<1x64x32xbf16> to vector<64x32xbf16>
    %cst_12 = arith.constant dense<0.000000e+00> : vector<32x32xf32>
    %38 = tpu.matmul %35, %37, %cst_12 {dimension_numbers = #tpu.dot_dimension_numbers<[1], [0], [0], [1], [0, 0, 1, 1], [], []>} : vector<32x64xbf16>, vector<64x32xbf16>, vector<32x32xf32> -> vector<32x32xf32>
    %39 = arith.truncf %29 : vector<32x64xf32> to vector<32x64xbf16>
    %c0_13 = arith.constant 0 : index
    %c0_14 = arith.constant 0 : index
    %c0_15 = arith.constant 0 : index
    %40 = vector.load %arg2[%c0_13, %c0_14, %c0_15] : memref<3x64x32xbf16, #tpu.memory_space<vmem>>, vector<1x64x32xbf16>
    %41 = vector.shape_cast %40 : vector<1x64x32xbf16> to vector<64x32xbf16>
    %cst_16 = arith.constant dense<0.000000e+00> : vector<32x32xf32>
    %42 = tpu.matmul %39, %41, %cst_16 {dimension_numbers = #tpu.dot_dimension_numbers<[1], [0], [0], [1], [0, 0, 1, 1], [], []>} : vector<32x64xbf16>, vector<64x32xbf16>, vector<32x32xf32> -> vector<32x32xf32>
    %43 = arith.addf %38, %42 : vector<32x32xf32>
    %44 = arith.truncf %34 : vector<32x64xf32> to vector<32x64xbf16>
    %c2 = arith.constant 2 : index
    %c0_17 = arith.constant 0 : index
    %c0_18 = arith.constant 0 : index
    %45 = vector.load %arg2[%c2, %c0_17, %c0_18] : memref<3x64x32xbf16, #tpu.memory_space<vmem>>, vector<1x64x32xbf16>
    %46 = vector.shape_cast %45 : vector<1x64x32xbf16> to vector<64x32xbf16>
    %cst_19 = arith.constant dense<0.000000e+00> : vector<32x32xf32>
    %47 = tpu.matmul %44, %46, %cst_19 {dimension_numbers = #tpu.dot_dimension_numbers<[1], [0], [0], [1], [0, 0, 1, 1], [], []>} : vector<32x64xbf16>, vector<64x32xbf16>, vector<32x32xf32> -> vector<32x32xf32>
    %48 = arith.addf %43, %47 : vector<32x32xf32>
    %49 = vector.broadcast %24 : vector<1x32xf32> to vector<32x32xf32>
    %50 = arith.addf %48, %49 : vector<32x32xf32>
    %c1_i32_20 = arith.constant 1 : i32
    %51 = tpu.dynamic_rotate %50 by %c1_i32_20 dim 0 : vector<32x32xf32>, i32 -> vector<32x32xf32>
    %cst_21 = arith.constant 0.000000e+00 : f32
    %52 = vector.shape_cast %18 : vector<32x1xi1> to vector<32x1xi1>
    %53 = vector.broadcast %52 : vector<32x1xi1> to vector<32x32xi1>
    %54 = vector.broadcast %cst_21 : f32 to vector<32x32xf32>
    %55 = arith.select %53, %54, %51 : vector<32x32xi1>, vector<32x32xf32>
    %c31_i32_22 = arith.constant 31 : i32
    %56 = tpu.dynamic_rotate %50 by %c31_i32_22 dim 0 : vector<32x32xf32>, i32 -> vector<32x32xf32>
    %cst_23 = arith.constant 0.000000e+00 : f32
    %57 = vector.shape_cast %20 : vector<32x1xi1> to vector<32x1xi1>
    %58 = vector.broadcast %57 : vector<32x1xi1> to vector<32x32xi1>
    %59 = vector.broadcast %cst_23 : f32 to vector<32x32xf32>
    %60 = arith.select %58, %59, %56 : vector<32x32xi1>, vector<32x32xf32>
    %61 = arith.truncf %50 : vector<32x32xf32> to vector<32x32xbf16>
    %c1_24 = arith.constant 1 : index
    %c0_25 = arith.constant 0 : index
    %c0_26 = arith.constant 0 : index
    %62 = vector.load %arg4[%c1_24, %c0_25, %c0_26] : memref<3x32x32xbf16, #tpu.memory_space<vmem>>, vector<1x32x32xbf16>
    %63 = vector.shape_cast %62 : vector<1x32x32xbf16> to vector<32x32xbf16>
    %cst_27 = arith.constant dense<0.000000e+00> : vector<32x32xf32>
    %64 = tpu.matmul %61, %63, %cst_27 {dimension_numbers = #tpu.dot_dimension_numbers<[1], [0], [0], [1], [0, 0, 1, 1], [], []>} : vector<32x32xbf16>, vector<32x32xbf16>, vector<32x32xf32> -> vector<32x32xf32>
    %65 = arith.truncf %55 : vector<32x32xf32> to vector<32x32xbf16>
    %c0_28 = arith.constant 0 : index
    %c0_29 = arith.constant 0 : index
    %c0_30 = arith.constant 0 : index
    %66 = vector.load %arg4[%c0_28, %c0_29, %c0_30] : memref<3x32x32xbf16, #tpu.memory_space<vmem>>, vector<1x32x32xbf16>
    %67 = vector.shape_cast %66 : vector<1x32x32xbf16> to vector<32x32xbf16>
    %cst_31 = arith.constant dense<0.000000e+00> : vector<32x32xf32>
    %68 = tpu.matmul %65, %67, %cst_31 {dimension_numbers = #tpu.dot_dimension_numbers<[1], [0], [0], [1], [0, 0, 1, 1], [], []>} : vector<32x32xbf16>, vector<32x32xbf16>, vector<32x32xf32> -> vector<32x32xf32>
    %69 = arith.addf %64, %68 : vector<32x32xf32>
    %70 = arith.truncf %60 : vector<32x32xf32> to vector<32x32xbf16>
    %c2_32 = arith.constant 2 : index
    %c0_33 = arith.constant 0 : index
    %c0_34 = arith.constant 0 : index
    %71 = vector.load %arg4[%c2_32, %c0_33, %c0_34] : memref<3x32x32xbf16, #tpu.memory_space<vmem>>, vector<1x32x32xbf16>
    %72 = vector.shape_cast %71 : vector<1x32x32xbf16> to vector<32x32xbf16>
    %cst_35 = arith.constant dense<0.000000e+00> : vector<32x32xf32>
    %73 = tpu.matmul %70, %72, %cst_35 {dimension_numbers = #tpu.dot_dimension_numbers<[1], [0], [0], [1], [0, 0, 1, 1], [], []>} : vector<32x32xbf16>, vector<32x32xbf16>, vector<32x32xf32> -> vector<32x32xf32>
    %74 = arith.addf %69, %73 : vector<32x32xf32>
    %c0_36 = arith.constant 0 : index
    %c0_37 = arith.constant 0 : index
    %75 = vector.load %arg1[%c0_36, %c0_37] : memref<32x32xbf16, #tpu.memory_space<vmem>>, vector<32x32xbf16>
    %76 = arith.extf %75 : vector<32x32xbf16> to vector<32x32xf32>
    %c1_i32_38 = arith.constant 1 : i32
    %77 = tpu.dynamic_rotate %76 by %c1_i32_38 dim 0 : vector<32x32xf32>, i32 -> vector<32x32xf32>
    %cst_39 = arith.constant 0.000000e+00 : f32
    %78 = vector.shape_cast %18 : vector<32x1xi1> to vector<32x1xi1>
    %79 = vector.broadcast %78 : vector<32x1xi1> to vector<32x32xi1>
    %80 = vector.broadcast %cst_39 : f32 to vector<32x32xf32>
    %81 = arith.select %79, %80, %77 : vector<32x32xi1>, vector<32x32xf32>
    %c31_i32_40 = arith.constant 31 : i32
    %82 = tpu.dynamic_rotate %76 by %c31_i32_40 dim 0 : vector<32x32xf32>, i32 -> vector<32x32xf32>
    %cst_41 = arith.constant 0.000000e+00 : f32
    %83 = vector.shape_cast %20 : vector<32x1xi1> to vector<32x1xi1>
    %84 = vector.broadcast %83 : vector<32x1xi1> to vector<32x32xi1>
    %85 = vector.broadcast %cst_41 : f32 to vector<32x32xf32>
    %86 = arith.select %84, %85, %82 : vector<32x32xi1>, vector<32x32xf32>
    %87 = arith.truncf %76 : vector<32x32xf32> to vector<32x32xbf16>
    %c1_42 = arith.constant 1 : index
    %c0_43 = arith.constant 0 : index
    %c0_44 = arith.constant 0 : index
    %88 = vector.load %arg5[%c1_42, %c0_43, %c0_44] : memref<3x32x32xbf16, #tpu.memory_space<vmem>>, vector<1x32x32xbf16>
    %89 = vector.shape_cast %88 : vector<1x32x32xbf16> to vector<32x32xbf16>
    %cst_45 = arith.constant dense<0.000000e+00> : vector<32x32xf32>
    %90 = tpu.matmul %87, %89, %cst_45 {dimension_numbers = #tpu.dot_dimension_numbers<[1], [0], [0], [1], [0, 0, 1, 1], [], []>} : vector<32x32xbf16>, vector<32x32xbf16>, vector<32x32xf32> -> vector<32x32xf32>
    %91 = arith.truncf %81 : vector<32x32xf32> to vector<32x32xbf16>
    %c0_46 = arith.constant 0 : index
    %c0_47 = arith.constant 0 : index
    %c0_48 = arith.constant 0 : index
    %92 = vector.load %arg5[%c0_46, %c0_47, %c0_48] : memref<3x32x32xbf16, #tpu.memory_space<vmem>>, vector<1x32x32xbf16>
    %93 = vector.shape_cast %92 : vector<1x32x32xbf16> to vector<32x32xbf16>
    %cst_49 = arith.constant dense<0.000000e+00> : vector<32x32xf32>
    %94 = tpu.matmul %91, %93, %cst_49 {dimension_numbers = #tpu.dot_dimension_numbers<[1], [0], [0], [1], [0, 0, 1, 1], [], []>} : vector<32x32xbf16>, vector<32x32xbf16>, vector<32x32xf32> -> vector<32x32xf32>
    %95 = arith.addf %90, %94 : vector<32x32xf32>
    %96 = arith.truncf %86 : vector<32x32xf32> to vector<32x32xbf16>
    %c2_50 = arith.constant 2 : index
    %c0_51 = arith.constant 0 : index
    %c0_52 = arith.constant 0 : index
    %97 = vector.load %arg5[%c2_50, %c0_51, %c0_52] : memref<3x32x32xbf16, #tpu.memory_space<vmem>>, vector<1x32x32xbf16>
    %98 = vector.shape_cast %97 : vector<1x32x32xbf16> to vector<32x32xbf16>
    %cst_53 = arith.constant dense<0.000000e+00> : vector<32x32xf32>
    %99 = tpu.matmul %96, %98, %cst_53 {dimension_numbers = #tpu.dot_dimension_numbers<[1], [0], [0], [1], [0, 0, 1, 1], [], []>} : vector<32x32xbf16>, vector<32x32xbf16>, vector<32x32xf32> -> vector<32x32xf32>
    %100 = arith.addf %95, %99 : vector<32x32xf32>
    %101 = arith.addf %74, %100 : vector<32x32xf32>
    %c0_54 = arith.constant 0 : index
    %c0_55 = arith.constant 0 : index
    %102 = vector.load %arg6[%c0_54, %c0_55] : memref<1x32xf32, #tpu.memory_space<vmem>>, vector<1x32xf32>
    %c0_56 = arith.constant 0 : index
    %c0_57 = arith.constant 0 : index
    %103 = vector.load %arg7[%c0_56, %c0_57] : memref<1x32xf32, #tpu.memory_space<vmem>>, vector<1x32xf32>
    %cst_58 = arith.constant dense<0.000000e+00> : vector<8x32xf32>
    %104 = tpu.matmul %21, %101, %cst_58 {dimension_numbers = #tpu.dot_dimension_numbers<[1], [0], [0], [1], [0, 0, 1, 1], [], []>} : vector<8x32xf32>, vector<32x32xf32>, vector<8x32xf32> -> vector<8x32xf32>
    %105 = vector.extract_strided_slice %104 {offsets = [0, 0], sizes = [1, 32], strides = [1, 1]} : vector<8x32xf32> to vector<1x32xf32>
    %cst_59 = arith.constant 3.125000e-02 : f32
    %106 = vector.broadcast %cst_59 : f32 to vector<1x32xf32>
    %107 = arith.mulf %105, %106 : vector<1x32xf32>
    %108 = vector.broadcast %107 : vector<1x32xf32> to vector<32x32xf32>
    %109 = arith.subf %101, %108 : vector<32x32xf32>
    %110 = arith.mulf %109, %109 : vector<32x32xf32>
    %cst_60 = arith.constant dense<0.000000e+00> : vector<8x32xf32>
    %111 = tpu.matmul %21, %110, %cst_60 {dimension_numbers = #tpu.dot_dimension_numbers<[1], [0], [0], [1], [0, 0, 1, 1], [], []>} : vector<8x32xf32>, vector<32x32xf32>, vector<8x32xf32> -> vector<8x32xf32>
    %112 = vector.extract_strided_slice %111 {offsets = [0, 0], sizes = [1, 32], strides = [1, 1]} : vector<8x32xf32> to vector<1x32xf32>
    %cst_61 = arith.constant 3.125000e-02 : f32
    %113 = vector.broadcast %cst_61 : f32 to vector<1x32xf32>
    %114 = arith.mulf %112, %113 : vector<1x32xf32>
    %cst_62 = arith.constant 0.000000e+00 : f32
    %115 = vector.broadcast %cst_62 : f32 to vector<1x32xf32>
    %116 = arith.maximumf %114, %115 : vector<1x32xf32>
    %cst_63 = arith.constant 9.99999974E-6 : f32
    %117 = vector.broadcast %cst_63 : f32 to vector<1x32xf32>
    %118 = arith.addf %116, %117 : vector<1x32xf32>
    %119 = math.rsqrt %118 : vector<1x32xf32>
    %120 = vector.broadcast %119 : vector<1x32xf32> to vector<32x32xf32>
    %121 = arith.mulf %109, %120 : vector<32x32xf32>
    %122 = vector.broadcast %102 : vector<1x32xf32> to vector<32x32xf32>
    %123 = arith.mulf %121, %122 : vector<32x32xf32>
    %124 = vector.broadcast %103 : vector<1x32xf32> to vector<32x32xf32>
    %125 = arith.addf %123, %124 : vector<32x32xf32>
    %cst_64 = arith.constant 0.000000e+00 : f32
    %126 = vector.broadcast %cst_64 : f32 to vector<32x32xf32>
    %127 = arith.maximumf %125, %126 : vector<32x32xf32>
    %c1_i32_65 = arith.constant 1 : i32
    %128 = tpu.dynamic_rotate %127 by %c1_i32_65 dim 0 : vector<32x32xf32>, i32 -> vector<32x32xf32>
    %cst_66 = arith.constant 0.000000e+00 : f32
    %129 = vector.shape_cast %18 : vector<32x1xi1> to vector<32x1xi1>
    %130 = vector.broadcast %129 : vector<32x1xi1> to vector<32x32xi1>
    %131 = vector.broadcast %cst_66 : f32 to vector<32x32xf32>
    %132 = arith.select %130, %131, %128 : vector<32x32xi1>, vector<32x32xf32>
    %c31_i32_67 = arith.constant 31 : i32
    %133 = tpu.dynamic_rotate %127 by %c31_i32_67 dim 0 : vector<32x32xf32>, i32 -> vector<32x32xf32>
    %cst_68 = arith.constant 0.000000e+00 : f32
    %134 = vector.shape_cast %20 : vector<32x1xi1> to vector<32x1xi1>
    %135 = vector.broadcast %134 : vector<32x1xi1> to vector<32x32xi1>
    %136 = vector.broadcast %cst_68 : f32 to vector<32x32xf32>
    %137 = arith.select %135, %136, %133 : vector<32x32xi1>, vector<32x32xf32>
    %138 = arith.truncf %127 : vector<32x32xf32> to vector<32x32xbf16>
    %c1_69 = arith.constant 1 : index
    %c0_70 = arith.constant 0 : index
    %c0_71 = arith.constant 0 : index
    %139 = vector.load %arg8[%c1_69, %c0_70, %c0_71] : memref<3x32x32xbf16, #tpu.memory_space<vmem>>, vector<1x32x32xbf16>
    %140 = vector.shape_cast %139 : vector<1x32x32xbf16> to vector<32x32xbf16>
    %cst_72 = arith.constant dense<0.000000e+00> : vector<32x32xf32>
    %141 = tpu.matmul %138, %140, %cst_72 {dimension_numbers = #tpu.dot_dimension_numbers<[1], [0], [0], [1], [0, 0, 1, 1], [], []>} : vector<32x32xbf16>, vector<32x32xbf16>, vector<32x32xf32> -> vector<32x32xf32>
    %142 = arith.truncf %132 : vector<32x32xf32> to vector<32x32xbf16>
    %c0_73 = arith.constant 0 : index
    %c0_74 = arith.constant 0 : index
    %c0_75 = arith.constant 0 : index
    %143 = vector.load %arg8[%c0_73, %c0_74, %c0_75] : memref<3x32x32xbf16, #tpu.memory_space<vmem>>, vector<1x32x32xbf16>
    %144 = vector.shape_cast %143 : vector<1x32x32xbf16> to vector<32x32xbf16>
    %cst_76 = arith.constant dense<0.000000e+00> : vector<32x32xf32>
    %145 = tpu.matmul %142, %144, %cst_76 {dimension_numbers = #tpu.dot_dimension_numbers<[1], [0], [0], [1], [0, 0, 1, 1], [], []>} : vector<32x32xbf16>, vector<32x32xbf16>, vector<32x32xf32> -> vector<32x32xf32>
    %146 = arith.addf %141, %145 : vector<32x32xf32>
    %147 = arith.truncf %137 : vector<32x32xf32> to vector<32x32xbf16>
    %c2_77 = arith.constant 2 : index
    %c0_78 = arith.constant 0 : index
    %c0_79 = arith.constant 0 : index
    %148 = vector.load %arg8[%c2_77, %c0_78, %c0_79] : memref<3x32x32xbf16, #tpu.memory_space<vmem>>, vector<1x32x32xbf16>
    %149 = vector.shape_cast %148 : vector<1x32x32xbf16> to vector<32x32xbf16>
    %cst_80 = arith.constant dense<0.000000e+00> : vector<32x32xf32>
    %150 = tpu.matmul %147, %149, %cst_80 {dimension_numbers = #tpu.dot_dimension_numbers<[1], [0], [0], [1], [0, 0, 1, 1], [], []>} : vector<32x32xbf16>, vector<32x32xbf16>, vector<32x32xf32> -> vector<32x32xf32>
    %151 = arith.addf %146, %150 : vector<32x32xf32>
    %c0_81 = arith.constant 0 : index
    %c0_82 = arith.constant 0 : index
    %152 = vector.load %arg9[%c0_81, %c0_82] : memref<1x32xf32, #tpu.memory_space<vmem>>, vector<1x32xf32>
    %c0_83 = arith.constant 0 : index
    %c0_84 = arith.constant 0 : index
    %153 = vector.load %arg10[%c0_83, %c0_84] : memref<1x32xf32, #tpu.memory_space<vmem>>, vector<1x32xf32>
    %cst_85 = arith.constant dense<0.000000e+00> : vector<8x32xf32>
    %154 = tpu.matmul %21, %151, %cst_85 {dimension_numbers = #tpu.dot_dimension_numbers<[1], [0], [0], [1], [0, 0, 1, 1], [], []>} : vector<8x32xf32>, vector<32x32xf32>, vector<8x32xf32> -> vector<8x32xf32>
    %155 = vector.extract_strided_slice %154 {offsets = [0, 0], sizes = [1, 32], strides = [1, 1]} : vector<8x32xf32> to vector<1x32xf32>
    %cst_86 = arith.constant 3.125000e-02 : f32
    %156 = vector.broadcast %cst_86 : f32 to vector<1x32xf32>
    %157 = arith.mulf %155, %156 : vector<1x32xf32>
    %158 = vector.broadcast %157 : vector<1x32xf32> to vector<32x32xf32>
    %159 = arith.subf %151, %158 : vector<32x32xf32>
    %160 = arith.mulf %159, %159 : vector<32x32xf32>
    %cst_87 = arith.constant dense<0.000000e+00> : vector<8x32xf32>
    %161 = tpu.matmul %21, %160, %cst_87 {dimension_numbers = #tpu.dot_dimension_numbers<[1], [0], [0], [1], [0, 0, 1, 1], [], []>} : vector<8x32xf32>, vector<32x32xf32>, vector<8x32xf32> -> vector<8x32xf32>
    %162 = vector.extract_strided_slice %161 {offsets = [0, 0], sizes = [1, 32], strides = [1, 1]} : vector<8x32xf32> to vector<1x32xf32>
    %cst_88 = arith.constant 3.125000e-02 : f32
    %163 = vector.broadcast %cst_88 : f32 to vector<1x32xf32>
    %164 = arith.mulf %162, %163 : vector<1x32xf32>
    %cst_89 = arith.constant 0.000000e+00 : f32
    %165 = vector.broadcast %cst_89 : f32 to vector<1x32xf32>
    %166 = arith.maximumf %164, %165 : vector<1x32xf32>
    %cst_90 = arith.constant 9.99999974E-6 : f32
    %167 = vector.broadcast %cst_90 : f32 to vector<1x32xf32>
    %168 = arith.addf %166, %167 : vector<1x32xf32>
    %169 = math.rsqrt %168 : vector<1x32xf32>
    %170 = vector.broadcast %169 : vector<1x32xf32> to vector<32x32xf32>
    %171 = arith.mulf %159, %170 : vector<32x32xf32>
    %172 = vector.broadcast %152 : vector<1x32xf32> to vector<32x32xf32>
    %173 = arith.mulf %171, %172 : vector<32x32xf32>
    %174 = vector.broadcast %153 : vector<1x32xf32> to vector<32x32xf32>
    %175 = arith.addf %173, %174 : vector<32x32xf32>
    %cst_91 = arith.constant 0.000000e+00 : f32
    %176 = vector.broadcast %cst_91 : f32 to vector<32x32xf32>
    %177 = arith.maximumf %175, %176 : vector<32x32xf32>
    %178 = arith.truncf %177 : vector<32x32xf32> to vector<32x32xbf16>
    %c0_92 = arith.constant 0 : index
    %c0_93 = arith.constant 0 : index
    %179 = vector.load %arg11[%c0_92, %c0_93] : memref<32x32xbf16, #tpu.memory_space<vmem>>, vector<32x32xbf16>
    tpu.vector_store %arg11[%c0_92, %c0_93], %178 {strides = array<i32>} : memref<32x32xbf16, #tpu.memory_space<vmem>>, vector<32x32xbf16>,
    return
  }
}

module attributes {stable_mosaic.version = 11 : i64} {
  func.func @_decoder_stage_kernel(%arg0: memref<64x32xbf16, #tpu.memory_space<vmem>>, %arg1: memref<64x16xbf16, #tpu.memory_space<vmem>>, %arg2: memref<3x32x16xbf16, #tpu.memory_space<vmem>>, %arg3: memref<1x16xf32, #tpu.memory_space<vmem>>, %arg4: memref<3x16x16xbf16, #tpu.memory_space<vmem>>, %arg5: memref<3x16x16xbf16, #tpu.memory_space<vmem>>, %arg6: memref<1x16xf32, #tpu.memory_space<vmem>>, %arg7: memref<1x16xf32, #tpu.memory_space<vmem>>, %arg8: memref<3x16x16xbf16, #tpu.memory_space<vmem>>, %arg9: memref<1x16xf32, #tpu.memory_space<vmem>>, %arg10: memref<1x16xf32, #tpu.memory_space<vmem>>, %arg11: memref<64x16xbf16, #tpu.memory_space<vmem>>) attributes {dimension_semantics = [], scalar_prefetch = 0 : i64, scratch_operands = 0 : i64, tpu.core_type = #tpu.core_type<tc>} {
    %0 = tpu.iota {dimensions = array<i32: 0>} : vector<64x1xi32>
    %c32_i32 = arith.constant 32 : i32
    %c0_i32 = arith.constant 0 : i32
    %1 = arith.cmpi eq, %c32_i32, %c0_i32 : i32
    %c1_i32 = arith.constant 1 : i32
    %2 = arith.select %1, %c1_i32, %c32_i32 : i32
    %3 = vector.broadcast %2 : i32 to vector<64x1xi32>
    %4 = arith.remsi %0, %3 : vector<64x1xi32>
    %c0_i32_0 = arith.constant 0 : i32
    %5 = vector.broadcast %c0_i32_0 : i32 to vector<64x1xi32>
    %6 = arith.cmpi ne, %4, %5 : vector<64x1xi32>
    %c0_i32_1 = arith.constant 0 : i32
    %7 = vector.broadcast %c0_i32_1 : i32 to vector<64x1xi32>
    %8 = arith.cmpi slt, %4, %7 : vector<64x1xi32>
    %c0_i32_2 = arith.constant 0 : i32
    %9 = arith.cmpi slt, %2, %c0_i32_2 : i32
    %10 = vector.broadcast %9 : i1 to vector<64x1xi1>
    %11 = vector.broadcast %10 : vector<64x1xi1> to vector<64x1xi1>
    %12 = arith.xori %8, %11 : vector<64x1xi1>
    %13 = arith.andi %12, %6 : vector<64x1xi1>
    %14 = vector.broadcast %2 : i32 to vector<64x1xi32>
    %15 = arith.addi %4, %14 : vector<64x1xi32>
    %16 = arith.select %13, %15, %4 : vector<64x1xi1>, vector<64x1xi32>
    %c0_i32_3 = arith.constant 0 : i32
    %17 = vector.broadcast %c0_i32_3 : i32 to vector<64x1xi32>
    %18 = arith.cmpi eq, %16, %17 : vector<64x1xi32>
    %c31_i32 = arith.constant 31 : i32
    %19 = vector.broadcast %c31_i32 : i32 to vector<64x1xi32>
    %20 = arith.cmpi eq, %16, %19 : vector<64x1xi32>
    %cst = arith.constant 1.000000e+00 : f32
    %21 = vector.broadcast %cst : f32 to vector<8x64xf32>
    %c0 = arith.constant 0 : index
    %c0_4 = arith.constant 0 : index
    %22 = vector.load %arg0[%c0, %c0_4] : memref<64x32xbf16, #tpu.memory_space<vmem>>, vector<64x32xbf16>
    %23 = arith.extf %22 : vector<64x32xbf16> to vector<64x32xf32>
    %c0_5 = arith.constant 0 : index
    %c0_6 = arith.constant 0 : index
    %24 = vector.load %arg3[%c0_5, %c0_6] : memref<1x16xf32, #tpu.memory_space<vmem>>, vector<1x16xf32>
    %c1_i32_7 = arith.constant 1 : i32
    %25 = tpu.dynamic_rotate %23 by %c1_i32_7 dim 0 : vector<64x32xf32>, i32 -> vector<64x32xf32>
    %cst_8 = arith.constant 0.000000e+00 : f32
    %26 = vector.shape_cast %18 : vector<64x1xi1> to vector<64x1xi1>
    %27 = vector.broadcast %26 : vector<64x1xi1> to vector<64x32xi1>
    %28 = vector.broadcast %cst_8 : f32 to vector<64x32xf32>
    %29 = arith.select %27, %28, %25 : vector<64x32xi1>, vector<64x32xf32>
    %c63_i32 = arith.constant 63 : i32
    %30 = tpu.dynamic_rotate %23 by %c63_i32 dim 0 : vector<64x32xf32>, i32 -> vector<64x32xf32>
    %cst_9 = arith.constant 0.000000e+00 : f32
    %31 = vector.shape_cast %20 : vector<64x1xi1> to vector<64x1xi1>
    %32 = vector.broadcast %31 : vector<64x1xi1> to vector<64x32xi1>
    %33 = vector.broadcast %cst_9 : f32 to vector<64x32xf32>
    %34 = arith.select %32, %33, %30 : vector<64x32xi1>, vector<64x32xf32>
    %35 = arith.truncf %23 : vector<64x32xf32> to vector<64x32xbf16>
    %c1 = arith.constant 1 : index
    %c0_10 = arith.constant 0 : index
    %c0_11 = arith.constant 0 : index
    %36 = vector.load %arg2[%c1, %c0_10, %c0_11] : memref<3x32x16xbf16, #tpu.memory_space<vmem>>, vector<1x32x16xbf16>
    %37 = vector.shape_cast %36 : vector<1x32x16xbf16> to vector<32x16xbf16>
    %cst_12 = arith.constant dense<0.000000e+00> : vector<64x16xf32>
    %38 = tpu.matmul %35, %37, %cst_12 {dimension_numbers = #tpu.dot_dimension_numbers<[1], [0], [0], [1], [0, 0, 1, 1], [], []>} : vector<64x32xbf16>, vector<32x16xbf16>, vector<64x16xf32> -> vector<64x16xf32>
    %39 = arith.truncf %29 : vector<64x32xf32> to vector<64x32xbf16>
    %c0_13 = arith.constant 0 : index
    %c0_14 = arith.constant 0 : index
    %c0_15 = arith.constant 0 : index
    %40 = vector.load %arg2[%c0_13, %c0_14, %c0_15] : memref<3x32x16xbf16, #tpu.memory_space<vmem>>, vector<1x32x16xbf16>
    %41 = vector.shape_cast %40 : vector<1x32x16xbf16> to vector<32x16xbf16>
    %cst_16 = arith.constant dense<0.000000e+00> : vector<64x16xf32>
    %42 = tpu.matmul %39, %41, %cst_16 {dimension_numbers = #tpu.dot_dimension_numbers<[1], [0], [0], [1], [0, 0, 1, 1], [], []>} : vector<64x32xbf16>, vector<32x16xbf16>, vector<64x16xf32> -> vector<64x16xf32>
    %43 = arith.addf %38, %42 : vector<64x16xf32>
    %44 = arith.truncf %34 : vector<64x32xf32> to vector<64x32xbf16>
    %c2 = arith.constant 2 : index
    %c0_17 = arith.constant 0 : index
    %c0_18 = arith.constant 0 : index
    %45 = vector.load %arg2[%c2, %c0_17, %c0_18] : memref<3x32x16xbf16, #tpu.memory_space<vmem>>, vector<1x32x16xbf16>
    %46 = vector.shape_cast %45 : vector<1x32x16xbf16> to vector<32x16xbf16>
    %cst_19 = arith.constant dense<0.000000e+00> : vector<64x16xf32>
    %47 = tpu.matmul %44, %46, %cst_19 {dimension_numbers = #tpu.dot_dimension_numbers<[1], [0], [0], [1], [0, 0, 1, 1], [], []>} : vector<64x32xbf16>, vector<32x16xbf16>, vector<64x16xf32> -> vector<64x16xf32>
    %48 = arith.addf %43, %47 : vector<64x16xf32>
    %49 = vector.broadcast %24 : vector<1x16xf32> to vector<64x16xf32>
    %50 = arith.addf %48, %49 : vector<64x16xf32>
    %c1_i32_20 = arith.constant 1 : i32
    %51 = tpu.dynamic_rotate %50 by %c1_i32_20 dim 0 : vector<64x16xf32>, i32 -> vector<64x16xf32>
    %cst_21 = arith.constant 0.000000e+00 : f32
    %52 = vector.shape_cast %18 : vector<64x1xi1> to vector<64x1xi1>
    %53 = vector.broadcast %52 : vector<64x1xi1> to vector<64x16xi1>
    %54 = vector.broadcast %cst_21 : f32 to vector<64x16xf32>
    %55 = arith.select %53, %54, %51 : vector<64x16xi1>, vector<64x16xf32>
    %c63_i32_22 = arith.constant 63 : i32
    %56 = tpu.dynamic_rotate %50 by %c63_i32_22 dim 0 : vector<64x16xf32>, i32 -> vector<64x16xf32>
    %cst_23 = arith.constant 0.000000e+00 : f32
    %57 = vector.shape_cast %20 : vector<64x1xi1> to vector<64x1xi1>
    %58 = vector.broadcast %57 : vector<64x1xi1> to vector<64x16xi1>
    %59 = vector.broadcast %cst_23 : f32 to vector<64x16xf32>
    %60 = arith.select %58, %59, %56 : vector<64x16xi1>, vector<64x16xf32>
    %61 = arith.truncf %50 : vector<64x16xf32> to vector<64x16xbf16>
    %c1_24 = arith.constant 1 : index
    %c0_25 = arith.constant 0 : index
    %c0_26 = arith.constant 0 : index
    %62 = vector.load %arg4[%c1_24, %c0_25, %c0_26] : memref<3x16x16xbf16, #tpu.memory_space<vmem>>, vector<1x16x16xbf16>
    %63 = vector.shape_cast %62 : vector<1x16x16xbf16> to vector<16x16xbf16>
    %cst_27 = arith.constant dense<0.000000e+00> : vector<64x16xf32>
    %64 = tpu.matmul %61, %63, %cst_27 {dimension_numbers = #tpu.dot_dimension_numbers<[1], [0], [0], [1], [0, 0, 1, 1], [], []>} : vector<64x16xbf16>, vector<16x16xbf16>, vector<64x16xf32> -> vector<64x16xf32>
    %65 = arith.truncf %55 : vector<64x16xf32> to vector<64x16xbf16>
    %c0_28 = arith.constant 0 : index
    %c0_29 = arith.constant 0 : index
    %c0_30 = arith.constant 0 : index
    %66 = vector.load %arg4[%c0_28, %c0_29, %c0_30] : memref<3x16x16xbf16, #tpu.memory_space<vmem>>, vector<1x16x16xbf16>
    %67 = vector.shape_cast %66 : vector<1x16x16xbf16> to vector<16x16xbf16>
    %cst_31 = arith.constant dense<0.000000e+00> : vector<64x16xf32>
    %68 = tpu.matmul %65, %67, %cst_31 {dimension_numbers = #tpu.dot_dimension_numbers<[1], [0], [0], [1], [0, 0, 1, 1], [], []>} : vector<64x16xbf16>, vector<16x16xbf16>, vector<64x16xf32> -> vector<64x16xf32>
    %69 = arith.addf %64, %68 : vector<64x16xf32>
    %70 = arith.truncf %60 : vector<64x16xf32> to vector<64x16xbf16>
    %c2_32 = arith.constant 2 : index
    %c0_33 = arith.constant 0 : index
    %c0_34 = arith.constant 0 : index
    %71 = vector.load %arg4[%c2_32, %c0_33, %c0_34] : memref<3x16x16xbf16, #tpu.memory_space<vmem>>, vector<1x16x16xbf16>
    %72 = vector.shape_cast %71 : vector<1x16x16xbf16> to vector<16x16xbf16>
    %cst_35 = arith.constant dense<0.000000e+00> : vector<64x16xf32>
    %73 = tpu.matmul %70, %72, %cst_35 {dimension_numbers = #tpu.dot_dimension_numbers<[1], [0], [0], [1], [0, 0, 1, 1], [], []>} : vector<64x16xbf16>, vector<16x16xbf16>, vector<64x16xf32> -> vector<64x16xf32>
    %74 = arith.addf %69, %73 : vector<64x16xf32>
    %c0_36 = arith.constant 0 : index
    %c0_37 = arith.constant 0 : index
    %75 = vector.load %arg1[%c0_36, %c0_37] : memref<64x16xbf16, #tpu.memory_space<vmem>>, vector<64x16xbf16>
    %76 = arith.extf %75 : vector<64x16xbf16> to vector<64x16xf32>
    %c1_i32_38 = arith.constant 1 : i32
    %77 = tpu.dynamic_rotate %76 by %c1_i32_38 dim 0 : vector<64x16xf32>, i32 -> vector<64x16xf32>
    %cst_39 = arith.constant 0.000000e+00 : f32
    %78 = vector.shape_cast %18 : vector<64x1xi1> to vector<64x1xi1>
    %79 = vector.broadcast %78 : vector<64x1xi1> to vector<64x16xi1>
    %80 = vector.broadcast %cst_39 : f32 to vector<64x16xf32>
    %81 = arith.select %79, %80, %77 : vector<64x16xi1>, vector<64x16xf32>
    %c63_i32_40 = arith.constant 63 : i32
    %82 = tpu.dynamic_rotate %76 by %c63_i32_40 dim 0 : vector<64x16xf32>, i32 -> vector<64x16xf32>
    %cst_41 = arith.constant 0.000000e+00 : f32
    %83 = vector.shape_cast %20 : vector<64x1xi1> to vector<64x1xi1>
    %84 = vector.broadcast %83 : vector<64x1xi1> to vector<64x16xi1>
    %85 = vector.broadcast %cst_41 : f32 to vector<64x16xf32>
    %86 = arith.select %84, %85, %82 : vector<64x16xi1>, vector<64x16xf32>
    %87 = arith.truncf %76 : vector<64x16xf32> to vector<64x16xbf16>
    %c1_42 = arith.constant 1 : index
    %c0_43 = arith.constant 0 : index
    %c0_44 = arith.constant 0 : index
    %88 = vector.load %arg5[%c1_42, %c0_43, %c0_44] : memref<3x16x16xbf16, #tpu.memory_space<vmem>>, vector<1x16x16xbf16>
    %89 = vector.shape_cast %88 : vector<1x16x16xbf16> to vector<16x16xbf16>
    %cst_45 = arith.constant dense<0.000000e+00> : vector<64x16xf32>
    %90 = tpu.matmul %87, %89, %cst_45 {dimension_numbers = #tpu.dot_dimension_numbers<[1], [0], [0], [1], [0, 0, 1, 1], [], []>} : vector<64x16xbf16>, vector<16x16xbf16>, vector<64x16xf32> -> vector<64x16xf32>
    %91 = arith.truncf %81 : vector<64x16xf32> to vector<64x16xbf16>
    %c0_46 = arith.constant 0 : index
    %c0_47 = arith.constant 0 : index
    %c0_48 = arith.constant 0 : index
    %92 = vector.load %arg5[%c0_46, %c0_47, %c0_48] : memref<3x16x16xbf16, #tpu.memory_space<vmem>>, vector<1x16x16xbf16>
    %93 = vector.shape_cast %92 : vector<1x16x16xbf16> to vector<16x16xbf16>
    %cst_49 = arith.constant dense<0.000000e+00> : vector<64x16xf32>
    %94 = tpu.matmul %91, %93, %cst_49 {dimension_numbers = #tpu.dot_dimension_numbers<[1], [0], [0], [1], [0, 0, 1, 1], [], []>} : vector<64x16xbf16>, vector<16x16xbf16>, vector<64x16xf32> -> vector<64x16xf32>
    %95 = arith.addf %90, %94 : vector<64x16xf32>
    %96 = arith.truncf %86 : vector<64x16xf32> to vector<64x16xbf16>
    %c2_50 = arith.constant 2 : index
    %c0_51 = arith.constant 0 : index
    %c0_52 = arith.constant 0 : index
    %97 = vector.load %arg5[%c2_50, %c0_51, %c0_52] : memref<3x16x16xbf16, #tpu.memory_space<vmem>>, vector<1x16x16xbf16>
    %98 = vector.shape_cast %97 : vector<1x16x16xbf16> to vector<16x16xbf16>
    %cst_53 = arith.constant dense<0.000000e+00> : vector<64x16xf32>
    %99 = tpu.matmul %96, %98, %cst_53 {dimension_numbers = #tpu.dot_dimension_numbers<[1], [0], [0], [1], [0, 0, 1, 1], [], []>} : vector<64x16xbf16>, vector<16x16xbf16>, vector<64x16xf32> -> vector<64x16xf32>
    %100 = arith.addf %95, %99 : vector<64x16xf32>
    %101 = arith.addf %74, %100 : vector<64x16xf32>
    %c0_54 = arith.constant 0 : index
    %c0_55 = arith.constant 0 : index
    %102 = vector.load %arg6[%c0_54, %c0_55] : memref<1x16xf32, #tpu.memory_space<vmem>>, vector<1x16xf32>
    %c0_56 = arith.constant 0 : index
    %c0_57 = arith.constant 0 : index
    %103 = vector.load %arg7[%c0_56, %c0_57] : memref<1x16xf32, #tpu.memory_space<vmem>>, vector<1x16xf32>
    %cst_58 = arith.constant dense<0.000000e+00> : vector<8x16xf32>
    %104 = tpu.matmul %21, %101, %cst_58 {dimension_numbers = #tpu.dot_dimension_numbers<[1], [0], [0], [1], [0, 0, 1, 1], [], []>} : vector<8x64xf32>, vector<64x16xf32>, vector<8x16xf32> -> vector<8x16xf32>
    %105 = vector.extract_strided_slice %104 {offsets = [0, 0], sizes = [1, 16], strides = [1, 1]} : vector<8x16xf32> to vector<1x16xf32>
    %cst_59 = arith.constant 1.562500e-02 : f32
    %106 = vector.broadcast %cst_59 : f32 to vector<1x16xf32>
    %107 = arith.mulf %105, %106 : vector<1x16xf32>
    %108 = vector.broadcast %107 : vector<1x16xf32> to vector<64x16xf32>
    %109 = arith.subf %101, %108 : vector<64x16xf32>
    %110 = arith.mulf %109, %109 : vector<64x16xf32>
    %cst_60 = arith.constant dense<0.000000e+00> : vector<8x16xf32>
    %111 = tpu.matmul %21, %110, %cst_60 {dimension_numbers = #tpu.dot_dimension_numbers<[1], [0], [0], [1], [0, 0, 1, 1], [], []>} : vector<8x64xf32>, vector<64x16xf32>, vector<8x16xf32> -> vector<8x16xf32>
    %112 = vector.extract_strided_slice %111 {offsets = [0, 0], sizes = [1, 16], strides = [1, 1]} : vector<8x16xf32> to vector<1x16xf32>
    %cst_61 = arith.constant 1.562500e-02 : f32
    %113 = vector.broadcast %cst_61 : f32 to vector<1x16xf32>
    %114 = arith.mulf %112, %113 : vector<1x16xf32>
    %cst_62 = arith.constant 0.000000e+00 : f32
    %115 = vector.broadcast %cst_62 : f32 to vector<1x16xf32>
    %116 = arith.maximumf %114, %115 : vector<1x16xf32>
    %cst_63 = arith.constant 9.99999974E-6 : f32
    %117 = vector.broadcast %cst_63 : f32 to vector<1x16xf32>
    %118 = arith.addf %116, %117 : vector<1x16xf32>
    %119 = math.rsqrt %118 : vector<1x16xf32>
    %120 = vector.broadcast %119 : vector<1x16xf32> to vector<64x16xf32>
    %121 = arith.mulf %109, %120 : vector<64x16xf32>
    %122 = vector.broadcast %102 : vector<1x16xf32> to vector<64x16xf32>
    %123 = arith.mulf %121, %122 : vector<64x16xf32>
    %124 = vector.broadcast %103 : vector<1x16xf32> to vector<64x16xf32>
    %125 = arith.addf %123, %124 : vector<64x16xf32>
    %cst_64 = arith.constant 0.000000e+00 : f32
    %126 = vector.broadcast %cst_64 : f32 to vector<64x16xf32>
    %127 = arith.maximumf %125, %126 : vector<64x16xf32>
    %c1_i32_65 = arith.constant 1 : i32
    %128 = tpu.dynamic_rotate %127 by %c1_i32_65 dim 0 : vector<64x16xf32>, i32 -> vector<64x16xf32>
    %cst_66 = arith.constant 0.000000e+00 : f32
    %129 = vector.shape_cast %18 : vector<64x1xi1> to vector<64x1xi1>
    %130 = vector.broadcast %129 : vector<64x1xi1> to vector<64x16xi1>
    %131 = vector.broadcast %cst_66 : f32 to vector<64x16xf32>
    %132 = arith.select %130, %131, %128 : vector<64x16xi1>, vector<64x16xf32>
    %c63_i32_67 = arith.constant 63 : i32
    %133 = tpu.dynamic_rotate %127 by %c63_i32_67 dim 0 : vector<64x16xf32>, i32 -> vector<64x16xf32>
    %cst_68 = arith.constant 0.000000e+00 : f32
    %134 = vector.shape_cast %20 : vector<64x1xi1> to vector<64x1xi1>
    %135 = vector.broadcast %134 : vector<64x1xi1> to vector<64x16xi1>
    %136 = vector.broadcast %cst_68 : f32 to vector<64x16xf32>
    %137 = arith.select %135, %136, %133 : vector<64x16xi1>, vector<64x16xf32>
    %138 = arith.truncf %127 : vector<64x16xf32> to vector<64x16xbf16>
    %c1_69 = arith.constant 1 : index
    %c0_70 = arith.constant 0 : index
    %c0_71 = arith.constant 0 : index
    %139 = vector.load %arg8[%c1_69, %c0_70, %c0_71] : memref<3x16x16xbf16, #tpu.memory_space<vmem>>, vector<1x16x16xbf16>
    %140 = vector.shape_cast %139 : vector<1x16x16xbf16> to vector<16x16xbf16>
    %cst_72 = arith.constant dense<0.000000e+00> : vector<64x16xf32>
    %141 = tpu.matmul %138, %140, %cst_72 {dimension_numbers = #tpu.dot_dimension_numbers<[1], [0], [0], [1], [0, 0, 1, 1], [], []>} : vector<64x16xbf16>, vector<16x16xbf16>, vector<64x16xf32> -> vector<64x16xf32>
    %142 = arith.truncf %132 : vector<64x16xf32> to vector<64x16xbf16>
    %c0_73 = arith.constant 0 : index
    %c0_74 = arith.constant 0 : index
    %c0_75 = arith.constant 0 : index
    %143 = vector.load %arg8[%c0_73, %c0_74, %c0_75] : memref<3x16x16xbf16, #tpu.memory_space<vmem>>, vector<1x16x16xbf16>
    %144 = vector.shape_cast %143 : vector<1x16x16xbf16> to vector<16x16xbf16>
    %cst_76 = arith.constant dense<0.000000e+00> : vector<64x16xf32>
    %145 = tpu.matmul %142, %144, %cst_76 {dimension_numbers = #tpu.dot_dimension_numbers<[1], [0], [0], [1], [0, 0, 1, 1], [], []>} : vector<64x16xbf16>, vector<16x16xbf16>, vector<64x16xf32> -> vector<64x16xf32>
    %146 = arith.addf %141, %145 : vector<64x16xf32>
    %147 = arith.truncf %137 : vector<64x16xf32> to vector<64x16xbf16>
    %c2_77 = arith.constant 2 : index
    %c0_78 = arith.constant 0 : index
    %c0_79 = arith.constant 0 : index
    %148 = vector.load %arg8[%c2_77, %c0_78, %c0_79] : memref<3x16x16xbf16, #tpu.memory_space<vmem>>, vector<1x16x16xbf16>
    %149 = vector.shape_cast %148 : vector<1x16x16xbf16> to vector<16x16xbf16>
    %cst_80 = arith.constant dense<0.000000e+00> : vector<64x16xf32>
    %150 = tpu.matmul %147, %149, %cst_80 {dimension_numbers = #tpu.dot_dimension_numbers<[1], [0], [0], [1], [0, 0, 1, 1], [], []>} : vector<64x16xbf16>, vector<16x16xbf16>, vector<64x16xf32> -> vector<64x16xf32>
    %151 = arith.addf %146, %150 : vector<64x16xf32>
    %c0_81 = arith.constant 0 : index
    %c0_82 = arith.constant 0 : index
    %152 = vector.load %arg9[%c0_81, %c0_82] : memref<1x16xf32, #tpu.memory_space<vmem>>, vector<1x16xf32>
    %c0_83 = arith.constant 0 : index
    %c0_84 = arith.constant 0 : index
    %153 = vector.load %arg10[%c0_83, %c0_84] : memref<1x16xf32, #tpu.memory_space<vmem>>, vector<1x16xf32>
    %cst_85 = arith.constant dense<0.000000e+00> : vector<8x16xf32>
    %154 = tpu.matmul %21, %151, %cst_85 {dimension_numbers = #tpu.dot_dimension_numbers<[1], [0], [0], [1], [0, 0, 1, 1], [], []>} : vector<8x64xf32>, vector<64x16xf32>, vector<8x16xf32> -> vector<8x16xf32>
    %155 = vector.extract_strided_slice %154 {offsets = [0, 0], sizes = [1, 16], strides = [1, 1]} : vector<8x16xf32> to vector<1x16xf32>
    %cst_86 = arith.constant 1.562500e-02 : f32
    %156 = vector.broadcast %cst_86 : f32 to vector<1x16xf32>
    %157 = arith.mulf %155, %156 : vector<1x16xf32>
    %158 = vector.broadcast %157 : vector<1x16xf32> to vector<64x16xf32>
    %159 = arith.subf %151, %158 : vector<64x16xf32>
    %160 = arith.mulf %159, %159 : vector<64x16xf32>
    %cst_87 = arith.constant dense<0.000000e+00> : vector<8x16xf32>
    %161 = tpu.matmul %21, %160, %cst_87 {dimension_numbers = #tpu.dot_dimension_numbers<[1], [0], [0], [1], [0, 0, 1, 1], [], []>} : vector<8x64xf32>, vector<64x16xf32>, vector<8x16xf32> -> vector<8x16xf32>
    %162 = vector.extract_strided_slice %161 {offsets = [0, 0], sizes = [1, 16], strides = [1, 1]} : vector<8x16xf32> to vector<1x16xf32>
    %cst_88 = arith.constant 1.562500e-02 : f32
    %163 = vector.broadcast %cst_88 : f32 to vector<1x16xf32>
    %164 = arith.mulf %162, %163 : vector<1x16xf32>
    %cst_89 = arith.constant 0.000000e+00 : f32
    %165 = vector.broadcast %cst_89 : f32 to vector<1x16xf32>
    %166 = arith.maximumf %164, %165 : vector<1x16xf32>
    %cst_90 = arith.constant 9.99999974E-6 : f32
    %167 = vector.broadcast %cst_90 : f32 to vector<1x16xf32>
    %168 = arith.addf %166, %167 : vector<1x16xf32>
    %169 = math.rsqrt %168 : vector<1x16xf32>
    %170 = vector.broadcast %169 : vector<1x16xf32> to vector<64x16xf32>
    %171 = arith.mulf %159, %170 : vector<64x16xf32>
    %172 = vector.broadcast %152 : vector<1x16xf32> to vector<64x16xf32>
    %173 = arith.mulf %171, %172 : vector<64x16xf32>
    %174 = vector.broadcast %153 : vector<1x16xf32> to vector<64x16xf32>
    %175 = arith.addf %173, %174 : vector<64x16xf32>
    %cst_91 = arith.constant 0.000000e+00 : f32
    %176 = vector.broadcast %cst_91 : f32 to vector<64x16xf32>
    %177 = arith.maximumf %175, %176 : vector<64x16xf32>
    %178 = arith.truncf %177 : vector<64x16xf32> to vector<64x16xbf16>
    %c0_92 = arith.constant 0 : index
    %c0_93 = arith.constant 0 : index
    %179 = vector.load %arg11[%c0_92, %c0_93] : memref<64x16xbf16, #tpu.memory_space<vmem>>, vector<64x16xbf16>
    tpu.vector_store %arg11[%c0_92, %c0_93], %178 {strides = array<i32>} : memref<64x16xbf16, #tpu.memory_space<vmem>>, vector<64x16xbf16>,
    return
  }
}

module attributes {stable_mosaic.version = 11 : i64} {
  func.func @_output_kernel(%arg0: memref<64x16xbf16, #tpu.memory_space<vmem>>, %arg1: memref<3x16x2xbf16, #tpu.memory_space<vmem>>, %arg2: memref<1x2xf32, #tpu.memory_space<vmem>>, %arg3: memref<64x2xf32, #tpu.memory_space<vmem>>) attributes {dimension_semantics = [], scalar_prefetch = 0 : i64, scratch_operands = 0 : i64, tpu.core_type = #tpu.core_type<tc>} {
    %0 = tpu.iota {dimensions = array<i32: 0>} : vector<64x1xi32>
    %c32_i32 = arith.constant 32 : i32
    %c0_i32 = arith.constant 0 : i32
    %1 = arith.cmpi eq, %c32_i32, %c0_i32 : i32
    %c1_i32 = arith.constant 1 : i32
    %2 = arith.select %1, %c1_i32, %c32_i32 : i32
    %3 = vector.broadcast %2 : i32 to vector<64x1xi32>
    %4 = arith.remsi %0, %3 : vector<64x1xi32>
    %c0_i32_0 = arith.constant 0 : i32
    %5 = vector.broadcast %c0_i32_0 : i32 to vector<64x1xi32>
    %6 = arith.cmpi ne, %4, %5 : vector<64x1xi32>
    %c0_i32_1 = arith.constant 0 : i32
    %7 = vector.broadcast %c0_i32_1 : i32 to vector<64x1xi32>
    %8 = arith.cmpi slt, %4, %7 : vector<64x1xi32>
    %c0_i32_2 = arith.constant 0 : i32
    %9 = arith.cmpi slt, %2, %c0_i32_2 : i32
    %10 = vector.broadcast %9 : i1 to vector<64x1xi1>
    %11 = vector.broadcast %10 : vector<64x1xi1> to vector<64x1xi1>
    %12 = arith.xori %8, %11 : vector<64x1xi1>
    %13 = arith.andi %12, %6 : vector<64x1xi1>
    %14 = vector.broadcast %2 : i32 to vector<64x1xi32>
    %15 = arith.addi %4, %14 : vector<64x1xi32>
    %16 = arith.select %13, %15, %4 : vector<64x1xi1>, vector<64x1xi32>
    %c0_i32_3 = arith.constant 0 : i32
    %17 = vector.broadcast %c0_i32_3 : i32 to vector<64x1xi32>
    %18 = arith.cmpi eq, %16, %17 : vector<64x1xi32>
    %c31_i32 = arith.constant 31 : i32
    %19 = vector.broadcast %c31_i32 : i32 to vector<64x1xi32>
    %20 = arith.cmpi eq, %16, %19 : vector<64x1xi32>
    %c0 = arith.constant 0 : index
    %c0_4 = arith.constant 0 : index
    %21 = vector.load %arg0[%c0, %c0_4] : memref<64x16xbf16, #tpu.memory_space<vmem>>, vector<64x16xbf16>
    %22 = arith.extf %21 : vector<64x16xbf16> to vector<64x16xf32>
    %c0_5 = arith.constant 0 : index
    %c0_6 = arith.constant 0 : index
    %23 = vector.load %arg2[%c0_5, %c0_6] : memref<1x2xf32, #tpu.memory_space<vmem>>, vector<1x2xf32>
    %c1_i32_7 = arith.constant 1 : i32
    %24 = tpu.dynamic_rotate %22 by %c1_i32_7 dim 0 : vector<64x16xf32>, i32 -> vector<64x16xf32>
    %cst = arith.constant 0.000000e+00 : f32
    %25 = vector.shape_cast %18 : vector<64x1xi1> to vector<64x1xi1>
    %26 = vector.broadcast %25 : vector<64x1xi1> to vector<64x16xi1>
    %27 = vector.broadcast %cst : f32 to vector<64x16xf32>
    %28 = arith.select %26, %27, %24 : vector<64x16xi1>, vector<64x16xf32>
    %c63_i32 = arith.constant 63 : i32
    %29 = tpu.dynamic_rotate %22 by %c63_i32 dim 0 : vector<64x16xf32>, i32 -> vector<64x16xf32>
    %cst_8 = arith.constant 0.000000e+00 : f32
    %30 = vector.shape_cast %20 : vector<64x1xi1> to vector<64x1xi1>
    %31 = vector.broadcast %30 : vector<64x1xi1> to vector<64x16xi1>
    %32 = vector.broadcast %cst_8 : f32 to vector<64x16xf32>
    %33 = arith.select %31, %32, %29 : vector<64x16xi1>, vector<64x16xf32>
    %34 = arith.truncf %22 : vector<64x16xf32> to vector<64x16xbf16>
    %c1 = arith.constant 1 : index
    %c0_9 = arith.constant 0 : index
    %c0_10 = arith.constant 0 : index
    %35 = vector.load %arg1[%c1, %c0_9, %c0_10] : memref<3x16x2xbf16, #tpu.memory_space<vmem>>, vector<1x16x2xbf16>
    %36 = vector.shape_cast %35 : vector<1x16x2xbf16> to vector<16x2xbf16>
    %cst_11 = arith.constant dense<0.000000e+00> : vector<64x2xf32>
    %37 = tpu.matmul %34, %36, %cst_11 {dimension_numbers = #tpu.dot_dimension_numbers<[1], [0], [0], [1], [0, 0, 1, 1], [], []>} : vector<64x16xbf16>, vector<16x2xbf16>, vector<64x2xf32> -> vector<64x2xf32>
    %38 = arith.truncf %28 : vector<64x16xf32> to vector<64x16xbf16>
    %c0_12 = arith.constant 0 : index
    %c0_13 = arith.constant 0 : index
    %c0_14 = arith.constant 0 : index
    %39 = vector.load %arg1[%c0_12, %c0_13, %c0_14] : memref<3x16x2xbf16, #tpu.memory_space<vmem>>, vector<1x16x2xbf16>
    %40 = vector.shape_cast %39 : vector<1x16x2xbf16> to vector<16x2xbf16>
    %cst_15 = arith.constant dense<0.000000e+00> : vector<64x2xf32>
    %41 = tpu.matmul %38, %40, %cst_15 {dimension_numbers = #tpu.dot_dimension_numbers<[1], [0], [0], [1], [0, 0, 1, 1], [], []>} : vector<64x16xbf16>, vector<16x2xbf16>, vector<64x2xf32> -> vector<64x2xf32>
    %42 = arith.addf %37, %41 : vector<64x2xf32>
    %43 = arith.truncf %33 : vector<64x16xf32> to vector<64x16xbf16>
    %c2 = arith.constant 2 : index
    %c0_16 = arith.constant 0 : index
    %c0_17 = arith.constant 0 : index
    %44 = vector.load %arg1[%c2, %c0_16, %c0_17] : memref<3x16x2xbf16, #tpu.memory_space<vmem>>, vector<1x16x2xbf16>
    %45 = vector.shape_cast %44 : vector<1x16x2xbf16> to vector<16x2xbf16>
    %cst_18 = arith.constant dense<0.000000e+00> : vector<64x2xf32>
    %46 = tpu.matmul %43, %45, %cst_18 {dimension_numbers = #tpu.dot_dimension_numbers<[1], [0], [0], [1], [0, 0, 1, 1], [], []>} : vector<64x16xbf16>, vector<16x2xbf16>, vector<64x2xf32> -> vector<64x2xf32>
    %47 = arith.addf %42, %46 : vector<64x2xf32>
    %48 = vector.broadcast %23 : vector<1x2xf32> to vector<64x2xf32>
    %49 = arith.addf %47, %48 : vector<64x2xf32>
    %cst_19 = arith.constant dense<0xFF800000> : vector<64xf32>
    %50 = vector.multi_reduction <maximumf>, %49, %cst_19 [1] : vector<64x2xf32> to vector<64xf32>
    %51 = vector.shape_cast %50 : vector<64xf32> to vector<64x1xf32>
    %52 = vector.broadcast %51 : vector<64x1xf32> to vector<64x2xf32>
    %53 = arith.subf %49, %52 : vector<64x2xf32>
    %54 = math.exp %53 : vector<64x2xf32>
    %cst_20 = arith.constant dense<0.000000e+00> : vector<64xf32>
    %55 = vector.multi_reduction <add>, %54, %cst_20 [1] : vector<64x2xf32> to vector<64xf32>
    %56 = vector.shape_cast %55 : vector<64xf32> to vector<64x1xf32>
    %57 = math.log %56 : vector<64x1xf32>
    %58 = arith.addf %51, %57 : vector<64x1xf32>
    %59 = vector.broadcast %58 : vector<64x1xf32> to vector<64x2xf32>
    %60 = arith.subf %49, %59 : vector<64x2xf32>
    %c0_21 = arith.constant 0 : index
    %c0_22 = arith.constant 0 : index
    %61 = vector.load %arg3[%c0_21, %c0_22] : memref<64x2xf32, #tpu.memory_space<vmem>>, vector<64x2xf32>
    tpu.vector_store %arg3[%c0_21, %c0_22], %60 {strides = array<i32>} : memref<64x2xf32, #tpu.memory_space<vmem>>, vector<64x2xf32>,
    return
  }
}

</mosaic_0001>

<bundles_post_ra>
// kernel: unet_forward.11
= control target key start
LH: loop header
LB: loop body
LE: loop exit
PB: predicated region body
PF: predicated region fallthrough
CT: control target
= control target key end

     0   :  { %12 = vsyncpa [#allocation3], 0  ;;  %s1651_s0 = inlined_call_operand.vmem [shape: bf16[32,16], index: 0, kind: input, shape index: {}]   ;;  %s1652_s1 = inlined_call_operand.vmem [shape: bf16[3,16,32], index: 1, kind: input, shape index: {}]   ;;  %s1653_s2 = inlined_call_operand.hbm [shape: f32[1,32], index: 2, kind: input, shape index: {}]   ;;  %s1654_s3 = inlined_call_operand.hbm [shape: f32[1,32], index: 3, kind: input, shape index: {}]   ;;  %s1655_s4 = inlined_call_operand.vmem [shape: bf16[3,32,32], index: 4, kind: input, shape index: {}]   ;;  %s1656_s5 = inlined_call_operand.hbm [shape: f32[1,32], index: 5, kind: input, shape index: {}]   ;;  %s1657_s6 = inlined_call_operand.hbm [shape: f32[1,32], index: 6, kind: input, shape index: {}]   ;;  %s1658_s7 = inlined_call_operand.vmem [shape: bf16[32,32], index: 7, kind: output, shape index: {}]  }
   0x1   :  { %13 = vsyncpa [#allocation5], 0 }
   0x2   :  { %14 = vsyncpa [#allocation8], 0  ;;  %s1395_s24 = smov [#allocation4]   ;;  %s1396_s26 = smov [#allocation2]  }
   0x3   :  { %s35_s25 = sshll.u32 %s1395_s24, 4  ;;  %s25_s27 = sshll.u32 %s1396_s26, 4  ;;  %s36_s25 = int_to_ptr.vmem [resolvable:$true] %s35_s25  ;;  %s26_s27 = int_to_ptr.vmem [resolvable:$true] %s25_s27 }
   0x4   :  { %s1301_s30 = scalar_lea.hbm %s1654_s3, 16 }
   0x5   :  { %p1302_p0 = scmp.ne.s32.totalorder %s1654_s3, %s1301_s30  ;;  %p1305_p1 = scmp.lt.u32.totalorder %s1301_s30, %s1654_s3 }
   0x7   :  { %p1307_p2 = pnand %p1305_p1, %p1302_p0 }
   0x9   :  { %1310 = shalt.err (!%p1307_p2)
}
   0xa   :  { %s1311_s12 = scalar_lea.vmem %s36_s25, 16  ;;  %s1315_s13 = scalar_lea.vmem %s36_s25, 32 }
   0xb   :  { %p1312_p3 = scmp.ne.s32.totalorder %s36_s25, %s1311_s12  ;;  %p1316_p4 = scmp.lt.s32.totalorder %s36_s25, %s36_s25 }
   0xc   :  { %p1317_p5 = scmp.lt.s32.totalorder %s1315_s13, %s1311_s12 }
   0xe   :  { %p1318_p6 = por %p1317_p5, %p1316_p4 }
  0x10   :  { %p1319_p7 = pnand %p1318_p6, %p1312_p3 }
  0x12   :  { %1322 = shalt.err (!%p1319_p7)
}
  0x13   :  { %38 = dma.hbm_to_vmem [thread:$0]  %s1654_s3, 16, %s36_s25, [#allocation5]  }
  0x14   :  { %s1323_s18 = scalar_lea.hbm %s1653_s2, 16 }
  0x15   :  { %p1324_p8 = scmp.ne.s32.totalorder %s1653_s2, %s1323_s18  ;;  %p1327_p9 = scmp.lt.u32.totalorder %s1323_s18, %s1653_s2 }
  0x17   :  { %p1329_p10 = pnand %p1327_p9, %p1324_p8 }
  0x19   :  { %1332 = shalt.err (!%p1329_p10)
}
  0x1a   :  { %s1333_s23 = scalar_lea.vmem %s26_s27, 16  ;;  %s1337_s24 = scalar_lea.vmem %s26_s27, 32 }
  0x1b   :  { %p1334_p11 = scmp.ne.s32.totalorder %s26_s27, %s1333_s23  ;;  %p1338_p12 = scmp.lt.s32.totalorder %s26_s27, %s26_s27 }
  0x1c   :  { %p1339_p13 = scmp.lt.s32.totalorder %s1337_s24, %s1333_s23 }
  0x1e   :  { %p1340_p0 = por %p1339_p13, %p1338_p12 }
  0x20   :  { %p1341_p1 = pnand %p1340_p0, %p1334_p11 }
  0x22   :  { %1344 = shalt.err (!%p1341_p1)
}
  0x23   :  { %28 = dma.hbm_to_vmem [thread:$0]  %s1653_s2, 16, %s26_s27, [#allocation3]  }
  0x24   :  { %s1397_s26 = smov [#allocation6]   ;;  %s1398_s29 = smov [#allocation7]  }
  0x25   :  { %s47_s28 = sshll.u32 %s1397_s26, 4  ;;  %s57_s30 = sshll.u32 %s1398_s29, 4  ;;  %s48_s28 = int_to_ptr.vmem [resolvable:$true] %s47_s28  ;;  %s58_s30 = int_to_ptr.vmem [resolvable:$true] %s57_s30 }
  0x26   :  { %s1345_s10 = scalar_lea.hbm %s1656_s5, 16 }
  0x27   :  { %p1346_p2 = scmp.ne.s32.totalorder %s1656_s5, %s1345_s10  ;;  %p1349_p3 = scmp.lt.u32.totalorder %s1345_s10, %s1656_s5 }
  0x29   :  { %p1351_p4 = pnand %p1349_p3, %p1346_p2 }
  0x2b   :  { %1354 = shalt.err (!%p1351_p4)
}
  0x2c   :  { %s1355_s2 = scalar_lea.vmem %s48_s28, 16  ;;  %s1359_s27 = scalar_lea.vmem %s48_s28, 32 }
  0x2d   :  { %p1356_p5 = scmp.ne.s32.totalorder %s48_s28, %s1355_s2  ;;  %p1360_p6 = scmp.lt.s32.totalorder %s48_s28, %s48_s28 }
  0x2e   :  { %p1361_p7 = scmp.lt.s32.totalorder %s1359_s27, %s1355_s2 }
  0x30   :  { %p1362_p8 = por %p1361_p7, %p1360_p6 }
  0x32   :  { %p1363_p9 = pnand %p1362_p8, %p1356_p5 }
  0x34   :  { %1366 = shalt.err (!%p1363_p9)
}
  0x35   :  { %50 = dma.hbm_to_vmem [thread:$0]  %s1656_s5, 16, %s48_s28, [#allocation5]  }
  0x36   :  { %s1367_s19 = scalar_lea.hbm %s1657_s6, 16 }
  0x37   :  { %p1368_p10 = scmp.ne.s32.totalorder %s1657_s6, %s1367_s19  ;;  %p1371_p11 = scmp.lt.u32.totalorder %s1367_s19, %s1657_s6 }
  0x39   :  { %p1373_p12 = pnand %p1371_p11, %p1368_p10 }
  0x3b   :  { %1376 = shalt.err (!%p1373_p12)
}
  0x3c   :  { %s1377_s24 = scalar_lea.vmem %s58_s30, 16  ;;  %s1381_s3 = scalar_lea.vmem %s58_s30, 32 }
  0x3d   :  { %p1378_p13 = scmp.ne.s32.totalorder %s58_s30, %s1377_s24  ;;  %p1382_p0 = scmp.lt.s32.totalorder %s58_s30, %s58_s30 }
  0x3e   :  { %p1383_p1 = scmp.lt.s32.totalorder %s1381_s3, %s1377_s24 }
  0x40   :  { %p1384_p2 = por %p1383_p1, %p1382_p0 }
  0x42   :  { %p1385_p3 = pnand %p1384_p2, %p1378_p13 }
  0x44   :  { %1388 = shalt.err (!%p1385_p3)
}
  0x45   :  { %60 = dma.hbm_to_vmem [thread:$0]  %s1657_s6, 16, %s58_s30, [#allocation8]  }
  0x46   :  { %1389 = dma.done.wait [#allocation3], 16  }
  0x47   :  { %1390 = vsyncadd [#allocation3], 4294967280 }
  0x48   :  { %1391 = dma.done.wait [#allocation5], 32  }
  0x49   :  { %1392 = vsyncadd [#allocation5], 4294967264 }
  0x4a   :  { %1393 = dma.done.wait [#allocation8], 16  }
  0x4b   :  { %1394 = vsyncadd [#allocation8], 4294967280  ;;  %v74_v0 = vlaneseq  ;;  %v1284_v3 = vld [vmem:[%s1652_s1] sm:$0xff]   ;;  %v138_v6 = vld [vmem:[%s1651_s0 + $0x8] sm:$0xff]   ;;  %vm198_vm3 = vcmask 130048   ;;  %v1399_v46 = vmov 0.0|0.0  }
  0x4c   :  { %v135_v5 = vld [vmem:[%s1651_s0] sm:$0xff]   ;;  %1150 = vmatprep.subr.bf16.mxu0 %v1284_v3  ;;  %v142_v10 = vunpack.c.h.bf16 %v138_v6  ;;  %v141_v11 = vunpack.c.l.bf16 %v138_v6  ;;  %v1285_v12 = vld [vmem:[%s1652_s1 + $0x8] sm:$0xff]   ;;  %v1288_v28 = vld [vmem:[%s1652_s1 + $0x10] sm:$0xff]   ;;  %1236 = vmatprep.subr.bf16.mxu1 %v1399_v46  ;;  %vm1400_vm7 = vmmov 0   ;;  %v1401_v47 = vmov 0.0  }
  0x4d   :  { %v1491_v1 = vshrl.u32 %v74_v0, 7  ;;  %v139_v8 = vunpack.c.l.bf16 %v135_v5  ;;  %v140_v9 = vunpack.c.h.bf16 %v135_v5  ;;  %1151 = vmatpush3.bf16.msra.mxu0 %v1284_v3  ;;  %1176 = vmatprep.mubr.msk.f32.mxu1 %vm1400_vm7, %v1401_v47  ;;  %vm397_vm8 = vcmask 261120   ;;  %v1293_v17 = vld [vmem:[%s1655_s4 + $0x20] sm:$0xff]  }
  0x4e   :  { %v146_v16 = vrot.slane %v142_v10, 7  ;;  %1156 = vmatprep.subr.bf16.mxu0 %v1285_v12  ;;  %v145_v18 = vrot.slane %v141_v11, 7  ;;  %v166_v31 = vrot.slane %v141_v11, 1  ;;  %v167_v39 = vrot.slane %v142_v10, 1 }
  0x4f   :  { %v77_v2 = vadd.s32 16, %v1491_v1  ;;  %v83_v4 = vand.u32 15, %v1491_v1  ;;  %vm147_vm0 = vcmp.lt.s32.totalorder %v1491_v1, 1  ;;  %v143_v14 = vrot.slane %v139_v8, 7 }
  0x50   :  { %v144_v15 = vrot.slane %v140_v9, 7  ;;  %v76_v19 = vadd.s32 8, %v1491_v1  ;;  %v148_v23 = vsel %vm147_vm0, %v145_v18, %v146_v16  ;;  %v165_v29 = vrot.slane %v140_v9, 1  ;;  %v1291_v9 = vld [vmem:[%s1655_s4 + $0x10] sm:$0xff]  }
  0x51   :  { %v97_v7 = vand.u32 15, %v77_v2  ;;  %vm1508_vm1 = vcmp.eq.s32.totalorder %v83_v4, 0  ;;  %v151_v21 = vsel %vm147_vm0, %v146_v16, %v143_v14  ;;  %vm168_vm4 = vcmp.lt.s32.totalorder %v1491_v1, 7 }
  0x52   :  { %v150_v20 = vsel %vm147_vm0, %v143_v14, %v144_v15  ;;  %v160_v22 = vsel %vm1508_vm1, 0.0, %v151_v21  ;;  %v149_v24 = vsel %vm147_vm0, %v144_v15, %v145_v18  ;;  %v90_v30 = vand.u32 15, %v76_v19  ;;  %v1075_v19 = vld [vmem:[#allocation2] ss:$0 sm:$0xff] }
  0x53   :  { %vm1512_vm2 = vcmp.eq.s32.totalorder %v97_v7, 0  ;;  %v188_v25 = vpack.c.bf16 %v150_v20, %v160_v22  ;;  %v164_v32 = vrot.slane %v139_v8, 1  ;;  %v170_v34 = vsel %vm168_vm4, %v165_v29, %v166_v31  ;;  %v1289_v7 = vld [vmem:[%s1655_s4] sm:$0xff]   ;;  %v1290_v8 = vld [vmem:[%s1655_s4 + $0x8] sm:$0xff]  }
  0x54   :  { %v162_v26 = vsel %vm1512_vm2, 0.0, %v149_v24  ;;  %vm1536_vm5 = vcmp.eq.s32.totalorder %v90_v30, 15  ;;  %v78_v37 = vadd.s32 24, %v1491_v1  ;;  %v169_v43 = vsel %vm168_vm4, %v166_v31, %v167_v39  ;;  %v1076_v24 = vld [vmem:[#allocation4] ss:$0 sm:$0xff] }
  0x55   :  { %v189_v27 = vpack.c.bf16 %v148_v23, %v162_v26  ;;  %1152 = vmatprep.mubr.msk.bf16.mxu0 %vm198_vm3, %v188_v25  ;;  %v171_v35 = vsel %vm168_vm4, %v164_v32, %v165_v29  ;;  %v182_v36 = vsel %vm1536_vm5, 0.0, %v170_v34  ;;  %v172_v42 = vsel %vm168_vm4, %v167_v39, %v164_v32 }
  0x56   :  { %v325_v38 = vpack.c.bf16 %v182_v36, %v171_v35  ;;  %v104_v40 = vand.u32 15, %v78_v37  ;;  %v1402_v54 = vmov 1.0   ;;  %v1573_v55 = vsub.s32 0, %v1491_v1 }
  0x57   :  { %1153 = vmatmul.mubr.msk.bf16.vlgmr.msra.gmra.mrb[0].mxu0 %vm198_vm3, %v189_v27  ;;  %vm1046_vm9 = vcmask 257024  }
  0x58   :  { %1157 = vmatpush3.bf16.msra.mxu0 %v1285_v12  ;;  %1158 = vmatprep.mubr.msk.bf16.mxu0 %vm198_vm3, %v135_v5  ;;  %vm1549_vm6 = vcmp.eq.s32.totalorder %v104_v40, 15 }
  0x59   :  { %1162 = vmatprep.subr.bf16.mxu0 %v1288_v28  ;;  %v184_v44 = vsel %vm1549_vm6, 0.0, %v172_v42 }
  0x5a   :  { %v326_v45 = vpack.c.bf16 %v184_v44, %v169_v43 }
  0x63   :  { %1159 = vmatmul.mubr.msk.bf16.vlgmr.msra.gmra.mrb[0].mxu0 %vm198_vm3, %v138_v6 }
  0x64   :  { %1163 = vmatpush3.bf16.msra.mxu0 %v1288_v28  ;;  %1164 = vmatprep.mubr.msk.bf16.mxu0 %vm198_vm3, %v325_v38 }
  0x65   :  { %1248 = vmatprep.subr.bf16.mxu0 %v1399_v46 }
  0x6f   :  { %1165 = vmatmul.mubr.msk.bf16.vlgmr.msra.gmra.mrb[0].mxu0 %vm198_vm3, %v326_v45 }
  0x70   :  { %1222 = vmatprep.mubr.msk.f32.mxu0 %vm1400_vm7, %v1401_v47 }
 0x142   :  { %v1166_v48 = vpop.f32.mrb[0].mxu0 }
 0x143   :  { %v376_v49 = vpop.f32.mrb[1].mxu0 }
 0x144   :  { %v1167_v50 = vpop.f32.mrb[2].mxu0 }
 0x145   :  { %v1240_v51 = vpack.c.bf16 %v1167_v50, %v1166_v48  ;;  %v379_v52 = vpop.f32.mrb[3].mxu0 }
 0x146   :  { %v1237_v53 = vpack.c.bf16 %v379_v52, %v376_v49 }
 0x148   :  { %1238 = vmatpush3.bf16.msra.mxu1 %v1237_v53  ;;  %v1292_v53 = vld [vmem:[%s1655_s4 + $0x18] sm:$0xff]  }
 0x149   :  { %1239 = vmatprep.subr.bf16.mxu1 %v1399_v46 }
 0x14c   :  { %1241 = vmatpush3.bf16.msra.mxu1 %v1240_v51 }
 0x14d   :  { %1242 = vmatprep.subr.bf16.mxu1 %v1399_v46 }
 0x14f   :  { %1177 = vmatmul.mubr.msk.f32.vlgmr.msra.gmra.mrb[0].mxu1 %vm397_vm8, %v1402_v54 }
 0x150   :  { %1187 = vmatprep.mubr.msk.f32.mxu1 %vm1400_vm7, %v1401_v47 }
 0x222   :  { %v467_v56 = vpop.f32.mrb[0].mxu1 }
 0x223   :  { %v471_v57 = vmul.f32 0.03125, %v467_v56  ;;  %v1178_v58 = vpop.f32.mrb[1].mxu1 }
 0x225   :  { %v475_v59 = vrot.slane %v471_v57, %v1573_v55 }
 0x227   :  { %v476_v60 = vsub.f32 %v376_v49, %v475_v59  ;;  %v477_v61 = vsub.f32 %v379_v52, %v475_v59  ;;  %v478_v62 = vsub.f32 %v1166_v48, %v475_v59  ;;  %v479_v63 = vsub.f32 %v1167_v50, %v475_v59 }
 0x229   :  { %v480_v0 = vmul.f32 %v476_v60, %v476_v60  ;;  %v481_v2 = vmul.f32 %v477_v61, %v477_v61  ;;  %v482_v4 = vmul.f32 %v478_v62, %v478_v62  ;;  %v483_v5 = vmul.f32 %v479_v63, %v479_v63 }
 0x22b   :  { %v1243_v3 = vpack.c.bf16 %v481_v2, %v480_v0  ;;  %v1246_v6 = vpack.c.bf16 %v483_v5, %v482_v4 }
 0x22d   :  { %1244 = vmatpush3.bf16.msra.mxu1 %v1243_v3 }
 0x22e   :  { %1245 = vmatprep.subr.bf16.mxu1 %v1399_v46 }
 0x231   :  { %1247 = vmatpush3.bf16.msra.mxu1 %v1246_v6 }
 0x232   :  { %1190 = vmatprep.subr.bf16.mxu1 %v1289_v7 }
 0x234   :  { %1188 = vmatmul.mubr.msk.f32.vlgmr.msra.gmra.mrb[2].mxu1 %vm397_vm8, %v1402_v54 }
 0x235   :  { %1191 = vmatpush3.bf16.msra.mxu1 %v1289_v7 }
 0x236   :  { %1192 = vmatprep.subr.bf16.mxu1 %v1290_v8 }
 0x239   :  { %1193 = vmatpush3.bf16.msra.mxu1 %v1290_v8 }
 0x23a   :  { %1198 = vmatprep.subr.bf16.mxu1 %v1291_v9 }
 0x307   :  { %v550_v10 = vpop.f32.mrb[2].mxu1 }
 0x308   :  { %v554_v11 = vmul.f32 0.03125, %v550_v10  ;;  %v1189_v12 = vpop.f32.mrb[3].mxu1 }
 0x30a   :  { %v555_v14 = vmax.f32 %v554_v11, 0.0 }
 0x30c   :  { %v556_v15 = vadd.f32 1e-05, %v555_v14 }
 0x30e   :  { %1297 = vrsqrt.f32 %v556_v15 }
 0x318   :  { %v1298_v16 = vpop.eup %1297 }
 0x319   :  { %v561_v18 = vrot.slane %v1298_v16, %v1573_v55 }
 0x31b   :  { %v562_v20 = vmul.f32 %v561_v18, %v476_v60  ;;  %v563_v21 = vmul.f32 %v561_v18, %v477_v61  ;;  %v564_v22 = vmul.f32 %v561_v18, %v478_v62  ;;  %v565_v23 = vmul.f32 %v561_v18, %v479_v63  ;;  %v1294_v63 = vld [vmem:[%s1655_s4 + $0x28] sm:$0xff]  }
 0x31d   :  { %v574_v25 = vmul.f32 %v1075_v19, %v564_v22  ;;  %v572_v26 = vmul.f32 %v1075_v19, %v562_v20  ;;  %v573_v27 = vmul.f32 %v1075_v19, %v563_v21  ;;  %v575_v28 = vmul.f32 %v1075_v19, %v565_v23 }
 0x31f   :  { %v582_v29 = vadd.f32 %v1076_v24, %v572_v26  ;;  %v583_v30 = vadd.f32 %v1076_v24, %v573_v27  ;;  %v585_v31 = vadd.f32 %v1076_v24, %v575_v28  ;;  %v584_v32 = vadd.f32 %v1076_v24, %v574_v25 }
 0x321   :  { %v586_v34 = vmax.f32 %v582_v29, 0.0  ;;  %v587_v35 = vmax.f32 %v583_v30, 0.0  ;;  %v589_v36 = vmax.f32 %v585_v31, 0.0  ;;  %v588_v37 = vmax.f32 %v584_v32, 0.0  ;;  %v1099_v32 = vld [vmem:[#allocation6] ss:$0 sm:$0xff] }
 0x323   :  { %v590_v38 = vrot.slane %v586_v34, 7  ;;  %v591_v39 = vrot.slane %v587_v35, 7  ;;  %v593_v40 = vrot.slane %v589_v36, 7  ;;  %v592_v42 = vrot.slane %v588_v37, 7 }
 0x324   :  { %v614_v56 = vpack.c.bf16 %v587_v35, %v586_v34  ;;  %v603_v57 = vrot.slane %v587_v35, 1  ;;  %v604_v13 = vrot.slane %v588_v37, 1  ;;  %v602_v58 = vrot.slane %v586_v34, 1 }
 0x325   :  { %v596_v43 = vsel %vm147_vm0, %v590_v38, %v591_v39  ;;  %v597_v44 = vsel %vm147_vm0, %v593_v40, %v590_v38  ;;  %v594_v45 = vsel %vm147_vm0, %v592_v42, %v593_v40  ;;  %v595_v48 = vsel %vm147_vm0, %v591_v39, %v592_v42 }
 0x326   :  { %v598_v49 = vsel %vm1508_vm1, 0.0, %v597_v44  ;;  %v600_v50 = vsel %vm1512_vm2, 0.0, %v595_v48  ;;  %v607_v59 = vsel %vm168_vm4, %v603_v57, %v604_v13  ;;  %v608_v60 = vsel %vm168_vm4, %v602_v58, %v603_v57 }
 0x327   :  { %v621_v51 = vpack.c.bf16 %v596_v43, %v598_v49  ;;  %v622_v52 = vpack.c.bf16 %v594_v45, %v600_v50  ;;  %v611_v61 = vsel %vm1536_vm5, 0.0, %v607_v59  ;;  %v615_v62 = vpack.c.bf16 %v589_v36, %v588_v37 }
 0x328   :  { %v761_v0 = vpack.c.bf16 %v611_v61, %v608_v60  ;;  %v605_v2 = vrot.slane %v589_v36, 1 }
 0x329   :  { %1194 = vmatprep.mubr.msk.bf16.mxu1 %vm397_vm8, %v621_v51 }
 0x32a   :  { %1195 = vmatmul.mubr.msk.bf16.vlgmr.msra.gmra.mrb[4].mxu1 %vm397_vm8, %v622_v52  ;;  %v609_v3 = vsel %vm168_vm4, %v605_v2, %v602_v58  ;;  %v606_v33 = vsel %vm168_vm4, %v604_v13, %v605_v2 }
 0x32b   :  { %1199 = vmatpush3.bf16.msra.mxu1 %v1291_v9  ;;  %1202 = vmatprep.mubr.msk.bf16.mxu1 %vm397_vm8, %v614_v56  ;;  %v613_v4 = vsel %vm1549_vm6, 0.0, %v609_v3 }
 0x32c   :  { %1200 = vmatprep.subr.bf16.mxu1 %v1292_v53  ;;  %v762_v5 = vpack.c.bf16 %v613_v4, %v606_v33 }
 0x32f   :  { %1201 = vmatpush3.bf16.msra.mxu1 %v1292_v53 }
 0x330   :  { %1206 = vmatprep.subr.bf16.mxu1 %v1293_v17 }
 0x336   :  { %1203 = vmatmul.mubr.msk.bf16.vlgmr.msra.gmra.mrb[4].mxu1 %vm397_vm8, %v615_v62 }
 0x337   :  { %1207 = vmatpush3.bf16.msra.mxu1 %v1293_v17  ;;  %1210 = vmatprep.mubr.msk.bf16.mxu1 %vm397_vm8, %v761_v0 }
 0x338   :  { %1208 = vmatprep.subr.bf16.mxu1 %v1294_v63 }
 0x33b   :  { %1209 = vmatpush3.bf16.msra.mxu1 %v1294_v63 }
 0x342   :  { %1211 = vmatmul.mubr.msk.bf16.vlgmr.msra.gmra.mrb[4].mxu1 %vm397_vm8, %v762_v5 }
 0x415   :  { %v1212_v6 = vpop.f32.mrb[4].mxu1 }
 0x416   :  { %v820_v7 = vpop.f32.mrb[5].mxu1 }
 0x417   :  { %v1213_v8 = vpop.f32.mrb[6].mxu1 }
 0x418   :  { %v1252_v9 = vpack.c.bf16 %v1213_v8, %v1212_v6  ;;  %v823_v10 = vpop.f32.mrb[7].mxu1 }
 0x419   :  { %v1249_v11 = vpack.c.bf16 %v823_v10, %v820_v7 }
 0x41b   :  { %1250 = vmatpush3.bf16.msra.mxu0 %v1249_v11 }
 0x41c   :  { %1251 = vmatprep.subr.bf16.mxu0 %v1399_v46 }
 0x41f   :  { %1253 = vmatpush3.bf16.msra.mxu0 %v1252_v9 }
 0x420   :  { %1254 = vmatprep.subr.bf16.mxu0 %v1399_v46 }
 0x422   :  { %1223 = vmatmul.mubr.msk.f32.vlgmr.msra.gmra.mrb[4].mxu0 %vm397_vm8, %v1402_v54 }
 0x423   :  { %1233 = vmatprep.mubr.msk.f32.mxu0 %vm1400_vm7, %v1401_v47 }
 0x4f5   :  { %v907_v1 = vpop.f32.mrb[4].mxu0 }
 0x4f6   :  { %v911_v41 = vmul.f32 0.03125, %v907_v1  ;;  %v1224_v12 = vpop.f32.mrb[5].mxu0 }
 0x4f8   :  { %v915_v14 = vrot.slane %v911_v41, %v1573_v55 }
 0x4fa   :  { %v916_v15 = vsub.f32 %v820_v7, %v915_v14  ;;  %v917_v16 = vsub.f32 %v823_v10, %v915_v14  ;;  %v918_v18 = vsub.f32 %v1212_v6, %v915_v14  ;;  %v919_v19 = vsub.f32 %v1213_v8, %v915_v14 }
 0x4fc   :  { %v920_v20 = vmul.f32 %v916_v15, %v916_v15  ;;  %v921_v21 = vmul.f32 %v917_v16, %v917_v16  ;;  %v922_v23 = vmul.f32 %v918_v18, %v918_v18  ;;  %v923_v24 = vmul.f32 %v919_v19, %v919_v19 }
 0x4fe   :  { %v1255_v22 = vpack.c.bf16 %v921_v21, %v920_v20  ;;  %v1258_v25 = vpack.c.bf16 %v923_v24, %v922_v23 }
 0x500   :  { %1256 = vmatpush3.bf16.msra.mxu0 %v1255_v22 }
 0x501   :  { %1257 = vmatprep.subr.bf16.mxu0 %v1399_v46  ;;  %v1100_v46 = vld [vmem:[#allocation7] ss:$0 sm:$0xff] }
 0x504   :  { %1259 = vmatpush3.bf16.msra.mxu0 %v1258_v25 }
 0x507   :  { %1234 = vmatmul.mubr.msk.f32.vlgmr.msra.gmra.mrb[6].mxu0 %vm397_vm8, %v1402_v54 }
 0x5da   :  { %v990_v47 = vpop.f32.mrb[6].mxu0 }
 0x5db   :  { %v994_v26 = vmul.f32 0.03125, %v990_v47  ;;  %v1235_v27 = vpop.f32.mrb[7].mxu0 }
 0x5dd   :  { %v995_v28 = vmax.f32 %v994_v26, 0.0 }
 0x5df   :  { %v996_v29 = vadd.f32 1e-05, %v995_v28 }
 0x5e1   :  { %1299 = vrsqrt.f32 %v996_v29 }
 0x5eb   :  { %v1300_v30 = vpop.eup %1299 }
 0x5ec   :  { %v1001_v31 = vrot.slane %v1300_v30, %v1573_v55 }
 0x5ee   :  { %v1002_v34 = vmul.f32 %v1001_v31, %v916_v15  ;;  %v1003_v35 = vmul.f32 %v1001_v31, %v917_v16  ;;  %v1004_v36 = vmul.f32 %v1001_v31, %v918_v18  ;;  %v1005_v37 = vmul.f32 %v1001_v31, %v919_v19 }
 0x5f0   :  { %v1012_v38 = vmul.f32 %v1099_v32, %v1002_v34  ;;  %v1013_v39 = vmul.f32 %v1099_v32, %v1003_v35  ;;  %v1014_v40 = vmul.f32 %v1099_v32, %v1004_v36  ;;  %v1015_v42 = vmul.f32 %v1099_v32, %v1005_v37 }
 0x5f2   :  { %v1022_v54 = vadd.f32 %v1100_v46, %v1012_v38  ;;  %v1023_v43 = vadd.f32 %v1100_v46, %v1013_v39  ;;  %v1024_v44 = vadd.f32 %v1100_v46, %v1014_v40  ;;  %v1025_v45 = vadd.f32 %v1100_v46, %v1015_v42 }
 0x5f4   :  { %v1026_v48 = vmax.f32 %v1022_v54, 0.0  ;;  %v1027_v49 = vmax.f32 %v1023_v43, 0.0  ;;  %v1028_v50 = vmax.f32 %v1024_v44, 0.0  ;;  %v1029_v51 = vmax.f32 %v1025_v45, 0.0 }
 0x5f6   :  { %v1105_v55 = vpack.c.bf16 %v1026_v48, %v1026_v48  ;;  %v1106_v52 = vpack.c.bf16 %v1027_v49, %v1027_v49  ;;  %v1107_v53 = vpack.c.bf16 %v1028_v50, %v1028_v50  ;;  %v1108_v56 = vpack.c.bf16 %v1029_v51, %v1029_v51 }
 0x5f8   :  { %1047 = vst.msk [vmem:[%s1658_s7] sm:$0xf] %vm1046_vm9, %v1105_v55  ;;  %1048 = vst.msk [vmem:[%s1658_s7 + $0x4] sm:$0xf] %vm1046_vm9, %v1106_v52 }
 0x5f9   :  { %1049 = vst.msk [vmem:[%s1658_s7 + $0x8] sm:$0xf] %vm1046_vm9, %v1107_v53  ;;  %1050 = vst.msk [vmem:[%s1658_s7 + $0xc] sm:$0xf] %vm1046_vm9, %v1108_v56 }
 0x5fa   :  { %1055 = vsyncpa [#allocation3], 1 }
 0x5fb   :  { %1056 = vsyncpa [#allocation5], 1 }
 0x5fc   :  { %1057 = vsyncpa [#allocation8], 1 }

// kernel: unet_forward.12
= control target key start
LH: loop header
LB: loop body
LE: loop exit
PB: predicated region body
PF: predicated region fallthrough
CT: control target
= control target key end

     0   :  { %12 = vsyncpa [#allocation3], 0  ;;  %s1592_s0 = inlined_call_operand.vmem [shape: bf16[16,32], index: 0, kind: input, shape index: {}]   ;;  %s1593_s1 = inlined_call_operand.hbm [shape: bf16[3,32,64], index: 1, kind: input, shape index: {}]   ;;  %s1594_s2 = inlined_call_operand.hbm [shape: f32[1,64], index: 2, kind: input, shape index: {}]   ;;  %s1595_s3 = inlined_call_operand.hbm [shape: f32[1,64], index: 3, kind: input, shape index: {}]   ;;  %s1596_s4 = inlined_call_operand.hbm [shape: bf16[3,64,64], index: 4, kind: input, shape index: {}]   ;;  %s1597_s5 = inlined_call_operand.hbm [shape: f32[1,64], index: 5, kind: input, shape index: {}]   ;;  %s1598_s6 = inlined_call_operand.hbm [shape: f32[1,64], index: 6, kind: input, shape index: {}]   ;;  %s1599_s7 = inlined_call_operand.vmem [shape: bf16[16,64], index: 7, kind: output, shape index: {}]  }
   0x1   :  { %13 = vsyncpa [#allocation5], 0 }
   0x2   :  { %14 = vsyncpa [#allocation8], 0 }
   0x3   :  { %15 = vsyncpa [#allocation11], 0  ;;  %s1342_s24 = smov [#allocation4]   ;;  %s1202_s28 = scalar_lea.hbm %s1594_s2, 16 }
   0x4   :  { %s36_s25 = sshll.u32 %s1342_s24, 4  ;;  %p1203_p0 = scmp.ne.s32.totalorder %s1594_s2, %s1202_s28  ;;  %s37_s25 = int_to_ptr.vmem [resolvable:$true] %s36_s25 }
   0x5   :  { %p1206_p1 = scmp.lt.u32.totalorder %s1202_s28, %s1594_s2 }
   0x7   :  { %p1208_p2 = pnand %p1206_p1, %p1203_p0 }
   0x9   :  { %1211 = shalt.err (!%p1208_p2)
}
   0xa   :  { %s1212_s10 = scalar_lea.vmem %s37_s25, 16  ;;  %s1216_s11 = scalar_lea.vmem %s37_s25, 32 }
   0xb   :  { %p1213_p3 = scmp.ne.s32.totalorder %s37_s25, %s1212_s10  ;;  %p1217_p4 = scmp.lt.s32.totalorder %s37_s25, %s37_s25 }
   0xc   :  { %p1218_p5 = scmp.lt.s32.totalorder %s1216_s11, %s1212_s10 }
   0xe   :  { %p1219_p6 = por %p1218_p5, %p1217_p4 }
  0x10   :  { %p1220_p7 = pnand %p1219_p6, %p1213_p3 }
  0x12   :  { %1223 = shalt.err (!%p1220_p7)
}
  0x13   :  { %39 = dma.hbm_to_vmem [thread:$0]  %s1594_s2, 16, %s37_s25, [#allocation5]  }
  0x14   :  { %s1343_s14 = smov [#allocation7]   ;;  %s1344_s16 = smov [#allocation2]  }
  0x15   :  { %s55_s15 = sshll.u32 %s1343_s14, 4  ;;  %s23_s17 = sshll.u32 %s1344_s16, 4  ;;  %s56_s15 = int_to_ptr.vmem [resolvable:$true] %s55_s15  ;;  %s24_s17 = int_to_ptr.vmem [resolvable:$true] %s23_s17 }
  0x16   :  { %s1224_s20 = scalar_lea.hbm %s1596_s4, 1536 }
  0x17   :  { %p1225_p8 = scmp.ne.s32.totalorder %s1596_s4, %s1224_s20  ;;  %p1228_p9 = scmp.lt.u32.totalorder %s1224_s20, %s1596_s4 }
  0x19   :  { %p1230_p10 = pnand %p1228_p9, %p1225_p8 }
  0x1b   :  { %1233 = shalt.err (!%p1230_p10)
}
  0x1c   :  { %s1234_s2 = scalar_lea.vmem %s56_s15, 1536  ;;  %p1239_p12 = scmp.lt.s32.totalorder %s56_s15, %s56_s15 }
  0x1d   :  { %p1235_p11 = scmp.ne.s32.totalorder %s56_s15, %s1234_s2  ;;  %p1240_p13 = scmp.lt.s32.totalorder %s1234_s2, %s1234_s2 }
  0x1f   :  { %p1241_p0 = por %p1240_p13, %p1239_p12 }
  0x21   :  { %p1242_p1 = pnand %p1241_p0, %p1235_p11 }
  0x23   :  { %1245 = shalt.err (!%p1242_p1)
}
  0x24   :  { %s1345_s25 = smov 64   ;;  %s1346_s26 = smov 4  }
  0x25   :  { %61 = dma.hbm_to_vmem [thread:$0]  %s1596_s4, 1536, %s56_s15, [#allocation8], %s1345_s25, %s1345_s25, %s1346_s26  }
  0x26   :  { %s1246_s8 = scalar_lea.hbm %s1593_s1, 768 }
  0x27   :  { %p1247_p2 = scmp.ne.s32.totalorder %s1593_s1, %s1246_s8  ;;  %p1250_p3 = scmp.lt.u32.totalorder %s1246_s8, %s1593_s1 }
  0x29   :  { %p1252_p4 = pnand %p1250_p3, %p1247_p2 }
  0x2b   :  { %1255 = shalt.err (!%p1252_p4)
}
  0x2c   :  { %s1256_s13 = scalar_lea.vmem %s24_s17, 768  ;;  %p1261_p6 = scmp.lt.s32.totalorder %s24_s17, %s24_s17 }
  0x2d   :  { %p1257_p5 = scmp.ne.s32.totalorder %s24_s17, %s1256_s13  ;;  %p1262_p7 = scmp.lt.s32.totalorder %s1256_s13, %s1256_s13 }
  0x2f   :  { %p1263_p8 = por %p1262_p7, %p1261_p6 }
  0x31   :  { %p1264_p9 = pnand %p1263_p8, %p1257_p5 }
  0x33   :  { %1267 = shalt.err (!%p1264_p9)
}
  0x34   :  { %29 = dma.hbm_to_vmem [thread:$0]  %s1593_s1, 768, %s24_s17, [#allocation3], %s1345_s25, %s1345_s25, %s1346_s26  }
  0x35   :  { %s1347_s15 = smov [#allocation6]   ;;  %s1348_s18 = smov [#allocation9]  }
  0x36   :  { %s46_s16 = sshll.u32 %s1347_s15, 4  ;;  %s68_s19 = sshll.u32 %s1348_s18, 4  ;;  %s47_s16 = int_to_ptr.vmem [resolvable:$true] %s46_s16  ;;  %s69_s19 = int_to_ptr.vmem [resolvable:$true] %s68_s19 }
  0x37   :  { %s1268_s22 = scalar_lea.hbm %s1595_s3, 16 }
  0x38   :  { %p1269_p10 = scmp.ne.s32.totalorder %s1595_s3, %s1268_s22  ;;  %p1272_p11 = scmp.lt.u32.totalorder %s1268_s22, %s1595_s3 }
  0x3a   :  { %p1274_p12 = pnand %p1272_p11, %p1269_p10 }
  0x3c   :  { %1277 = shalt.err (!%p1274_p12)
}
  0x3d   :  { %s1278_s1 = scalar_lea.vmem %s47_s16, 16  ;;  %s1282_s17 = scalar_lea.vmem %s47_s16, 32 }
  0x3e   :  { %p1279_p13 = scmp.ne.s32.totalorder %s47_s16, %s1278_s1  ;;  %p1283_p0 = scmp.lt.s32.totalorder %s47_s16, %s47_s16 }
  0x3f   :  { %p1284_p1 = scmp.lt.s32.totalorder %s1282_s17, %s1278_s1 }
  0x41   :  { %p1285_p2 = por %p1284_p1, %p1283_p0 }
  0x43   :  { %p1286_p3 = pnand %p1285_p2, %p1279_p13 }
  0x45   :  { %1289 = shalt.err (!%p1286_p3)
}
  0x46   :  { %49 = dma.hbm_to_vmem [thread:$0]  %s1595_s3, 16, %s47_s16, [#allocation5]  }
  0x47   :  { %s1290_s30 = scalar_lea.hbm %s1597_s5, 16 }
  0x48   :  { %p1291_p4 = scmp.ne.s32.totalorder %s1597_s5, %s1290_s30  ;;  %p1294_p5 = scmp.lt.u32.totalorder %s1290_s30, %s1597_s5 }
  0x4a   :  { %p1296_p6 = pnand %p1294_p5, %p1291_p4 }
  0x4c   :  { %1299 = shalt.err (!%p1296_p6)
}
  0x4d   :  { %s1300_s12 = scalar_lea.vmem %s69_s19, 16  ;;  %s1304_s13 = scalar_lea.vmem %s69_s19, 32 }
  0x4e   :  { %p1301_p7 = scmp.ne.s32.totalorder %s69_s19, %s1300_s12  ;;  %p1305_p8 = scmp.lt.s32.totalorder %s69_s19, %s69_s19 }
  0x4f   :  { %p1306_p9 = scmp.lt.s32.totalorder %s1304_s13, %s1300_s12 }
  0x51   :  { %p1307_p10 = por %p1306_p9, %p1305_p8 }
  0x53   :  { %p1308_p11 = pnand %p1307_p10, %p1301_p7 }
  0x55   :  { %1311 = shalt.err (!%p1308_p11)
}
  0x56   :  { %71 = dma.hbm_to_vmem [thread:$0]  %s1597_s5, 16, %s69_s19, [#allocation8]  }
  0x57   :  { %s1349_s14 = smov [#allocation10]   ;;  %s1312_s20 = scalar_lea.hbm %s1598_s6, 16 }
  0x58   :  { %s78_s15 = sshll.u32 %s1349_s14, 4  ;;  %p1313_p12 = scmp.ne.s32.totalorder %s1598_s6, %s1312_s20  ;;  %s79_s15 = int_to_ptr.vmem [resolvable:$true] %s78_s15 }
  0x59   :  { %p1316_p13 = scmp.lt.u32.totalorder %s1312_s20, %s1598_s6 }
  0x5b   :  { %p1318_p0 = pnand %p1316_p13, %p1313_p12 }
  0x5d   :  { %1321 = shalt.err (!%p1318_p0)
}
  0x5e   :  { %s1322_s2 = scalar_lea.vmem %s79_s15, 16  ;;  %s1326_s5 = scalar_lea.vmem %s79_s15, 32 }
  0x5f   :  { %p1323_p1 = scmp.ne.s32.totalorder %s79_s15, %s1322_s2  ;;  %p1327_p2 = scmp.lt.s32.totalorder %s79_s15, %s79_s15 }
  0x60   :  { %p1328_p3 = scmp.lt.s32.totalorder %s1326_s5, %s1322_s2 }
  0x62   :  { %p1329_p4 = por %p1328_p3, %p1327_p2 }
  0x64   :  { %p1330_p5 = pnand %p1329_p4, %p1323_p1 }
  0x66   :  { %1333 = shalt.err (!%p1330_p5)
}
  0x67   :  { %81 = dma.hbm_to_vmem [thread:$0]  %s1598_s6, 16, %s79_s15, [#allocation11]  }
  0x68   :  { %1334 = dma.done.wait [#allocation3], 768  }
  0x69   :  { %1335 = vsyncadd [#allocation3], 4294966528 }
  0x6a   :  { %1336 = dma.done.wait [#allocation5], 32  }
  0x6b   :  { %1337 = vsyncadd [#allocation5], 4294967264 }
  0x6c   :  { %1338 = dma.done.wait [#allocation8], 1552  }
  0x6d   :  { %1339 = vsyncadd [#allocation8], 4294965744 }
  0x6e   :  { %1340 = dma.done.wait [#allocation11], 16  }
  0x6f   :  { %1341 = vsyncadd [#allocation11], 4294967280  ;;  %v101_v0 = vlaneseq  ;;  %v1350_v1 = vmov 0.0   ;;  %vm1351_vm0 = vmmov 0   ;;  %v1178_v4 = vld [vmem:[#allocation2] sm:$0xff]   ;;  %v1179_v6 = vld [vmem:[#allocation2 + $0x8] sm:$0xff]  }
  0x70   :  { %1052 = vmatprep.subr.bf16.mxu0 %v1350_v1  ;;  %1056 = vmatprep.mubr.msk.bf16.mxu0 %vm1351_vm0, %v1350_v1  ;;  %v132_v8 = vld [vmem:[%s1592_s0] sm:$0xff]   ;;  %vm180_vm4 = vcmask 261120   ;;  %v1180_v19 = vld [vmem:[#allocation2 + $0x10] sm:$0xff]   ;;  %v1181_v21 = vld [vmem:[#allocation2 + $0x18] sm:$0xff]   ;;  %v1352_v33 = vmov 0.0|0.0   ;;  %vm352_vm8 = vcmask 130048  }
  0x71   :  { %v1469_v2 = vshrl.u32 %v101_v0, 7  ;;  %1080 = vmatprep.mubr.msk.f32.mxu1 %vm1351_vm0, %v1350_v1  ;;  %1053 = vmatpush3.bf16.msra.mxu0 %v1178_v4  ;;  %v134_v9 = vunpack.c.l.bf16 %v132_v8  ;;  %v135_v10 = vunpack.c.h.bf16 %v132_v8  ;;  %v1183_v22 = vld [vmem:[#allocation2 + $0x20] sm:$0xff]   ;;  %v1184_v25 = vld [vmem:[#allocation2 + $0x28] sm:$0xff]   ;;  %v1353_v39 = vmov 1.0   ;;  %v1185_v50 = vld [vmem:[#allocation7 + $0x20] sm:$0xff]  }
  0x72   :  { %1054 = vmatprep.subr.bf16.mxu0 %v1350_v1  ;;  %1140 = vmatprep.subr.bf16.mxu1 %v1352_v33  ;;  %v1186_v51 = vld [vmem:[#allocation7 + $0x28] sm:$0xff]   ;;  %v1187_v52 = vld [vmem:[#allocation7] sm:$0xff]   ;;  %v1188_v53 = vld [vmem:[#allocation7 + $0x30] sm:$0xff]   ;;  %vm588_vm9 = vcmask 523264   ;;  %vm968_vm10 = vcmask 519168  }
  0x73   :  { %v103_v3 = vadd.s32 8, %v1469_v2  ;;  %v108_v5 = vand.u32 7, %v1469_v2  ;;  %vm138_vm1 = vcmp.lt.s32.totalorder %v1469_v2, 1  ;;  %v136_v13 = vrot.slane %v134_v9, 7  ;;  %v1189_v54 = vld [vmem:[#allocation7 + $0x8] sm:$0xff]   ;;  %v1190_v55 = vld [vmem:[#allocation7 + $0x38] sm:$0xff]  }
  0x74   :  { %v137_v14 = vrot.slane %v135_v10, 7  ;;  %v147_v23 = vrot.slane %v134_v9, 1  ;;  %v148_v24 = vrot.slane %v135_v10, 1  ;;  %vm149_vm5 = vcmp.lt.s32.totalorder %v1469_v2, 7  ;;  %v1191_v56 = vld [vmem:[#allocation7 + $0x10] sm:$0xff]   ;;  %v1193_v57 = vld [vmem:[#allocation7 + $0x18] sm:$0xff]  }
  0x75   :  { %v115_v7 = vand.u32 7, %v103_v3  ;;  %vm1480_vm2 = vcmp.eq.s32.totalorder %v108_v5, 0  ;;  %1055 = vmatpush3.bf16.msra.mxu0 %v1179_v6  ;;  %vm1506_vm6 = vcmp.eq.s32.totalorder %v108_v5, 7  ;;  %v1534_v40 = vsub.s32 0, %v1469_v2  ;;  %v991_v3 = vld [vmem:[#allocation4] ss:$0 sm:$0xff] }
  0x76   :  { %v139_v15 = vsel %vm138_vm1, %v136_v13, %v137_v14  ;;  %v140_v16 = vsel %vm138_vm1, %v137_v14, %v136_v13  ;;  %1060 = vmatprep.subr.bf16.mxu0 %v1350_v1  ;;  %v150_v28 = vsel %vm149_vm5, %v147_v23, %v148_v24  ;;  %v151_v29 = vsel %vm149_vm5, %v148_v24, %v147_v23  ;;  %v992_v6 = vld [vmem:[#allocation6] ss:$0 sm:$0xff]  ;;  %v1194_v23 = vld [vmem:[#allocation7 + $0x48] sm:$0xff]  }
  0x77   :  { %vm1484_vm3 = vcmp.eq.s32.totalorder %v115_v7, 0  ;;  %v145_v17 = vsel %vm1480_vm2, 0.0, %v140_v16  ;;  %vm1510_vm7 = vcmp.eq.s32.totalorder %v115_v7, 7  ;;  %v156_v30 = vsel %vm1506_vm6, 0.0, %v150_v28 }
  0x78   :  { %v146_v18 = vsel %vm1484_vm3, 0.0, %v139_v15  ;;  %v157_v31 = vsel %vm1510_vm7, 0.0, %v151_v29  ;;  %v1192_v15 = vld [vmem:[#allocation7 + $0x40] sm:$0xff]   ;;  %v1195_v29 = vld [vmem:[#allocation7 + $0x50] sm:$0xff]  }
  0x79   :  { %v163_v20 = vpack.c.bf16 %v146_v18, %v145_v17  ;;  %v286_v32 = vpack.c.bf16 %v157_v31, %v156_v30  ;;  %v1196_v30 = vld [vmem:[#allocation7 + $0x58] sm:$0xff]  }
  0x7b   :  { %1057 = vmatmul.mubr.msk.bf16.vlgmr.msra.gmra.mrb[0].mxu0 %vm180_vm4, %v163_v20 }
  0x7c   :  { %1061 = vmatpush3.bf16.msra.mxu0 %v1180_v19  ;;  %1064 = vmatprep.mubr.msk.bf16.mxu0 %vm1351_vm0, %v1350_v1 }
  0x7d   :  { %1062 = vmatprep.subr.bf16.mxu0 %v1350_v1 }
  0x80   :  { %1063 = vmatpush3.bf16.msra.mxu0 %v1181_v21 }
  0x81   :  { %1068 = vmatprep.subr.bf16.mxu0 %v1350_v1 }
  0x87   :  { %1065 = vmatmul.mubr.msk.bf16.vlgmr.msra.gmra.mrb[0].mxu0 %vm180_vm4, %v132_v8 }
  0x88   :  { %1069 = vmatpush3.bf16.msra.mxu0 %v1183_v22  ;;  %1072 = vmatprep.mubr.msk.bf16.mxu0 %vm1351_vm0, %v1350_v1 }
  0x89   :  { %1070 = vmatprep.subr.bf16.mxu0 %v1350_v1 }
  0x8c   :  { %1071 = vmatpush3.bf16.msra.mxu0 %v1184_v25 }
  0x8d   :  { %1090 = vmatprep.subr.bf16.mxu0 %v1350_v1 }
  0x93   :  { %1073 = vmatmul.mubr.msk.bf16.vlgmr.msra.gmra.mrb[0].mxu0 %vm180_vm4, %v286_v32 }
  0x94   :  { %1098 = vmatprep.mubr.msk.bf16.mxu0 %vm1351_vm0, %v1350_v1  ;;  %1091 = vmatpush3.bf16.msra.mxu0 %v1187_v52 }
  0x95   :  { %1092 = vmatprep.subr.bf16.mxu0 %v1350_v1 }
  0x98   :  { %1093 = vmatpush3.bf16.msra.mxu0 %v1189_v54 }
  0x99   :  { %1094 = vmatprep.subr.bf16.mxu0 %v1350_v1 }
  0x9c   :  { %1095 = vmatpush3.bf16.msra.mxu0 %v1191_v56 }
  0x9d   :  { %1096 = vmatprep.subr.bf16.mxu0 %v1350_v1 }
  0xa0   :  { %1097 = vmatpush3.bf16.msra.mxu0 %v1193_v57 }
  0xa1   :  { %1149 = vmatprep.subr.bf16.mxu0 %v1352_v33 }
 0x166   :  { %v341_v34 = vpop.f32.mrb[0].mxu0 }
 0x167   :  { %v1074_v35 = vpop.f32.mrb[1].mxu0 }
 0x168   :  { %v344_v36 = vpop.f32.mrb[2].mxu0 }
 0x169   :  { %v1075_v37 = vpop.f32.mrb[3].mxu0  ;;  %v1141_v38 = vpack.c.bf16 %v344_v36, %v341_v34 }
 0x16b   :  { %1142 = vmatpush3.bf16.msra.mxu1 %v1141_v38 }
 0x16c   :  { %1143 = vmatprep.subr.bf16.mxu1 %v1352_v33 }
 0x16e   :  { %1081 = vmatmul.mubr.msk.f32.vlgmr.msra.gmra.mrb[0].mxu1 %vm352_vm8, %v1353_v39 }
 0x16f   :  { %1087 = vmatprep.mubr.msk.f32.mxu1 %vm1351_vm0, %v1350_v1 }
 0x241   :  { %v422_v41 = vpop.f32.mrb[0].mxu1 }
 0x242   :  { %v426_v42 = vmul.f32 0.0625, %v422_v41  ;;  %v1082_v43 = vpop.f32.mrb[1].mxu1 }
 0x244   :  { %v430_v44 = vrot.slane %v426_v42, %v1534_v40 }
 0x246   :  { %v431_v45 = vsub.f32 %v341_v34, %v430_v44  ;;  %v432_v46 = vsub.f32 %v344_v36, %v430_v44 }
 0x248   :  { %v433_v47 = vmul.f32 %v431_v45, %v431_v45  ;;  %v434_v48 = vmul.f32 %v432_v46, %v432_v46 }
 0x24a   :  { %v1144_v49 = vpack.c.bf16 %v434_v48, %v433_v47 }
 0x24c   :  { %1145 = vmatpush3.bf16.msra.mxu1 %v1144_v49 }
 0x24d   :  { %1102 = vmatprep.subr.bf16.mxu1 %v1350_v1 }
 0x24f   :  { %1088 = vmatmul.mubr.msk.f32.vlgmr.msra.gmra.mrb[2].mxu1 %vm352_vm8, %v1353_v39 }
 0x250   :  { %1110 = vmatprep.mubr.msk.bf16.mxu1 %vm1351_vm0, %v1350_v1  ;;  %1103 = vmatpush3.bf16.msra.mxu1 %v1185_v50 }
 0x251   :  { %1104 = vmatprep.subr.bf16.mxu1 %v1350_v1 }
 0x254   :  { %1105 = vmatpush3.bf16.msra.mxu1 %v1186_v51 }
 0x255   :  { %1106 = vmatprep.subr.bf16.mxu1 %v1350_v1 }
 0x258   :  { %1107 = vmatpush3.bf16.msra.mxu1 %v1188_v53 }
 0x259   :  { %1108 = vmatprep.subr.bf16.mxu1 %v1350_v1 }
 0x25c   :  { %1109 = vmatpush3.bf16.msra.mxu1 %v1190_v55 }
 0x25d   :  { %1114 = vmatprep.subr.bf16.mxu1 %v1350_v1 }
 0x322   :  { %v501_v58 = vpop.f32.mrb[2].mxu1 }
 0x323   :  { %v505_v59 = vmul.f32 0.0625, %v501_v58  ;;  %v1089_v60 = vpop.f32.mrb[3].mxu1 }
 0x325   :  { %v506_v61 = vmax.f32 %v505_v59, 0.0  ;;  %v1010_v59 = vld [vmem:[#allocation9] ss:$0 sm:$0xff] }
 0x327   :  { %v507_v62 = vadd.f32 1e-05, %v506_v61 }
 0x329   :  { %1198 = vrsqrt.f32 %v507_v62  ;;  %v1011_v62 = vld [vmem:[#allocation10] ss:$0 sm:$0xff] }
 0x333   :  { %v1199_v63 = vpop.eup %1198 }
 0x334   :  { %v512_v0 = vrot.slane %v1199_v63, %v1534_v40 }
 0x336   :  { %v513_v4 = vmul.f32 %v512_v0, %v431_v45  ;;  %v514_v5 = vmul.f32 %v512_v0, %v432_v46 }
 0x338   :  { %v521_v7 = vmul.f32 %v991_v3, %v513_v4  ;;  %v522_v8 = vmul.f32 %v991_v3, %v514_v5 }
 0x33a   :  { %v529_v9 = vadd.f32 %v992_v6, %v521_v7  ;;  %v530_v10 = vadd.f32 %v992_v6, %v522_v8 }
 0x33c   :  { %v531_v13 = vmax.f32 %v529_v9, 0.0  ;;  %v532_v14 = vmax.f32 %v530_v10, 0.0 }
 0x33e   :  { %v545_v16 = vpack.c.bf16 %v532_v14, %v531_v13  ;;  %v533_v17 = vrot.slane %v531_v13, 7  ;;  %v534_v18 = vrot.slane %v532_v14, 7  ;;  %v539_v25 = vrot.slane %v531_v13, 1 }
 0x33f   :  { %v540_v28 = vrot.slane %v532_v14, 1 }
 0x340   :  { %1111 = vmatmul.mubr.msk.bf16.vlgmr.msra.gmra.mrb[4].mxu1 %vm588_vm9, %v545_v16  ;;  %v535_v19 = vsel %vm138_vm1, %v533_v17, %v534_v18  ;;  %v536_v20 = vsel %vm138_vm1, %v534_v18, %v533_v17 }
 0x341   :  { %1115 = vmatpush3.bf16.msra.mxu1 %v1192_v15  ;;  %v537_v21 = vsel %vm1480_vm2, 0.0, %v536_v20  ;;  %v538_v22 = vsel %vm1484_vm3, 0.0, %v535_v19  ;;  %1122 = vmatprep.mubr.msk.bf16.mxu1 %vm1351_vm0, %v1350_v1  ;;  %v541_v11 = vsel %vm149_vm5, %v539_v25, %v540_v28  ;;  %v542_v12 = vsel %vm149_vm5, %v540_v28, %v539_v25 }
 0x342   :  { %1116 = vmatprep.subr.bf16.mxu1 %v1350_v1  ;;  %v555_v24 = vpack.c.bf16 %v538_v22, %v537_v21  ;;  %v543_v31 = vsel %vm1506_vm6, 0.0, %v541_v11  ;;  %v544_v32 = vsel %vm1510_vm7, 0.0, %v542_v12 }
 0x343   :  { %v701_v34 = vpack.c.bf16 %v544_v32, %v543_v31 }
 0x344   :  { %1099 = vmatmul.mubr.msk.bf16.vlgmr.msra.gmra.mrb[4].mxu0 %vm588_vm9, %v555_v24 }
 0x345   :  { %1117 = vmatpush3.bf16.msra.mxu1 %v1194_v23  ;;  %1137 = vmatprep.mubr.msk.f32.mxu0 %vm1351_vm0, %v1350_v1 }
 0x346   :  { %1118 = vmatprep.subr.bf16.mxu1 %v1350_v1 }
 0x349   :  { %1119 = vmatpush3.bf16.msra.mxu1 %v1195_v29 }
 0x34a   :  { %1120 = vmatprep.subr.bf16.mxu1 %v1350_v1 }
 0x34d   :  { %1121 = vmatpush3.bf16.msra.mxu1 %v1196_v30 }
 0x34e   :  { %1146 = vmatprep.subr.bf16.mxu1 %v1352_v33 }
 0x350   :  { %1123 = vmatmul.mubr.msk.bf16.vlgmr.msra.gmra.mrb[4].mxu1 %vm588_vm9, %v701_v34 }
 0x351   :  { %1130 = vmatprep.mubr.msk.f32.mxu1 %vm1351_vm0, %v1350_v1 }
 0x417   :  { %v626_v2 = vpop.f32.mrb[4].mxu0 }
 0x418   :  { %v1100_v35 = vpop.f32.mrb[5].mxu0 }
 0x419   :  { %v629_v36 = vpop.f32.mrb[6].mxu0 }
 0x41a   :  { %v1101_v37 = vpop.f32.mrb[7].mxu0 }
 0x423   :  { %v772_v38 = vpop.f32.mrb[4].mxu1 }
 0x424   :  { %v1152_v41 = vadd.f32 %v772_v38, %v626_v2  ;;  %v1124_v26 = vpop.f32.mrb[5].mxu1 }
 0x425   :  { %v775_v42 = vpop.f32.mrb[6].mxu1 }
 0x426   :  { %v1153_v43 = vadd.f32 %v775_v42, %v629_v36  ;;  %v1125_v27 = vpop.f32.mrb[7].mxu1 }
 0x428   :  { %v1147_v44 = vpack.c.bf16 %v1153_v43, %v1152_v41 }
 0x42a   :  { %1148 = vmatpush3.bf16.msra.mxu1 %v1147_v44 }
 0x42d   :  { %1131 = vmatmul.mubr.msk.f32.vlgmr.msra.gmra.mrb[8].mxu1 %vm352_vm8, %v1353_v39 }
 0x500   :  { %v849_v33 = vpop.f32.mrb[8].mxu1 }
 0x501   :  { %v853_v45 = vmul.f32 0.0625, %v849_v33  ;;  %v1132_v46 = vpop.f32.mrb[9].mxu1 }
 0x503   :  { %v857_v1 = vrot.slane %v853_v45, %v1534_v40 }
 0x505   :  { %v858_v47 = vsub.f32 %v1152_v41, %v857_v1  ;;  %v859_v48 = vsub.f32 %v1153_v43, %v857_v1 }
 0x507   :  { %v860_v49 = vmul.f32 %v858_v47, %v858_v47  ;;  %v861_v50 = vmul.f32 %v859_v48, %v859_v48 }
 0x509   :  { %v1150_v51 = vpack.c.bf16 %v861_v50, %v860_v49 }
 0x50b   :  { %1151 = vmatpush3.bf16.msra.mxu0 %v1150_v51 }
 0x50e   :  { %1138 = vmatmul.mubr.msk.f32.vlgmr.msra.gmra.mrb[8].mxu0 %vm352_vm8, %v1353_v39 }
 0x5e1   :  { %v928_v52 = vpop.f32.mrb[8].mxu0 }
 0x5e2   :  { %v932_v53 = vmul.f32 0.0625, %v928_v52  ;;  %v1139_v54 = vpop.f32.mrb[9].mxu0 }
 0x5e4   :  { %v933_v55 = vmax.f32 %v932_v53, 0.0 }
 0x5e6   :  { %v934_v56 = vadd.f32 1e-05, %v933_v55 }
 0x5e8   :  { %1200 = vrsqrt.f32 %v934_v56 }
 0x5f2   :  { %v1201_v57 = vpop.eup %1200 }
 0x5f3   :  { %v939_v58 = vrot.slane %v1201_v57, %v1534_v40 }
 0x5f5   :  { %v940_v60 = vmul.f32 %v939_v58, %v858_v47  ;;  %v941_v61 = vmul.f32 %v939_v58, %v859_v48 }
 0x5f7   :  { %v948_v63 = vmul.f32 %v1010_v59, %v940_v60  ;;  %v949_v0 = vmul.f32 %v1010_v59, %v941_v61 }
 0x5f9   :  { %v956_v3 = vadd.f32 %v1011_v62, %v948_v63  ;;  %v957_v4 = vadd.f32 %v1011_v62, %v949_v0 }
 0x5fb   :  { %v958_v5 = vmax.f32 %v956_v3, 0.0  ;;  %v959_v6 = vmax.f32 %v957_v4, 0.0 }
 0x5fd   :  { %v1014_v39 = vpack.c.bf16 %v958_v5, %v958_v5  ;;  %v1015_v7 = vpack.c.bf16 %v959_v6, %v959_v6 }
 0x5ff   :  { %969 = vst.msk [vmem:[%s1599_s7] sm:$0xf] %vm968_vm10, %v1014_v39  ;;  %970 = vst.msk [vmem:[%s1599_s7 + $0x4] sm:$0xf] %vm968_vm10, %v1015_v7 }
 0x600   :  { %975 = vsyncpa [#allocation3], 1 }
 0x601   :  { %976 = vsyncpa [#allocation5], 1 }
 0x602   :  { %977 = vsyncpa [#allocation8], 1 }
 0x603   :  { %978 = vsyncpa [#allocation11], 1 }

// kernel: unet_forward.13
= control target key start
LH: loop header
LB: loop body
LE: loop exit
PB: predicated region body
PF: predicated region fallthrough
CT: control target
= control target key end

     0   :  { %12 = vsyncpa [#allocation3], 0  ;;  %s1744_s0 = inlined_call_operand.vmem [shape: bf16[8,64], index: 0, kind: input, shape index: {}]   ;;  %s1745_s1 = inlined_call_operand.hbm [shape: bf16[3,64,128], index: 1, kind: input, shape index: {}]   ;;  %s1746_s2 = inlined_call_operand.hbm [shape: f32[1,128], index: 2, kind: input, shape index: {}]   ;;  %s1747_s3 = inlined_call_operand.hbm [shape: f32[1,128], index: 3, kind: input, shape index: {}]   ;;  %s1748_s4 = inlined_call_operand.vmem [shape: bf16[3,128,128], index: 4, kind: input, shape index: {}]   ;;  %s1749_s5 = inlined_call_operand.hbm [shape: f32[1,128], index: 5, kind: input, shape index: {}]   ;;  %s1750_s6 = inlined_call_operand.hbm [shape: f32[1,128], index: 6, kind: input, shape index: {}]   ;;  %s1751_s7 = inlined_call_operand.vmem [shape: bf16[8,128], index: 7, kind: output, shape index: {}]  }
   0x1   :  { %13 = vsyncpa [#allocation5], 0 }
   0x2   :  { %14 = vsyncpa [#allocation8], 0  ;;  %s1459_s24 = smov [#allocation4]   ;;  %s1460_s26 = smov [#allocation7]  }
   0x3   :  { %s35_s25 = sshll.u32 %s1459_s24, 4  ;;  %s57_s27 = sshll.u32 %s1460_s26, 4  ;;  %s36_s25 = int_to_ptr.vmem [resolvable:$true] %s35_s25  ;;  %s58_s27 = int_to_ptr.vmem [resolvable:$true] %s57_s27 }
   0x4   :  { %s1343_s30 = scalar_lea.hbm %s1746_s2, 16 }
   0x5   :  { %p1344_p0 = scmp.ne.s32.totalorder %s1746_s2, %s1343_s30  ;;  %p1347_p1 = scmp.lt.u32.totalorder %s1343_s30, %s1746_s2 }
   0x7   :  { %p1349_p2 = pnand %p1347_p1, %p1344_p0 }
   0x9   :  { %1352 = shalt.err (!%p1349_p2)
}
   0xa   :  { %s1353_s12 = scalar_lea.vmem %s36_s25, 16  ;;  %s1357_s13 = scalar_lea.vmem %s36_s25, 32 }
   0xb   :  { %p1354_p3 = scmp.ne.s32.totalorder %s36_s25, %s1353_s12  ;;  %p1358_p4 = scmp.lt.s32.totalorder %s36_s25, %s36_s25 }
   0xc   :  { %p1359_p5 = scmp.lt.s32.totalorder %s1357_s13, %s1353_s12 }
   0xe   :  { %p1360_p6 = por %p1359_p5, %p1358_p4 }
  0x10   :  { %p1361_p7 = pnand %p1360_p6, %p1354_p3 }
  0x12   :  { %1364 = shalt.err (!%p1361_p7)
}
  0x13   :  { %38 = dma.hbm_to_vmem [thread:$0]  %s1746_s2, 16, %s36_s25, [#allocation5]  }
  0x14   :  { %s1365_s18 = scalar_lea.hbm %s1749_s5, 16 }
  0x15   :  { %p1366_p8 = scmp.ne.s32.totalorder %s1749_s5, %s1365_s18  ;;  %p1369_p9 = scmp.lt.u32.totalorder %s1365_s18, %s1749_s5 }
  0x17   :  { %p1371_p10 = pnand %p1369_p9, %p1366_p8 }
  0x19   :  { %1374 = shalt.err (!%p1371_p10)
}
  0x1a   :  { %s1375_s23 = scalar_lea.vmem %s58_s27, 16  ;;  %s1379_s24 = scalar_lea.vmem %s58_s27, 32 }
  0x1b   :  { %p1376_p11 = scmp.ne.s32.totalorder %s58_s27, %s1375_s23  ;;  %p1380_p12 = scmp.lt.s32.totalorder %s58_s27, %s58_s27 }
  0x1c   :  { %p1381_p13 = scmp.lt.s32.totalorder %s1379_s24, %s1375_s23 }
  0x1e   :  { %p1382_p0 = por %p1381_p13, %p1380_p12 }
  0x20   :  { %p1383_p1 = pnand %p1382_p0, %p1376_p11 }
  0x22   :  { %1386 = shalt.err (!%p1383_p1)
}
  0x23   :  { %60 = dma.hbm_to_vmem [thread:$0]  %s1749_s5, 16, %s58_s27, [#allocation8]  }
  0x24   :  { %s1461_s26 = smov [#allocation2]   ;;  %s1387_s8 = scalar_lea.hbm %s1745_s1, 1536 }
  0x25   :  { %s22_s28 = sshll.u32 %s1461_s26, 4  ;;  %p1388_p2 = scmp.ne.s32.totalorder %s1745_s1, %s1387_s8  ;;  %s23_s28 = int_to_ptr.vmem [resolvable:$true] %s22_s28 }
  0x26   :  { %p1391_p3 = scmp.lt.u32.totalorder %s1387_s8, %s1745_s1 }
  0x28   :  { %p1393_p4 = pnand %p1391_p3, %p1388_p2 }
  0x2a   :  { %1396 = shalt.err (!%p1393_p4)
}
  0x2b   :  { %s1397_s13 = scalar_lea.vmem %s23_s28, 1536  ;;  %p1402_p6 = scmp.lt.s32.totalorder %s23_s28, %s23_s28 }
  0x2c   :  { %p1398_p5 = scmp.ne.s32.totalorder %s23_s28, %s1397_s13  ;;  %p1403_p7 = scmp.lt.s32.totalorder %s1397_s13, %s1397_s13 }
  0x2e   :  { %p1404_p8 = por %p1403_p7, %p1402_p6 }
  0x30   :  { %p1405_p9 = pnand %p1404_p8, %p1398_p5 }
  0x32   :  { %1408 = shalt.err (!%p1405_p9)
}
  0x33   :  { %s1462_s5 = smov 64   ;;  %s1463_s27 = smov 4  }
  0x34   :  { %28 = dma.hbm_to_vmem [thread:$0]  %s1745_s1, 1536, %s23_s28, [#allocation3], %s1462_s5, %s1462_s5, %s1463_s27  }
  0x35   :  { %s1464_s16 = smov [#allocation6]   ;;  %s1465_s18 = smov [#allocation9]  }
  0x36   :  { %s45_s17 = sshll.u32 %s1464_s16, 4  ;;  %s67_s19 = sshll.u32 %s1465_s18, 4  ;;  %s46_s17 = int_to_ptr.vmem [resolvable:$true] %s45_s17  ;;  %s68_s19 = int_to_ptr.vmem [resolvable:$true] %s67_s19 }
  0x37   :  { %s1409_s22 = scalar_lea.hbm %s1747_s3, 16 }
  0x38   :  { %p1410_p10 = scmp.ne.s32.totalorder %s1747_s3, %s1409_s22  ;;  %p1413_p11 = scmp.lt.u32.totalorder %s1409_s22, %s1747_s3 }
  0x3a   :  { %p1415_p12 = pnand %p1413_p11, %p1410_p10 }
  0x3c   :  { %1418 = shalt.err (!%p1415_p12)
}
  0x3d   :  { %s1419_s1 = scalar_lea.vmem %s46_s17, 16  ;;  %s1423_s26 = scalar_lea.vmem %s46_s17, 32 }
  0x3e   :  { %p1420_p13 = scmp.ne.s32.totalorder %s46_s17, %s1419_s1  ;;  %p1424_p0 = scmp.lt.s32.totalorder %s46_s17, %s46_s17 }
  0x3f   :  { %p1425_p1 = scmp.lt.s32.totalorder %s1423_s26, %s1419_s1 }
  0x41   :  { %p1426_p2 = por %p1425_p1, %p1424_p0 }
  0x43   :  { %p1427_p3 = pnand %p1426_p2, %p1420_p13 }
  0x45   :  { %1430 = shalt.err (!%p1427_p3)
}
  0x46   :  { %48 = dma.hbm_to_vmem [thread:$0]  %s1747_s3, 16, %s46_s17, [#allocation5]  }
  0x47   :  { %s1431_s9 = scalar_lea.hbm %s1750_s6, 16 }
  0x48   :  { %p1432_p4 = scmp.ne.s32.totalorder %s1750_s6, %s1431_s9  ;;  %p1435_p5 = scmp.lt.u32.totalorder %s1431_s9, %s1750_s6 }
  0x4a   :  { %p1437_p6 = pnand %p1435_p5, %p1432_p4 }
  0x4c   :  { %1440 = shalt.err (!%p1437_p6)
}
  0x4d   :  { %s1441_s5 = scalar_lea.vmem %s68_s19, 16  ;;  %s1445_s27 = scalar_lea.vmem %s68_s19, 32 }
  0x4e   :  { %p1442_p7 = scmp.ne.s32.totalorder %s68_s19, %s1441_s5  ;;  %p1446_p8 = scmp.lt.s32.totalorder %s68_s19, %s68_s19 }
  0x4f   :  { %p1447_p9 = scmp.lt.s32.totalorder %s1445_s27, %s1441_s5 }
  0x51   :  { %p1448_p10 = por %p1447_p9, %p1446_p8 }
  0x53   :  { %p1449_p11 = pnand %p1448_p10, %p1442_p7 }
  0x55   :  { %1452 = shalt.err (!%p1449_p11)
}
  0x56   :  { %70 = dma.hbm_to_vmem [thread:$0]  %s1750_s6, 16, %s68_s19, [#allocation8]  }
  0x57   :  { %1453 = dma.done.wait [#allocation3], 1536  }
  0x58   :  { %1454 = vsyncadd [#allocation3], 4294965760 }
  0x59   :  { %1455 = dma.done.wait [#allocation5], 32  }
  0x5a   :  { %1456 = vsyncadd [#allocation5], 4294967264 }
  0x5b   :  { %1457 = dma.done.wait [#allocation8], 32  }
  0x5c   :  { %1458 = vsyncadd [#allocation8], 4294967264  ;;  %v1466_v0 = vmov 0.0   ;;  %vm1467_vm0 = vmmov 0   ;;  %v87_v1 = vlaneseq  ;;  %v1303_v3 = vld [vmem:[#allocation2] sm:$0xff]   ;;  %v1304_v4 = vld [vmem:[#allocation2 + $0x8] sm:$0xff]  }
  0x5d   :  { %1164 = vmatprep.subr.bf16.mxu0 %v1466_v0  ;;  %1172 = vmatprep.mubr.msk.bf16.mxu0 %vm1467_vm0, %v1466_v0  ;;  %v103_v6 = vld [vmem:[%s1744_s0] sm:$0xf]  ;;  %v1305_v8 = vld [vmem:[#allocation2 + $0x10] sm:$0xff]   ;;  %v1306_v11 = vld [vmem:[#allocation2 + $0x18] sm:$0xff]   ;;  %vm155_vm2 = vcmask 523264   ;;  %vm346_vm4 = vcmask 64512  }
  0x5e   :  { %1200 = vmatprep.subr.mxu1 %v1466_v0  ;;  %1202 = vmatprep.mubr.msk.f32.mxu1 %vm1467_vm0, %v1466_v0  ;;  %v1575_v2 = vshrl.u32 %v87_v1, 7  ;;  %v104_v7 = vunpack.c.l.bf16 %v103_v6  ;;  %v1307_v13 = vld [vmem:[#allocation2 + $0x20] sm:$0xff]   ;;  %v1308_v15 = vld [vmem:[#allocation2 + $0x28] sm:$0xff]   ;;  %v1309_v16 = vld [vmem:[#allocation2 + $0x30] sm:$0xff]   ;;  %v1468_v29 = vmov 1.0  }
  0x5f   :  { %1165 = vmatpush3.bf16.msra.mxu0 %v1303_v3  ;;  %v1310_v17 = vld [vmem:[#allocation2 + $0x38] sm:$0xff]   ;;  %v1311_v18 = vld [vmem:[#allocation2 + $0x40] sm:$0xff]   ;;  %v1312_v19 = vld [vmem:[#allocation2 + $0x48] sm:$0xff]  }
  0x60   :  { %1166 = vmatprep.subr.bf16.mxu0 %v1466_v0  ;;  %v93_v5 = vand.u32 3, %v1575_v2  ;;  %v105_v10 = vrot.slane %v104_v7, 7  ;;  %v109_v20 = vrot.slane %v104_v7, 1  ;;  %v1313_v21 = vld [vmem:[#allocation2 + $0x50] sm:$0xff]   ;;  %v1314_v23 = vld [vmem:[#allocation2 + $0x58] sm:$0xff]   ;;  %v1620_v31 = vsub.s32 0, %v1575_v2 }
  0x61   :  { %v1315_v38 = vld [vmem:[%s1748_s4 + $0x40] sm:$0xff]   ;;  %v1317_v40 = vld [vmem:[%s1748_s4 + $0x48] sm:$0xff]   ;;  %v1319_v42 = vld [vmem:[%s1748_s4 + $0x50] sm:$0xff]  }
  0x62   :  { %vm1583_vm1 = vcmp.eq.s32.totalorder %v93_v5, 0  ;;  %vm1602_vm3 = vcmp.eq.s32.totalorder %v93_v5, 3  ;;  %v1316_v39 = vld [vmem:[%s1748_s4] sm:$0xff]   ;;  %v1318_v41 = vld [vmem:[%s1748_s4 + $0x8] sm:$0xff]   ;;  %v1320_v43 = vld [vmem:[%s1748_s4 + $0x10] sm:$0xff]  }
  0x63   :  { %1167 = vmatpush3.bf16.msra.mxu0 %v1304_v4  ;;  %v108_v12 = vsel %vm1583_vm1, 0.0, %v105_v10  ;;  %v112_v24 = vsel %vm1602_vm3, 0.0, %v109_v20  ;;  %v1321_v44 = vld [vmem:[%s1748_s4 + $0x58] sm:$0xff]   ;;  %v1323_v46 = vld [vmem:[%s1748_s4 + $0x60] sm:$0xff]   ;;  %v1325_v48 = vld [vmem:[%s1748_s4 + $0x68] sm:$0xff]  }
  0x64   :  { %1168 = vmatprep.subr.bf16.mxu0 %v1466_v0  ;;  %v122_v14 = vpack.c.bf16 %v108_v12, %v108_v12  ;;  %v266_v25 = vpack.c.bf16 %v112_v24, %v112_v24  ;;  %v1322_v45 = vld [vmem:[%s1748_s4 + $0x18] sm:$0xff]   ;;  %v1324_v47 = vld [vmem:[%s1748_s4 + $0x20] sm:$0xff]   ;;  %v1326_v49 = vld [vmem:[%s1748_s4 + $0x28] sm:$0xff]  }
  0x65   :  { %v1327_v50 = vld [vmem:[%s1748_s4 + $0x70] sm:$0xff]   ;;  %v1329_v52 = vld [vmem:[%s1748_s4 + $0x78] sm:$0xff]   ;;  %v1042_v61 = vld [vmem:[#allocation4] ss:$0 sm:$0xff] }
  0x66   :  { %v1328_v51 = vld [vmem:[%s1748_s4 + $0x30] sm:$0xff]   ;;  %v1330_v53 = vld [vmem:[%s1748_s4 + $0x38] sm:$0xff]   ;;  %v1043_v63 = vld [vmem:[#allocation6] ss:$0 sm:$0xff] }
  0x67   :  { %1169 = vmatpush3.bf16.msra.mxu0 %v1305_v8  ;;  %vm1068_vm5 = vmneg %vm1583_vm1  ;;  %v1331_v4 = vld [vmem:[%s1748_s4 + $0x80] sm:$0xff]   ;;  %v1332_v8 = vld [vmem:[%s1748_s4 + $0x88] sm:$0xff]  }
  0x68   :  { %1170 = vmatprep.subr.bf16.mxu0 %v1466_v0  ;;  %vm1070_vm6 = vmpackc.low %vm1068_vm5, %vm1068_vm5  ;;  %v1333_v9 = vld [vmem:[%s1748_s4 + $0x90] sm:$0xff]   ;;  %v1334_v10 = vld [vmem:[%s1748_s4 + $0x98] sm:$0xff]  }
  0x69   :  { %v1336_v12 = vld [vmem:[%s1748_s4 + $0xa8] sm:$0xff]   ;;  %vm1105_vm7 = vmneg %vm1602_vm3 }
  0x6a   :  { %vm1107_vm8 = vmpackc.low %vm1105_vm7, %vm1105_vm7 }
  0x6b   :  { %1171 = vmatpush3.bf16.msra.mxu0 %v1306_v11  ;;  %v1335_v11 = vld [vmem:[%s1748_s4 + $0xa0] sm:$0xff]  }
  0x6c   :  { %1176 = vmatprep.subr.bf16.mxu0 %v1466_v0 }
  0x6e   :  { %1173 = vmatmul.mubr.msk.bf16.vlgmr.msra.gmra.mrb[0].mxu0 %vm155_vm2, %v122_v14  ;;  %v1338_v14 = vld [vmem:[%s1748_s4 + $0xb8] sm:$0xff]  }
  0x6f   :  { %1177 = vmatpush3.bf16.msra.mxu0 %v1307_v13  ;;  %1184 = vmatprep.mubr.msk.bf16.mxu0 %vm1467_vm0, %v1466_v0  ;;  %v1337_v13 = vld [vmem:[%s1748_s4 + $0xb0] sm:$0xff]  }
  0x70   :  { %1178 = vmatprep.subr.bf16.mxu0 %v1466_v0 }
  0x73   :  { %1179 = vmatpush3.bf16.msra.mxu0 %v1308_v15 }
  0x74   :  { %1180 = vmatprep.subr.bf16.mxu0 %v1466_v0 }
  0x77   :  { %1181 = vmatpush3.bf16.msra.mxu0 %v1309_v16 }
  0x78   :  { %1182 = vmatprep.subr.bf16.mxu0 %v1466_v0 }
  0x7b   :  { %1183 = vmatpush3.bf16.msra.mxu0 %v1310_v17 }
  0x7c   :  { %1188 = vmatprep.subr.bf16.mxu0 %v1466_v0 }
  0x7e   :  { %1185 = vmatmul.mubr.msk.bf16.vlgmr.msra.gmra.mrb[0].mxu0 %vm155_vm2, %v103_v6 }
  0x7f   :  { %1189 = vmatpush3.bf16.msra.mxu0 %v1311_v18  ;;  %1196 = vmatprep.mubr.msk.bf16.mxu0 %vm1467_vm0, %v1466_v0 }
  0x80   :  { %1190 = vmatprep.subr.bf16.mxu0 %v1466_v0 }
  0x83   :  { %1191 = vmatpush3.bf16.msra.mxu0 %v1312_v19 }
  0x84   :  { %1192 = vmatprep.subr.bf16.mxu0 %v1466_v0 }
  0x87   :  { %1193 = vmatpush3.bf16.msra.mxu0 %v1313_v21 }
  0x88   :  { %1194 = vmatprep.subr.bf16.mxu0 %v1466_v0 }
  0x8b   :  { %1195 = vmatpush3.bf16.msra.mxu0 %v1314_v23 }
  0x8c   :  { %1210 = vmatprep.subr.bf16.mxu0 %v1466_v0 }
  0x8e   :  { %1197 = vmatmul.mubr.msk.bf16.vlgmr.msra.gmra.mrb[0].mxu0 %vm155_vm2, %v266_v25 }
  0x8f   :  { %1226 = vmatprep.mubr.msk.bf16.mxu0 %vm1467_vm0, %v1466_v0  ;;  %1211 = vmatpush3.bf16.msra.mxu0 %v1316_v39 }
  0x90   :  { %1212 = vmatprep.subr.bf16.mxu0 %v1466_v0 }
  0x93   :  { %1213 = vmatpush3.bf16.msra.mxu0 %v1318_v41 }
  0x94   :  { %1214 = vmatprep.subr.bf16.mxu0 %v1466_v0 }
  0x97   :  { %1215 = vmatpush3.bf16.msra.mxu0 %v1320_v43 }
  0x98   :  { %1216 = vmatprep.subr.bf16.mxu0 %v1466_v0 }
  0x9b   :  { %1217 = vmatpush3.bf16.msra.mxu0 %v1322_v45 }
  0x9c   :  { %1218 = vmatprep.subr.bf16.mxu0 %v1466_v0 }
  0x9f   :  { %1219 = vmatpush3.bf16.msra.mxu0 %v1324_v47 }
  0xa0   :  { %1220 = vmatprep.subr.bf16.mxu0 %v1466_v0 }
  0xa3   :  { %1221 = vmatpush3.bf16.msra.mxu0 %v1326_v49 }
  0xa4   :  { %1222 = vmatprep.subr.bf16.mxu0 %v1466_v0 }
  0xa7   :  { %1223 = vmatpush3.bf16.msra.mxu0 %v1328_v51 }
  0xa8   :  { %1224 = vmatprep.subr.bf16.mxu0 %v1466_v0 }
  0xab   :  { %1225 = vmatpush3.bf16.msra.mxu0 %v1330_v53 }
 0x161   :  { %v337_v26 = vpop.f32.mrb[0].mxu0 }
 0x162   :  { %v1198_v27 = vpop.f32.mrb[1].mxu0  ;;  %1201 = vmatpush3.msra.mxu1 %v337_v26 }
 0x163   :  { %v340_v28 = vpop.f32.mrb[2].mxu0  ;;  %1203 = vmatmul.mubr.msk.f32.vlgmr.msra.gmra.mrb[0].mxu1 %vm346_vm4, %v1468_v29  ;;  %1205 = vmatprep.subr.mxu1 %v1466_v0 }
 0x164   :  { %v1199_v30 = vpop.f32.mrb[3].mxu0  ;;  %1207 = vmatprep.mubr.msk.f32.mxu1 %vm1467_vm0, %v1466_v0 }
 0x236   :  { %v416_v32 = vpop.f32.mrb[0].mxu1 }
 0x237   :  { %v420_v33 = vmul.f32 0.125, %v416_v32  ;;  %v1204_v34 = vpop.f32.mrb[1].mxu1 }
 0x239   :  { %v424_v35 = vrot.slane %v420_v33, %v1620_v31 }
 0x23b   :  { %v425_v36 = vsub.f32 %v337_v26, %v424_v35 }
 0x23d   :  { %v426_v37 = vmul.f32 %v425_v36, %v425_v36 }
 0x23f   :  { %1206 = vmatpush3.msra.mxu1 %v426_v37 }
 0x240   :  { %1208 = vmatmul.mubr.msk.f32.vlgmr.msra.gmra.mrb[2].mxu1 %vm346_vm4, %v1468_v29  ;;  %1230 = vmatprep.subr.bf16.mxu1 %v1466_v0 }
 0x241   :  { %1231 = vmatpush3.bf16.msra.mxu1 %v1315_v38  ;;  %1246 = vmatprep.mubr.msk.bf16.mxu1 %vm1467_vm0, %v1466_v0 }
 0x242   :  { %1232 = vmatprep.subr.bf16.mxu1 %v1466_v0 }
 0x245   :  { %1233 = vmatpush3.bf16.msra.mxu1 %v1317_v40  ;;  %v1112_v40 = vld [vmem:[#allocation7] ss:$0 sm:$0xff] }
 0x246   :  { %1234 = vmatprep.subr.bf16.mxu1 %v1466_v0 }
 0x249   :  { %1235 = vmatpush3.bf16.msra.mxu1 %v1319_v42  ;;  %v1113_v42 = vld [vmem:[#allocation9] ss:$0 sm:$0xff] }
 0x24a   :  { %1236 = vmatprep.subr.bf16.mxu1 %v1466_v0 }
 0x24d   :  { %1237 = vmatpush3.bf16.msra.mxu1 %v1321_v44 }
 0x24e   :  { %1238 = vmatprep.subr.bf16.mxu1 %v1466_v0 }
 0x251   :  { %1239 = vmatpush3.bf16.msra.mxu1 %v1323_v46 }
 0x252   :  { %1240 = vmatprep.subr.bf16.mxu1 %v1466_v0 }
 0x255   :  { %1241 = vmatpush3.bf16.msra.mxu1 %v1325_v48 }
 0x256   :  { %1242 = vmatprep.subr.bf16.mxu1 %v1466_v0 }
 0x259   :  { %1243 = vmatpush3.bf16.msra.mxu1 %v1327_v50 }
 0x25a   :  { %1244 = vmatprep.subr.bf16.mxu1 %v1466_v0 }
 0x25d   :  { %1245 = vmatpush3.bf16.msra.mxu1 %v1329_v52 }
 0x25e   :  { %1250 = vmatprep.subr.bf16.mxu1 %v1466_v0 }
 0x313   :  { %v493_v54 = vpop.f32.mrb[2].mxu1 }
 0x314   :  { %v497_v55 = vmul.f32 0.125, %v493_v54  ;;  %v1209_v56 = vpop.f32.mrb[3].mxu1 }
 0x316   :  { %v498_v57 = vmax.f32 %v497_v55, 0.0 }
 0x318   :  { %v499_v58 = vadd.f32 1e-05, %v498_v57 }
 0x31a   :  { %1339 = vrsqrt.f32 %v499_v58 }
 0x324   :  { %v1340_v59 = vpop.eup %1339 }
 0x325   :  { %v504_v60 = vrot.slane %v1340_v59, %v1620_v31 }
 0x327   :  { %v505_v62 = vmul.f32 %v504_v60, %v425_v36 }
 0x329   :  { %v512_v1 = vmul.f32 %v1042_v61, %v505_v62 }
 0x32b   :  { %v519_v2 = vadd.f32 %v1043_v63, %v512_v1 }
 0x32d   :  { %v520_v3 = vmax.f32 %v519_v2, 0.0 }
 0x32f   :  { %v525_v5 = vpack.c.bf16 %v520_v3, %v520_v3  ;;  %v521_v6 = vrot.slane %v520_v3, 7  ;;  %v523_v15 = vrot.slane %v520_v3, 1 }
 0x331   :  { %1247 = vmatmul.mubr.bf16.vlgmr.msra.gmra.mrb[4].mxu1 %v525_v5  ;;  %v1071_v7 = vpack.c.bf16 %v521_v6, %v521_v6  ;;  %v1108_v16 = vpack.c.bf16 %v523_v15, %v523_v15 }
 0x332   :  { %1251 = vmatpush3.bf16.msra.mxu1 %v1331_v4  ;;  %1266 = vmatprep.mubr.msk.bf16.mxu1 %vm1467_vm0, %v1466_v0 }
 0x333   :  { %1227 = vmatmul.mubr.msk.bf16.vlgmr.msra.gmra.mrb[4].mxu0 %vm1070_vm6, %v1071_v7  ;;  %1252 = vmatprep.subr.bf16.mxu1 %v1466_v0 }
 0x336   :  { %1253 = vmatpush3.bf16.msra.mxu1 %v1332_v8 }
 0x337   :  { %1254 = vmatprep.subr.bf16.mxu1 %v1466_v0 }
 0x33a   :  { %1255 = vmatpush3.bf16.msra.mxu1 %v1333_v9 }
 0x33b   :  { %1256 = vmatprep.subr.bf16.mxu1 %v1466_v0 }
 0x33e   :  { %1257 = vmatpush3.bf16.msra.mxu1 %v1334_v10 }
 0x33f   :  { %1258 = vmatprep.subr.bf16.mxu1 %v1466_v0 }
 0x342   :  { %1259 = vmatpush3.bf16.msra.mxu1 %v1335_v11 }
 0x343   :  { %1260 = vmatprep.subr.bf16.mxu1 %v1466_v0 }
 0x346   :  { %1261 = vmatpush3.bf16.msra.mxu1 %v1336_v12 }
 0x347   :  { %1262 = vmatprep.subr.bf16.mxu1 %v1466_v0 }
 0x34a   :  { %1263 = vmatpush3.bf16.msra.mxu1 %v1337_v13 }
 0x34b   :  { %1264 = vmatprep.subr.bf16.mxu1 %v1466_v0 }
 0x34e   :  { %1265 = vmatpush3.bf16.msra.mxu1 %v1338_v14 }
 0x34f   :  { %1270 = vmatprep.subr.mxu1 %v1466_v0 }
 0x351   :  { %1267 = vmatmul.mubr.msk.bf16.vlgmr.msra.gmra.mrb[4].mxu1 %vm1107_vm8, %v1108_v16 }
 0x352   :  { %1272 = vmatprep.mubr.msk.f32.mxu1 %vm1467_vm0, %v1466_v0 }
 0x406   :  { %v642_v17 = vpop.f32.mrb[4].mxu0 }
 0x407   :  { %v1228_v18 = vpop.f32.mrb[5].mxu0 }
 0x408   :  { %v645_v19 = vpop.f32.mrb[6].mxu0 }
 0x409   :  { %v1229_v20 = vpop.f32.mrb[7].mxu0 }
 0x424   :  { %v836_v21 = vpop.f32.mrb[4].mxu1 }
 0x425   :  { %v1280_v23 = vadd.f32 %v836_v21, %v642_v17  ;;  %v1268_v24 = vpop.f32.mrb[5].mxu1 }
 0x426   :  { %v839_v25 = vpop.f32.mrb[6].mxu1 }
 0x427   :  { %v1269_v26 = vpop.f32.mrb[7].mxu1  ;;  %1271 = vmatpush3.msra.mxu1 %v1280_v23 }
 0x428   :  { %1273 = vmatmul.mubr.msk.f32.vlgmr.msra.gmra.mrb[8].mxu1 %vm346_vm4, %v1468_v29  ;;  %1275 = vmatprep.subr.mxu1 %v1466_v0 }
 0x429   :  { %1277 = vmatprep.mubr.msk.f32.mxu1 %vm1467_vm0, %v1466_v0 }
 0x4fb   :  { %v911_v22 = vpop.f32.mrb[8].mxu1 }
 0x4fc   :  { %v915_v27 = vmul.f32 0.125, %v911_v22  ;;  %v1274_v28 = vpop.f32.mrb[9].mxu1 }
 0x4fe   :  { %v919_v30 = vrot.slane %v915_v27, %v1620_v31 }
 0x500   :  { %v920_v32 = vsub.f32 %v1280_v23, %v919_v30 }
 0x502   :  { %v921_v33 = vmul.f32 %v920_v32, %v920_v32 }
 0x504   :  { %1276 = vmatpush3.msra.mxu1 %v921_v33 }
 0x505   :  { %1278 = vmatmul.mubr.msk.f32.vlgmr.msra.gmra.mrb[10].mxu1 %vm346_vm4, %v1468_v29 }
 0x5d8   :  { %v988_v34 = vpop.f32.mrb[10].mxu1 }
 0x5d9   :  { %v992_v35 = vmul.f32 0.125, %v988_v34  ;;  %v1279_v36 = vpop.f32.mrb[11].mxu1 }
 0x5db   :  { %v993_v37 = vmax.f32 %v992_v35, 0.0 }
 0x5dd   :  { %v994_v38 = vadd.f32 1e-05, %v993_v37 }
 0x5df   :  { %1341 = vrsqrt.f32 %v994_v38 }
 0x5e9   :  { %v1342_v39 = vpop.eup %1341 }
 0x5ea   :  { %v999_v0 = vrot.slane %v1342_v39, %v1620_v31 }
 0x5ec   :  { %v1000_v41 = vmul.f32 %v999_v0, %v920_v32 }
 0x5ee   :  { %v1007_v43 = vmul.f32 %v1112_v40, %v1000_v41 }
 0x5f0   :  { %v1014_v44 = vadd.f32 %v1113_v42, %v1007_v43 }
 0x5f2   :  { %v1015_v45 = vmax.f32 %v1014_v44, 0.0 }
 0x5f4   :  { %v1016_v46 = vpack.c.bf16 %v1015_v45, %v1015_v45 }
 0x5f6   :  { %1017 = vst [vmem:[%s1751_s7] sm:$0xf] %v1016_v46 }
 0x5f7   :  { %1022 = vsyncpa [#allocation3], 1 }
 0x5f8   :  { %1023 = vsyncpa [#allocation5], 1 }
 0x5f9   :  { %1024 = vsyncpa [#allocation8], 1 }

// kernel: unet_forward.10
= control target key start
LH: loop header
LB: loop body
LE: loop exit
PB: predicated region body
PF: predicated region fallthrough
CT: control target
= control target key end

     0   :  { %vm266_vm0 = vcmask 1040384   ;;  %v27_v0 = vlaneseq  ;;  %vm253_vm3 = vcmask 15360   ;;  %vm1700_vm8 = vmmov 0   ;;  %s2013_s1 = inlined_call_operand.vmem [shape: bf16[3,2,16], index: 1, kind: input, shape index: {}]   ;;  %s2014_s0 = inlined_call_operand.vmem [shape: bf16[64,2], index: 0, kind: input, shape index: {}]   ;;  %s2015_s4 = inlined_call_operand.vmem [shape: bf16[3,16,16], index: 4, kind: input, shape index: {}]   ;;  %s2016_s2 = inlined_call_operand.vmem [shape: f32[1,16], index: 2, kind: input, shape index: {}]   ;;  %s2017_s3 = inlined_call_operand.vmem [shape: f32[1,16], index: 3, kind: input, shape index: {}]   ;;  %s2018_s5 = inlined_call_operand.vmem [shape: f32[1,16], index: 5, kind: input, shape index: {}]   ;;  %s2019_s6 = inlined_call_operand.vmem [shape: f32[1,16], index: 6, kind: input, shape index: {}]   ;;  %s2020_s7 = inlined_call_operand.vmem [shape: bf16[64,16], index: 7, kind: output, shape index: {}]  }
   0x1   :  { %v252_v1 = vld [vmem:[%s2013_s1] sm:$0x1]  ;;  %v1752_v3 = vld [vmem:[%s2014_s0 + $0x18] sm:$0xff]   ;;  %v150_v8 = vld [vmem:[%s2014_s0 + $0x8] sm:$0xff]   ;;  %vm531_vm9 = vcmask 523264   ;;  %vm815_vm10 = vcmask 130048  }
   0x2   :  { %v148_v2 = vld [vmem:[%s2014_s0] sm:$0xff]   ;;  %1677 = vmatprep.subr.msk.bf16.mxu0 %vm266_vm0, %v252_v1  ;;  %v268_v4 = vsel %vm266_vm0, %v252_v1, 0  ;;  %v1756_v5 = vshrl.u32 %v27_v0, 7  ;;  %v163_v10 = vunpack.c.h.bf16 %v1752_v3  ;;  %v158_v11 = vunpack.c.l.bf16 %v150_v8  ;;  %v152_v17 = vld [vmem:[%s2014_s0 + $0x10] sm:$0xff]  }
   0x3   :  { %v156_v6 = vunpack.c.l.bf16 %v148_v2  ;;  %v157_v7 = vunpack.c.h.bf16 %v148_v2  ;;  %v1334_v9 = vld [vmem:[%s2013_s1 + $0x1] sm:$0x1]  ;;  %1462 = vmatpush3.bf16.msra.mxu0 %v268_v4  ;;  %v159_v12 = vunpack.c.h.bf16 %v150_v8  ;;  %v160_v26 = vunpack.c.l.bf16 %v152_v17  ;;  %v1347_v37 = vld [vmem:[%s2013_s1 + $0x2] sm:$0x1] }
   0x4   :  { %v40_v13 = vand.u32 31, %v1756_v5  ;;  %vm172_vm1 = vcmp.lt.s32.totalorder %v1756_v5, 1  ;;  %1678 = vmatprep.subr.msk.bf16.mxu0 %vm266_vm0, %v1334_v9  ;;  %v171_v16 = vrot.slane %v163_v10, 7  ;;  %v166_v20 = vrot.slane %v158_v11, 7 }
   0x5   :  { %v164_v14 = vrot.slane %v156_v6, 7  ;;  %v165_v15 = vrot.slane %v157_v7, 7  ;;  %v167_v22 = vrot.slane %v159_v12, 7  ;;  %v32_v25 = vadd.s32 32, %v1756_v5 }
   0x6   :  { %vm1773_vm2 = vcmp.eq.s32.totalorder %v40_v13, 0  ;;  %v161_v29 = vunpack.c.h.bf16 %v152_v17  ;;  %v162_v30 = vunpack.c.l.bf16 %v1752_v3  ;;  %v368_v32 = vsel %vm266_vm0, %v1334_v9, 0 }
   0x7   :  { %v179_v19 = vsel %vm172_vm1, %v164_v14, %v165_v15  ;;  %v180_v21 = vsel %vm172_vm1, %v171_v16, %v164_v14  ;;  %v178_v24 = vsel %vm172_vm1, %v165_v15, %v166_v20  ;;  %v177_v28 = vsel %vm172_vm1, %v166_v20, %v167_v22 }
   0x8   :  { %v197_v23 = vsel %vm1773_vm2, 0.0, %v180_v21  ;;  %v249_v31 = vpack.c.bf16 %v177_v28, %v178_v24  ;;  %v68_v33 = vand.u32 31, %v32_v25  ;;  %v168_v34 = vrot.slane %v160_v26, 7 }
   0x9   :  { %v248_v27 = vpack.c.bf16 %v179_v19, %v197_v23  ;;  %v169_v35 = vrot.slane %v161_v29, 7  ;;  %v170_v36 = vrot.slane %v162_v30, 7  ;;  %v205_v46 = vrot.slane %v156_v6, 1 }
   0xa   :  { %vm1795_vm4 = vcmp.eq.s32.totalorder %v68_v33, 0  ;;  %v176_v39 = vsel %vm172_vm1, %v167_v22, %v168_v34  ;;  %v206_v47 = vrot.slane %v157_v7, 1  ;;  %v454_v48 = vsel %vm266_vm0, %v1347_v37, 0 }
   0xb   :  { %1463 = vmatprep.mubr.msk.bf16.mxu0 %vm253_vm3, %v248_v27  ;;  %v175_v40 = vsel %vm172_vm1, %v168_v34, %v169_v35  ;;  %v201_v41 = vsel %vm1795_vm4, 0.0, %v176_v39  ;;  %v173_v42 = vsel %vm172_vm1, %v170_v36, %v171_v16  ;;  %v174_v43 = vsel %vm172_vm1, %v169_v35, %v170_v36 }
   0xc   :  { %1464 = vmatmul.mubr.msk.bf16.vlgmr.msra.gmra.mrb[0].mxu0 %vm253_vm3, %v249_v31  ;;  %v250_v44 = vpack.c.bf16 %v175_v40, %v201_v41  ;;  %v251_v45 = vpack.c.bf16 %v173_v42, %v174_v43  ;;  %v207_v49 = vrot.slane %v158_v11, 1  ;;  %v31_v50 = vadd.s32 24, %v1756_v5 }
   0xd   :  { %1472 = vmatpush3.bf16.msra.mxu0 %v368_v32  ;;  %vm213_vm5 = vcmp.lt.s32.totalorder %v1756_v5, 7  ;;  %v208_v51 = vrot.slane %v159_v12, 1  ;;  %v209_v52 = vrot.slane %v160_v26, 1  ;;  %v210_v59 = vrot.slane %v161_v29, 1 }
   0xe   :  { %1679 = vmatprep.subr.msk.bf16.mxu0 %vm266_vm0, %v1347_v37  ;;  %1467 = vmatprep.mubr.msk.bf16.mxu0 %vm253_vm3, %v250_v44  ;;  %v219_v53 = vsel %vm213_vm5, %v206_v47, %v207_v49  ;;  %v220_v54 = vsel %vm213_vm5, %v205_v46, %v206_v47  ;;  %v61_v55 = vand.u32 31, %v31_v50  ;;  %v211_v60 = vrot.slane %v162_v30, 1 }
   0xf   :  { %v435_v56 = vpack.c.bf16 %v219_v53, %v220_v54  ;;  %v217_v57 = vsel %vm213_vm5, %v208_v51, %v209_v52  ;;  %v35_v61 = vadd.s32 56, %v1756_v5  ;;  %v218_v62 = vsel %vm213_vm5, %v207_v49, %v208_v51  ;;  %v1688_v54 = vld [vmem:[%s2015_s4] sm:$0xff]  }
  0x10   :  { %vm1824_vm6 = vcmp.eq.s32.totalorder %v61_v55, 31  ;;  %v212_v0 = vrot.slane %v163_v10, 1  ;;  %v215_v1 = vsel %vm213_vm5, %v210_v59, %v211_v60  ;;  %v1699_v12 = vmov 0.0|0.0   ;;  %v1884_v55 = vld [vmem:[%s2015_s4 + $0x8] sm:$0xff]  }
  0x11   :  { %v241_v63 = vsel %vm1824_vm6, 0.0, %v217_v57  ;;  %v89_v4 = vand.u32 31, %v35_v61  ;;  %1597 = vmatprep.subr.bf16.mxu1 %v1699_v12  ;;  %v1701_v13 = vmov 0.0   ;;  %v1702_v27 = vmov 1.0  }
  0x12   :  { %v436_v6 = vpack.c.bf16 %v241_v63, %v218_v62  ;;  %v221_v9 = vsel %vm213_vm5, %v212_v0, %v205_v46  ;;  %1507 = vmatprep.mubr.msk.f32.mxu1 %vm1700_vm8, %v1701_v13  ;;  %v1870_v28 = vsub.s32 0, %v1756_v5  ;;  %vm1321_vm11 = vcmask 125952  }
  0x13   :  { %vm1842_vm7 = vcmp.eq.s32.totalorder %v89_v4, 31 }
  0x14   :  { %1468 = vmatmul.mubr.msk.bf16.gmra.mrb[4].mxu0 %vm253_vm3, %v251_v45  ;;  %v245_v10 = vsel %vm1842_vm7, 0.0, %v221_v9 }
  0x15   :  { %1473 = vmatprep.mubr.msk.bf16.mxu0 %vm253_vm3, %v148_v2  ;;  %v216_v2 = vsel %vm213_vm5, %v209_v52, %v210_v59 }
  0x16   :  { %v437_v7 = vpack.c.bf16 %v215_v1, %v216_v2 }
  0x1c   :  { %1474 = vmatmul.mubr.msk.bf16.vlgmr.msra.gmra.mrb[0].mxu0 %vm253_vm3, %v150_v8 }
  0x1d   :  { %1482 = vmatpush3.bf16.msra.mxu0 %v454_v48  ;;  %1477 = vmatprep.mubr.msk.bf16.mxu0 %vm253_vm3, %v152_v17 }
  0x1e   :  { %1621 = vmatprep.subr.bf16.mxu0 %v1699_v12 }
  0x24   :  { %1478 = vmatmul.mubr.msk.bf16.gmra.mrb[4].mxu0 %vm253_vm3, %v1752_v3  ;;  %v214_v3 = vsel %vm213_vm5, %v211_v60, %v212_v0  ;;  %v1354_v0 = vld [vmem:[%s2016_s2] ss:$0 sm:$0xff] }
  0x25   :  { %1483 = vmatprep.mubr.msk.bf16.mxu0 %vm253_vm3, %v435_v56  ;;  %v438_v11 = vpack.c.bf16 %v245_v10, %v214_v3 }
  0x2c   :  { %1484 = vmatmul.mubr.msk.bf16.vlgmr.msra.gmra.mrb[0].mxu0 %vm253_vm3, %v436_v6 }
  0x2d   :  { %1487 = vmatprep.mubr.msk.bf16.mxu0 %vm253_vm3, %v437_v7  ;;  %v1355_v7 = vld [vmem:[%s2017_s3] ss:$0 sm:$0xff] }
  0x34   :  { %1488 = vmatmul.mubr.msk.bf16.gmra.mrb[4].mxu0 %vm253_vm3, %v438_v11 }
  0x35   :  { %1575 = vmatprep.mubr.msk.f32.mxu0 %vm1700_vm8, %v1701_v13 }
  0xff   :  { %v1485_v14 = vpop.f32.mrb[0].mxu0 }
 0x100   :  { %v490_v15 = vpop.f32.mrb[1].mxu0 }
 0x101   :  { %v1486_v16 = vpop.f32.mrb[2].mxu0 }
 0x102   :  { %v1601_v17 = vpack.c.bf16 %v1486_v16, %v1485_v14  ;;  %v493_v19 = vpop.f32.mrb[3].mxu0 }
 0x103   :  { %v1598_v20 = vpack.c.bf16 %v493_v19, %v490_v15 }
 0x105   :  { %1599 = vmatpush3.bf16.msra.mxu1 %v1598_v20 }
 0x106   :  { %1600 = vmatprep.subr.bf16.mxu1 %v1699_v12 }
 0x107   :  { %v1489_v21 = vpop.f32.mrb[4].mxu0 }
 0x108   :  { %v506_v22 = vpop.f32.mrb[5].mxu0 }
 0x109   :  { %v1490_v23 = vpop.f32.mrb[6].mxu0  ;;  %1602 = vmatpush3.bf16.msra.mxu1 %v1601_v17 }
 0x10a   :  { %v1607_v24 = vpack.c.bf16 %v1490_v23, %v1489_v21  ;;  %v509_v25 = vpop.f32.mrb[7].mxu0  ;;  %1603 = vmatprep.subr.bf16.mxu1 %v1699_v12 }
 0x10b   :  { %v1604_v26 = vpack.c.bf16 %v509_v25, %v506_v22 }
 0x10d   :  { %1605 = vmatpush3.bf16.msra.mxu1 %v1604_v26 }
 0x10e   :  { %1606 = vmatprep.subr.bf16.mxu1 %v1699_v12 }
 0x111   :  { %1608 = vmatpush3.bf16.msra.mxu1 %v1607_v24 }
 0x112   :  { %1609 = vmatprep.subr.bf16.mxu1 %v1699_v12 }
 0x114   :  { %1508 = vmatmul.mubr.msk.f32.vlgmr.msra.gmra.mrb[0].mxu1 %vm531_vm9, %v1702_v27 }
 0x115   :  { %1526 = vmatprep.mubr.msk.f32.mxu1 %vm1700_vm8, %v1701_v13 }
 0x1e7   :  { %v601_v29 = vpop.f32.mrb[0].mxu1 }
 0x1e8   :  { %v605_v30 = vmul.f32 0.015625, %v601_v29  ;;  %v1509_v31 = vpop.f32.mrb[1].mxu1 }
 0x1ea   :  { %v609_v32 = vrot.slane %v605_v30, %v1870_v28 }
 0x1ec   :  { %v610_v33 = vsub.f32 %v490_v15, %v609_v32  ;;  %v611_v34 = vsub.f32 %v493_v19, %v609_v32  ;;  %v612_v35 = vsub.f32 %v1485_v14, %v609_v32  ;;  %v613_v36 = vsub.f32 %v1486_v16, %v609_v32 }
 0x1ed   :  { %v614_v37 = vsub.f32 %v506_v22, %v609_v32  ;;  %v615_v39 = vsub.f32 %v509_v25, %v609_v32  ;;  %v616_v40 = vsub.f32 %v1489_v21, %v609_v32  ;;  %v617_v41 = vsub.f32 %v1490_v23, %v609_v32 }
 0x1ee   :  { %v618_v42 = vmul.f32 %v610_v33, %v610_v33  ;;  %v619_v43 = vmul.f32 %v611_v34, %v611_v34  ;;  %v620_v45 = vmul.f32 %v612_v35, %v612_v35  ;;  %v621_v46 = vmul.f32 %v613_v36, %v613_v36 }
 0x1ef   :  { %v622_v48 = vmul.f32 %v614_v37, %v614_v37  ;;  %v623_v49 = vmul.f32 %v615_v39, %v615_v39  ;;  %v624_v51 = vmul.f32 %v616_v40, %v616_v40  ;;  %v625_v52 = vmul.f32 %v617_v41, %v617_v41 }
 0x1f0   :  { %v1610_v44 = vpack.c.bf16 %v619_v43, %v618_v42  ;;  %v1613_v47 = vpack.c.bf16 %v621_v46, %v620_v45 }
 0x1f1   :  { %v1616_v50 = vpack.c.bf16 %v623_v49, %v622_v48  ;;  %v1619_v53 = vpack.c.bf16 %v625_v52, %v624_v51 }
 0x1f2   :  { %1611 = vmatpush3.bf16.msra.mxu1 %v1610_v44 }
 0x1f3   :  { %1612 = vmatprep.subr.bf16.mxu1 %v1699_v12 }
 0x1f6   :  { %1614 = vmatpush3.bf16.msra.mxu1 %v1613_v47 }
 0x1f7   :  { %1615 = vmatprep.subr.bf16.mxu1 %v1699_v12 }
 0x1fa   :  { %1617 = vmatpush3.bf16.msra.mxu1 %v1616_v50 }
 0x1fb   :  { %1618 = vmatprep.subr.bf16.mxu1 %v1699_v12 }
 0x1fe   :  { %1620 = vmatpush3.bf16.msra.mxu1 %v1619_v53 }
 0x1ff   :  { %1529 = vmatprep.subr.bf16.mxu1 %v1688_v54 }
 0x201   :  { %1527 = vmatmul.mubr.msk.f32.vlgmr.msra.gmra.mrb[2].mxu1 %vm531_vm9, %v1702_v27 }
 0x202   :  { %1530 = vmatpush3.bf16.msra.mxu1 %v1688_v54 }
 0x203   :  { %1539 = vmatprep.subr.bf16.mxu1 %v1884_v55 }
 0x2d4   :  { %v692_v56 = vpop.f32.mrb[2].mxu1 }
 0x2d5   :  { %v696_v57 = vmul.f32 0.015625, %v692_v56  ;;  %v1528_v59 = vpop.f32.mrb[3].mxu1 }
 0x2d7   :  { %v697_v60 = vmax.f32 %v696_v57, 0.0 }
 0x2d9   :  { %v698_v61 = vadd.f32 1e-05, %v697_v60 }
 0x2db   :  { %1695 = vrsqrt.f32 %v698_v61  ;;  %v1690_v61 = vld [vmem:[%s2015_s4 + $0x10] sm:$0xff]  }
 0x2e5   :  { %v1696_v62 = vpop.eup %1695 }
 0x2e6   :  { %v703_v63 = vrot.slane %v1696_v62, %v1870_v28 }
 0x2e8   :  { %v704_v1 = vmul.f32 %v703_v63, %v610_v33  ;;  %v705_v2 = vmul.f32 %v703_v63, %v611_v34  ;;  %v711_v4 = vmul.f32 %v703_v63, %v617_v41  ;;  %v706_v6 = vmul.f32 %v703_v63, %v612_v35 }
 0x2e9   :  { %v707_v9 = vmul.f32 %v703_v63, %v613_v36  ;;  %v708_v3 = vmul.f32 %v703_v63, %v614_v37  ;;  %v709_v10 = vmul.f32 %v703_v63, %v615_v39  ;;  %v710_v11 = vmul.f32 %v703_v63, %v616_v40 }
 0x2ea   :  { %v718_v14 = vmul.f32 %v1354_v0, %v704_v1  ;;  %v719_v15 = vmul.f32 %v1354_v0, %v705_v2  ;;  %v725_v16 = vmul.f32 %v1354_v0, %v711_v4  ;;  %v720_v17 = vmul.f32 %v1354_v0, %v706_v6 }
 0x2eb   :  { %v721_v19 = vmul.f32 %v1354_v0, %v707_v9  ;;  %v722_v20 = vmul.f32 %v1354_v0, %v708_v3  ;;  %v723_v21 = vmul.f32 %v1354_v0, %v709_v10  ;;  %v724_v22 = vmul.f32 %v1354_v0, %v710_v11 }
 0x2ec   :  { %v732_v23 = vadd.f32 %v1355_v7, %v718_v14  ;;  %v733_v24 = vadd.f32 %v1355_v7, %v719_v15  ;;  %v739_v25 = vadd.f32 %v1355_v7, %v725_v16  ;;  %v734_v26 = vadd.f32 %v1355_v7, %v720_v17 }
 0x2ed   :  { %v735_v29 = vadd.f32 %v1355_v7, %v721_v19  ;;  %v736_v30 = vadd.f32 %v1355_v7, %v722_v20  ;;  %v737_v31 = vadd.f32 %v1355_v7, %v723_v21  ;;  %v738_v32 = vadd.f32 %v1355_v7, %v724_v22 }
 0x2ee   :  { %v1894_v33 = vmax.f32 %v732_v23, 0.0  ;;  %v741_v34 = vmax.f32 %v733_v24, 0.0  ;;  %v1896_v35 = vmax.f32 %v739_v25, 0.0  ;;  %v742_v36 = vmax.f32 %v734_v26, 0.0 }
 0x2ef   :  { %v743_v37 = vmax.f32 %v735_v29, 0.0  ;;  %v744_v39 = vmax.f32 %v736_v30, 0.0  ;;  %v745_v40 = vmax.f32 %v737_v31, 0.0  ;;  %v746_v51 = vmax.f32 %v738_v32, 0.0 }
 0x2f0   :  { %v748_v41 = vrot.slane %v1894_v33, 7  ;;  %v749_v42 = vrot.slane %v741_v34, 7  ;;  %v755_v43 = vrot.slane %v1896_v35, 7  ;;  %v750_v44 = vrot.slane %v742_v36, 7 }
 0x2f1   :  { %v751_v45 = vrot.slane %v743_v37, 7  ;;  %v752_v46 = vrot.slane %v744_v39, 7  ;;  %v753_v47 = vrot.slane %v745_v40, 7  ;;  %v754_v62 = vrot.slane %v746_v51, 7 }
 0x2f2   :  { %v762_v48 = vsel %vm172_vm1, %v748_v41, %v749_v42  ;;  %v763_v49 = vsel %vm172_vm1, %v755_v43, %v748_v41  ;;  %v761_v50 = vsel %vm172_vm1, %v749_v42, %v750_v44  ;;  %v796_v1 = vpack.c.bf16 %v741_v34, %v1894_v33 }
 0x2f3   :  { %v764_v52 = vsel %vm1773_vm2, 0.0, %v763_v49  ;;  %v760_v53 = vsel %vm172_vm1, %v750_v44, %v751_v45  ;;  %v758_v54 = vsel %vm172_vm1, %v752_v46, %v753_v47  ;;  %v759_v56 = vsel %vm172_vm1, %v751_v45, %v752_v46 }
 0x2f4   :  { %v803_v57 = vpack.c.bf16 %v762_v48, %v764_v52  ;;  %v768_v59 = vsel %vm1795_vm4, 0.0, %v759_v56  ;;  %v804_v60 = vpack.c.bf16 %v760_v53, %v761_v50  ;;  %v756_v38 = vsel %vm172_vm1, %v754_v62, %v755_v43 }
 0x2f5   :  { %v805_v18 = vpack.c.bf16 %v758_v54, %v768_v59  ;;  %v757_v63 = vsel %vm172_vm1, %v753_v47, %v754_v62  ;;  %v797_v2 = vpack.c.bf16 %v743_v37, %v742_v36  ;;  %v798_v4 = vpack.c.bf16 %v745_v40, %v744_v39 }
 0x2f6   :  { %1531 = vmatprep.mubr.msk.bf16.mxu1 %vm815_vm10, %v803_v57  ;;  %v806_v0 = vpack.c.bf16 %v756_v38, %v757_v63  ;;  %v773_v6 = vrot.slane %v741_v34, 1  ;;  %v774_v7 = vrot.slane %v742_v36, 1  ;;  %v776_v9 = vrot.slane %v744_v39, 1 }
 0x2f7   :  { %1532 = vmatmul.mubr.msk.bf16.vlgmr.msra.gmra.mrb[4].mxu1 %vm815_vm10, %v804_v60  ;;  %v775_v3 = vrot.slane %v743_v37, 1  ;;  %v799_v14 = vpack.c.bf16 %v1896_v35, %v746_v51  ;;  %v777_v17 = vrot.slane %v745_v40, 1  ;;  %v778_v19 = vrot.slane %v746_v51, 1 }
 0x2f8   :  { %1535 = vmatprep.mubr.msk.bf16.mxu1 %vm815_vm10, %v805_v18  ;;  %1540 = vmatpush3.bf16.msra.mxu1 %v1884_v55  ;;  %v772_v55 = vrot.slane %v1894_v33, 1  ;;  %v785_v10 = vsel %vm213_vm5, %v773_v6, %v774_v7  ;;  %v779_v24 = vrot.slane %v1896_v35, 1 }
 0x2f9   :  { %1549 = vmatprep.subr.bf16.mxu1 %v1690_v61  ;;  %v783_v16 = vsel %vm213_vm5, %v775_v3, %v776_v9  ;;  %v784_v20 = vsel %vm213_vm5, %v774_v7, %v775_v3  ;;  %v781_v22 = vsel %vm213_vm5, %v777_v17, %v778_v19  ;;  %v782_v23 = vsel %vm213_vm5, %v776_v9, %v777_v17 }
 0x2fa   :  { %v786_v11 = vsel %vm213_vm5, %v772_v55, %v773_v6  ;;  %v791_v21 = vsel %vm1824_vm6, 0.0, %v783_v16  ;;  %v978_v26 = vpack.c.bf16 %v781_v22, %v782_v23  ;;  %v787_v29 = vsel %vm213_vm5, %v779_v24, %v772_v55 }
 0x2fb   :  { %v976_v15 = vpack.c.bf16 %v785_v10, %v786_v11  ;;  %v977_v25 = vpack.c.bf16 %v791_v21, %v784_v20  ;;  %v780_v58 = vsel %vm213_vm5, %v778_v19, %v779_v24  ;;  %v795_v30 = vsel %vm1842_vm7, 0.0, %v787_v29  ;;  %v1377_v10 = vld [vmem:[%s2018_s5] ss:$0 sm:$0xff] }
 0x2fc   :  { %v979_v31 = vpack.c.bf16 %v795_v30, %v780_v58 }
 0x2ff   :  { %1536 = vmatmul.mubr.msk.bf16.gmra.mrb[8].mxu1 %vm815_vm10, %v806_v0 }
 0x300   :  { %1541 = vmatprep.mubr.msk.bf16.mxu1 %vm815_vm10, %v796_v1 }
 0x307   :  { %1542 = vmatmul.mubr.msk.bf16.vlgmr.msra.gmra.mrb[4].mxu1 %vm815_vm10, %v797_v2 }
 0x308   :  { %1545 = vmatprep.mubr.msk.bf16.mxu1 %vm815_vm10, %v798_v4  ;;  %1550 = vmatpush3.bf16.msra.mxu1 %v1690_v61 }
 0x30f   :  { %1546 = vmatmul.mubr.msk.bf16.gmra.mrb[8].mxu1 %vm815_vm10, %v799_v14 }
 0x310   :  { %1551 = vmatprep.mubr.msk.bf16.mxu1 %vm815_vm10, %v976_v15 }
 0x317   :  { %1552 = vmatmul.mubr.msk.bf16.vlgmr.msra.gmra.mrb[4].mxu1 %vm815_vm10, %v977_v25 }
 0x318   :  { %1555 = vmatprep.mubr.msk.bf16.mxu1 %vm815_vm10, %v978_v26 }
 0x31f   :  { %1556 = vmatmul.mubr.msk.bf16.gmra.mrb[8].mxu1 %vm815_vm10, %v979_v31 }
 0x3ea   :  { %v1553_v32 = vpop.f32.mrb[4].mxu1 }
 0x3eb   :  { %v1035_v33 = vpop.f32.mrb[5].mxu1 }
 0x3ec   :  { %v1554_v34 = vpop.f32.mrb[6].mxu1 }
 0x3ed   :  { %v1625_v35 = vpack.c.bf16 %v1554_v34, %v1553_v32  ;;  %v1038_v36 = vpop.f32.mrb[7].mxu1 }
 0x3ee   :  { %v1622_v37 = vpack.c.bf16 %v1038_v36, %v1035_v33 }
 0x3f0   :  { %1623 = vmatpush3.bf16.msra.mxu0 %v1622_v37 }
 0x3f1   :  { %1624 = vmatprep.subr.bf16.mxu0 %v1699_v12 }
 0x3f2   :  { %v1557_v39 = vpop.f32.mrb[8].mxu1 }
 0x3f3   :  { %v1051_v40 = vpop.f32.mrb[9].mxu1 }
 0x3f4   :  { %v1558_v41 = vpop.f32.mrb[10].mxu1  ;;  %1626 = vmatpush3.bf16.msra.mxu0 %v1625_v35 }
 0x3f5   :  { %v1631_v5 = vpack.c.bf16 %v1558_v41, %v1557_v39  ;;  %v1054_v42 = vpop.f32.mrb[11].mxu1  ;;  %1627 = vmatprep.subr.bf16.mxu0 %v1699_v12 }
 0x3f6   :  { %v1628_v8 = vpack.c.bf16 %v1054_v42, %v1051_v40 }
 0x3f8   :  { %1629 = vmatpush3.bf16.msra.mxu0 %v1628_v8 }
 0x3f9   :  { %1630 = vmatprep.subr.bf16.mxu0 %v1699_v12 }
 0x3fc   :  { %1632 = vmatpush3.bf16.msra.mxu0 %v1631_v5 }
 0x3fd   :  { %1633 = vmatprep.subr.bf16.mxu0 %v1699_v12 }
 0x3ff   :  { %1576 = vmatmul.mubr.msk.f32.vlgmr.msra.gmra.mrb[8].mxu0 %vm531_vm9, %v1702_v27 }
 0x400   :  { %1594 = vmatprep.mubr.msk.f32.mxu0 %vm1700_vm8, %v1701_v13 }
 0x4d2   :  { %v1142_v43 = vpop.f32.mrb[8].mxu0 }
 0x4d3   :  { %v1146_v44 = vmul.f32 0.015625, %v1142_v43  ;;  %v1577_v45 = vpop.f32.mrb[9].mxu0 }
 0x4d5   :  { %v1150_v46 = vrot.slane %v1146_v44, %v1870_v28 }
 0x4d7   :  { %v1151_v47 = vsub.f32 %v1035_v33, %v1150_v46  ;;  %v1152_v48 = vsub.f32 %v1038_v36, %v1150_v46  ;;  %v1153_v49 = vsub.f32 %v1553_v32, %v1150_v46  ;;  %v1154_v50 = vsub.f32 %v1554_v34, %v1150_v46 }
 0x4d8   :  { %v1155_v51 = vsub.f32 %v1051_v40, %v1150_v46  ;;  %v1156_v52 = vsub.f32 %v1054_v42, %v1150_v46  ;;  %v1157_v53 = vsub.f32 %v1557_v39, %v1150_v46  ;;  %v1158_v54 = vsub.f32 %v1558_v41, %v1150_v46 }
 0x4d9   :  { %v1159_v56 = vmul.f32 %v1151_v47, %v1151_v47  ;;  %v1160_v57 = vmul.f32 %v1152_v48, %v1152_v48  ;;  %v1161_v60 = vmul.f32 %v1153_v49, %v1153_v49  ;;  %v1162_v61 = vmul.f32 %v1154_v50, %v1154_v50 }
 0x4da   :  { %v1163_v18 = vmul.f32 %v1155_v51, %v1155_v51  ;;  %v1164_v62 = vmul.f32 %v1156_v52, %v1156_v52  ;;  %v1165_v63 = vmul.f32 %v1157_v53, %v1157_v53  ;;  %v1166_v0 = vmul.f32 %v1158_v54, %v1158_v54 }
 0x4db   :  { %v1634_v59 = vpack.c.bf16 %v1160_v57, %v1159_v56  ;;  %v1637_v13 = vpack.c.bf16 %v1162_v61, %v1161_v60 }
 0x4dc   :  { %v1640_v38 = vpack.c.bf16 %v1164_v62, %v1163_v18  ;;  %v1643_v1 = vpack.c.bf16 %v1166_v0, %v1165_v63 }
 0x4dd   :  { %1635 = vmatpush3.bf16.msra.mxu0 %v1634_v59 }
 0x4de   :  { %1636 = vmatprep.subr.bf16.mxu0 %v1699_v12 }
 0x4e1   :  { %1638 = vmatpush3.bf16.msra.mxu0 %v1637_v13 }
 0x4e2   :  { %1639 = vmatprep.subr.bf16.mxu0 %v1699_v12 }
 0x4e5   :  { %1641 = vmatpush3.bf16.msra.mxu0 %v1640_v38 }
 0x4e6   :  { %1642 = vmatprep.subr.bf16.mxu0 %v1699_v12 }
 0x4e9   :  { %1644 = vmatpush3.bf16.msra.mxu0 %v1643_v1 }
 0x4ec   :  { %1595 = vmatmul.mubr.msk.f32.vlgmr.msra.gmra.mrb[10].mxu0 %vm531_vm9, %v1702_v27  ;;  %v1378_v27 = vld [vmem:[%s2019_s6] ss:$0 sm:$0xff] }
 0x5bf   :  { %v1233_v2 = vpop.f32.mrb[10].mxu0 }
 0x5c0   :  { %v1237_v4 = vmul.f32 0.015625, %v1233_v2  ;;  %v1596_v55 = vpop.f32.mrb[11].mxu0 }
 0x5c2   :  { %v1238_v6 = vmax.f32 %v1237_v4, 0.0 }
 0x5c4   :  { %v1239_v7 = vadd.f32 1e-05, %v1238_v6 }
 0x5c6   :  { %1697 = vrsqrt.f32 %v1239_v7 }
 0x5d0   :  { %v1698_v9 = vpop.eup %1697 }
 0x5d1   :  { %v1244_v3 = vrot.slane %v1698_v9, %v1870_v28 }
 0x5d3   :  { %v1245_v12 = vmul.f32 %v1244_v3, %v1151_v47  ;;  %v1246_v11 = vmul.f32 %v1244_v3, %v1152_v48  ;;  %v1247_v14 = vmul.f32 %v1244_v3, %v1153_v49  ;;  %v1248_v15 = vmul.f32 %v1244_v3, %v1154_v50 }
 0x5d4   :  { %v1249_v16 = vmul.f32 %v1244_v3, %v1155_v51  ;;  %v1250_v17 = vmul.f32 %v1244_v3, %v1156_v52  ;;  %v1251_v19 = vmul.f32 %v1244_v3, %v1157_v53  ;;  %v1252_v20 = vmul.f32 %v1244_v3, %v1158_v54 }
 0x5d5   :  { %v1259_v21 = vmul.f32 %v1377_v10, %v1245_v12  ;;  %v1260_v22 = vmul.f32 %v1377_v10, %v1246_v11  ;;  %v1261_v28 = vmul.f32 %v1377_v10, %v1247_v14  ;;  %v1262_v23 = vmul.f32 %v1377_v10, %v1248_v15 }
 0x5d6   :  { %v1263_v24 = vmul.f32 %v1377_v10, %v1249_v16  ;;  %v1264_v25 = vmul.f32 %v1377_v10, %v1250_v17  ;;  %v1265_v26 = vmul.f32 %v1377_v10, %v1251_v19  ;;  %v1266_v29 = vmul.f32 %v1377_v10, %v1252_v20 }
 0x5d7   :  { %v1273_v58 = vadd.f32 %v1378_v27, %v1259_v21  ;;  %v1274_v30 = vadd.f32 %v1378_v27, %v1260_v22  ;;  %v1275_v31 = vadd.f32 %v1378_v27, %v1261_v28  ;;  %v1276_v32 = vadd.f32 %v1378_v27, %v1262_v23 }
 0x5d8   :  { %v1277_v33 = vadd.f32 %v1378_v27, %v1263_v24  ;;  %v1278_v34 = vadd.f32 %v1378_v27, %v1264_v25  ;;  %v1279_v35 = vadd.f32 %v1378_v27, %v1265_v26  ;;  %v1280_v36 = vadd.f32 %v1378_v27, %v1266_v29 }
 0x5d9   :  { %v1281_v37 = vmax.f32 %v1273_v58, 0.0  ;;  %v1282_v39 = vmax.f32 %v1274_v30, 0.0  ;;  %v1283_v40 = vmax.f32 %v1275_v31, 0.0  ;;  %v1284_v41 = vmax.f32 %v1276_v32, 0.0 }
 0x5da   :  { %v1285_v5 = vmax.f32 %v1277_v33, 0.0  ;;  %v1286_v42 = vmax.f32 %v1278_v34, 0.0  ;;  %v1287_v8 = vmax.f32 %v1279_v35, 0.0  ;;  %v1288_v43 = vmax.f32 %v1280_v36, 0.0 }
 0x5db   :  { %v1387_v44 = vpack.c.bf16 %v1281_v37, %v1281_v37  ;;  %v1388_v45 = vpack.c.bf16 %v1282_v39, %v1282_v39  ;;  %v1389_v46 = vpack.c.bf16 %v1283_v40, %v1283_v40  ;;  %v1390_v47 = vpack.c.bf16 %v1284_v41, %v1284_v41 }
 0x5dc   :  { %v1391_v48 = vpack.c.bf16 %v1285_v5, %v1285_v5  ;;  %v1392_v49 = vpack.c.bf16 %v1286_v42, %v1286_v42  ;;  %v1393_v50 = vpack.c.bf16 %v1287_v8, %v1287_v8  ;;  %v1394_v51 = vpack.c.bf16 %v1288_v43, %v1288_v43 }
 0x5dd   :  { %1322 = vst.msk [vmem:[%s2020_s7] sm:$0xf] %vm1321_vm11, %v1387_v44  ;;  %1323 = vst.msk [vmem:[%s2020_s7 + $0x4] sm:$0xf] %vm1321_vm11, %v1388_v45 }
 0x5de   :  { %1324 = vst.msk [vmem:[%s2020_s7 + $0x8] sm:$0xf] %vm1321_vm11, %v1389_v46  ;;  %1325 = vst.msk [vmem:[%s2020_s7 + $0xc] sm:$0xf] %vm1321_vm11, %v1390_v47 }
 0x5df   :  { %1326 = vst.msk [vmem:[%s2020_s7 + $0x10] sm:$0xf] %vm1321_vm11, %v1391_v48  ;;  %1327 = vst.msk [vmem:[%s2020_s7 + $0x14] sm:$0xf] %vm1321_vm11, %v1392_v49 }
 0x5e0   :  { %1328 = vst.msk [vmem:[%s2020_s7 + $0x18] sm:$0xf] %vm1321_vm11, %v1393_v50  ;;  %1329 = vst.msk [vmem:[%s2020_s7 + $0x1c] sm:$0xf] %vm1321_vm11, %v1394_v51 }

// kernel: unet_forward.14
= control target key start
LH: loop header
LB: loop body
LE: loop exit
PB: predicated region body
PF: predicated region fallthrough
CT: control target
= control target key end

     0   :  { %12 = vsyncpa [#allocation3], 0  ;;  %s2849_s0 = inlined_call_operand.vmem [shape: bf16[4,128], index: 0, kind: input, shape index: {}]   ;;  %s2850_s1 = inlined_call_operand.hbm [shape: bf16[3,128,256], index: 1, kind: input, shape index: {}]   ;;  %s2851_s2 = inlined_call_operand.hbm [shape: f32[1,256], index: 2, kind: input, shape index: {}]   ;;  %s2852_s3 = inlined_call_operand.hbm [shape: f32[1,256], index: 3, kind: input, shape index: {}]   ;;  %s2853_s4 = inlined_call_operand.vmem [shape: bf16[3,256,256], index: 4, kind: input, shape index: {}]   ;;  %s2854_s5 = inlined_call_operand.hbm [shape: f32[1,256], index: 5, kind: input, shape index: {}]   ;;  %s2855_s6 = inlined_call_operand.hbm [shape: f32[1,256], index: 6, kind: input, shape index: {}]   ;;  %s2856_s7 = inlined_call_operand.vmem [shape: bf16[4,256], index: 7, kind: output, shape index: {}]  }
   0x1   :  { %13 = vsyncpa [#allocation5], 0 }
   0x2   :  { %14 = vsyncpa [#allocation8], 0  ;;  %s2345_s24 = smov [#allocation4]   ;;  %s2346_s26 = smov [#allocation7]  }
   0x3   :  { %s35_s25 = sshll.u32 %s2345_s24, 4  ;;  %s57_s27 = sshll.u32 %s2346_s26, 4  ;;  %s36_s25 = int_to_ptr.vmem [resolvable:$true] %s35_s25  ;;  %s58_s27 = int_to_ptr.vmem [resolvable:$true] %s57_s27 }
   0x4   :  { %s2229_s30 = scalar_lea.hbm %s2851_s2, 32 }
   0x5   :  { %p2230_p0 = scmp.ne.s32.totalorder %s2851_s2, %s2229_s30  ;;  %p2233_p1 = scmp.lt.u32.totalorder %s2229_s30, %s2851_s2 }
   0x7   :  { %p2235_p2 = pnand %p2233_p1, %p2230_p0 }
   0x9   :  { %2238 = shalt.err (!%p2235_p2)
}
   0xa   :  { %s2239_s12 = scalar_lea.vmem %s36_s25, 32  ;;  %p2244_p4 = scmp.lt.s32.totalorder %s36_s25, %s36_s25 }
   0xb   :  { %p2240_p3 = scmp.ne.s32.totalorder %s36_s25, %s2239_s12  ;;  %p2245_p5 = scmp.lt.s32.totalorder %s2239_s12, %s2239_s12 }
   0xd   :  { %p2246_p6 = por %p2245_p5, %p2244_p4 }
   0xf   :  { %p2247_p7 = pnand %p2246_p6, %p2240_p3 }
  0x11   :  { %2250 = shalt.err (!%p2247_p7)
}
  0x12   :  { %38 = dma.hbm_to_vmem [thread:$0]  %s2851_s2, 32, %s36_s25, [#allocation5]  }
  0x13   :  { %s2251_s17 = scalar_lea.hbm %s2854_s5, 32 }
  0x14   :  { %p2252_p8 = scmp.ne.s32.totalorder %s2854_s5, %s2251_s17  ;;  %p2255_p9 = scmp.lt.u32.totalorder %s2251_s17, %s2854_s5 }
  0x16   :  { %p2257_p10 = pnand %p2255_p9, %p2252_p8 }
  0x18   :  { %2260 = shalt.err (!%p2257_p10)
}
  0x19   :  { %s2261_s22 = scalar_lea.vmem %s58_s27, 32  ;;  %p2266_p12 = scmp.lt.s32.totalorder %s58_s27, %s58_s27 }
  0x1a   :  { %p2262_p11 = scmp.ne.s32.totalorder %s58_s27, %s2261_s22  ;;  %p2267_p13 = scmp.lt.s32.totalorder %s2261_s22, %s2261_s22 }
  0x1c   :  { %p2268_p0 = por %p2267_p13, %p2266_p12 }
  0x1e   :  { %p2269_p1 = pnand %p2268_p0, %p2262_p11 }
  0x20   :  { %2272 = shalt.err (!%p2269_p1)
}
  0x21   :  { %60 = dma.hbm_to_vmem [thread:$0]  %s2854_s5, 32, %s58_s27, [#allocation8]  }
  0x22   :  { %s2347_s24 = smov [#allocation2]   ;;  %s2273_s29 = scalar_lea.hbm %s2850_s1, 6144 }
  0x23   :  { %s22_s25 = sshll.u32 %s2347_s24, 4  ;;  %p2274_p2 = scmp.ne.s32.totalorder %s2850_s1, %s2273_s29  ;;  %s23_s25 = int_to_ptr.vmem [resolvable:$true] %s22_s25 }
  0x24   :  { %p2277_p3 = scmp.lt.u32.totalorder %s2273_s29, %s2850_s1 }
  0x26   :  { %p2279_p4 = pnand %p2277_p3, %p2274_p2 }
  0x28   :  { %2282 = shalt.err (!%p2279_p4)
}
  0x29   :  { %s2283_s11 = scalar_lea.vmem %s23_s25, 6144  ;;  %p2288_p6 = scmp.lt.s32.totalorder %s23_s25, %s23_s25 }
  0x2a   :  { %p2284_p5 = scmp.ne.s32.totalorder %s23_s25, %s2283_s11  ;;  %p2289_p7 = scmp.lt.s32.totalorder %s2283_s11, %s2283_s11 }
  0x2c   :  { %p2290_p8 = por %p2289_p7, %p2288_p6 }
  0x2e   :  { %p2291_p9 = pnand %p2290_p8, %p2284_p5 }
  0x30   :  { %2294 = shalt.err (!%p2291_p9)
}
  0x31   :  { %s2348_s5 = smov 128   ;;  %s2349_s27 = smov 8  }
  0x32   :  { %28 = dma.hbm_to_vmem [thread:$0]  %s2850_s1, 6144, %s23_s25, [#allocation3], %s2348_s5, %s2348_s5, %s2349_s27  }
  0x33   :  { %s2350_s14 = smov [#allocation6]   ;;  %s2351_s16 = smov [#allocation9]  }
  0x34   :  { %s45_s15 = sshll.u32 %s2350_s14, 4  ;;  %s67_s17 = sshll.u32 %s2351_s16, 4  ;;  %s46_s15 = int_to_ptr.vmem [resolvable:$true] %s45_s15  ;;  %s68_s17 = int_to_ptr.vmem [resolvable:$true] %s67_s17 }
  0x35   :  { %s2295_s20 = scalar_lea.hbm %s2852_s3, 32 }
  0x36   :  { %p2296_p10 = scmp.ne.s32.totalorder %s2852_s3, %s2295_s20  ;;  %p2299_p11 = scmp.lt.u32.totalorder %s2295_s20, %s2852_s3 }
  0x38   :  { %p2301_p12 = pnand %p2299_p11, %p2296_p10 }
  0x3a   :  { %2304 = shalt.err (!%p2301_p12)
}
  0x3b   :  { %s2305_s1 = scalar_lea.vmem %s46_s15, 32  ;;  %p2310_p0 = scmp.lt.s32.totalorder %s46_s15, %s46_s15 }
  0x3c   :  { %p2306_p13 = scmp.ne.s32.totalorder %s46_s15, %s2305_s1  ;;  %p2311_p1 = scmp.lt.s32.totalorder %s2305_s1, %s2305_s1 }
  0x3e   :  { %p2312_p2 = por %p2311_p1, %p2310_p0 }
  0x40   :  { %p2313_p3 = pnand %p2312_p2, %p2306_p13 }
  0x42   :  { %2316 = shalt.err (!%p2313_p3)
}
  0x43   :  { %48 = dma.hbm_to_vmem [thread:$0]  %s2852_s3, 32, %s46_s15, [#allocation5]  }
  0x44   :  { %s2317_s29 = scalar_lea.hbm %s2855_s6, 32 }
  0x45   :  { %p2318_p4 = scmp.ne.s32.totalorder %s2855_s6, %s2317_s29  ;;  %p2321_p5 = scmp.lt.u32.totalorder %s2317_s29, %s2855_s6 }
  0x47   :  { %p2323_p6 = pnand %p2321_p5, %p2318_p4 }
  0x49   :  { %2326 = shalt.err (!%p2323_p6)
}
  0x4a   :  { %s2327_s11 = scalar_lea.vmem %s68_s17, 32  ;;  %p2332_p8 = scmp.lt.s32.totalorder %s68_s17, %s68_s17 }
  0x4b   :  { %p2328_p7 = scmp.ne.s32.totalorder %s68_s17, %s2327_s11  ;;  %p2333_p9 = scmp.lt.s32.totalorder %s2327_s11, %s2327_s11 }
  0x4d   :  { %p2334_p10 = por %p2333_p9, %p2332_p8 }
  0x4f   :  { %p2335_p11 = pnand %p2334_p10, %p2328_p7 }
  0x51   :  { %2338 = shalt.err (!%p2335_p11)
}
  0x52   :  { %70 = dma.hbm_to_vmem [thread:$0]  %s2855_s6, 32, %s68_s17, [#allocation8]  }
  0x53   :  { %2339 = dma.done.wait [#allocation3], 6144  }
  0x54   :  { %2340 = vsyncadd [#allocation3], 4294961152 }
  0x55   :  { %2341 = dma.done.wait [#allocation5], 64  }
  0x56   :  { %2342 = vsyncadd [#allocation5], 4294967232 }
  0x57   :  { %2343 = dma.done.wait [#allocation8], 64  }
  0x58   :  { %2344 = vsyncadd [#allocation8], 4294967232  ;;  %v2352_v0 = vmov 0   ;;  %v2005_v1 = vld [vmem:[#allocation2 + $0x4] ss:$8 sps:$4 sm:$0xff]   ;;  %vm105_vm0 = vcmask 1047556   ;;  %v87_v15 = vlaneseq }
  0x59   :  { %267 = vmatprep.mubr.bf16.mxu0 %v2352_v0  ;;  %v2007_v2 = vld [vmem:[#allocation2] ss:$8 sps:$4 sm:$0xff]   ;;  %235 = vmatprep.subr.bf16.mxu0 %v2005_v1  ;;  %v2008_v3 = vld [vmem:[#allocation2 + $0x14] ss:$8 sps:$4 sm:$0xff]   ;;  %v2010_v4 = vld [vmem:[#allocation2 + $0x10] ss:$8 sps:$4 sm:$0xff]  }
  0x5a   :  { %236 = vmatpush1.bf16.msra.mxu0 %v2007_v2  ;;  %v2011_v5 = vld [vmem:[#allocation2 + $0x24] ss:$8 sps:$4 sm:$0xff]   ;;  %v2013_v6 = vld [vmem:[#allocation2 + $0x20] ss:$8 sps:$4 sm:$0xff]   ;;  %v2014_v7 = vld [vmem:[#allocation2 + $0x34] ss:$8 sps:$4 sm:$0xff]  }
  0x5b   :  { %237 = vmatprep.subr.bf16.mxu0 %v2008_v3  ;;  %v2016_v8 = vld [vmem:[#allocation2 + $0x30] ss:$8 sps:$4 sm:$0xff]   ;;  %v2017_v9 = vld [vmem:[#allocation2 + $0x44] ss:$8 sps:$4 sm:$0xff]   ;;  %v2459_v10 = vld [vmem:[%s2849_s0] sm:$0x3] }
  0x5c   :  { %v104_v11 = vunpack.c.l.bf16 %v2459_v10  ;;  %v2019_v12 = vld [vmem:[#allocation2 + $0x40] ss:$8 sps:$4 sm:$0xff]   ;;  %v2020_v14 = vld [vmem:[#allocation2 + $0x54] ss:$8 sps:$4 sm:$0xff]   ;;  %v2022_v17 = vld [vmem:[#allocation2 + $0x50] ss:$8 sps:$4 sm:$0xff]  }
  0x5d   :  { %v2023_v19 = vld [vmem:[#allocation2 + $0x64] ss:$8 sps:$4 sm:$0xff]   ;;  %v2463_v20 = vshrl.u32 %v87_v15, 7  ;;  %v2025_v21 = vld [vmem:[#allocation2 + $0x60] ss:$8 sps:$4 sm:$0xff]   ;;  %vm544_vm5 = vcmask 1043456  }
  0x5e   :  { %238 = vmatpush1.bf16.msra.mxu0 %v2010_v4  ;;  %v106_v13 = vrot.slane %v104_v11, 4  ;;  %v2026_v23 = vld [vmem:[#allocation2 + $0x74] ss:$8 sps:$4 sm:$0xff]   ;;  %v2028_v26 = vld [vmem:[#allocation2 + $0x70] ss:$8 sps:$4 sm:$0xff]   ;;  %vm540_vm6 = vcmask 31744  }
  0x5f   :  { %239 = vmatprep.subr.bf16.mxu0 %v2011_v5  ;;  %v93_v24 = vand.u32 1, %v2463_v20  ;;  %v2031_v27 = vld [vmem:[#allocation2 + $0x84] ss:$8 sps:$4 sm:$0xff]   ;;  %v2029_v28 = vld [vmem:[#allocation2 + $0x80] ss:$8 sps:$4 sm:$0xff]   ;;  %v2354_v5 = vmov 1.0  }
  0x60   :  { %v107_v16 = vsel %vm105_vm0, %v106_v13, %v104_v11  ;;  %v2034_v31 = vld [vmem:[#allocation2 + $0x94] ss:$8 sps:$4 sm:$0xff]   ;;  %v2032_v32 = vld [vmem:[#allocation2 + $0x90] ss:$8 sps:$4 sm:$0xff]   ;;  %v2037_v33 = vld [vmem:[#allocation2 + $0xa4] ss:$8 sps:$4 sm:$0xff]  }
  0x61   :  { %v108_v18 = vrot.slane %v107_v16, 4  ;;  %vm1979_vm1 = vcmp.ne.s32.totalorder %v93_v24, 0  ;;  %v2035_v34 = vld [vmem:[#allocation2 + $0xa0] ss:$8 sps:$4 sm:$0xff]   ;;  %v2040_v35 = vld [vmem:[#allocation2 + $0xb4] ss:$8 sps:$4 sm:$0xff]  }
  0x62   :  { %240 = vmatpush1.bf16.msra.mxu0 %v2013_v6  ;;  %vm2472_vm2 = vmpackc.low %vm1979_vm1, %vm1979_vm1  ;;  %v2038_v36 = vld [vmem:[#allocation2 + $0xb0] ss:$8 sps:$4 sm:$0xff]   ;;  %v2043_v37 = vld [vmem:[#allocation2 + $0xc4] ss:$8 sps:$4 sm:$0xff]   ;;  %vm1980_vm3 = vcmp.ne.s32.totalorder %v93_v24, 1 }
  0x63   :  { %241 = vmatprep.subr.bf16.mxu0 %v2014_v7  ;;  %v2466_v22 = vsel %vm105_vm0, %v108_v18, %v104_v11  ;;  %v2041_v38 = vld [vmem:[#allocation2 + $0xc0] ss:$8 sps:$4 sm:$0xff]   ;;  %v2046_v39 = vld [vmem:[#allocation2 + $0xd4] ss:$8 sps:$4 sm:$0xff]   ;;  %v2044_v40 = vld [vmem:[#allocation2 + $0xd0] ss:$8 sps:$4 sm:$0xff]  }
  0x64   :  { %v113_v25 = vrot.slane %v2466_v22, 3  ;;  %v2049_v41 = vld [vmem:[#allocation2 + $0xe4] ss:$8 sps:$4 sm:$0xff]   ;;  %v2047_v42 = vld [vmem:[#allocation2 + $0xe0] ss:$8 sps:$4 sm:$0xff]   ;;  %v118_v60 = vrot.slane %v2466_v22, 1  ;;  %vm2484_vm4 = vmpackc.low %vm1980_vm3, %vm1980_vm3 }
  0x65   :  { %v2052_v43 = vld [vmem:[#allocation2 + $0xf4] ss:$8 sps:$4 sm:$0xff]   ;;  %v2050_v44 = vld [vmem:[#allocation2 + $0xf0] ss:$8 sps:$4 sm:$0xff]   ;;  %v2055_v45 = vld [vmem:[#allocation2 + $0x104] ss:$8 sps:$4 sm:$0xff]  }
  0x66   :  { %242 = vmatpush1.bf16.msra.mxu0 %v2016_v8  ;;  %v1746_v29 = vpack.c.bf16 %v113_v25, %v113_v25  ;;  %v2053_v46 = vld [vmem:[#allocation2 + $0x100] ss:$8 sps:$4 sm:$0xff]   ;;  %v2058_v47 = vld [vmem:[#allocation2 + $0x114] ss:$8 sps:$4 sm:$0xff]   ;;  %v2056_v48 = vld [vmem:[#allocation2 + $0x110] ss:$8 sps:$4 sm:$0xff]   ;;  %v1783_v62 = vpack.c.bf16 %v118_v60, %v118_v60 }
  0x67   :  { %243 = vmatprep.subr.bf16.mxu0 %v2017_v9  ;;  %v2061_v49 = vld [vmem:[#allocation2 + $0x124] ss:$8 sps:$4 sm:$0xff]   ;;  %v2059_v50 = vld [vmem:[#allocation2 + $0x120] ss:$8 sps:$4 sm:$0xff]   ;;  %v2064_v51 = vld [vmem:[#allocation2 + $0x134] ss:$8 sps:$4 sm:$0xff]  }
  0x68   :  { %v2062_v52 = vld [vmem:[#allocation2 + $0x130] ss:$8 sps:$4 sm:$0xff]   ;;  %v2067_v53 = vld [vmem:[#allocation2 + $0x144] ss:$8 sps:$4 sm:$0xff]   ;;  %v2065_v54 = vld [vmem:[#allocation2 + $0x140] ss:$8 sps:$4 sm:$0xff]  }
  0x69   :  { %v2070_v55 = vld [vmem:[#allocation2 + $0x154] ss:$8 sps:$4 sm:$0xff]   ;;  %v2068_v56 = vld [vmem:[#allocation2 + $0x150] ss:$8 sps:$4 sm:$0xff]   ;;  %v2073_v57 = vld [vmem:[#allocation2 + $0x164] ss:$8 sps:$4 sm:$0xff]  }
  0x6a   :  { %244 = vmatpush1.bf16.msra.mxu0 %v2019_v12  ;;  %v2071_v58 = vld [vmem:[#allocation2 + $0x160] ss:$8 sps:$4 sm:$0xff]   ;;  %v2076_v59 = vld [vmem:[#allocation2 + $0x174] ss:$8 sps:$4 sm:$0xff]   ;;  %v2074_v61 = vld [vmem:[#allocation2 + $0x170] ss:$8 sps:$4 sm:$0xff]  }
  0x6b   :  { %245 = vmatprep.subr.bf16.mxu0 %v2020_v14  ;;  %v2086_v6 = vld [vmem:[%s2853_s4] ss:$8 sps:$4 sm:$0xff]   ;;  %v2088_v7 = vld [vmem:[%s2853_s4 + $0x4] ss:$8 sps:$4 sm:$0xff]   ;;  %v2092_v8 = vld [vmem:[%s2853_s4 + $0x10] ss:$8 sps:$4 sm:$0xff]  }
  0x6c   :  { %v2094_v9 = vld [vmem:[%s2853_s4 + $0x14] ss:$8 sps:$4 sm:$0xff]   ;;  %v2100_v11 = vld [vmem:[%s2853_s4 + $0x24] ss:$8 sps:$4 sm:$0xff]   ;;  %v2104_v12 = vld [vmem:[%s2853_s4 + $0x30] ss:$8 sps:$4 sm:$0xff]  }
  0x6d   :  { %v2106_v13 = vld [vmem:[%s2853_s4 + $0x34] ss:$8 sps:$4 sm:$0xff]   ;;  %v2110_v14 = vld [vmem:[%s2853_s4 + $0x40] ss:$8 sps:$4 sm:$0xff]   ;;  %v2112_v15 = vld [vmem:[%s2853_s4 + $0x44] ss:$8 sps:$4 sm:$0xff]  }
  0x6e   :  { %246 = vmatpush1.bf16.msra.mxu0 %v2022_v17  ;;  %v2116_v16 = vld [vmem:[%s2853_s4 + $0x50] ss:$8 sps:$4 sm:$0xff]   ;;  %v2118_v17 = vld [vmem:[%s2853_s4 + $0x54] ss:$8 sps:$4 sm:$0xff]   ;;  %v2533_v18 = vsub.s32 0, %v2463_v20 }
  0x6f   :  { %247 = vmatprep.subr.bf16.mxu0 %v2023_v19  ;;  %v2137_v60 = vld [vmem:[%s2853_s4 + $0x1b0] ss:$8 sps:$4 sm:$0xff]   ;;  %v2190_v30 = vld [vmem:[%s2853_s4 + $0x254] ss:$8 sps:$4 sm:$0xff]  }
  0x72   :  { %248 = vmatpush1.bf16.msra.mxu0 %v2025_v21 }
  0x73   :  { %249 = vmatprep.subr.bf16.mxu0 %v2026_v23 }
  0x76   :  { %250 = vmatpush1.bf16.msra.mxu0 %v2028_v26 }
  0x77   :  { %356 = vmatprep.subr.bf16.mxu0 %v2031_v27 }
  0x79   :  { %1747 = vmatmul.mubr.msk.bf16.vlgmr.msra.gmra.mrb[0].mxu0 %vm2472_vm2, %v1746_v29  ;;  %v2079_v29 = vld [vmem:[%s2853_s4 + $0x104] ss:$8 sps:$4 sm:$0xff]  }
  0x7a   :  { %357 = vmatpush1.bf16.msra.mxu0 %v2029_v28  ;;  %388 = vmatprep.mubr.bf16.mxu0 %v2352_v0 }
  0x7b   :  { %358 = vmatprep.subr.bf16.mxu0 %v2034_v31 }
  0x7e   :  { %359 = vmatpush1.bf16.msra.mxu0 %v2032_v32  ;;  %v2077_v32 = vld [vmem:[%s2853_s4 + $0x100] ss:$8 sps:$4 sm:$0xff]  }
  0x7f   :  { %360 = vmatprep.subr.bf16.mxu0 %v2037_v33  ;;  %v2082_v33 = vld [vmem:[%s2853_s4 + $0x114] ss:$8 sps:$4 sm:$0xff]  }
  0x82   :  { %361 = vmatpush1.bf16.msra.mxu0 %v2035_v34  ;;  %v2080_v34 = vld [vmem:[%s2853_s4 + $0x110] ss:$8 sps:$4 sm:$0xff]  }
  0x83   :  { %362 = vmatprep.subr.bf16.mxu0 %v2040_v35  ;;  %v2085_v35 = vld [vmem:[%s2853_s4 + $0x124] ss:$8 sps:$4 sm:$0xff]  }
  0x86   :  { %363 = vmatpush1.bf16.msra.mxu0 %v2038_v36  ;;  %v2083_v36 = vld [vmem:[%s2853_s4 + $0x120] ss:$8 sps:$4 sm:$0xff]  }
  0x87   :  { %364 = vmatprep.subr.bf16.mxu0 %v2043_v37  ;;  %v2091_v37 = vld [vmem:[%s2853_s4 + $0x134] ss:$8 sps:$4 sm:$0xff]  }
  0x8a   :  { %365 = vmatpush1.bf16.msra.mxu0 %v2041_v38  ;;  %v2089_v38 = vld [vmem:[%s2853_s4 + $0x130] ss:$8 sps:$4 sm:$0xff]  }
  0x8b   :  { %366 = vmatprep.subr.bf16.mxu0 %v2046_v39  ;;  %v2097_v39 = vld [vmem:[%s2853_s4 + $0x144] ss:$8 sps:$4 sm:$0xff]  }
  0x8e   :  { %367 = vmatpush1.bf16.msra.mxu0 %v2044_v40  ;;  %v2095_v40 = vld [vmem:[%s2853_s4 + $0x140] ss:$8 sps:$4 sm:$0xff]  }
  0x8f   :  { %368 = vmatprep.subr.bf16.mxu0 %v2049_v41  ;;  %v2103_v41 = vld [vmem:[%s2853_s4 + $0x154] ss:$8 sps:$4 sm:$0xff]  }
  0x92   :  { %369 = vmatpush1.bf16.msra.mxu0 %v2047_v42  ;;  %v2101_v42 = vld [vmem:[%s2853_s4 + $0x150] ss:$8 sps:$4 sm:$0xff]  }
  0x93   :  { %370 = vmatprep.subr.bf16.mxu0 %v2052_v43  ;;  %v2109_v43 = vld [vmem:[%s2853_s4 + $0x164] ss:$8 sps:$4 sm:$0xff]  }
  0x96   :  { %371 = vmatpush1.bf16.msra.mxu0 %v2050_v44  ;;  %v2107_v44 = vld [vmem:[%s2853_s4 + $0x160] ss:$8 sps:$4 sm:$0xff]  }
  0x97   :  { %495 = vmatprep.subr.bf16.mxu0 %v2055_v45  ;;  %v2115_v45 = vld [vmem:[%s2853_s4 + $0x174] ss:$8 sps:$4 sm:$0xff]  }
  0x99   :  { %389 = vmatmul.mubr.bf16.vlgmr.msra.gmra.mrb[0].mxu0 %v2459_v10  ;;  %v2098_v10 = vld [vmem:[%s2853_s4 + $0x20] ss:$8 sps:$4 sm:$0xff]  }
  0x9a   :  { %496 = vmatpush1.bf16.msra.mxu0 %v2053_v46  ;;  %527 = vmatprep.mubr.bf16.mxu0 %v2352_v0  ;;  %v2353_v0 = vmov 0.0   ;;  %v2113_v46 = vld [vmem:[%s2853_s4 + $0x170] ss:$8 sps:$4 sm:$0xff]  }
  0x9b   :  { %497 = vmatprep.subr.bf16.mxu0 %v2058_v47  ;;  %615 = vmatprep.mubr.f32.mxu1 %v2353_v0  ;;  %v2121_v47 = vld [vmem:[%s2853_s4 + $0x184] ss:$8 sps:$4 sm:$0xff]  }
  0x9e   :  { %498 = vmatpush1.bf16.msra.mxu0 %v2056_v48  ;;  %v2119_v48 = vld [vmem:[%s2853_s4 + $0x180] ss:$8 sps:$4 sm:$0xff]  }
  0x9f   :  { %499 = vmatprep.subr.bf16.mxu0 %v2061_v49  ;;  %v2124_v49 = vld [vmem:[%s2853_s4 + $0x64] ss:$8 sps:$4 sm:$0xff]  }
  0xa2   :  { %500 = vmatpush1.bf16.msra.mxu0 %v2059_v50  ;;  %v2122_v50 = vld [vmem:[%s2853_s4 + $0x60] ss:$8 sps:$4 sm:$0xff]  }
  0xa3   :  { %501 = vmatprep.subr.bf16.mxu0 %v2064_v51  ;;  %v2127_v51 = vld [vmem:[%s2853_s4 + $0x194] ss:$8 sps:$4 sm:$0xff]  }
  0xa6   :  { %502 = vmatpush1.bf16.msra.mxu0 %v2062_v52  ;;  %v2125_v52 = vld [vmem:[%s2853_s4 + $0x190] ss:$8 sps:$4 sm:$0xff]  }
  0xa7   :  { %503 = vmatprep.subr.bf16.mxu0 %v2067_v53  ;;  %v2130_v53 = vld [vmem:[%s2853_s4 + $0x74] ss:$8 sps:$4 sm:$0xff]  }
  0xaa   :  { %504 = vmatpush1.bf16.msra.mxu0 %v2065_v54  ;;  %v2128_v54 = vld [vmem:[%s2853_s4 + $0x70] ss:$8 sps:$4 sm:$0xff]  }
  0xab   :  { %505 = vmatprep.subr.bf16.mxu0 %v2070_v55  ;;  %v2133_v55 = vld [vmem:[%s2853_s4 + $0x1a4] ss:$8 sps:$4 sm:$0xff]  }
  0xae   :  { %506 = vmatpush1.bf16.msra.mxu0 %v2068_v56  ;;  %v2131_v56 = vld [vmem:[%s2853_s4 + $0x1a0] ss:$8 sps:$4 sm:$0xff]  }
  0xaf   :  { %507 = vmatprep.subr.bf16.mxu0 %v2073_v57  ;;  %v2136_v57 = vld [vmem:[%s2853_s4 + $0x84] ss:$8 sps:$4 sm:$0xff]  }
  0xb2   :  { %508 = vmatpush1.bf16.msra.mxu0 %v2071_v58  ;;  %v2134_v58 = vld [vmem:[%s2853_s4 + $0x80] ss:$8 sps:$4 sm:$0xff]  }
  0xb3   :  { %509 = vmatprep.subr.bf16.mxu0 %v2076_v59  ;;  %v2139_v59 = vld [vmem:[%s2853_s4 + $0x1b4] ss:$8 sps:$4 sm:$0xff]  }
  0xb6   :  { %510 = vmatpush1.bf16.msra.mxu0 %v2074_v61  ;;  %v2142_v61 = vld [vmem:[%s2853_s4 + $0x94] ss:$8 sps:$4 sm:$0xff]  }
  0xb7   :  { %1010 = vmatprep.subr.bf16.mxu0 %v2088_v7  ;;  %v2149_v7 = vld [vmem:[%s2853_s4 + $0x1d0] ss:$8 sps:$4 sm:$0xff]  }
  0xb9   :  { %1784 = vmatmul.mubr.msk.bf16.vlgmr.msra.gmra.mrb[0].mxu0 %vm2484_vm4, %v1783_v62  ;;  %v2140_v62 = vld [vmem:[%s2853_s4 + $0x90] ss:$8 sps:$4 sm:$0xff]  }
  0xba   :  { %1011 = vmatpush1.bf16.msra.mxu0 %v2086_v6  ;;  %v2151_v6 = vld [vmem:[%s2853_s4 + $0x1d4] ss:$8 sps:$4 sm:$0xff]  }
  0xbb   :  { %1012 = vmatprep.subr.bf16.mxu0 %v2094_v9  ;;  %v2152_v9 = vld [vmem:[%s2853_s4 + $0xb0] ss:$8 sps:$4 sm:$0xff]  }
  0xbe   :  { %1013 = vmatpush1.bf16.msra.mxu0 %v2092_v8  ;;  %v2154_v8 = vld [vmem:[%s2853_s4 + $0xb4] ss:$8 sps:$4 sm:$0xff]  }
  0xbf   :  { %1014 = vmatprep.subr.bf16.mxu0 %v2100_v11  ;;  %v2155_v11 = vld [vmem:[%s2853_s4 + $0x1e0] ss:$8 sps:$4 sm:$0xff]  }
  0xc2   :  { %1015 = vmatpush1.bf16.msra.mxu0 %v2098_v10  ;;  %v2157_v10 = vld [vmem:[%s2853_s4 + $0x1e4] ss:$8 sps:$4 sm:$0xff]  }
  0xc3   :  { %1016 = vmatprep.subr.bf16.mxu0 %v2106_v13  ;;  %v2160_v13 = vld [vmem:[%s2853_s4 + $0xc4] ss:$8 sps:$4 sm:$0xff]  }
  0xc6   :  { %1017 = vmatpush1.bf16.msra.mxu0 %v2104_v12  ;;  %v2158_v12 = vld [vmem:[%s2853_s4 + $0xc0] ss:$8 sps:$4 sm:$0xff]  }
  0xc7   :  { %1018 = vmatprep.subr.bf16.mxu0 %v2112_v15  ;;  %v2161_v15 = vld [vmem:[%s2853_s4 + $0x1f0] ss:$8 sps:$4 sm:$0xff]  }
  0xca   :  { %1019 = vmatpush1.bf16.msra.mxu0 %v2110_v14  ;;  %v2163_v14 = vld [vmem:[%s2853_s4 + $0x1f4] ss:$8 sps:$4 sm:$0xff]  }
  0xcb   :  { %1020 = vmatprep.subr.bf16.mxu0 %v2118_v17  ;;  %v2164_v17 = vld [vmem:[%s2853_s4 + $0xd0] ss:$8 sps:$4 sm:$0xff]  }
  0xce   :  { %1021 = vmatpush1.bf16.msra.mxu0 %v2116_v16  ;;  %v2166_v16 = vld [vmem:[%s2853_s4 + $0xd4] ss:$8 sps:$4 sm:$0xff]  }
  0xcf   :  { %1022 = vmatprep.subr.bf16.mxu0 %v2124_v49 }
  0xd2   :  { %1023 = vmatpush1.bf16.msra.mxu0 %v2122_v50 }
  0xd3   :  { %1024 = vmatprep.subr.bf16.mxu0 %v2130_v53 }
  0xd6   :  { %1025 = vmatpush1.bf16.msra.mxu0 %v2128_v54 }
  0xd7   :  { %1026 = vmatprep.subr.bf16.mxu0 %v2136_v57 }
  0xda   :  { %1027 = vmatpush1.bf16.msra.mxu0 %v2134_v58 }
  0xdb   :  { %1028 = vmatprep.subr.bf16.mxu0 %v2142_v61 }
  0xde   :  { %1029 = vmatpush1.bf16.msra.mxu0 %v2140_v62  ;;  %v2173_v62 = vld [vmem:[%s2853_s4 + $0x210] ss:$8 sps:$4 sm:$0xff]  }
 0x18c   :  { %v529_v1 = vpop.f32.mrb[0].mxu0 }
 0x18d   :  { %v531_v2 = vpop.f32.mrb[1].mxu0 }
 0x18e   :  { %v533_v3 = vpop.f32.mrb[2].mxu0  ;;  %1785 = vmatprep.subr.msk.mxu1 %vm544_vm5, %v531_v2 }
 0x18f   :  { %v534_v4 = vpop.f32.mrb[3].mxu0  ;;  %1786 = vmatpush1.msk.msra.mxu1 %vm544_vm5, %v529_v1  ;;  %v2148_v3 = vld [vmem:[%s2853_s4 + $0xa4] ss:$8 sps:$4 sm:$0xff]  }
 0x190   :  { %1787 = vmatmul.mubr.msk.f32.vlgmr.msra.gmra.mrb[0].mxu1 %vm540_vm6, %v2354_v5  ;;  %v2146_v4 = vld [vmem:[%s2853_s4 + $0xa0] ss:$8 sps:$4 sm:$0xff]   ;;  %1030 = vmatprep.subr.bf16.mxu0 %v2148_v3  ;;  %v2181_v3 = vld [vmem:[%s2853_s4 + $0x224] ss:$8 sps:$4 sm:$0xff]  }
 0x191   :  { %706 = vmatprep.mubr.f32.mxu1 %v2353_v0  ;;  %1031 = vmatpush1.bf16.msra.mxu0 %v2146_v4 }
 0x192   :  { %1032 = vmatprep.subr.bf16.mxu0 %v2154_v8 }
 0x195   :  { %1033 = vmatpush1.bf16.msra.mxu0 %v2152_v9  ;;  %v2179_v9 = vld [vmem:[%s2853_s4 + $0x220] ss:$8 sps:$4 sm:$0xff]  }
 0x196   :  { %1034 = vmatprep.subr.bf16.mxu0 %v2160_v13  ;;  %v2182_v13 = vld [vmem:[%s2853_s4 + $0x230] ss:$8 sps:$4 sm:$0xff]  }
 0x199   :  { %1035 = vmatpush1.bf16.msra.mxu0 %v2158_v12  ;;  %v2184_v12 = vld [vmem:[%s2853_s4 + $0x234] ss:$8 sps:$4 sm:$0xff]  }
 0x19a   :  { %1036 = vmatprep.subr.bf16.mxu0 %v2166_v16  ;;  %v2188_v16 = vld [vmem:[%s2853_s4 + $0x250] ss:$8 sps:$4 sm:$0xff]  }
 0x19d   :  { %1037 = vmatpush1.bf16.msra.mxu0 %v2164_v17  ;;  %v2193_v17 = vld [vmem:[%s2853_s4 + $0x264] ss:$8 sps:$4 sm:$0xff]  }
 0x263   :  { %v617_v19 = vpop.f32.mrb[0].mxu1 }
 0x264   :  { %v622_v21 = vmul.f32 0.25, %v617_v19  ;;  %v619_v22 = vpop.f32.mrb[1].mxu1  ;;  %v2169_v19 = vld [vmem:[%s2853_s4 + $0x204] ss:$8 sps:$4 sm:$0xff]  }
 0x265   :  { %v623_v23 = vmul.f32 0.25, %v619_v22  ;;  %v2170_v22 = vld [vmem:[%s2853_s4 + $0xe0] ss:$8 sps:$4 sm:$0xff]  }
 0x266   :  { %v627_v24 = vrot.slane %v622_v21, %v2533_v18  ;;  %v2172_v21 = vld [vmem:[%s2853_s4 + $0xe4] ss:$8 sps:$4 sm:$0xff]  }
 0x267   :  { %v631_v25 = vrot.slane %v623_v23, %v2533_v18  ;;  %1038 = vmatprep.subr.bf16.mxu0 %v2172_v21  ;;  %v2176_v23 = vld [vmem:[%s2853_s4 + $0xf0] ss:$8 sps:$4 sm:$0xff]   ;;  %v2196_v21 = vld [vmem:[%s2853_s4 + $0x274] ss:$8 sps:$4 sm:$0xff]  }
 0x268   :  { %v2537_v26 = vsub.f32 %v529_v1, %v627_v24  ;;  %v2145_v1 = vld [vmem:[%s2853_s4 + $0x1c4] ss:$8 sps:$4 sm:$0xff]   ;;  %1039 = vmatpush1.bf16.msra.mxu0 %v2170_v22  ;;  %v2178_v24 = vld [vmem:[%s2853_s4 + $0xf4] ss:$8 sps:$4 sm:$0xff]   ;;  %v2194_v22 = vld [vmem:[%s2853_s4 + $0x270] ss:$8 sps:$4 sm:$0xff]  }
 0x269   :  { %v2539_v27 = vsub.f32 %v531_v2, %v631_v25  ;;  %v2143_v2 = vld [vmem:[%s2853_s4 + $0x1c0] ss:$8 sps:$4 sm:$0xff]   ;;  %1040 = vmatprep.subr.bf16.mxu0 %v2178_v24 }
 0x26a   :  { %v634_v31 = vmul.f32 %v2537_v26, %v2537_v26  ;;  %v2197_v24 = vld [vmem:[%s2853_s4 + $0x280] ss:$8 sps:$4 sm:$0xff]  }
 0x26b   :  { %v635_v28 = vmul.f32 %v2539_v27, %v2539_v27 }
 0x26c   :  { %1041 = vmatpush1.bf16.msra.mxu0 %v2176_v23  ;;  %v2199_v23 = vld [vmem:[%s2853_s4 + $0x284] ss:$8 sps:$4 sm:$0xff]  }
 0x26d   :  { %1788 = vmatprep.subr.msk.mxu1 %vm544_vm5, %v635_v28 }
 0x26e   :  { %1789 = vmatpush1.msk.msra.mxu1 %vm544_vm5, %v634_v31 }
 0x26f   :  { %1790 = vmatmul.mubr.msk.f32.vlgmr.msra.gmra.mrb[2].mxu1 %vm540_vm6, %v2354_v5  ;;  %1211 = vmatprep.subr.bf16.mxu1 %v2079_v29 }
 0x270   :  { %1212 = vmatpush1.bf16.msra.mxu1 %v2077_v32 }
 0x271   :  { %1213 = vmatprep.subr.bf16.mxu1 %v2082_v33 }
 0x274   :  { %1214 = vmatpush1.bf16.msra.mxu1 %v2080_v34 }
 0x275   :  { %1215 = vmatprep.subr.bf16.mxu1 %v2085_v35 }
 0x278   :  { %1216 = vmatpush1.bf16.msra.mxu1 %v2083_v36  ;;  %v2709_v36 = vsub.s32 1, %v2463_v20 }
 0x279   :  { %1217 = vmatprep.subr.bf16.mxu1 %v2091_v37  ;;  %v538_v37 = vld [vmem:[#allocation4] sm:$0x3] }
 0x27c   :  { %1218 = vmatpush1.bf16.msra.mxu1 %v2089_v38 }
 0x27d   :  { %1219 = vmatprep.subr.bf16.mxu1 %v2097_v39  ;;  %v539_v39 = vld [vmem:[#allocation6] sm:$0x3] }
 0x27e   :  { %v752_v20 = vrot.slane %v539_v39, %v2709_v36 }
 0x280   :  { %1220 = vmatpush1.bf16.msra.mxu1 %v2095_v40 }
 0x281   :  { %1221 = vmatprep.subr.bf16.mxu1 %v2103_v41 }
 0x284   :  { %1222 = vmatpush1.bf16.msra.mxu1 %v2101_v42  ;;  %v735_v42 = vrot.slane %v538_v37, %v2533_v18 }
 0x285   :  { %1223 = vmatprep.subr.bf16.mxu1 %v2109_v43 }
 0x288   :  { %1224 = vmatpush1.bf16.msra.mxu1 %v2107_v44  ;;  %v739_v44 = vrot.slane %v538_v37, %v2709_v36  ;;  %v2214_v37 = vld [vmem:[%s2853_s4 + $0x2d4] ss:$8 sps:$4 sm:$0xff]  }
 0x289   :  { %1225 = vmatprep.subr.bf16.mxu1 %v2115_v45 }
 0x28c   :  { %1226 = vmatpush1.bf16.msra.mxu1 %v2113_v46  ;;  %v748_v46 = vrot.slane %v539_v39, %v2533_v18  ;;  %v2217_v39 = vld [vmem:[%s2853_s4 + $0x2e4] ss:$8 sps:$4 sm:$0xff]  }
 0x28d   :  { %1227 = vmatprep.subr.bf16.mxu1 %v2121_v47 }
 0x290   :  { %1228 = vmatpush1.bf16.msra.mxu1 %v2119_v48 }
 0x291   :  { %1229 = vmatprep.subr.bf16.mxu1 %v2127_v51 }
 0x294   :  { %1230 = vmatpush1.bf16.msra.mxu1 %v2125_v52 }
 0x295   :  { %1231 = vmatprep.subr.bf16.mxu1 %v2133_v55 }
 0x298   :  { %1232 = vmatpush1.bf16.msra.mxu1 %v2131_v56  ;;  %v2167_v56 = vld [vmem:[%s2853_s4 + $0x200] ss:$8 sps:$4 sm:$0xff]  }
 0x299   :  { %1233 = vmatprep.subr.bf16.mxu1 %v2139_v59 }
 0x29c   :  { %1234 = vmatpush1.bf16.msra.mxu1 %v2137_v60 }
 0x29d   :  { %1235 = vmatprep.subr.bf16.mxu1 %v2145_v1 }
 0x2a0   :  { %1236 = vmatpush1.bf16.msra.mxu1 %v2143_v2 }
 0x2a1   :  { %1237 = vmatprep.subr.bf16.mxu1 %v2151_v6 }
 0x2a4   :  { %1238 = vmatpush1.bf16.msra.mxu1 %v2149_v7 }
 0x2a5   :  { %1239 = vmatprep.subr.bf16.mxu1 %v2157_v10 }
 0x2a8   :  { %1240 = vmatpush1.bf16.msra.mxu1 %v2155_v11 }
 0x2a9   :  { %1241 = vmatprep.subr.bf16.mxu1 %v2163_v14  ;;  %v2187_v14 = vld [vmem:[%s2853_s4 + $0x244] ss:$8 sps:$4 sm:$0xff]  }
 0x2ac   :  { %1242 = vmatpush1.bf16.msra.mxu1 %v2161_v15  ;;  %v2185_v15 = vld [vmem:[%s2853_s4 + $0x240] ss:$8 sps:$4 sm:$0xff]  }
 0x2ad   :  { %1447 = vmatprep.subr.bf16.mxu1 %v2169_v19  ;;  %v2191_v19 = vld [vmem:[%s2853_s4 + $0x260] ss:$8 sps:$4 sm:$0xff]  }
 0x342   :  { %v708_v25 = vpop.f32.mrb[2].mxu1 }
 0x343   :  { %v713_v28 = vmul.f32 0.25, %v708_v25  ;;  %v710_v29 = vpop.f32.mrb[3].mxu1  ;;  %v2202_v25 = vld [vmem:[%s2853_s4 + $0x294] ss:$8 sps:$4 sm:$0xff]  }
 0x344   :  { %v714_v31 = vmul.f32 0.25, %v710_v29  ;;  %v2205_v29 = vld [vmem:[%s2853_s4 + $0x2a4] ss:$8 sps:$4 sm:$0xff]  }
 0x345   :  { %v715_v32 = vmax.f32 %v713_v28, 0.0  ;;  %v2200_v28 = vld [vmem:[%s2853_s4 + $0x290] ss:$8 sps:$4 sm:$0xff]  }
 0x346   :  { %v716_v33 = vmax.f32 %v714_v31, 0.0  ;;  %v2203_v31 = vld [vmem:[%s2853_s4 + $0x2a0] ss:$8 sps:$4 sm:$0xff]  }
 0x347   :  { %v717_v34 = vadd.f32 1e-05, %v715_v32  ;;  %v2208_v32 = vld [vmem:[%s2853_s4 + $0x2b4] ss:$8 sps:$4 sm:$0xff]  }
 0x348   :  { %v718_v35 = vadd.f32 1e-05, %v716_v33  ;;  %v2206_v33 = vld [vmem:[%s2853_s4 + $0x2b0] ss:$8 sps:$4 sm:$0xff]  }
 0x349   :  { %2221 = vrsqrt.f32 %v717_v34  ;;  %v2211_v34 = vld [vmem:[%s2853_s4 + $0x2c4] ss:$8 sps:$4 sm:$0xff]  }
 0x34a   :  { %2223 = vrsqrt.f32 %v718_v35  ;;  %v2209_v35 = vld [vmem:[%s2853_s4 + $0x2c0] ss:$8 sps:$4 sm:$0xff]  }
 0x353   :  { %v2222_v38 = vpop.eup %2221 }
 0x354   :  { %v2224_v40 = vpop.eup %2223  ;;  %v724_v41 = vrot.slane %v2222_v38, %v2533_v18  ;;  %v2212_v38 = vld [vmem:[%s2853_s4 + $0x2d0] ss:$8 sps:$4 sm:$0xff]  }
 0x355   :  { %v728_v43 = vrot.slane %v2224_v40, %v2533_v18  ;;  %v2215_v40 = vld [vmem:[%s2853_s4 + $0x2e0] ss:$8 sps:$4 sm:$0xff]  }
 0x356   :  { %v729_v45 = vmul.f32 %v724_v41, %v2537_v26  ;;  %v2220_v41 = vld [vmem:[%s2853_s4 + $0x2f4] ss:$8 sps:$4 sm:$0xff]  }
 0x357   :  { %v730_v47 = vmul.f32 %v728_v43, %v2539_v27  ;;  %v2175_v27 = vld [vmem:[%s2853_s4 + $0x214] ss:$8 sps:$4 sm:$0xff]  }
 0x358   :  { %v742_v48 = vmul.f32 %v735_v42, %v729_v45  ;;  %v2218_v42 = vld [vmem:[%s2853_s4 + $0x2f0] ss:$8 sps:$4 sm:$0xff]  }
 0x359   :  { %v743_v49 = vmul.f32 %v739_v44, %v730_v47 }
 0x35a   :  { %v755_v50 = vadd.f32 %v748_v46, %v742_v48 }
 0x35b   :  { %v756_v51 = vadd.f32 %v752_v20, %v743_v49 }
 0x35c   :  { %v757_v52 = vmax.f32 %v755_v50, 0.0 }
 0x35d   :  { %v758_v53 = vmax.f32 %v756_v51, 0.0 }
 0x35e   :  { %v759_v54 = vrot.slane %v757_v52, 4  ;;  %v781_v26 = vpack.c.bf16 %v757_v52, %v757_v52 }
 0x35f   :  { %v782_v55 = vpack.c.bf16 %v758_v53, %v758_v53  ;;  %v761_v57 = vrot.slane %v758_v53, 4 }
 0x360   :  { %v760_v58 = vsel %vm105_vm0, %v759_v54, %v757_v52 }
 0x361   :  { %1243 = vmatprep.mubr.bf16.mxu1 %v782_v55  ;;  %v762_v59 = vsel %vm105_vm0, %v761_v57, %v758_v53  ;;  %v763_v60 = vrot.slane %v760_v58, 4 }
 0x362   :  { %1244 = vmatmul.mubr.bf16.vlgmr.msra.gmra.mrb[4].mxu1 %v781_v26  ;;  %v764_v61 = vrot.slane %v762_v59, 4 }
 0x363   :  { %1448 = vmatpush1.bf16.msra.mxu1 %v2167_v56  ;;  %v2731_v1 = vsel %vm105_vm0, %v763_v60, %v757_v52 }
 0x364   :  { %1449 = vmatprep.subr.bf16.mxu1 %v2175_v27  ;;  %v766_v2 = vsel %vm105_vm0, %v764_v61, %v758_v53  ;;  %v769_v4 = vrot.slane %v2731_v1, 3  ;;  %v775_v43 = vrot.slane %v2731_v1, 1 }
 0x365   :  { %v770_v6 = vrot.slane %v766_v2, 3  ;;  %v776_v7 = vrot.slane %v766_v2, 1 }
 0x366   :  { %v1863_v11 = vpack.c.bf16 %v769_v4, %v769_v4  ;;  %v1969_v44 = vpack.c.bf16 %v775_v43, %v775_v43 }
 0x367   :  { %1450 = vmatpush1.bf16.msra.mxu1 %v2173_v62  ;;  %v1858_v8 = vpack.c.bf16 %v770_v6, %v770_v6  ;;  %v1964_v10 = vpack.c.bf16 %v776_v7, %v776_v7  ;;  %v1490_v7 = vld [vmem:[#allocation7] sm:$0x3] }
 0x368   :  { %1451 = vmatprep.subr.bf16.mxu1 %v2181_v3 }
 0x369   :  { %1859 = vmatprep.mubr.msk.bf16.mxu0 %vm2472_vm2, %v1858_v8  ;;  %1965 = vmatprep.mubr.msk.bf16.mxu1 %vm2484_vm4, %v1964_v10 }
 0x36a   :  { %1864 = vmatmul.mubr.msk.bf16.vlgmr.msra.gmra.mrb[4].mxu0 %vm2472_vm2, %v1863_v11 }
 0x36b   :  { %1452 = vmatpush1.bf16.msra.mxu1 %v2179_v9  ;;  %v1491_v9 = vld [vmem:[#allocation9] sm:$0x3] }
 0x36c   :  { %1453 = vmatprep.subr.bf16.mxu1 %v2184_v12  ;;  %v1682_v12 = vrot.slane %v1490_v7, %v2533_v18 }
 0x36f   :  { %1454 = vmatpush1.bf16.msra.mxu1 %v2182_v13  ;;  %v1686_v13 = vrot.slane %v1490_v7, %v2709_v36 }
 0x370   :  { %1455 = vmatprep.subr.bf16.mxu1 %v2187_v14 }
 0x373   :  { %1456 = vmatpush1.bf16.msra.mxu1 %v2185_v15  ;;  %v1695_v15 = vrot.slane %v1491_v9, %v2533_v18 }
 0x374   :  { %1457 = vmatprep.subr.bf16.mxu1 %v2190_v30 }
 0x377   :  { %1458 = vmatpush1.bf16.msra.mxu1 %v2188_v16  ;;  %v1699_v16 = vrot.slane %v1491_v9, %v2709_v36 }
 0x378   :  { %1459 = vmatprep.subr.bf16.mxu1 %v2193_v17 }
 0x37b   :  { %1460 = vmatpush1.bf16.msra.mxu1 %v2191_v19 }
 0x37c   :  { %1461 = vmatprep.subr.bf16.mxu1 %v2196_v21 }
 0x37f   :  { %1462 = vmatpush1.bf16.msra.mxu1 %v2194_v22 }
 0x380   :  { %1463 = vmatprep.subr.bf16.mxu1 %v2199_v23 }
 0x383   :  { %1464 = vmatpush1.bf16.msra.mxu1 %v2197_v24 }
 0x384   :  { %1465 = vmatprep.subr.bf16.mxu1 %v2202_v25 }
 0x387   :  { %1466 = vmatpush1.bf16.msra.mxu1 %v2200_v28 }
 0x388   :  { %1467 = vmatprep.subr.bf16.mxu1 %v2205_v29 }
 0x38b   :  { %1468 = vmatpush1.bf16.msra.mxu1 %v2203_v31 }
 0x38c   :  { %1469 = vmatprep.subr.bf16.mxu1 %v2208_v32 }
 0x38f   :  { %1470 = vmatpush1.bf16.msra.mxu1 %v2206_v33 }
 0x390   :  { %1471 = vmatprep.subr.bf16.mxu1 %v2211_v34 }
 0x393   :  { %1472 = vmatpush1.bf16.msra.mxu1 %v2209_v35 }
 0x394   :  { %1473 = vmatprep.subr.bf16.mxu1 %v2214_v37 }
 0x397   :  { %1474 = vmatpush1.bf16.msra.mxu1 %v2212_v38 }
 0x398   :  { %1475 = vmatprep.subr.bf16.mxu1 %v2217_v39 }
 0x39b   :  { %1476 = vmatpush1.bf16.msra.mxu1 %v2215_v40 }
 0x39c   :  { %1477 = vmatprep.subr.bf16.mxu1 %v2220_v41 }
 0x39f   :  { %1478 = vmatpush1.bf16.msra.mxu1 %v2218_v42 }
 0x3a2   :  { %1970 = vmatmul.mubr.msk.bf16.vlgmr.msra.gmra.mrb[4].mxu1 %vm2484_vm4, %v1969_v44 }
 0x3a3   :  { %1562 = vmatprep.mubr.f32.mxu1 %v2353_v0 }
 0x43d   :  { %v1044_v45 = vpop.f32.mrb[4].mxu0 }
 0x43e   :  { %v1046_v46 = vpop.f32.mrb[5].mxu0 }
 0x43f   :  { %v1048_v47 = vpop.f32.mrb[6].mxu0 }
 0x440   :  { %v1049_v20 = vpop.f32.mrb[7].mxu0 }
 0x475   :  { %v1481_v48 = vpop.f32.mrb[4].mxu1 }
 0x476   :  { %v1981_v49 = vadd.f32 %v1481_v48, %v1044_v45  ;;  %v1483_v50 = vpop.f32.mrb[5].mxu1 }
 0x477   :  { %v1982_v51 = vadd.f32 %v1483_v50, %v1046_v46  ;;  %v1485_v52 = vpop.f32.mrb[6].mxu1 }
 0x478   :  { %v1486_v53 = vpop.f32.mrb[7].mxu1 }
 0x479   :  { %1971 = vmatprep.subr.msk.mxu1 %vm544_vm5, %v1982_v51 }
 0x47a   :  { %1972 = vmatpush1.msk.msra.mxu1 %vm544_vm5, %v1981_v49 }
 0x47b   :  { %1973 = vmatmul.mubr.msk.f32.vlgmr.msra.gmra.mrb[8].mxu1 %vm540_vm6, %v2354_v5 }
 0x47c   :  { %1653 = vmatprep.mubr.f32.mxu1 %v2353_v0 }
 0x54e   :  { %v1564_v63 = vpop.f32.mrb[8].mxu1 }
 0x54f   :  { %v1569_v54 = vmul.f32 0.25, %v1564_v63  ;;  %v1566_v55 = vpop.f32.mrb[9].mxu1 }
 0x550   :  { %v1570_v56 = vmul.f32 0.25, %v1566_v55 }
 0x551   :  { %v1574_v57 = vrot.slane %v1569_v54, %v2533_v18 }
 0x552   :  { %v1578_v26 = vrot.slane %v1570_v56, %v2533_v18 }
 0x553   :  { %v1579_v27 = vsub.f32 %v1981_v49, %v1574_v57 }
 0x554   :  { %v1580_v58 = vsub.f32 %v1982_v51, %v1578_v26 }
 0x555   :  { %v1581_v60 = vmul.f32 %v1579_v27, %v1579_v27 }
 0x556   :  { %v1582_v59 = vmul.f32 %v1580_v58, %v1580_v58 }
 0x558   :  { %1974 = vmatprep.subr.msk.mxu1 %vm544_vm5, %v1582_v59 }
 0x559   :  { %1975 = vmatpush1.msk.msra.mxu1 %vm544_vm5, %v1581_v60 }
 0x55a   :  { %1976 = vmatmul.mubr.msk.f32.vlgmr.msra.gmra.mrb[10].mxu1 %vm540_vm6, %v2354_v5 }
 0x62d   :  { %v1655_v0 = vpop.f32.mrb[10].mxu1 }
 0x62e   :  { %v1660_v61 = vmul.f32 0.25, %v1655_v0  ;;  %v1657_v62 = vpop.f32.mrb[11].mxu1 }
 0x62f   :  { %v1661_v1 = vmul.f32 0.25, %v1657_v62 }
 0x630   :  { %v1662_v2 = vmax.f32 %v1660_v61, 0.0 }
 0x631   :  { %v1663_v3 = vmax.f32 %v1661_v1, 0.0 }
 0x632   :  { %v1664_v4 = vadd.f32 1e-05, %v1662_v2 }
 0x633   :  { %v1665_v6 = vadd.f32 1e-05, %v1663_v3 }
 0x634   :  { %2225 = vrsqrt.f32 %v1664_v4 }
 0x635   :  { %2227 = vrsqrt.f32 %v1665_v6 }
 0x63e   :  { %v2226_v8 = vpop.eup %2225 }
 0x63f   :  { %v2228_v10 = vpop.eup %2227  ;;  %v1671_v11 = vrot.slane %v2226_v8, %v2533_v18 }
 0x640   :  { %v1675_v5 = vrot.slane %v2228_v10, %v2533_v18 }
 0x641   :  { %v1676_v14 = vmul.f32 %v1671_v11, %v1579_v27 }
 0x642   :  { %v1677_v30 = vmul.f32 %v1675_v5, %v1580_v58 }
 0x643   :  { %v1689_v17 = vmul.f32 %v1682_v12, %v1676_v14 }
 0x644   :  { %v1690_v19 = vmul.f32 %v1686_v13, %v1677_v30 }
 0x645   :  { %v1702_v21 = vadd.f32 %v1695_v15, %v1689_v17 }
 0x646   :  { %v1703_v22 = vadd.f32 %v1699_v16, %v1690_v19 }
 0x647   :  { %v1704_v23 = vmax.f32 %v1702_v21, 0.0 }
 0x648   :  { %v1705_v24 = vmax.f32 %v1703_v22, 0.0 }
 0x64a   :  { %v1977_v25 = vpack.c.bf16 %v1705_v24, %v1704_v23 }
 0x64c   :  { %1978 = vst.sshfl [vmem:[%s2856_s7] sm:$0x33 pattern:$0x76325410] %v1977_v25 }
 0x64d   :  { %1724 = vsyncpa [#allocation3], 1 }
 0x64e   :  { %1725 = vsyncpa [#allocation5], 1 }
 0x64f   :  { %1726 = vsyncpa [#allocation8], 1 }

// kernel: unet_forward.16
= control target key start
LH: loop header
LB: loop body
LE: loop exit
PB: predicated region body
PF: predicated region fallthrough
CT: control target
= control target key end

     0   :  { %v2127_v0 = vmov 0.0   ;;  %vm2128_vm0 = vmmov 0   ;;  %v39_v7 = vlaneseq  ;;  %vm487_vm13 = vcmask 523264   ;;  %s2607_s2 = inlined_call_operand.vmem [shape: bf16[3,128,64], index: 2, kind: input, shape index: {}]   ;;  %s2608_s0 = inlined_call_operand.vmem [shape: bf16[16,128], index: 0, kind: input, shape index: {}]   ;;  %s2609_s4 = inlined_call_operand.vmem [shape: bf16[3,64,64], index: 4, kind: input, shape index: {}]   ;;  %s2610_s5 = inlined_call_operand.vmem [shape: bf16[3,64,64], index: 5, kind: input, shape index: {}]   ;;  %s2611_s3 = inlined_call_operand.vmem [shape: f32[1,64], index: 3, kind: input, shape index: {}]   ;;  %s2612_s1 = inlined_call_operand.vmem [shape: bf16[16,64], index: 1, kind: input, shape index: {}]   ;;  %s2613_s8 = inlined_call_operand.vmem [shape: bf16[3,64,64], index: 8, kind: input, shape index: {}]   ;;  %s2614_s6 = inlined_call_operand.vmem [shape: f32[1,64], index: 6, kind: input, shape index: {}]   ;;  %s2615_s7 = inlined_call_operand.vmem [shape: f32[1,64], index: 7, kind: input, shape index: {}]   ;;  %s2616_s9 = inlined_call_operand.vmem [shape: f32[1,64], index: 9, kind: input, shape index: {}]   ;;  %s2617_s10 = inlined_call_operand.vmem [shape: f32[1,64], index: 10, kind: input, shape index: {}]   ;;  %s2618_s11 = inlined_call_operand.vmem [shape: bf16[16,64], index: 11, kind: output, shape index: {}]  }
   0x1   :  { %1819 = vmatprep.subr.bf16.mxu0 %v2127_v0  ;;  %1839 = vmatprep.subr.bf16.mxu1 %v2127_v0  ;;  %v2059_v1 = vld [vmem:[%s2607_s2] sm:$0xff]   ;;  %v2061_v3 = vld [vmem:[%s2607_s2 + $0x8] sm:$0xff]   ;;  %v2063_v5 = vld [vmem:[%s2607_s2 + $0x10] sm:$0xff]   ;;  %vm939_vm14 = vcmask 130048   ;;  %vm1554_vm15 = vcmask 519168  }
   0x2   :  { %v2060_v2 = vld [vmem:[%s2607_s2 + $0x40] sm:$0xff]   ;;  %1835 = vmatprep.mubr.msk.bf16.mxu0 %vm2128_vm0, %v2127_v0  ;;  %1855 = vmatprep.mubr.msk.bf16.mxu1 %vm2128_vm0, %v2127_v0  ;;  %v2062_v4 = vld [vmem:[%s2607_s2 + $0x48] sm:$0xff]   ;;  %v2064_v6 = vld [vmem:[%s2607_s2 + $0x50] sm:$0xff]   ;;  %v2226_v10 = vshrl.u32 %v39_v7, 7 }
   0x3   :  { %1820 = vmatpush3.bf16.msra.mxu0 %v2059_v1  ;;  %1840 = vmatpush3.bf16.msra.mxu1 %v2060_v2  ;;  %v2065_v8 = vld [vmem:[%s2607_s2 + $0x18] sm:$0xff]   ;;  %v2067_v11 = vld [vmem:[%s2607_s2 + $0x20] sm:$0xff]   ;;  %v2069_v15 = vld [vmem:[%s2607_s2 + $0x28] sm:$0xff]  }
   0x4   :  { %1821 = vmatprep.subr.bf16.mxu0 %v2127_v0  ;;  %1841 = vmatprep.subr.bf16.mxu1 %v2127_v0  ;;  %v2066_v9 = vld [vmem:[%s2607_s2 + $0x58] sm:$0xff]   ;;  %v2068_v12 = vld [vmem:[%s2607_s2 + $0x60] sm:$0xff]   ;;  %v2237_v13 = vadd.s32 8, %v2226_v10  ;;  %v2070_v18 = vld [vmem:[%s2607_s2 + $0x68] sm:$0xff]   ;;  %v46_v19 = vand.u32 7, %v2226_v10  ;;  %vm77_vm3 = vcmp.lt.s32.totalorder %v2226_v10, 1 }
   0x5   :  { %v70_v14 = vld [vmem:[%s2608_s0] sm:$0xff]   ;;  %v2071_v21 = vld [vmem:[%s2607_s2 + $0x30] sm:$0xff]   ;;  %v2073_v27 = vld [vmem:[%s2607_s2 + $0x38] sm:$0xff]   ;;  %vm88_vm8 = vcmp.lt.s32.totalorder %v2226_v10, 7 }
   0x6   :  { %v72_v16 = vunpack.c.l.bf16 %v70_v14  ;;  %v73_v17 = vunpack.c.h.bf16 %v70_v14  ;;  %v53_v20 = vand.u32 7, %v2237_v13  ;;  %v2072_v24 = vld [vmem:[%s2607_s2 + $0x70] sm:$0xff]   ;;  %vm2260_vm1 = vcmp.eq.s32.totalorder %v46_v19, 0  ;;  %v2074_v30 = vld [vmem:[%s2607_s2 + $0x78] sm:$0xff]   ;;  %v2076_v32 = vld [vmem:[%s2607_s2 + $0x80] sm:$0xff]  }
   0x7   :  { %1822 = vmatpush3.bf16.msra.mxu0 %v2061_v3  ;;  %1842 = vmatpush3.bf16.msra.mxu1 %v2062_v4  ;;  %vm1586_vm5 = vmneg %vm2260_vm1  ;;  %v2077_v33 = vld [vmem:[%s2607_s2 + $0x88] sm:$0xff]   ;;  %v2078_v34 = vld [vmem:[%s2607_s2 + $0x90] sm:$0xff]   ;;  %vm2324_vm9 = vcmp.eq.s32.totalorder %v46_v19, 7 }
   0x8   :  { %1823 = vmatprep.subr.bf16.mxu0 %v2127_v0  ;;  %1843 = vmatprep.subr.bf16.mxu1 %v2127_v0  ;;  %v75_v22 = vrot.slane %v72_v16, 7  ;;  %v76_v23 = vrot.slane %v73_v17, 7  ;;  %vm2264_vm2 = vcmp.eq.s32.totalorder %v53_v20, 0  ;;  %v2079_v35 = vld [vmem:[%s2607_s2 + $0x98] sm:$0xff]   ;;  %v2080_v36 = vld [vmem:[%s2607_s2 + $0xa0] sm:$0xff]   ;;  %v2081_v37 = vld [vmem:[%s2607_s2 + $0xa8] sm:$0xff]  }
   0x9   :  { %vm1585_vm4 = vmneg %vm2264_vm2  ;;  %v86_v38 = vrot.slane %v72_v16, 1  ;;  %v87_v39 = vrot.slane %v73_v17, 1  ;;  %v2082_v40 = vld [vmem:[%s2607_s2 + $0xb0] sm:$0xff]   ;;  %vm2319_vm7 = vcmp.eq.s32.totalorder %v53_v20, 7  ;;  %v2083_v43 = vld [vmem:[%s2607_s2 + $0xb8] sm:$0xff]  }
   0xa   :  { %v78_v28 = vsel %vm77_vm3, %v75_v22, %v76_v23  ;;  %v79_v29 = vsel %vm77_vm3, %v76_v23, %v75_v22  ;;  %vm1587_vm6 = vmpackc.low %vm1585_vm4, %vm1586_vm5  ;;  %v2084_v47 = vld [vmem:[%s2609_s4] sm:$0xff]   ;;  %v2085_v48 = vld [vmem:[%s2609_s4 + $0x8] sm:$0xff]  }
   0xb   :  { %1824 = vmatpush3.bf16.msra.mxu0 %v2063_v5  ;;  %1844 = vmatpush3.bf16.msra.mxu1 %v2064_v6  ;;  %v1588_v31 = vpack.c.bf16 %v78_v28, %v79_v29  ;;  %v89_v44 = vsel %vm88_vm8, %v86_v38, %v87_v39  ;;  %v90_v45 = vsel %vm88_vm8, %v87_v39, %v86_v38  ;;  %vm1623_vm10 = vmneg %vm2319_vm7  ;;  %v2086_v49 = vld [vmem:[%s2609_s4 + $0x10] sm:$0xff]   ;;  %v2087_v50 = vld [vmem:[%s2609_s4 + $0x18] sm:$0xff]  }
   0xc   :  { %1825 = vmatprep.subr.bf16.mxu0 %v2127_v0  ;;  %1845 = vmatprep.subr.bf16.mxu1 %v2127_v0  ;;  %vm1624_vm11 = vmneg %vm2324_vm9  ;;  %v1626_v46 = vpack.c.bf16 %v90_v45, %v89_v44  ;;  %v1628_v61 = vld [vmem:[%s2611_s3] ss:$0 sm:$0xff]  ;;  %v2091_v28 = vld [vmem:[%s2609_s4 + $0x38] sm:$0xff]  }
   0xd   :  { %vm1625_vm12 = vmpackc.low %vm1623_vm10, %vm1624_vm11  ;;  %v2092_v29 = vld [vmem:[%s2609_s4 + $0x40] sm:$0xff]   ;;  %v2115_v25 = vld [vmem:[%s2613_s8 + $0x30] sm:$0xff]  }
   0xe   :  { %v2116_v26 = vld [vmem:[%s2613_s8 + $0x38] sm:$0xff]  }
   0xf   :  { %1826 = vmatpush3.bf16.msra.mxu0 %v2065_v8  ;;  %1846 = vmatpush3.bf16.msra.mxu1 %v2066_v9 }
  0x10   :  { %1827 = vmatprep.subr.bf16.mxu0 %v2127_v0  ;;  %1847 = vmatprep.subr.bf16.mxu1 %v2127_v0 }
  0x13   :  { %1828 = vmatpush3.bf16.msra.mxu0 %v2067_v11  ;;  %1848 = vmatpush3.bf16.msra.mxu1 %v2068_v12 }
  0x14   :  { %1829 = vmatprep.subr.bf16.mxu0 %v2127_v0  ;;  %1849 = vmatprep.subr.bf16.mxu1 %v2127_v0 }
  0x17   :  { %1830 = vmatpush3.bf16.msra.mxu0 %v2069_v15  ;;  %1850 = vmatpush3.bf16.msra.mxu1 %v2070_v18 }
  0x18   :  { %1831 = vmatprep.subr.bf16.mxu0 %v2127_v0  ;;  %1851 = vmatprep.subr.bf16.mxu1 %v2127_v0 }
  0x1b   :  { %1832 = vmatpush3.bf16.msra.mxu0 %v2071_v21  ;;  %1852 = vmatpush3.bf16.msra.mxu1 %v2072_v24  ;;  %v2088_v21 = vld [vmem:[%s2609_s4 + $0x20] sm:$0xff]   ;;  %v2089_v24 = vld [vmem:[%s2609_s4 + $0x28] sm:$0xff]  }
  0x1c   :  { %1833 = vmatprep.subr.bf16.mxu0 %v2127_v0  ;;  %1853 = vmatprep.subr.bf16.mxu1 %v2127_v0 }
  0x1f   :  { %1834 = vmatpush3.bf16.msra.mxu0 %v2073_v27  ;;  %1854 = vmatpush3.bf16.msra.mxu1 %v2074_v30  ;;  %v2090_v27 = vld [vmem:[%s2609_s4 + $0x30] sm:$0xff]   ;;  %v2093_v30 = vld [vmem:[%s2609_s4 + $0x48] sm:$0xff]  }
  0x20   :  { %1859 = vmatprep.subr.bf16.mxu0 %v2127_v0  ;;  %1879 = vmatprep.subr.bf16.mxu1 %v2127_v0 }
  0x22   :  { %1836 = vmatmul.mubr.msk.bf16.vlgmr.msra.gmra.mrb[0].mxu0 %vm1587_vm6, %v1588_v31  ;;  %1856 = vmatmul.mubr.bf16.vlgmr.msra.gmra.mrb[0].mxu1 %v70_v14  ;;  %v2094_v31 = vld [vmem:[%s2609_s4 + $0x50] sm:$0xff]  }
  0x23   :  { %1860 = vmatpush3.bf16.msra.mxu0 %v2076_v32  ;;  %1875 = vmatprep.mubr.msk.bf16.mxu0 %vm2128_vm0, %v2127_v0  ;;  %v2095_v32 = vld [vmem:[%s2609_s4 + $0x58] sm:$0xff]  }
  0x24   :  { %1861 = vmatprep.subr.bf16.mxu0 %v2127_v0  ;;  %1887 = vmatprep.mubr.msk.bf16.mxu1 %vm2128_vm0, %v2127_v0 }
  0x25   :  { %1880 = vmatpush3.bf16.msra.mxu1 %v2084_v47  ;;  %v2099_v47 = vld [vmem:[%s2610_s5 + $0x18] sm:$0xff]  }
  0x26   :  { %1881 = vmatprep.subr.bf16.mxu1 %v2127_v0 }
  0x27   :  { %1862 = vmatpush3.bf16.msra.mxu0 %v2077_v33  ;;  %v680_v33 = vld [vmem:[%s2612_s1] sm:$0xff]  }
  0x28   :  { %1863 = vmatprep.subr.bf16.mxu0 %v2127_v0 }
  0x29   :  { %1882 = vmatpush3.bf16.msra.mxu1 %v2085_v48 }
  0x2a   :  { %1883 = vmatprep.subr.bf16.mxu1 %v2127_v0 }
  0x2b   :  { %1864 = vmatpush3.bf16.msra.mxu0 %v2078_v34  ;;  %v2096_v34 = vld [vmem:[%s2610_s5] sm:$0xff]  }
  0x2c   :  { %1865 = vmatprep.subr.bf16.mxu0 %v2127_v0 }
  0x2d   :  { %1884 = vmatpush3.bf16.msra.mxu1 %v2086_v49  ;;  %v2100_v49 = vld [vmem:[%s2610_s5 + $0x20] sm:$0xff]  }
  0x2e   :  { %1885 = vmatprep.subr.bf16.mxu1 %v2127_v0 }
  0x2f   :  { %1866 = vmatpush3.bf16.msra.mxu0 %v2079_v35  ;;  %v682_v35 = vunpack.c.l.bf16 %v680_v33 }
  0x30   :  { %1867 = vmatprep.subr.bf16.mxu0 %v2127_v0 }
  0x31   :  { %1886 = vmatpush3.bf16.msra.mxu1 %v2087_v50  ;;  %v684_v38 = vrot.slane %v682_v35, 7  ;;  %v2101_v50 = vld [vmem:[%s2610_s5 + $0x28] sm:$0xff]  }
  0x32   :  { %1891 = vmatprep.subr.bf16.mxu1 %v2127_v0 }
  0x33   :  { %1868 = vmatpush3.bf16.msra.mxu0 %v2080_v36  ;;  %v683_v36 = vunpack.c.h.bf16 %v680_v33 }
  0x34   :  { %1869 = vmatprep.subr.bf16.mxu0 %v2127_v0 }
  0x35   :  { %v685_v39 = vrot.slane %v683_v36, 7 }
  0x37   :  { %1870 = vmatpush3.bf16.msra.mxu0 %v2081_v37  ;;  %v2097_v37 = vld [vmem:[%s2610_s5 + $0x8] sm:$0xff]   ;;  %v687_v44 = vsel %vm77_vm3, %v685_v39, %v684_v38 }
  0x38   :  { %1871 = vmatprep.subr.bf16.mxu0 %v2127_v0  ;;  %v688_v45 = vsel %vm2260_vm1, 0.0, %v687_v44 }
  0x3b   :  { %1872 = vmatpush3.bf16.msra.mxu0 %v2082_v40  ;;  %v2098_v40 = vld [vmem:[%s2610_s5 + $0x10] sm:$0xff]  }
  0x3c   :  { %1873 = vmatprep.subr.bf16.mxu0 %v2127_v0 }
  0x3f   :  { %1874 = vmatpush3.bf16.msra.mxu0 %v2083_v43  ;;  %v686_v43 = vsel %vm77_vm3, %v684_v38, %v685_v39 }
  0x42   :  { %1876 = vmatmul.mubr.msk.bf16.vlgmr.msra.gmra.mrb[4].mxu0 %vm1625_vm12, %v1626_v46  ;;  %v689_v46 = vsel %vm2264_vm2, 0.0, %v686_v43 }
  0x43   :  { %1955 = vmatprep.mubr.msk.f32.mxu0 %vm2128_vm0, %v2127_v0  ;;  %v705_v48 = vpack.c.bf16 %v689_v46, %v688_v45 }
  0xf5   :  { %v213_v51 = vpop.f32.mrb[0].mxu0  ;;  %v308_v52 = vpop.f32.mrb[0].mxu1 }
  0xf6   :  { %v1837_v53 = vpop.f32.mrb[1].mxu0  ;;  %v309_v54 = vadd.f32 %v308_v52, %v213_v51  ;;  %v1857_v55 = vpop.f32.mrb[1].mxu1  ;;  %v2102_v51 = vld [vmem:[%s2610_s5 + $0x30] sm:$0xff]   ;;  %v2103_v52 = vld [vmem:[%s2610_s5 + $0x38] sm:$0xff]  }
  0xf7   :  { %v216_v56 = vpop.f32.mrb[2].mxu0  ;;  %v311_v57 = vpop.f32.mrb[2].mxu1  ;;  %v2105_v53 = vld [vmem:[%s2610_s5 + $0x40] sm:$0xff]   ;;  %v690_v55 = vrot.slane %v682_v35, 1 }
  0xf8   :  { %v1838_v58 = vpop.f32.mrb[3].mxu0  ;;  %v312_v59 = vadd.f32 %v311_v57, %v216_v56  ;;  %v1858_v60 = vpop.f32.mrb[3].mxu1  ;;  %v691_v56 = vrot.slane %v683_v36, 1  ;;  %v2107_v57 = vld [vmem:[%s2610_s5 + $0x50] sm:$0xff]   ;;  %v1695_v35 = vld [vmem:[%s2615_s7] ss:$0 sm:$0xff] }
  0xf9   :  { %v2108_v60 = vld [vmem:[%s2610_s5 + $0x58] sm:$0xff]  }
  0xfa   :  { %v692_v58 = vsel %vm88_vm8, %v690_v55, %v691_v56 }
 0x115   :  { %v415_v62 = vpop.f32.mrb[4].mxu0 }
 0x116   :  { %v422_v63 = vadd.f32 %v415_v62, %v309_v54  ;;  %v1877_v1 = vpop.f32.mrb[5].mxu0  ;;  %v2106_v54 = vld [vmem:[%s2610_s5 + $0x48] sm:$0xff]  }
 0x117   :  { %v418_v2 = vpop.f32.mrb[6].mxu0  ;;  %v2129_v1 = vmov 0.0|0.0  }
 0x118   :  { %v430_v3 = vadd.f32 %v1628_v61, %v422_v63  ;;  %v423_v4 = vadd.f32 %v418_v2, %v312_v59  ;;  %v1878_v5 = vpop.f32.mrb[7].mxu0  ;;  %v693_v59 = vsel %vm88_vm8, %v691_v56, %v690_v55  ;;  %2015 = vmatprep.subr.bf16.mxu0 %v2129_v1  ;;  %v2118_v55 = vld [vmem:[%s2613_s8 + $0x48] sm:$0xff]  }
 0x119   :  { %v695_v62 = vsel %vm2319_vm7, 0.0, %v693_v59 }
 0x11a   :  { %v431_v6 = vadd.f32 %v1628_v61, %v423_v4  ;;  %v432_v7 = vrot.slane %v430_v3, 7  ;;  %v438_v8 = vrot.slane %v430_v3, 1  ;;  %v694_v61 = vsel %vm2324_vm9, 0.0, %v692_v58  ;;  %v2119_v58 = vld [vmem:[%s2613_s8 + $0x50] sm:$0xff]  }
 0x11b   :  { %v855_v63 = vpack.c.bf16 %v695_v62, %v694_v61  ;;  %v2120_v61 = vld [vmem:[%s2613_s8 + $0x58] sm:$0xff]  }
 0x11c   :  { %v433_v9 = vrot.slane %v431_v6, 7  ;;  %v439_v11 = vrot.slane %v431_v6, 1  ;;  %v444_v12 = vpack.c.bf16 %v431_v6, %v430_v3 }
 0x11e   :  { %v434_v13 = vsel %vm77_vm3, %v432_v7, %v433_v9  ;;  %v435_v14 = vsel %vm77_vm3, %v433_v9, %v432_v7  ;;  %v440_v15 = vsel %vm88_vm8, %v438_v8, %v439_v11  ;;  %v441_v16 = vsel %vm88_vm8, %v439_v11, %v438_v8 }
 0x11f   :  { %v436_v17 = vsel %vm2260_vm1, 0.0, %v435_v14  ;;  %v437_v18 = vsel %vm2264_vm2, 0.0, %v434_v13  ;;  %v442_v19 = vsel %vm2324_vm9, 0.0, %v440_v15  ;;  %v443_v20 = vsel %vm2319_vm7, 0.0, %v441_v16 }
 0x120   :  { %v454_v22 = vpack.c.bf16 %v437_v18, %v436_v17  ;;  %v600_v23 = vpack.c.bf16 %v443_v20, %v442_v19  ;;  %v2130_v7 = vmov 1.0   ;;  %v2498_v8 = vsub.s32 0, %v2226_v10  ;;  %v2109_v19 = vld [vmem:[%s2613_s8] sm:$0xff]   ;;  %v2110_v20 = vld [vmem:[%s2613_s8 + $0x8] sm:$0xff]  }
 0x122   :  { %1888 = vmatmul.mubr.msk.bf16.vlgmr.msra.gmra.mrb[4].mxu1 %vm487_vm13, %v454_v22  ;;  %v2112_v22 = vld [vmem:[%s2613_s8 + $0x18] sm:$0xff]  }
 0x123   :  { %1892 = vmatpush3.bf16.msra.mxu1 %v2088_v21  ;;  %1899 = vmatprep.mubr.msk.bf16.mxu1 %vm2128_vm0, %v2127_v0  ;;  %v2111_v21 = vld [vmem:[%s2613_s8 + $0x10] sm:$0xff]  }
 0x124   :  { %1893 = vmatprep.subr.bf16.mxu1 %v2127_v0 }
 0x127   :  { %1894 = vmatpush3.bf16.msra.mxu1 %v2089_v24 }
 0x128   :  { %1895 = vmatprep.subr.bf16.mxu1 %v2127_v0 }
 0x12b   :  { %1896 = vmatpush3.bf16.msra.mxu1 %v2090_v27 }
 0x12c   :  { %1897 = vmatprep.subr.bf16.mxu1 %v2127_v0 }
 0x12f   :  { %1898 = vmatpush3.bf16.msra.mxu1 %v2091_v28 }
 0x130   :  { %1903 = vmatprep.subr.bf16.mxu1 %v2127_v0 }
 0x132   :  { %1900 = vmatmul.mubr.msk.bf16.vlgmr.msra.gmra.mrb[4].mxu1 %vm487_vm13, %v444_v12 }
 0x133   :  { %1904 = vmatpush3.bf16.msra.mxu1 %v2092_v29  ;;  %1911 = vmatprep.mubr.msk.bf16.mxu1 %vm2128_vm0, %v2127_v0 }
 0x134   :  { %1905 = vmatprep.subr.bf16.mxu1 %v2127_v0 }
 0x137   :  { %1906 = vmatpush3.bf16.msra.mxu1 %v2093_v30 }
 0x138   :  { %1907 = vmatprep.subr.bf16.mxu1 %v2127_v0 }
 0x13b   :  { %1908 = vmatpush3.bf16.msra.mxu1 %v2094_v31 }
 0x13c   :  { %1909 = vmatprep.subr.bf16.mxu1 %v2127_v0 }
 0x13f   :  { %1910 = vmatpush3.bf16.msra.mxu1 %v2095_v32  ;;  %v1694_v32 = vld [vmem:[%s2614_s6] ss:$0 sm:$0xff] }
 0x140   :  { %1915 = vmatprep.subr.bf16.mxu1 %v2127_v0 }
 0x142   :  { %1912 = vmatmul.mubr.msk.bf16.vlgmr.msra.gmra.mrb[4].mxu1 %vm487_vm13, %v600_v23 }
 0x143   :  { %1916 = vmatpush3.bf16.msra.mxu1 %v2096_v34  ;;  %1923 = vmatprep.mubr.msk.bf16.mxu1 %vm2128_vm0, %v2127_v0 }
 0x144   :  { %1917 = vmatprep.subr.bf16.mxu1 %v2127_v0 }
 0x147   :  { %1918 = vmatpush3.bf16.msra.mxu1 %v2097_v37 }
 0x148   :  { %1919 = vmatprep.subr.bf16.mxu1 %v2127_v0 }
 0x14b   :  { %1920 = vmatpush3.bf16.msra.mxu1 %v2098_v40 }
 0x14c   :  { %1921 = vmatprep.subr.bf16.mxu1 %v2127_v0 }
 0x14f   :  { %1922 = vmatpush3.bf16.msra.mxu1 %v2099_v47 }
 0x150   :  { %1927 = vmatprep.subr.bf16.mxu1 %v2127_v0 }
 0x152   :  { %1924 = vmatmul.mubr.msk.bf16.vlgmr.msra.gmra.mrb[4].mxu1 %vm487_vm13, %v705_v48 }
 0x153   :  { %1928 = vmatpush3.bf16.msra.mxu1 %v2100_v49  ;;  %1935 = vmatprep.mubr.msk.bf16.mxu1 %vm2128_vm0, %v2127_v0 }
 0x154   :  { %1929 = vmatprep.subr.bf16.mxu1 %v2127_v0 }
 0x157   :  { %1930 = vmatpush3.bf16.msra.mxu1 %v2101_v50  ;;  %v2113_v50 = vld [vmem:[%s2613_s8 + $0x20] sm:$0xff]  }
 0x158   :  { %1931 = vmatprep.subr.bf16.mxu1 %v2127_v0 }
 0x15b   :  { %1932 = vmatpush3.bf16.msra.mxu1 %v2102_v51 }
 0x15c   :  { %1933 = vmatprep.subr.bf16.mxu1 %v2127_v0 }
 0x15f   :  { %1934 = vmatpush3.bf16.msra.mxu1 %v2103_v52  ;;  %v2114_v52 = vld [vmem:[%s2613_s8 + $0x28] sm:$0xff]  }
 0x160   :  { %1939 = vmatprep.subr.bf16.mxu1 %v2127_v0 }
 0x162   :  { %1936 = vmatmul.mubr.msk.bf16.vlgmr.msra.gmra.mrb[4].mxu1 %vm487_vm13, %v680_v33 }
 0x163   :  { %1940 = vmatpush3.bf16.msra.mxu1 %v2105_v53  ;;  %1947 = vmatprep.mubr.msk.bf16.mxu1 %vm2128_vm0, %v2127_v0  ;;  %v2117_v53 = vld [vmem:[%s2613_s8 + $0x40] sm:$0xff]  }
 0x164   :  { %1941 = vmatprep.subr.bf16.mxu1 %v2127_v0 }
 0x167   :  { %1942 = vmatpush3.bf16.msra.mxu1 %v2106_v54 }
 0x168   :  { %1943 = vmatprep.subr.bf16.mxu1 %v2127_v0 }
 0x16b   :  { %1944 = vmatpush3.bf16.msra.mxu1 %v2107_v57 }
 0x16c   :  { %1945 = vmatprep.subr.bf16.mxu1 %v2127_v0 }
 0x16f   :  { %1946 = vmatpush3.bf16.msra.mxu1 %v2108_v60 }
 0x172   :  { %1948 = vmatmul.mubr.msk.bf16.vlgmr.msra.gmra.mrb[4].mxu1 %vm487_vm13, %v855_v63 }
 0x245   :  { %v926_v2 = vpop.f32.mrb[4].mxu1 }
 0x246   :  { %v1949_v3 = vpop.f32.mrb[5].mxu1 }
 0x247   :  { %v929_v4 = vpop.f32.mrb[6].mxu1 }
 0x248   :  { %v2016_v5 = vpack.c.bf16 %v929_v4, %v926_v2  ;;  %v1950_v6 = vpop.f32.mrb[7].mxu1 }
 0x24a   :  { %2017 = vmatpush3.bf16.msra.mxu0 %v2016_v5 }
 0x24b   :  { %2018 = vmatprep.subr.bf16.mxu0 %v2129_v1 }
 0x24d   :  { %1956 = vmatmul.mubr.msk.f32.vlgmr.msra.gmra.mrb[8].mxu0 %vm939_vm14, %v2130_v7 }
 0x24e   :  { %1962 = vmatprep.mubr.msk.f32.mxu0 %vm2128_vm0, %v2127_v0 }
 0x320   :  { %v1009_v9 = vpop.f32.mrb[8].mxu0 }
 0x321   :  { %v1013_v11 = vmul.f32 0.0625, %v1009_v9  ;;  %v1957_v12 = vpop.f32.mrb[9].mxu0 }
 0x323   :  { %v1017_v13 = vrot.slane %v1013_v11, %v2498_v8 }
 0x325   :  { %v1018_v14 = vsub.f32 %v926_v2, %v1017_v13  ;;  %v1019_v15 = vsub.f32 %v929_v4, %v1017_v13 }
 0x327   :  { %v1020_v16 = vmul.f32 %v1018_v14, %v1018_v14  ;;  %v1021_v17 = vmul.f32 %v1019_v15, %v1019_v15 }
 0x329   :  { %v2019_v18 = vpack.c.bf16 %v1021_v17, %v1020_v16 }
 0x32b   :  { %2020 = vmatpush3.bf16.msra.mxu0 %v2019_v18 }
 0x32c   :  { %1965 = vmatprep.subr.bf16.mxu0 %v2127_v0 }
 0x32e   :  { %1963 = vmatmul.mubr.msk.f32.vlgmr.msra.gmra.mrb[10].mxu0 %vm939_vm14, %v2130_v7 }
 0x32f   :  { %1973 = vmatprep.mubr.msk.bf16.mxu0 %vm2128_vm0, %v2127_v0  ;;  %1966 = vmatpush3.bf16.msra.mxu0 %v2109_v19 }
 0x330   :  { %1967 = vmatprep.subr.bf16.mxu0 %v2127_v0 }
 0x333   :  { %1968 = vmatpush3.bf16.msra.mxu0 %v2110_v20 }
 0x334   :  { %1969 = vmatprep.subr.bf16.mxu0 %v2127_v0 }
 0x337   :  { %1970 = vmatpush3.bf16.msra.mxu0 %v2111_v21 }
 0x338   :  { %1971 = vmatprep.subr.bf16.mxu0 %v2127_v0 }
 0x33b   :  { %1972 = vmatpush3.bf16.msra.mxu0 %v2112_v22  ;;  %v1729_v22 = vld [vmem:[%s2616_s9] ss:$0 sm:$0xff] }
 0x33c   :  { %1977 = vmatprep.subr.bf16.mxu0 %v2127_v0 }
 0x401   :  { %v1088_v23 = vpop.f32.mrb[10].mxu0 }
 0x402   :  { %v1092_v24 = vmul.f32 0.0625, %v1088_v23  ;;  %v1964_v27 = vpop.f32.mrb[11].mxu0 }
 0x403   :  { %v1730_v27 = vld [vmem:[%s2617_s10] ss:$0 sm:$0xff] }
 0x404   :  { %v1093_v28 = vmax.f32 %v1092_v24, 0.0 }
 0x406   :  { %v1094_v29 = vadd.f32 1e-05, %v1093_v28 }
 0x408   :  { %2123 = vrsqrt.f32 %v1094_v29 }
 0x412   :  { %v2124_v30 = vpop.eup %2123 }
 0x413   :  { %v1099_v31 = vrot.slane %v2124_v30, %v2498_v8 }
 0x415   :  { %v1100_v33 = vmul.f32 %v1099_v31, %v1018_v14  ;;  %v1101_v34 = vmul.f32 %v1099_v31, %v1019_v15 }
 0x417   :  { %v1108_v36 = vmul.f32 %v1694_v32, %v1100_v33  ;;  %v1109_v37 = vmul.f32 %v1694_v32, %v1101_v34 }
 0x419   :  { %v1116_v38 = vadd.f32 %v1695_v35, %v1108_v36  ;;  %v1117_v39 = vadd.f32 %v1695_v35, %v1109_v37 }
 0x41b   :  { %v1118_v40 = vmax.f32 %v1116_v38, 0.0  ;;  %v1119_v43 = vmax.f32 %v1117_v39, 0.0 }
 0x41d   :  { %v1120_v44 = vrot.slane %v1118_v40, 7  ;;  %v1121_v45 = vrot.slane %v1119_v43, 7  ;;  %v1132_v54 = vpack.c.bf16 %v1119_v43, %v1118_v40  ;;  %v1126_v56 = vrot.slane %v1118_v40, 1 }
 0x41e   :  { %v1127_v57 = vrot.slane %v1119_v43, 1 }
 0x41f   :  { %v1122_v46 = vsel %vm77_vm3, %v1120_v44, %v1121_v45  ;;  %v1123_v47 = vsel %vm77_vm3, %v1121_v45, %v1120_v44 }
 0x420   :  { %v1124_v48 = vsel %vm2260_vm1, 0.0, %v1123_v47  ;;  %v1125_v49 = vsel %vm2264_vm2, 0.0, %v1122_v46  ;;  %v1128_v59 = vsel %vm88_vm8, %v1126_v56, %v1127_v57  ;;  %v1129_v60 = vsel %vm88_vm8, %v1127_v57, %v1126_v56 }
 0x421   :  { %v1142_v51 = vpack.c.bf16 %v1125_v49, %v1124_v48  ;;  %v1130_v62 = vsel %vm2324_vm9, 0.0, %v1128_v59  ;;  %v1131_v63 = vsel %vm2319_vm7, 0.0, %v1129_v60 }
 0x422   :  { %v1287_v2 = vpack.c.bf16 %v1131_v63, %v1130_v62 }
 0x423   :  { %1974 = vmatmul.mubr.msk.bf16.vlgmr.msra.gmra.mrb[12].mxu0 %vm487_vm13, %v1142_v51 }
 0x424   :  { %1978 = vmatpush3.bf16.msra.mxu0 %v2113_v50  ;;  %1985 = vmatprep.mubr.msk.bf16.mxu0 %vm2128_vm0, %v2127_v0 }
 0x425   :  { %1979 = vmatprep.subr.bf16.mxu0 %v2127_v0 }
 0x428   :  { %1980 = vmatpush3.bf16.msra.mxu0 %v2114_v52 }
 0x429   :  { %1981 = vmatprep.subr.bf16.mxu0 %v2127_v0 }
 0x42c   :  { %1982 = vmatpush3.bf16.msra.mxu0 %v2115_v25 }
 0x42d   :  { %1983 = vmatprep.subr.bf16.mxu0 %v2127_v0 }
 0x430   :  { %1984 = vmatpush3.bf16.msra.mxu0 %v2116_v26 }
 0x431   :  { %1989 = vmatprep.subr.bf16.mxu0 %v2127_v0 }
 0x433   :  { %1986 = vmatmul.mubr.msk.bf16.vlgmr.msra.gmra.mrb[12].mxu0 %vm487_vm13, %v1132_v54 }
 0x434   :  { %1990 = vmatpush3.bf16.msra.mxu0 %v2117_v53  ;;  %1997 = vmatprep.mubr.msk.bf16.mxu0 %vm2128_vm0, %v2127_v0 }
 0x435   :  { %1991 = vmatprep.subr.bf16.mxu0 %v2127_v0 }
 0x438   :  { %1992 = vmatpush3.bf16.msra.mxu0 %v2118_v55 }
 0x439   :  { %1993 = vmatprep.subr.bf16.mxu0 %v2127_v0 }
 0x43c   :  { %1994 = vmatpush3.bf16.msra.mxu0 %v2119_v58 }
 0x43d   :  { %1995 = vmatprep.subr.bf16.mxu0 %v2127_v0 }
 0x440   :  { %1996 = vmatpush3.bf16.msra.mxu0 %v2120_v61 }
 0x441   :  { %2021 = vmatprep.subr.bf16.mxu0 %v2129_v1 }
 0x443   :  { %1998 = vmatmul.mubr.msk.bf16.vlgmr.msra.gmra.mrb[12].mxu0 %vm487_vm13, %v1287_v2 }
 0x444   :  { %2005 = vmatprep.mubr.msk.f32.mxu0 %vm2128_vm0, %v2127_v0 }
 0x516   :  { %v1358_v10 = vpop.f32.mrb[12].mxu0 }
 0x517   :  { %v1999_v3 = vpop.f32.mrb[13].mxu0 }
 0x518   :  { %v1361_v4 = vpop.f32.mrb[14].mxu0 }
 0x519   :  { %v2022_v5 = vpack.c.bf16 %v1361_v4, %v1358_v10  ;;  %v2000_v6 = vpop.f32.mrb[15].mxu0 }
 0x51b   :  { %2023 = vmatpush3.bf16.msra.mxu0 %v2022_v5 }
 0x51c   :  { %2024 = vmatprep.subr.bf16.mxu0 %v2129_v1 }
 0x51e   :  { %2006 = vmatmul.mubr.msk.f32.vlgmr.msra.gmra.mrb[16].mxu0 %vm939_vm14, %v2130_v7 }
 0x51f   :  { %2012 = vmatprep.mubr.msk.f32.mxu0 %vm2128_vm0, %v2127_v0 }
 0x5f1   :  { %v1435_v41 = vpop.f32.mrb[16].mxu0 }
 0x5f2   :  { %v1439_v42 = vmul.f32 0.0625, %v1435_v41  ;;  %v2007_v9 = vpop.f32.mrb[17].mxu0 }
 0x5f4   :  { %v1443_v11 = vrot.slane %v1439_v42, %v2498_v8 }
 0x5f6   :  { %v1444_v12 = vsub.f32 %v1358_v10, %v1443_v11  ;;  %v1445_v13 = vsub.f32 %v1361_v4, %v1443_v11 }
 0x5f8   :  { %v1446_v14 = vmul.f32 %v1444_v12, %v1444_v12  ;;  %v1447_v15 = vmul.f32 %v1445_v13, %v1445_v13 }
 0x5fa   :  { %v2025_v16 = vpack.c.bf16 %v1447_v15, %v1446_v14 }
 0x5fc   :  { %2026 = vmatpush3.bf16.msra.mxu0 %v2025_v16 }
 0x5ff   :  { %2013 = vmatmul.mubr.msk.f32.vlgmr.msra.gmra.mrb[18].mxu0 %vm939_vm14, %v2130_v7 }
 0x6d2   :  { %v1514_v1 = vpop.f32.mrb[18].mxu0 }
 0x6d3   :  { %v1518_v17 = vmul.f32 0.0625, %v1514_v1  ;;  %v2014_v18 = vpop.f32.mrb[19].mxu0 }
 0x6d5   :  { %v1519_v19 = vmax.f32 %v1518_v17, 0.0 }
 0x6d7   :  { %v1520_v20 = vadd.f32 1e-05, %v1519_v19 }
 0x6d9   :  { %2125 = vrsqrt.f32 %v1520_v20 }
 0x6e3   :  { %v2126_v0 = vpop.eup %2125 }
 0x6e4   :  { %v1525_v21 = vrot.slane %v2126_v0, %v2498_v8 }
 0x6e6   :  { %v1526_v23 = vmul.f32 %v1525_v21, %v1444_v12  ;;  %v1527_v24 = vmul.f32 %v1525_v21, %v1445_v13 }
 0x6e8   :  { %v1534_v7 = vmul.f32 %v1729_v22, %v1526_v23  ;;  %v1535_v28 = vmul.f32 %v1729_v22, %v1527_v24 }
 0x6ea   :  { %v1542_v29 = vadd.f32 %v1730_v27, %v1534_v7  ;;  %v1543_v30 = vadd.f32 %v1730_v27, %v1535_v28 }
 0x6ec   :  { %v1544_v31 = vmax.f32 %v1542_v29, 0.0  ;;  %v1545_v32 = vmax.f32 %v1543_v30, 0.0 }
 0x6ee   :  { %v1733_v33 = vpack.c.bf16 %v1544_v31, %v1544_v31  ;;  %v1734_v34 = vpack.c.bf16 %v1545_v32, %v1545_v32 }
 0x6f0   :  { %1555 = vst.msk [vmem:[%s2618_s11] sm:$0xf] %vm1554_vm15, %v1733_v33  ;;  %1556 = vst.msk [vmem:[%s2618_s11 + $0x4] sm:$0xf] %vm1554_vm15, %v1734_v34 }

// kernel: unet_forward.15
= control target key start
LH: loop header
LB: loop body
LE: loop exit
PB: predicated region body
PF: predicated region fallthrough
CT: control target
= control target key end

     0   :  { %v39_v5 = vlaneseq  ;;  %vm2776_vm4 = vmmov 0   ;;  %vm1244_vm5 = vcmask 64512   ;;  %s3382_s2 = inlined_call_operand.vmem [shape: bf16[3,256,128], index: 2, kind: input, shape index: {}]   ;;  %s3383_s0 = inlined_call_operand.vmem [shape: bf16[8,256], index: 0, kind: input, shape index: {}]   ;;  %s3384_s4 = inlined_call_operand.vmem [shape: bf16[3,128,128], index: 4, kind: input, shape index: {}]   ;;  %s3385_s5 = inlined_call_operand.vmem [shape: bf16[3,128,128], index: 5, kind: input, shape index: {}]   ;;  %s3386_s3 = inlined_call_operand.vmem [shape: f32[1,128], index: 3, kind: input, shape index: {}]   ;;  %s3387_s1 = inlined_call_operand.vmem [shape: bf16[8,128], index: 1, kind: input, shape index: {}]   ;;  %s3388_s8 = inlined_call_operand.vmem [shape: bf16[3,128,128], index: 8, kind: input, shape index: {}]   ;;  %s3389_s6 = inlined_call_operand.vmem [shape: f32[1,128], index: 6, kind: input, shape index: {}]   ;;  %s3390_s7 = inlined_call_operand.vmem [shape: f32[1,128], index: 7, kind: input, shape index: {}]   ;;  %s3391_s9 = inlined_call_operand.vmem [shape: f32[1,128], index: 9, kind: input, shape index: {}]   ;;  %s3392_s10 = inlined_call_operand.vmem [shape: f32[1,128], index: 10, kind: input, shape index: {}]   ;;  %s3393_s11 = inlined_call_operand.vmem [shape: bf16[8,128], index: 11, kind: output, shape index: {}]  }
   0x1   :  { %v2649_v0 = vld [vmem:[%s3382_s2 + $0x40] sm:$0xff]   ;;  %v2651_v2 = vld [vmem:[%s3382_s2 + $0x48] sm:$0xff]   ;;  %v2653_v4 = vld [vmem:[%s3382_s2 + $0x50] sm:$0xff]  }
   0x2   :  { %v2650_v1 = vld [vmem:[%s3382_s2] sm:$0xff]   ;;  %2263 = vmatprep.subr.bf16.mxu0 %v2649_v0  ;;  %v2652_v3 = vld [vmem:[%s3382_s2 + $0x8] sm:$0xff]   ;;  %v2654_v6 = vld [vmem:[%s3382_s2 + $0x10] sm:$0xff]   ;;  %v2859_v8 = vshrl.u32 %v39_v5, 7 }
   0x3   :  { %2264 = vmatpush3.bf16.msra.mxu0 %v2650_v1  ;;  %v2655_v7 = vld [vmem:[%s3382_s2 + $0x58] sm:$0xff]   ;;  %v2657_v10 = vld [vmem:[%s3382_s2 + $0x60] sm:$0xff]   ;;  %v2659_v13 = vld [vmem:[%s3382_s2 + $0x68] sm:$0xff]  }
   0x4   :  { %2265 = vmatprep.subr.bf16.mxu0 %v2651_v2  ;;  %v2656_v9 = vld [vmem:[%s3382_s2 + $0x18] sm:$0xff]   ;;  %v45_v11 = vand.u32 3, %v2859_v8  ;;  %v2658_v12 = vld [vmem:[%s3382_s2 + $0x20] sm:$0xff]   ;;  %v2660_v16 = vld [vmem:[%s3382_s2 + $0x28] sm:$0xff]   ;;  %v2775_v2 = vmov 0.0  }
   0x5   :  { %v2877_v14 = vld [vmem:[%s3383_s0] sm:$0xff]  ;;  %v2661_v17 = vld [vmem:[%s3382_s2 + $0x70] sm:$0xff]   ;;  %v2663_v23 = vld [vmem:[%s3382_s2 + $0x78] sm:$0xff]   ;;  %2418 = vmatprep.subr.bf16.mxu1 %v2775_v2  ;;  %2434 = vmatprep.mubr.msk.bf16.mxu1 %vm2776_vm4, %v2775_v2 }
   0x6   :  { %v57_v15 = vunpack.c.h.bf16 %v2877_v14  ;;  %vm2261_vm0 = vcmp.ne.s32.totalorder %v45_v11, 0  ;;  %v56_v21 = vunpack.c.l.bf16 %v2877_v14  ;;  %v2662_v22 = vld [vmem:[%s3382_s2 + $0x30] sm:$0xff]   ;;  %v2664_v25 = vld [vmem:[%s3382_s2 + $0x38] sm:$0xff]   ;;  %v2665_v26 = vld [vmem:[%s3382_s2 + $0xc0] sm:$0xff]   ;;  %v1979_v29 = vcombine.high %v2877_v14, %v2877_v14 }
   0x7   :  { %2266 = vmatpush3.bf16.msra.mxu0 %v2652_v3  ;;  %vm2886_vm1 = vmpackc.low %vm2261_vm0, %vm2261_vm0  ;;  %v2666_v28 = vld [vmem:[%s3382_s2 + $0x80] sm:$0xff]   ;;  %v2667_v30 = vld [vmem:[%s3382_s2 + $0xc8] sm:$0xff]   ;;  %vm2262_vm2 = vcmp.ne.s32.totalorder %v45_v11, 3  ;;  %v1978_v46 = vcombine.low %v2877_v14, %v2877_v14 }
   0x8   :  { %2267 = vmatprep.subr.bf16.mxu0 %v2653_v4  ;;  %v60_v18 = vrot.slane %v57_v15, 7  ;;  %v59_v24 = vrot.slane %v56_v21, 7  ;;  %v2668_v31 = vld [vmem:[%s3382_s2 + $0x88] sm:$0xff]   ;;  %v2669_v32 = vld [vmem:[%s3382_s2 + $0xd0] sm:$0xff]   ;;  %v2671_v34 = vld [vmem:[%s3382_s2 + $0xd8] sm:$0xff]   ;;  %v66_v43 = vrot.slane %v57_v15, 1 }
   0x9   :  { %v2670_v33 = vld [vmem:[%s3382_s2 + $0x90] sm:$0xff]   ;;  %v2672_v35 = vld [vmem:[%s3382_s2 + $0x98] sm:$0xff]   ;;  %v2673_v36 = vld [vmem:[%s3382_s2 + $0xe0] sm:$0xff]   ;;  %v65_v63 = vrot.slane %v56_v21, 1 }
   0xa   :  { %v1971_v20 = vpack.c.bf16 %v60_v18, %v60_v18  ;;  %v1976_v27 = vpack.c.bf16 %v59_v24, %v59_v24  ;;  %v2674_v37 = vld [vmem:[%s3382_s2 + $0xa0] sm:$0xff]   ;;  %v2675_v38 = vld [vmem:[%s3382_s2 + $0xe8] sm:$0xff]   ;;  %v2677_v40 = vld [vmem:[%s3382_s2 + $0xf0] sm:$0xff]   ;;  %v2047_v47 = vpack.c.bf16 %v66_v43, %v66_v43 }
   0xb   :  { %2268 = vmatpush3.bf16.msra.mxu0 %v2654_v6  ;;  %v2676_v39 = vld [vmem:[%s3382_s2 + $0xa8] sm:$0xff]   ;;  %v2678_v41 = vld [vmem:[%s3382_s2 + $0xb0] sm:$0xff]   ;;  %v2679_v42 = vld [vmem:[%s3382_s2 + $0xf8] sm:$0xff]   ;;  %v2052_v1 = vpack.c.bf16 %v65_v63, %v65_v63 }
   0xc   :  { %2269 = vmatprep.subr.bf16.mxu0 %v2655_v7  ;;  %1972 = vmatprep.mubr.msk.bf16.mxu0 %vm2886_vm1, %v1971_v20  ;;  %v2680_v44 = vld [vmem:[%s3382_s2 + $0xb8] sm:$0xff]   ;;  %v2683_v45 = vld [vmem:[%s3382_s2 + $0x140] sm:$0xff]   ;;  %v2685_v49 = vld [vmem:[%s3382_s2 + $0x148] sm:$0xff]  }
   0xd   :  { %v2684_v48 = vld [vmem:[%s3382_s2 + $0x100] sm:$0xff]   ;;  %vm2967_vm3 = vmpackc.low %vm2262_vm2, %vm2262_vm2  ;;  %v2686_v51 = vld [vmem:[%s3382_s2 + $0x108] sm:$0xff]  }
   0xe   :  { %v2687_v52 = vld [vmem:[%s3382_s2 + $0x150] sm:$0xff]   ;;  %v2689_v54 = vld [vmem:[%s3382_s2 + $0x158] sm:$0xff]   ;;  %v2691_v56 = vld [vmem:[%s3382_s2 + $0x160] sm:$0xff]  }
   0xf   :  { %2270 = vmatpush3.bf16.msra.mxu0 %v2656_v9  ;;  %v2688_v53 = vld [vmem:[%s3382_s2 + $0x110] sm:$0xff]   ;;  %v2690_v55 = vld [vmem:[%s3382_s2 + $0x118] sm:$0xff]   ;;  %v2692_v57 = vld [vmem:[%s3382_s2 + $0x120] sm:$0xff]  }
  0x10   :  { %2271 = vmatprep.subr.bf16.mxu0 %v2657_v10  ;;  %v2693_v58 = vld [vmem:[%s3382_s2 + $0x168] sm:$0xff]   ;;  %v2695_v60 = vld [vmem:[%s3382_s2 + $0x170] sm:$0xff]   ;;  %v2697_v62 = vld [vmem:[%s3382_s2 + $0x178] sm:$0xff]  }
  0x11   :  { %v2694_v59 = vld [vmem:[%s3382_s2 + $0x128] sm:$0xff]   ;;  %v2696_v61 = vld [vmem:[%s3382_s2 + $0x130] sm:$0xff]   ;;  %v2698_v0 = vld [vmem:[%s3382_s2 + $0x138] sm:$0xff]  }
  0x12   :  { %v2699_v3 = vld [vmem:[%s3384_s4] sm:$0xff]   ;;  %v2700_v4 = vld [vmem:[%s3384_s4 + $0x8] sm:$0xff]   ;;  %v2701_v5 = vld [vmem:[%s3384_s4 + $0x10] sm:$0xff]  }
  0x13   :  { %2272 = vmatpush3.bf16.msra.mxu0 %v2658_v12  ;;  %2419 = vmatpush3.bf16.msra.mxu1 %v2699_v3  ;;  %v2702_v6 = vld [vmem:[%s3384_s4 + $0x18] sm:$0xff]   ;;  %v2703_v7 = vld [vmem:[%s3384_s4 + $0x20] sm:$0xff]   ;;  %v2704_v9 = vld [vmem:[%s3384_s4 + $0x28] sm:$0xff]  }
  0x14   :  { %2273 = vmatprep.subr.bf16.mxu0 %v2659_v13  ;;  %2420 = vmatprep.subr.bf16.mxu1 %v2775_v2  ;;  %v2705_v10 = vld [vmem:[%s3384_s4 + $0x30] sm:$0xff]   ;;  %v2706_v11 = vld [vmem:[%s3384_s4 + $0x38] sm:$0xff]   ;;  %v2731_v3 = vld [vmem:[%s3385_s5 + $0x40] sm:$0xff]  }
  0x15   :  { %v2758_v19 = vld [vmem:[%s3388_s8 + $0x58] sm:$0xff]  }
  0x17   :  { %2274 = vmatpush3.bf16.msra.mxu0 %v2660_v16  ;;  %2421 = vmatpush3.bf16.msra.mxu1 %v2700_v4  ;;  %v2732_v4 = vld [vmem:[%s3385_s5 + $0x48] sm:$0xff]  }
  0x18   :  { %2275 = vmatprep.subr.bf16.mxu0 %v2661_v17  ;;  %2422 = vmatprep.subr.bf16.mxu1 %v2775_v2 }
  0x1b   :  { %2276 = vmatpush3.bf16.msra.mxu0 %v2662_v22  ;;  %2423 = vmatpush3.bf16.msra.mxu1 %v2701_v5  ;;  %v2733_v5 = vld [vmem:[%s3385_s5 + $0x50] sm:$0xff]  }
  0x1c   :  { %2277 = vmatprep.subr.bf16.mxu0 %v2663_v23  ;;  %2424 = vmatprep.subr.bf16.mxu1 %v2775_v2 }
  0x1f   :  { %2278 = vmatpush3.bf16.msra.mxu0 %v2664_v25  ;;  %2425 = vmatpush3.bf16.msra.mxu1 %v2702_v6  ;;  %v2734_v6 = vld [vmem:[%s3385_s5 + $0x58] sm:$0xff]  }
  0x20   :  { %2285 = vmatprep.subr.bf16.mxu0 %v2665_v26  ;;  %2426 = vmatprep.subr.bf16.mxu1 %v2775_v2 }
  0x22   :  { %1977 = vmatmul.mubr.msk.bf16.vlgmr.msra.gmra.mrb[0].mxu0 %vm2886_vm1, %v1976_v27 }
  0x23   :  { %2286 = vmatpush3.bf16.msra.mxu0 %v2666_v28  ;;  %409 = vmatprep.mubr.bf16.mxu0 %v1979_v29  ;;  %v2054_v28 = vld [vmem:[%s3386_s3] ss:$0 sm:$0xff] }
  0x24   :  { %2287 = vmatprep.subr.bf16.mxu0 %v2667_v30  ;;  %2427 = vmatpush3.bf16.msra.mxu1 %v2703_v7  ;;  %v2735_v7 = vld [vmem:[%s3385_s5 + $0x60] sm:$0xff]  }
  0x25   :  { %2428 = vmatprep.subr.bf16.mxu1 %v2775_v2 }
  0x27   :  { %2288 = vmatpush3.bf16.msra.mxu0 %v2668_v31 }
  0x28   :  { %2289 = vmatprep.subr.bf16.mxu0 %v2669_v32  ;;  %2429 = vmatpush3.bf16.msra.mxu1 %v2704_v9  ;;  %v2736_v9 = vld [vmem:[%s3385_s5 + $0x68] sm:$0xff]  }
  0x29   :  { %2430 = vmatprep.subr.bf16.mxu1 %v2775_v2 }
  0x2b   :  { %2290 = vmatpush3.bf16.msra.mxu0 %v2670_v33  ;;  %v2707_v33 = vld [vmem:[%s3384_s4 + $0x40] sm:$0xff]  }
  0x2c   :  { %2291 = vmatprep.subr.bf16.mxu0 %v2671_v34  ;;  %2431 = vmatpush3.bf16.msra.mxu1 %v2705_v10  ;;  %v2737_v10 = vld [vmem:[%s3385_s5 + $0x70] sm:$0xff]  }
  0x2d   :  { %2432 = vmatprep.subr.bf16.mxu1 %v2775_v2 }
  0x2f   :  { %2292 = vmatpush3.bf16.msra.mxu0 %v2672_v35  ;;  %v2708_v35 = vld [vmem:[%s3384_s4 + $0x48] sm:$0xff]  }
  0x30   :  { %2293 = vmatprep.subr.bf16.mxu0 %v2673_v36  ;;  %2433 = vmatpush3.bf16.msra.mxu1 %v2706_v11  ;;  %v2709_v36 = vld [vmem:[%s3384_s4 + $0x50] sm:$0xff]   ;;  %v2738_v11 = vld [vmem:[%s3385_s5 + $0x78] sm:$0xff]  }
  0x31   :  { %2438 = vmatprep.subr.bf16.mxu1 %v2775_v2 }
  0x33   :  { %2294 = vmatpush3.bf16.msra.mxu0 %v2674_v37  ;;  %v2710_v37 = vld [vmem:[%s3384_s4 + $0x58] sm:$0xff]  }
  0x34   :  { %2295 = vmatprep.subr.bf16.mxu0 %v2675_v38  ;;  %v2711_v38 = vld [vmem:[%s3384_s4 + $0x60] sm:$0xff]  }
  0x37   :  { %2296 = vmatpush3.bf16.msra.mxu0 %v2676_v39  ;;  %v2712_v39 = vld [vmem:[%s3384_s4 + $0x68] sm:$0xff]  }
  0x38   :  { %2297 = vmatprep.subr.bf16.mxu0 %v2677_v40  ;;  %v2713_v40 = vld [vmem:[%s3384_s4 + $0x70] sm:$0xff]  }
  0x3b   :  { %2298 = vmatpush3.bf16.msra.mxu0 %v2678_v41  ;;  %v2714_v41 = vld [vmem:[%s3384_s4 + $0x78] sm:$0xff]  }
  0x3c   :  { %2299 = vmatprep.subr.bf16.mxu0 %v2679_v42  ;;  %v2715_v42 = vld [vmem:[%s3384_s4 + $0x80] sm:$0xff]  }
  0x3f   :  { %2300 = vmatpush3.bf16.msra.mxu0 %v2680_v44  ;;  %v2716_v44 = vld [vmem:[%s3384_s4 + $0x88] sm:$0xff]  }
  0x40   :  { %2307 = vmatprep.subr.bf16.mxu0 %v2683_v45  ;;  %v2717_v45 = vld [vmem:[%s3384_s4 + $0x90] sm:$0xff]  }
  0x42   :  { %410 = vmatmul.mubr.bf16.vlgmr.msra.gmra.mrb[4].mxu0 %v1978_v46  ;;  %v2718_v46 = vld [vmem:[%s3384_s4 + $0x98] sm:$0xff]  }
  0x43   :  { %2308 = vmatpush3.bf16.msra.mxu0 %v2684_v48  ;;  %2048 = vmatprep.mubr.msk.bf16.mxu0 %vm2967_vm3, %v2047_v47  ;;  %v2719_v47 = vld [vmem:[%s3384_s4 + $0xa0] sm:$0xff]   ;;  %v2720_v48 = vld [vmem:[%s3384_s4 + $0xa8] sm:$0xff]  }
  0x44   :  { %2309 = vmatprep.subr.bf16.mxu0 %v2685_v49  ;;  %v2721_v49 = vld [vmem:[%s3384_s4 + $0xb0] sm:$0xff]  }
  0x47   :  { %2310 = vmatpush3.bf16.msra.mxu0 %v2686_v51  ;;  %v2722_v51 = vld [vmem:[%s3384_s4 + $0xb8] sm:$0xff]  }
  0x48   :  { %2311 = vmatprep.subr.bf16.mxu0 %v2687_v52 }
  0x4b   :  { %2312 = vmatpush3.bf16.msra.mxu0 %v2688_v53  ;;  %v2723_v53 = vld [vmem:[%s3385_s5] sm:$0xff]  }
  0x4c   :  { %2313 = vmatprep.subr.bf16.mxu0 %v2689_v54 }
  0x4f   :  { %2314 = vmatpush3.bf16.msra.mxu0 %v2690_v55  ;;  %v2724_v55 = vld [vmem:[%s3385_s5 + $0x8] sm:$0xff]  }
  0x50   :  { %2315 = vmatprep.subr.bf16.mxu0 %v2691_v56  ;;  %v2725_v56 = vld [vmem:[%s3385_s5 + $0x10] sm:$0xff]  }
  0x53   :  { %2316 = vmatpush3.bf16.msra.mxu0 %v2692_v57  ;;  %v2726_v57 = vld [vmem:[%s3385_s5 + $0x18] sm:$0xff]  }
  0x54   :  { %2317 = vmatprep.subr.bf16.mxu0 %v2693_v58  ;;  %v2727_v58 = vld [vmem:[%s3385_s5 + $0x20] sm:$0xff]  }
  0x57   :  { %2318 = vmatpush3.bf16.msra.mxu0 %v2694_v59  ;;  %v2728_v59 = vld [vmem:[%s3385_s5 + $0x28] sm:$0xff]  }
  0x58   :  { %2319 = vmatprep.subr.bf16.mxu0 %v2695_v60  ;;  %v918_v60 = vld [vmem:[%s3387_s1] sm:$0xf] }
  0x5b   :  { %2320 = vmatpush3.bf16.msra.mxu0 %v2696_v61  ;;  %v919_v61 = vunpack.c.l.bf16 %v918_v60 }
  0x5c   :  { %2321 = vmatprep.subr.bf16.mxu0 %v2697_v62  ;;  %v2729_v62 = vld [vmem:[%s3385_s5 + $0x30] sm:$0xff]  }
  0x5d   :  { %v920_v63 = vrot.slane %v919_v61, 7 }
  0x5f   :  { %2322 = vmatpush3.bf16.msra.mxu0 %v2698_v0  ;;  %v2730_v0 = vld [vmem:[%s3385_s5 + $0x38] sm:$0xff]  }
  0x60   :  { %2548 = vmatprep.subr.bf16.mxu0 %v2775_v2 }
  0x62   :  { %2053 = vmatmul.mubr.msk.bf16.vlgmr.msra.gmra.mrb[8].mxu0 %vm2967_vm3, %v2052_v1  ;;  %v2148_v1 = vpack.c.bf16 %v920_v63, %v920_v63  ;;  %v2761_v63 = vld [vmem:[%s3388_s8 + $0x70] sm:$0xff]  }
  0x63   :  { %2564 = vmatprep.mubr.msk.bf16.mxu0 %vm2776_vm4, %v2775_v2 }
  0xf5   :  { %v2279_v12 = vpop.f32.mrb[0].mxu0 }
  0xf6   :  { %v2280_v13 = vpop.f32.mrb[1].mxu0 }
  0xf7   :  { %v2281_v14 = vadd.f32 %v2280_v13, %v2279_v12  ;;  %v2282_v15 = vpop.f32.mrb[2].mxu0  ;;  %v2739_v12 = vld [vmem:[%s3385_s5 + $0x80] sm:$0xff]   ;;  %v2740_v13 = vld [vmem:[%s3385_s5 + $0x88] sm:$0xff]  }
  0xf8   :  { %v2283_v16 = vpop.f32.mrb[3].mxu0  ;;  %v2742_v15 = vld [vmem:[%s3385_s5 + $0x98] sm:$0xff]  }
  0xf9   :  { %v2743_v16 = vld [vmem:[%s3385_s5 + $0xa0] sm:$0xff]  }
 0x115   :  { %v2301_v17 = vpop.f32.mrb[4].mxu0 }
 0x116   :  { %v2302_v18 = vpop.f32.mrb[5].mxu0 }
 0x117   :  { %v2303_v20 = vadd.f32 %v2302_v18, %v2301_v17  ;;  %v2304_v21 = vpop.f32.mrb[6].mxu0  ;;  %v2744_v17 = vld [vmem:[%s3385_s5 + $0xa8] sm:$0xff]   ;;  %v2745_v18 = vld [vmem:[%s3385_s5 + $0xb0] sm:$0xff]  }
 0x118   :  { %v2305_v22 = vpop.f32.mrb[7].mxu0  ;;  %v2746_v21 = vld [vmem:[%s3385_s5 + $0xb8] sm:$0xff]  }
 0x119   :  { %v412_v23 = vadd.f32 %v2303_v20, %v2281_v14  ;;  %v2741_v14 = vld [vmem:[%s3385_s5 + $0x90] sm:$0xff]   ;;  %v922_v20 = vrot.slane %v919_v61, 1  ;;  %v2759_v61 = vld [vmem:[%s3388_s8 + $0x60] sm:$0xff]  }
 0x11b   :  { %v2185_v22 = vpack.c.bf16 %v922_v20, %v922_v20 }
 0x135   :  { %v2323_v24 = vpop.f32.mrb[8].mxu0 }
 0x136   :  { %v2324_v25 = vpop.f32.mrb[9].mxu0 }
 0x137   :  { %v2325_v26 = vadd.f32 %v2324_v25, %v2323_v24  ;;  %v2326_v27 = vpop.f32.mrb[10].mxu0 }
 0x138   :  { %v2327_v29 = vpop.f32.mrb[11].mxu0 }
 0x139   :  { %v588_v30 = vadd.f32 %v2325_v26, %v412_v23  ;;  %v2777_v26 = vmov 1.0  }
 0x13b   :  { %v595_v31 = vadd.f32 %v2054_v28, %v588_v30  ;;  %v3246_v28 = vsub.s32 0, %v2859_v8  ;;  %v2748_v8 = vld [vmem:[%s3388_s8 + $0x8] sm:$0xff]  }
 0x13d   :  { %v596_v32 = vrot.slane %v595_v31, 7  ;;  %v600_v43 = vpack.c.bf16 %v595_v31, %v595_v31  ;;  %v598_v52 = vrot.slane %v595_v31, 1 }
 0x13f   :  { %v2082_v34 = vpack.c.bf16 %v596_v32, %v596_v32  ;;  %v2119_v54 = vpack.c.bf16 %v598_v52, %v598_v52  ;;  %v2190_v52 = vld [vmem:[%s3390_s7] ss:$0 sm:$0xff] }
 0x141   :  { %2435 = vmatmul.mubr.msk.bf16.vlgmr.msra.gmra.mrb[0].mxu1 %vm2886_vm1, %v2082_v34 }
 0x142   :  { %2439 = vmatpush3.bf16.msra.mxu1 %v2707_v33  ;;  %2454 = vmatprep.mubr.msk.bf16.mxu1 %vm2776_vm4, %v2775_v2 }
 0x143   :  { %2440 = vmatprep.subr.bf16.mxu1 %v2775_v2 }
 0x146   :  { %2441 = vmatpush3.bf16.msra.mxu1 %v2708_v35  ;;  %v2747_v35 = vld [vmem:[%s3388_s8] sm:$0xff]  }
 0x147   :  { %2442 = vmatprep.subr.bf16.mxu1 %v2775_v2  ;;  %2549 = vmatpush3.bf16.msra.mxu0 %v2747_v35 }
 0x148   :  { %2550 = vmatprep.subr.bf16.mxu0 %v2775_v2 }
 0x14a   :  { %2443 = vmatpush3.bf16.msra.mxu1 %v2709_v36  ;;  %v2749_v36 = vld [vmem:[%s3388_s8 + $0x10] sm:$0xff]  }
 0x14b   :  { %2444 = vmatprep.subr.bf16.mxu1 %v2775_v2  ;;  %2551 = vmatpush3.bf16.msra.mxu0 %v2748_v8 }
 0x14c   :  { %2552 = vmatprep.subr.bf16.mxu0 %v2775_v2 }
 0x14e   :  { %2445 = vmatpush3.bf16.msra.mxu1 %v2710_v37  ;;  %v2750_v37 = vld [vmem:[%s3388_s8 + $0x18] sm:$0xff]  }
 0x14f   :  { %2446 = vmatprep.subr.bf16.mxu1 %v2775_v2  ;;  %2553 = vmatpush3.bf16.msra.mxu0 %v2749_v36 }
 0x150   :  { %2554 = vmatprep.subr.bf16.mxu0 %v2775_v2 }
 0x152   :  { %2447 = vmatpush3.bf16.msra.mxu1 %v2711_v38  ;;  %v2751_v38 = vld [vmem:[%s3388_s8 + $0x20] sm:$0xff]  }
 0x153   :  { %2448 = vmatprep.subr.bf16.mxu1 %v2775_v2  ;;  %2555 = vmatpush3.bf16.msra.mxu0 %v2750_v37 }
 0x154   :  { %2556 = vmatprep.subr.bf16.mxu0 %v2775_v2 }
 0x156   :  { %2449 = vmatpush3.bf16.msra.mxu1 %v2712_v39  ;;  %v2752_v39 = vld [vmem:[%s3388_s8 + $0x28] sm:$0xff]  }
 0x157   :  { %2450 = vmatprep.subr.bf16.mxu1 %v2775_v2  ;;  %2557 = vmatpush3.bf16.msra.mxu0 %v2751_v38 }
 0x158   :  { %2558 = vmatprep.subr.bf16.mxu0 %v2775_v2 }
 0x15a   :  { %2451 = vmatpush3.bf16.msra.mxu1 %v2713_v40  ;;  %v2753_v40 = vld [vmem:[%s3388_s8 + $0x30] sm:$0xff]  }
 0x15b   :  { %2452 = vmatprep.subr.bf16.mxu1 %v2775_v2  ;;  %2559 = vmatpush3.bf16.msra.mxu0 %v2752_v39 }
 0x15c   :  { %2560 = vmatprep.subr.bf16.mxu0 %v2775_v2 }
 0x15e   :  { %2453 = vmatpush3.bf16.msra.mxu1 %v2714_v41  ;;  %v2754_v41 = vld [vmem:[%s3388_s8 + $0x38] sm:$0xff]  }
 0x15f   :  { %2458 = vmatprep.subr.bf16.mxu1 %v2775_v2  ;;  %2561 = vmatpush3.bf16.msra.mxu0 %v2753_v40 }
 0x160   :  { %2562 = vmatprep.subr.bf16.mxu0 %v2775_v2 }
 0x161   :  { %2455 = vmatmul.mubr.bf16.vlgmr.msra.gmra.mrb[0].mxu1 %v600_v43 }
 0x162   :  { %2459 = vmatpush3.bf16.msra.mxu1 %v2715_v42  ;;  %2474 = vmatprep.mubr.msk.bf16.mxu1 %vm2776_vm4, %v2775_v2 }
 0x163   :  { %2460 = vmatprep.subr.bf16.mxu1 %v2775_v2  ;;  %2563 = vmatpush3.bf16.msra.mxu0 %v2754_v41 }
 0x164   :  { %2568 = vmatprep.subr.bf16.mxu0 %v2775_v2 }
 0x166   :  { %2461 = vmatpush3.bf16.msra.mxu1 %v2716_v44 }
 0x167   :  { %2462 = vmatprep.subr.bf16.mxu1 %v2775_v2 }
 0x16a   :  { %2463 = vmatpush3.bf16.msra.mxu1 %v2717_v45 }
 0x16b   :  { %2464 = vmatprep.subr.bf16.mxu1 %v2775_v2 }
 0x16e   :  { %2465 = vmatpush3.bf16.msra.mxu1 %v2718_v46 }
 0x16f   :  { %2466 = vmatprep.subr.bf16.mxu1 %v2775_v2 }
 0x172   :  { %2467 = vmatpush3.bf16.msra.mxu1 %v2719_v47 }
 0x173   :  { %2468 = vmatprep.subr.bf16.mxu1 %v2775_v2 }
 0x176   :  { %2469 = vmatpush3.bf16.msra.mxu1 %v2720_v48 }
 0x177   :  { %2470 = vmatprep.subr.bf16.mxu1 %v2775_v2 }
 0x17a   :  { %2471 = vmatpush3.bf16.msra.mxu1 %v2721_v49  ;;  %v2189_v49 = vld [vmem:[%s3389_s6] ss:$0 sm:$0xff] }
 0x17b   :  { %2472 = vmatprep.subr.bf16.mxu1 %v2775_v2 }
 0x17e   :  { %2473 = vmatpush3.bf16.msra.mxu1 %v2722_v51 }
 0x17f   :  { %2478 = vmatprep.subr.bf16.mxu1 %v2775_v2 }
 0x181   :  { %2475 = vmatmul.mubr.msk.bf16.vlgmr.msra.gmra.mrb[0].mxu1 %vm2967_vm3, %v2119_v54 }
 0x182   :  { %2479 = vmatpush3.bf16.msra.mxu1 %v2723_v53  ;;  %2494 = vmatprep.mubr.msk.bf16.mxu1 %vm2776_vm4, %v2775_v2 }
 0x183   :  { %2480 = vmatprep.subr.bf16.mxu1 %v2775_v2 }
 0x186   :  { %2481 = vmatpush3.bf16.msra.mxu1 %v2724_v55 }
 0x187   :  { %2482 = vmatprep.subr.bf16.mxu1 %v2775_v2 }
 0x18a   :  { %2483 = vmatpush3.bf16.msra.mxu1 %v2725_v56 }
 0x18b   :  { %2484 = vmatprep.subr.bf16.mxu1 %v2775_v2 }
 0x18e   :  { %2485 = vmatpush3.bf16.msra.mxu1 %v2726_v57  ;;  %v2755_v57 = vld [vmem:[%s3388_s8 + $0x40] sm:$0xff]  }
 0x18f   :  { %2486 = vmatprep.subr.bf16.mxu1 %v2775_v2 }
 0x192   :  { %2487 = vmatpush3.bf16.msra.mxu1 %v2727_v58 }
 0x193   :  { %2488 = vmatprep.subr.bf16.mxu1 %v2775_v2 }
 0x196   :  { %2489 = vmatpush3.bf16.msra.mxu1 %v2728_v59  ;;  %v2756_v59 = vld [vmem:[%s3388_s8 + $0x48] sm:$0xff]  }
 0x197   :  { %2490 = vmatprep.subr.bf16.mxu1 %v2775_v2 }
 0x19a   :  { %2491 = vmatpush3.bf16.msra.mxu1 %v2729_v62  ;;  %v2760_v62 = vld [vmem:[%s3388_s8 + $0x68] sm:$0xff]  }
 0x19b   :  { %2492 = vmatprep.subr.bf16.mxu1 %v2775_v2 }
 0x19e   :  { %2493 = vmatpush3.bf16.msra.mxu1 %v2730_v0  ;;  %v2762_v0 = vld [vmem:[%s3388_s8 + $0x78] sm:$0xff]  }
 0x19f   :  { %2498 = vmatprep.subr.bf16.mxu1 %v2775_v2 }
 0x1a1   :  { %2495 = vmatmul.mubr.msk.bf16.vlgmr.msra.gmra.mrb[0].mxu1 %vm2886_vm1, %v2148_v1  ;;  %v2763_v1 = vld [vmem:[%s3388_s8 + $0x80] sm:$0xff]  }
 0x1a2   :  { %2499 = vmatpush3.bf16.msra.mxu1 %v2731_v3  ;;  %2514 = vmatprep.mubr.msk.bf16.mxu1 %vm2776_vm4, %v2775_v2 }
 0x1a3   :  { %2500 = vmatprep.subr.bf16.mxu1 %v2775_v2 }
 0x1a6   :  { %2501 = vmatpush3.bf16.msra.mxu1 %v2732_v4  ;;  %v2764_v4 = vld [vmem:[%s3388_s8 + $0x88] sm:$0xff]  }
 0x1a7   :  { %2502 = vmatprep.subr.bf16.mxu1 %v2775_v2 }
 0x1aa   :  { %2503 = vmatpush3.bf16.msra.mxu1 %v2733_v5  ;;  %v2765_v5 = vld [vmem:[%s3388_s8 + $0x90] sm:$0xff]  }
 0x1ab   :  { %2504 = vmatprep.subr.bf16.mxu1 %v2775_v2 }
 0x1ae   :  { %2505 = vmatpush3.bf16.msra.mxu1 %v2734_v6  ;;  %v2766_v6 = vld [vmem:[%s3388_s8 + $0x98] sm:$0xff]  }
 0x1af   :  { %2506 = vmatprep.subr.bf16.mxu1 %v2775_v2 }
 0x1b2   :  { %2507 = vmatpush3.bf16.msra.mxu1 %v2735_v7  ;;  %v2767_v7 = vld [vmem:[%s3388_s8 + $0xa0] sm:$0xff]  }
 0x1b3   :  { %2508 = vmatprep.subr.bf16.mxu1 %v2775_v2 }
 0x1b6   :  { %2509 = vmatpush3.bf16.msra.mxu1 %v2736_v9  ;;  %v2768_v9 = vld [vmem:[%s3388_s8 + $0xa8] sm:$0xff]  }
 0x1b7   :  { %2510 = vmatprep.subr.bf16.mxu1 %v2775_v2 }
 0x1ba   :  { %2511 = vmatpush3.bf16.msra.mxu1 %v2737_v10  ;;  %v2769_v10 = vld [vmem:[%s3388_s8 + $0xb0] sm:$0xff]  }
 0x1bb   :  { %2512 = vmatprep.subr.bf16.mxu1 %v2775_v2 }
 0x1be   :  { %2513 = vmatpush3.bf16.msra.mxu1 %v2738_v11  ;;  %v2770_v11 = vld [vmem:[%s3388_s8 + $0xb8] sm:$0xff]  }
 0x1bf   :  { %2518 = vmatprep.subr.bf16.mxu1 %v2775_v2 }
 0x1c1   :  { %2515 = vmatmul.mubr.bf16.vlgmr.msra.gmra.mrb[0].mxu1 %v918_v60  ;;  %v2757_v60 = vld [vmem:[%s3388_s8 + $0x50] sm:$0xff]  }
 0x1c2   :  { %2519 = vmatpush3.bf16.msra.mxu1 %v2739_v12  ;;  %2534 = vmatprep.mubr.msk.bf16.mxu1 %vm2776_vm4, %v2775_v2 }
 0x1c3   :  { %2520 = vmatprep.subr.bf16.mxu1 %v2775_v2 }
 0x1c6   :  { %2521 = vmatpush3.bf16.msra.mxu1 %v2740_v13 }
 0x1c7   :  { %2522 = vmatprep.subr.bf16.mxu1 %v2775_v2 }
 0x1ca   :  { %2523 = vmatpush3.bf16.msra.mxu1 %v2741_v14 }
 0x1cb   :  { %2524 = vmatprep.subr.bf16.mxu1 %v2775_v2 }
 0x1ce   :  { %2525 = vmatpush3.bf16.msra.mxu1 %v2742_v15 }
 0x1cf   :  { %2526 = vmatprep.subr.bf16.mxu1 %v2775_v2 }
 0x1d2   :  { %2527 = vmatpush3.bf16.msra.mxu1 %v2743_v16 }
 0x1d3   :  { %2528 = vmatprep.subr.bf16.mxu1 %v2775_v2 }
 0x1d6   :  { %2529 = vmatpush3.bf16.msra.mxu1 %v2744_v17 }
 0x1d7   :  { %2530 = vmatprep.subr.bf16.mxu1 %v2775_v2 }
 0x1da   :  { %2531 = vmatpush3.bf16.msra.mxu1 %v2745_v18 }
 0x1db   :  { %2532 = vmatprep.subr.bf16.mxu1 %v2775_v2 }
 0x1de   :  { %2533 = vmatpush3.bf16.msra.mxu1 %v2746_v21 }
 0x1df   :  { %2538 = vmatprep.subr.mxu1 %v2775_v2 }
 0x1e1   :  { %2535 = vmatmul.mubr.msk.bf16.vlgmr.msra.gmra.mrb[0].mxu1 %vm2967_vm3, %v2185_v22 }
 0x1e2   :  { %2540 = vmatprep.mubr.msk.f32.mxu1 %vm2776_vm4, %v2775_v2 }
 0x2b4   :  { %v1234_v23 = vpop.f32.mrb[0].mxu1 }
 0x2b5   :  { %v2536_v24 = vpop.f32.mrb[1].mxu1  ;;  %2539 = vmatpush3.msra.mxu1 %v1234_v23 }
 0x2b6   :  { %v1237_v25 = vpop.f32.mrb[2].mxu1  ;;  %2541 = vmatmul.mubr.msk.f32.vlgmr.msra.gmra.mrb[4].mxu1 %vm1244_vm5, %v2777_v26  ;;  %2543 = vmatprep.subr.mxu1 %v2775_v2 }
 0x2b7   :  { %v2537_v27 = vpop.f32.mrb[3].mxu1  ;;  %2545 = vmatprep.mubr.msk.f32.mxu1 %vm2776_vm4, %v2775_v2 }
 0x389   :  { %v1314_v29 = vpop.f32.mrb[4].mxu1 }
 0x38a   :  { %v1318_v30 = vmul.f32 0.125, %v1314_v29  ;;  %v2542_v31 = vpop.f32.mrb[5].mxu1 }
 0x38c   :  { %v1322_v32 = vrot.slane %v1318_v30, %v3246_v28 }
 0x38e   :  { %v1323_v33 = vsub.f32 %v1234_v23, %v1322_v32  ;;  %v2259_v32 = vld [vmem:[%s3391_s9] ss:$0 sm:$0xff] }
 0x390   :  { %v1324_v34 = vmul.f32 %v1323_v33, %v1323_v33 }
 0x392   :  { %2544 = vmatpush3.msra.mxu1 %v1324_v34  ;;  %v2260_v34 = vld [vmem:[%s3392_s10] ss:$0 sm:$0xff] }
 0x393   :  { %2546 = vmatmul.mubr.msk.f32.vlgmr.msra.gmra.mrb[6].mxu1 %vm1244_vm5, %v2777_v26 }
 0x466   :  { %v1391_v42 = vpop.f32.mrb[6].mxu1 }
 0x467   :  { %v1395_v43 = vmul.f32 0.125, %v1391_v42  ;;  %v2547_v44 = vpop.f32.mrb[7].mxu1 }
 0x469   :  { %v1396_v45 = vmax.f32 %v1395_v43, 0.0 }
 0x46b   :  { %v1397_v46 = vadd.f32 1e-05, %v1396_v45 }
 0x46d   :  { %2771 = vrsqrt.f32 %v1397_v46 }
 0x477   :  { %v2772_v47 = vpop.eup %2771 }
 0x478   :  { %v1402_v48 = vrot.slane %v2772_v47, %v3246_v28 }
 0x47a   :  { %v1403_v51 = vmul.f32 %v1402_v48, %v1323_v33 }
 0x47c   :  { %v1410_v53 = vmul.f32 %v2189_v49, %v1403_v51 }
 0x47e   :  { %v1417_v54 = vadd.f32 %v2190_v52, %v1410_v53 }
 0x480   :  { %v1418_v55 = vmax.f32 %v1417_v54, 0.0 }
 0x482   :  { %v1419_v56 = vrot.slane %v1418_v55, 7  ;;  %v1423_v3 = vpack.c.bf16 %v1418_v55, %v1418_v55  ;;  %v1421_v12 = vrot.slane %v1418_v55, 1 }
 0x484   :  { %v2218_v58 = vpack.c.bf16 %v1419_v56, %v1419_v56  ;;  %v2255_v13 = vpack.c.bf16 %v1421_v12, %v1421_v12 }
 0x486   :  { %2565 = vmatmul.mubr.msk.bf16.vlgmr.msra.gmra.mrb[12].mxu0 %vm2886_vm1, %v2218_v58 }
 0x487   :  { %2569 = vmatpush3.bf16.msra.mxu0 %v2755_v57  ;;  %2584 = vmatprep.mubr.msk.bf16.mxu0 %vm2776_vm4, %v2775_v2 }
 0x488   :  { %2570 = vmatprep.subr.bf16.mxu0 %v2775_v2 }
 0x48b   :  { %2571 = vmatpush3.bf16.msra.mxu0 %v2756_v59 }
 0x48c   :  { %2572 = vmatprep.subr.bf16.mxu0 %v2775_v2 }
 0x48f   :  { %2573 = vmatpush3.bf16.msra.mxu0 %v2757_v60 }
 0x490   :  { %2574 = vmatprep.subr.bf16.mxu0 %v2775_v2 }
 0x493   :  { %2575 = vmatpush3.bf16.msra.mxu0 %v2758_v19 }
 0x494   :  { %2576 = vmatprep.subr.bf16.mxu0 %v2775_v2 }
 0x497   :  { %2577 = vmatpush3.bf16.msra.mxu0 %v2759_v61 }
 0x498   :  { %2578 = vmatprep.subr.bf16.mxu0 %v2775_v2 }
 0x49b   :  { %2579 = vmatpush3.bf16.msra.mxu0 %v2760_v62 }
 0x49c   :  { %2580 = vmatprep.subr.bf16.mxu0 %v2775_v2 }
 0x49f   :  { %2581 = vmatpush3.bf16.msra.mxu0 %v2761_v63 }
 0x4a0   :  { %2582 = vmatprep.subr.bf16.mxu0 %v2775_v2 }
 0x4a3   :  { %2583 = vmatpush3.bf16.msra.mxu0 %v2762_v0 }
 0x4a4   :  { %2588 = vmatprep.subr.bf16.mxu0 %v2775_v2 }
 0x4a6   :  { %2585 = vmatmul.mubr.bf16.vlgmr.msra.gmra.mrb[12].mxu0 %v1423_v3 }
 0x4a7   :  { %2589 = vmatpush3.bf16.msra.mxu0 %v2763_v1  ;;  %2604 = vmatprep.mubr.msk.bf16.mxu0 %vm2776_vm4, %v2775_v2 }
 0x4a8   :  { %2590 = vmatprep.subr.bf16.mxu0 %v2775_v2 }
 0x4ab   :  { %2591 = vmatpush3.bf16.msra.mxu0 %v2764_v4 }
 0x4ac   :  { %2592 = vmatprep.subr.bf16.mxu0 %v2775_v2 }
 0x4af   :  { %2593 = vmatpush3.bf16.msra.mxu0 %v2765_v5 }
 0x4b0   :  { %2594 = vmatprep.subr.bf16.mxu0 %v2775_v2 }
 0x4b3   :  { %2595 = vmatpush3.bf16.msra.mxu0 %v2766_v6 }
 0x4b4   :  { %2596 = vmatprep.subr.bf16.mxu0 %v2775_v2 }
 0x4b7   :  { %2597 = vmatpush3.bf16.msra.mxu0 %v2767_v7 }
 0x4b8   :  { %2598 = vmatprep.subr.bf16.mxu0 %v2775_v2 }
 0x4bb   :  { %2599 = vmatpush3.bf16.msra.mxu0 %v2768_v9 }
 0x4bc   :  { %2600 = vmatprep.subr.bf16.mxu0 %v2775_v2 }
 0x4bf   :  { %2601 = vmatpush3.bf16.msra.mxu0 %v2769_v10 }
 0x4c0   :  { %2602 = vmatprep.subr.bf16.mxu0 %v2775_v2 }
 0x4c3   :  { %2603 = vmatpush3.bf16.msra.mxu0 %v2770_v11 }
 0x4c4   :  { %2608 = vmatprep.subr.mxu0 %v2775_v2 }
 0x4c6   :  { %2605 = vmatmul.mubr.msk.bf16.vlgmr.msra.gmra.mrb[12].mxu0 %vm2967_vm3, %v2255_v13 }
 0x4c7   :  { %2610 = vmatprep.mubr.msk.f32.mxu0 %vm2776_vm4, %v2775_v2 }
 0x599   :  { %v1734_v14 = vpop.f32.mrb[12].mxu0 }
 0x59a   :  { %v2606_v15 = vpop.f32.mrb[13].mxu0  ;;  %2609 = vmatpush3.msra.mxu0 %v1734_v14 }
 0x59b   :  { %v1737_v16 = vpop.f32.mrb[14].mxu0  ;;  %2611 = vmatmul.mubr.msk.f32.vlgmr.msra.gmra.mrb[16].mxu0 %vm1244_vm5, %v2777_v26  ;;  %2613 = vmatprep.subr.mxu0 %v2775_v2 }
 0x59c   :  { %v2607_v17 = vpop.f32.mrb[15].mxu0  ;;  %2615 = vmatprep.mubr.msk.f32.mxu0 %vm2776_vm4, %v2775_v2 }
 0x66e   :  { %v1809_v18 = vpop.f32.mrb[16].mxu0 }
 0x66f   :  { %v1813_v20 = vmul.f32 0.125, %v1809_v18  ;;  %v2612_v50 = vpop.f32.mrb[17].mxu0 }
 0x671   :  { %v1817_v21 = vrot.slane %v1813_v20, %v3246_v28 }
 0x673   :  { %v1818_v22 = vsub.f32 %v1734_v14, %v1817_v21 }
 0x675   :  { %v1819_v23 = vmul.f32 %v1818_v22, %v1818_v22 }
 0x677   :  { %2614 = vmatpush3.msra.mxu0 %v1819_v23 }
 0x678   :  { %2616 = vmatmul.mubr.msk.f32.vlgmr.msra.gmra.mrb[18].mxu0 %vm1244_vm5, %v2777_v26 }
 0x74b   :  { %v1886_v24 = vpop.f32.mrb[18].mxu0 }
 0x74c   :  { %v1890_v25 = vmul.f32 0.125, %v1886_v24  ;;  %v2617_v27 = vpop.f32.mrb[19].mxu0 }
 0x74e   :  { %v1891_v29 = vmax.f32 %v1890_v25, 0.0 }
 0x750   :  { %v1892_v30 = vadd.f32 1e-05, %v1891_v29 }
 0x752   :  { %2773 = vrsqrt.f32 %v1892_v30 }
 0x75c   :  { %v2774_v31 = vpop.eup %2773 }
 0x75d   :  { %v1897_v2 = vrot.slane %v2774_v31, %v3246_v28 }
 0x75f   :  { %v1898_v33 = vmul.f32 %v1897_v2, %v1818_v22 }
 0x761   :  { %v1905_v35 = vmul.f32 %v2259_v32, %v1898_v33 }
 0x763   :  { %v1912_v26 = vadd.f32 %v2260_v34, %v1905_v35 }
 0x765   :  { %v1913_v8 = vmax.f32 %v1912_v26, 0.0 }
 0x767   :  { %v1914_v36 = vpack.c.bf16 %v1913_v8, %v1913_v8 }
 0x769   :  { %1915 = vst [vmem:[%s3393_s11] sm:$0xf] %v1914_v36 }

// kernel: unet_forward.17
= control target key start
LH: loop header
LB: loop body
LE: loop exit
PB: predicated region body
PF: predicated region fallthrough
CT: control target
= control target key end

     0   :  { %v39_v0 = vlaneseq  ;;  %vm194_vm2 = vcmask 523264   ;;  %vm492_vm7 = vcmask 261120   ;;  %vm2069_vm8 = vmmov 0   ;;  %s2436_s2 = inlined_call_operand.vmem [shape: bf16[3,64,32], index: 2, kind: input, shape index: {}]   ;;  %s2437_s0 = inlined_call_operand.vmem [shape: bf16[32,64], index: 0, kind: input, shape index: {}]   ;;  %s2438_s4 = inlined_call_operand.vmem [shape: bf16[3,32,32], index: 4, kind: input, shape index: {}]   ;;  %s2439_s5 = inlined_call_operand.vmem [shape: bf16[3,32,32], index: 5, kind: input, shape index: {}]   ;;  %s2440_s3 = inlined_call_operand.vmem [shape: f32[1,32], index: 3, kind: input, shape index: {}]   ;;  %s2441_s1 = inlined_call_operand.vmem [shape: bf16[32,32], index: 1, kind: input, shape index: {}]   ;;  %s2442_s8 = inlined_call_operand.vmem [shape: bf16[3,32,32], index: 8, kind: input, shape index: {}]   ;;  %s2443_s6 = inlined_call_operand.vmem [shape: f32[1,32], index: 6, kind: input, shape index: {}]   ;;  %s2444_s7 = inlined_call_operand.vmem [shape: f32[1,32], index: 7, kind: input, shape index: {}]   ;;  %s2445_s9 = inlined_call_operand.vmem [shape: f32[1,32], index: 9, kind: input, shape index: {}]   ;;  %s2446_s10 = inlined_call_operand.vmem [shape: f32[1,32], index: 10, kind: input, shape index: {}]   ;;  %s2447_s11 = inlined_call_operand.vmem [shape: bf16[32,32], index: 11, kind: output, shape index: {}]  }
   0x1   :  { %v2026_v1 = vld [vmem:[%s2436_s2] sm:$0xff]   ;;  %v2027_v2 = vld [vmem:[%s2436_s2 + $0x8] sm:$0xff]   ;;  %v2028_v4 = vld [vmem:[%s2436_s2 + $0x10] sm:$0xff]   ;;  %vm1612_vm9 = vcmask 257024  }
   0x2   :  { %v2138_v3 = vshrl.u32 %v39_v0, 7  ;;  %1810 = vmatprep.subr.bf16.mxu0 %v2026_v1  ;;  %v100_v6 = vld [vmem:[%s2437_s0] sm:$0xff]   ;;  %v103_v7 = vld [vmem:[%s2437_s0 + $0x8] sm:$0xff]   ;;  %v2029_v17 = vld [vmem:[%s2436_s2 + $0x18] sm:$0xff]  }
   0x3   :  { %1811 = vmatpush3.bf16.msra.mxu0 %v2026_v1  ;;  %v104_v8 = vunpack.c.l.bf16 %v100_v6  ;;  %v105_v9 = vunpack.c.h.bf16 %v100_v6  ;;  %v107_v10 = vunpack.c.h.bf16 %v103_v7  ;;  %v106_v12 = vunpack.c.l.bf16 %v103_v7  ;;  %v2030_v26 = vld [vmem:[%s2436_s2 + $0x20] sm:$0xff]   ;;  %v2031_v30 = vld [vmem:[%s2436_s2 + $0x28] sm:$0xff]   ;;  %v2032_v32 = vld [vmem:[%s2436_s2 + $0x30] sm:$0xff]  }
   0x4   :  { %v48_v5 = vand.u32 15, %v2138_v3  ;;  %1812 = vmatprep.subr.bf16.mxu0 %v2027_v2  ;;  %vm113_vm0 = vcmp.lt.s32.totalorder %v2138_v3, 1  ;;  %v42_v11 = vadd.s32 16, %v2138_v3  ;;  %v41_v31 = vadd.s32 8, %v2138_v3  ;;  %v2033_v37 = vld [vmem:[%s2436_s2 + $0x38] sm:$0xff]   ;;  %v2035_v40 = vld [vmem:[%s2436_s2 + $0x40] sm:$0xff]  }
   0x5   :  { %v109_v14 = vrot.slane %v104_v8, 7  ;;  %v110_v15 = vrot.slane %v105_v9, 7  ;;  %v112_v16 = vrot.slane %v107_v10, 7  ;;  %v111_v19 = vrot.slane %v106_v12, 7  ;;  %v2037_v44 = vld [vmem:[%s2436_s2 + $0x48] sm:$0xff]   ;;  %v2038_v47 = vld [vmem:[%s2436_s2 + $0x50] sm:$0xff]  }
   0x6   :  { %vm2152_vm1 = vcmp.eq.s32.totalorder %v48_v5, 0  ;;  %v62_v18 = vand.u32 15, %v42_v11  ;;  %v131_v33 = vrot.slane %v105_v9, 1  ;;  %v55_v34 = vand.u32 15, %v41_v31  ;;  %v2039_v49 = vld [vmem:[%s2436_s2 + $0x58] sm:$0xff]   ;;  %v2040_v55 = vld [vmem:[%s2438_s4] sm:$0xff]  }
   0x7   :  { %1813 = vmatpush3.bf16.msra.mxu0 %v2027_v2  ;;  %v116_v20 = vsel %vm113_vm0, %v109_v14, %v110_v15  ;;  %v117_v21 = vsel %vm113_vm0, %v112_v16, %v109_v14  ;;  %v115_v24 = vsel %vm113_vm0, %v110_v15, %v111_v19  ;;  %v114_v27 = vsel %vm113_vm0, %v111_v19, %v112_v16  ;;  %v2041_v56 = vld [vmem:[%s2438_s4 + $0x8] sm:$0xff]   ;;  %v2042_v57 = vld [vmem:[%s2438_s4 + $0x10] sm:$0xff]   ;;  %v1657_v58 = vld [vmem:[%s2440_s3] ss:$0 sm:$0xff] }
   0x8   :  { %1814 = vmatprep.subr.bf16.mxu0 %v2028_v4  ;;  %v126_v22 = vsel %vm2152_vm1, 0.0, %v117_v21  ;;  %vm2165_vm3 = vcmp.eq.s32.totalorder %v62_v18, 0  ;;  %v132_v35 = vrot.slane %v106_v12, 1  ;;  %vm134_vm4 = vcmp.lt.s32.totalorder %v2138_v3, 7  ;;  %1846 = vmatprep.subr.bf16.mxu1 %v2040_v55  ;;  %v2058_v23 = vld [vmem:[%s2442_s8 + $0x20] sm:$0xff]  }
   0x9   :  { %v160_v25 = vpack.c.bf16 %v116_v20, %v126_v22  ;;  %v128_v28 = vsel %vm2165_vm3, 0.0, %v115_v24  ;;  %v130_v36 = vrot.slane %v104_v8, 1  ;;  %vm2192_vm5 = vcmp.eq.s32.totalorder %v55_v34, 15  ;;  %1847 = vmatpush3.bf16.msra.mxu1 %v2040_v55  ;;  %v693_v34 = vld [vmem:[%s2441_s1] sm:$0xff]  }
   0xa   :  { %v161_v29 = vpack.c.bf16 %v114_v27, %v128_v28  ;;  %v136_v39 = vsel %vm134_vm4, %v131_v33, %v132_v35  ;;  %v43_v45 = vadd.s32 24, %v2138_v3  ;;  %v133_v46 = vrot.slane %v107_v10, 1  ;;  %1848 = vmatprep.subr.bf16.mxu1 %v2041_v56 }
   0xb   :  { %1815 = vmatpush3.bf16.msra.mxu0 %v2028_v4  ;;  %1818 = vmatprep.mubr.msk.bf16.mxu0 %vm194_vm2, %v160_v25  ;;  %v137_v41 = vsel %vm134_vm4, %v130_v36, %v131_v33  ;;  %v148_v42 = vsel %vm2192_vm5, 0.0, %v136_v39  ;;  %v2044_v33 = vld [vmem:[%s2438_s4 + $0x20] sm:$0xff]   ;;  %v2045_v39 = vld [vmem:[%s2438_s4 + $0x28] sm:$0xff]  }
   0xc   :  { %1816 = vmatprep.subr.bf16.mxu0 %v2029_v17  ;;  %v339_v43 = vpack.c.bf16 %v148_v42, %v137_v41  ;;  %v69_v48 = vand.u32 15, %v43_v45  ;;  %v138_v51 = vsel %vm134_vm4, %v133_v46, %v130_v36  ;;  %v135_v52 = vsel %vm134_vm4, %v132_v35, %v133_v46  ;;  %v696_v35 = vld [vmem:[%s2441_s1 + $0x8] sm:$0xff]  }
   0xd   :  { %1849 = vmatpush3.bf16.msra.mxu1 %v2041_v56  ;;  %v697_v36 = vunpack.c.l.bf16 %v693_v34 }
   0xe   :  { %vm2217_vm6 = vcmp.eq.s32.totalorder %v69_v48, 15  ;;  %1854 = vmatprep.subr.bf16.mxu1 %v2042_v57  ;;  %v699_v48 = vunpack.c.l.bf16 %v696_v35 }
   0xf   :  { %1817 = vmatpush3.bf16.msra.mxu0 %v2029_v17  ;;  %v150_v53 = vsel %vm2217_vm6, 0.0, %v138_v51  ;;  %v701_v41 = vrot.slane %v697_v36, 7  ;;  %v2047_v51 = vld [vmem:[%s2439_s5 + $0x8] sm:$0xff]  }
  0x10   :  { %1822 = vmatprep.subr.bf16.mxu0 %v2030_v26  ;;  %v340_v54 = vpack.c.bf16 %v150_v53, %v135_v52  ;;  %v703_v52 = vrot.slane %v699_v48, 7 }
  0x12   :  { %1819 = vmatmul.mubr.msk.bf16.vlgmr.msra.gmra.mrb[0].mxu0 %vm194_vm2, %v161_v29  ;;  %v2043_v29 = vld [vmem:[%s2438_s4 + $0x18] sm:$0xff]  }
  0x13   :  { %1823 = vmatpush3.bf16.msra.mxu0 %v2030_v26  ;;  %1830 = vmatprep.mubr.msk.bf16.mxu0 %vm194_vm2, %v100_v6 }
  0x14   :  { %1824 = vmatprep.subr.bf16.mxu0 %v2031_v30 }
  0x17   :  { %1825 = vmatpush3.bf16.msra.mxu0 %v2031_v30 }
  0x18   :  { %1826 = vmatprep.subr.bf16.mxu0 %v2032_v32 }
  0x1b   :  { %1827 = vmatpush3.bf16.msra.mxu0 %v2032_v32 }
  0x1c   :  { %1828 = vmatprep.subr.bf16.mxu0 %v2033_v37 }
  0x1f   :  { %1829 = vmatpush3.bf16.msra.mxu0 %v2033_v37  ;;  %v700_v37 = vunpack.c.h.bf16 %v696_v35 }
  0x20   :  { %1834 = vmatprep.subr.bf16.mxu0 %v2035_v40 }
  0x21   :  { %v704_v42 = vrot.slane %v700_v37, 7 }
  0x22   :  { %1831 = vmatmul.mubr.msk.bf16.vlgmr.msra.gmra.mrb[0].mxu0 %vm194_vm2, %v103_v7 }
  0x23   :  { %1835 = vmatpush3.bf16.msra.mxu0 %v2035_v40  ;;  %1842 = vmatprep.mubr.msk.bf16.mxu0 %vm194_vm2, %v339_v43  ;;  %v698_v40 = vunpack.c.h.bf16 %v693_v34  ;;  %v2046_v43 = vld [vmem:[%s2439_s5] sm:$0xff]   ;;  %v708_v45 = vsel %vm113_vm0, %v704_v42, %v701_v41  ;;  %v705_v55 = vsel %vm113_vm0, %v703_v52, %v704_v42 }
  0x24   :  { %1836 = vmatprep.subr.bf16.mxu0 %v2037_v44 }
  0x27   :  { %1837 = vmatpush3.bf16.msra.mxu0 %v2037_v44  ;;  %v702_v44 = vrot.slane %v698_v40, 7 }
  0x28   :  { %1838 = vmatprep.subr.bf16.mxu0 %v2038_v47 }
  0x29   :  { %v707_v46 = vsel %vm113_vm0, %v701_v41, %v702_v44  ;;  %v706_v53 = vsel %vm113_vm0, %v702_v44, %v703_v52 }
  0x2a   :  { %v711_v56 = vsel %vm2165_vm3, 0.0, %v706_v53  ;;  %v1703_v53 = vld [vmem:[%s2444_s7] ss:$0 sm:$0xff] }
  0x2b   :  { %1839 = vmatpush3.bf16.msra.mxu0 %v2038_v47  ;;  %v709_v47 = vsel %vm2152_vm1, 0.0, %v708_v45 }
  0x2c   :  { %1840 = vmatprep.subr.bf16.mxu0 %v2039_v49 }
  0x2f   :  { %1841 = vmatpush3.bf16.msra.mxu0 %v2039_v49  ;;  %v730_v49 = vpack.c.bf16 %v707_v46, %v709_v47  ;;  %v1702_v47 = vld [vmem:[%s2443_s6] ss:$0 sm:$0xff] }
  0x32   :  { %1843 = vmatmul.mubr.msk.bf16.vlgmr.msra.gmra.mrb[0].mxu0 %vm194_vm2, %v340_v54  ;;  %v2048_v54 = vld [vmem:[%s2439_s5 + $0x10] sm:$0xff]  }
 0x105   :  { %v1844_v59 = vpop.f32.mrb[0].mxu0 }
 0x106   :  { %v441_v60 = vadd.f32 %v1844_v59, %v1657_v58  ;;  %v414_v61 = vpop.f32.mrb[1].mxu0  ;;  %v714_v59 = vrot.slane %v698_v40, 1 }
 0x107   :  { %v439_v62 = vadd.f32 %v1657_v58, %v414_v61  ;;  %v1845_v63 = vpop.f32.mrb[2].mxu0  ;;  %v2052_v61 = vld [vmem:[%s2439_s5 + $0x20] sm:$0xff]  }
 0x108   :  { %v442_v0 = vadd.f32 %v1845_v63, %v1657_v58  ;;  %v417_v1 = vpop.f32.mrb[3].mxu0  ;;  %v445_v2 = vrot.slane %v441_v60, 7  ;;  %v457_v7 = vrot.slane %v441_v60, 1 }
 0x109   :  { %v443_v4 = vrot.slane %v439_v62, 7  ;;  %v455_v5 = vrot.slane %v439_v62, 1  ;;  %v440_v6 = vadd.f32 %v1657_v58, %v417_v1  ;;  %v2049_v58 = vld [vmem:[%s2439_s5 + $0x18] sm:$0xff]  }
 0x10a   :  { %v446_v8 = vrot.slane %v442_v0, 7  ;;  %v458_v9 = vrot.slane %v442_v0, 1  ;;  %v468_v10 = vpack.c.bf16 %v442_v0, %v441_v60  ;;  %v715_v60 = vrot.slane %v699_v48, 1 }
 0x10b   :  { %v444_v11 = vrot.slane %v440_v6, 7  ;;  %v456_v12 = vrot.slane %v440_v6, 1  ;;  %v467_v14 = vpack.c.bf16 %v440_v6, %v439_v62  ;;  %v713_v62 = vrot.slane %v697_v36, 1  ;;  %v2054_v36 = vld [vmem:[%s2442_s8] sm:$0xff]  }
 0x10c   :  { %v459_v15 = vsel %vm134_vm4, %v457_v7, %v458_v9  ;;  %v462_v16 = vsel %vm134_vm4, %v458_v9, %v455_v5  ;;  %v450_v17 = vsel %vm113_vm0, %v446_v8, %v443_v4  ;;  %v447_v18 = vsel %vm113_vm0, %v445_v2, %v446_v8  ;;  %1916 = vmatprep.subr.bf16.mxu0 %v2054_v36 }
 0x10d   :  { %v466_v19 = vsel %vm2217_vm6, 0.0, %v462_v16  ;;  %v449_v20 = vsel %vm113_vm0, %v443_v4, %v444_v11  ;;  %v451_v21 = vsel %vm2152_vm1, 0.0, %v450_v17  ;;  %v448_v22 = vsel %vm113_vm0, %v444_v11, %v445_v2  ;;  %v2053_v4 = vld [vmem:[%s2439_s5 + $0x28] sm:$0xff]   ;;  %1917 = vmatpush3.bf16.msra.mxu0 %v2054_v36 }
 0x10e   :  { %v616_v24 = vpack.c.bf16 %v466_v19, %v459_v15  ;;  %v474_v25 = vpack.c.bf16 %v449_v20, %v451_v21  ;;  %v453_v26 = vsel %vm2165_vm3, 0.0, %v448_v22  ;;  %v460_v27 = vsel %vm134_vm4, %v456_v12, %v457_v7 }
 0x10f   :  { %v475_v28 = vpack.c.bf16 %v447_v18, %v453_v26  ;;  %v461_v30 = vsel %vm134_vm4, %v455_v5, %v456_v12  ;;  %v464_v31 = vsel %vm2192_vm5, 0.0, %v460_v27  ;;  %v718_v63 = vsel %vm134_vm4, %v714_v59, %v715_v60 }
 0x110   :  { %1850 = vmatprep.mubr.msk.bf16.mxu1 %vm492_vm7, %v474_v25  ;;  %v615_v32 = vpack.c.bf16 %v464_v31, %v461_v30  ;;  %v719_v0 = vsel %vm134_vm4, %v713_v62, %v714_v59  ;;  %v722_v1 = vsel %vm2192_vm5, 0.0, %v718_v63  ;;  %v716_v5 = vrot.slane %v700_v37, 1  ;;  %v2055_v37 = vld [vmem:[%s2442_s8 + $0x8] sm:$0xff]  }
 0x111   :  { %1851 = vmatmul.mubr.msk.bf16.vlgmr.msra.gmra.mrb[0].mxu1 %vm492_vm7, %v475_v28  ;;  %v880_v2 = vpack.c.bf16 %v722_v1, %v719_v0  ;;  %v2070_v11 = vmov 0.0   ;;  %v2071_v19 = vmov 1.0   ;;  %v2343_v20 = vsub.s32 0, %v2138_v3  ;;  %1918 = vmatprep.subr.bf16.mxu0 %v2055_v37 }
 0x112   :  { %1855 = vmatpush3.bf16.msra.mxu1 %v2042_v57  ;;  %1858 = vmatprep.mubr.msk.bf16.mxu1 %vm492_vm7, %v467_v14  ;;  %v731_v57 = vpack.c.bf16 %v705_v55, %v711_v56  ;;  %v720_v6 = vsel %vm134_vm4, %v716_v5, %v713_v62  ;;  %v717_v7 = vsel %vm134_vm4, %v715_v60, %v716_v5 }
 0x113   :  { %1856 = vmatprep.subr.bf16.mxu1 %v2043_v29  ;;  %v724_v8 = vsel %vm2217_vm6, 0.0, %v720_v6  ;;  %1919 = vmatpush3.bf16.msra.mxu0 %v2055_v37 }
 0x114   :  { %v881_v9 = vpack.c.bf16 %v724_v8, %v717_v7 }
 0x116   :  { %1857 = vmatpush3.bf16.msra.mxu1 %v2043_v29 }
 0x117   :  { %1862 = vmatprep.subr.bf16.mxu1 %v2044_v33 }
 0x11d   :  { %1859 = vmatmul.mubr.msk.bf16.vlgmr.msra.gmra.mrb[0].mxu1 %vm492_vm7, %v468_v10  ;;  %v2068_v10 = vmov 0.0|0.0  }
 0x11e   :  { %1863 = vmatpush3.bf16.msra.mxu1 %v2044_v33  ;;  %1866 = vmatprep.mubr.msk.bf16.mxu1 %vm492_vm7, %v615_v32 }
 0x11f   :  { %1864 = vmatprep.subr.bf16.mxu1 %v2045_v39 }
 0x122   :  { %1865 = vmatpush3.bf16.msra.mxu1 %v2045_v39  ;;  %v2056_v39 = vld [vmem:[%s2442_s8 + $0x10] sm:$0xff]  }
 0x123   :  { %1870 = vmatprep.subr.bf16.mxu1 %v2046_v43  ;;  %1924 = vmatprep.subr.bf16.mxu0 %v2056_v39 }
 0x129   :  { %1867 = vmatmul.mubr.msk.bf16.vlgmr.msra.gmra.mrb[0].mxu1 %vm492_vm7, %v616_v24 }
 0x12a   :  { %1871 = vmatpush3.bf16.msra.mxu1 %v2046_v43  ;;  %1874 = vmatprep.mubr.msk.bf16.mxu1 %vm492_vm7, %v730_v49 }
 0x12b   :  { %1872 = vmatprep.subr.bf16.mxu1 %v2047_v51 }
 0x12e   :  { %1873 = vmatpush3.bf16.msra.mxu1 %v2047_v51 }
 0x12f   :  { %1878 = vmatprep.subr.bf16.mxu1 %v2048_v54 }
 0x135   :  { %1875 = vmatmul.mubr.msk.bf16.vlgmr.msra.gmra.mrb[0].mxu1 %vm492_vm7, %v731_v57 }
 0x136   :  { %1879 = vmatpush3.bf16.msra.mxu1 %v2048_v54  ;;  %1882 = vmatprep.mubr.msk.bf16.mxu1 %vm492_vm7, %v693_v34 }
 0x137   :  { %1880 = vmatprep.subr.bf16.mxu1 %v2049_v58 }
 0x13a   :  { %1881 = vmatpush3.bf16.msra.mxu1 %v2049_v58 }
 0x13b   :  { %1886 = vmatprep.subr.bf16.mxu1 %v2052_v61 }
 0x141   :  { %1883 = vmatmul.mubr.msk.bf16.vlgmr.msra.gmra.mrb[0].mxu1 %vm492_vm7, %v696_v35 }
 0x142   :  { %1887 = vmatpush3.bf16.msra.mxu1 %v2052_v61  ;;  %1890 = vmatprep.mubr.msk.bf16.mxu1 %vm492_vm7, %v880_v2 }
 0x143   :  { %1888 = vmatprep.subr.bf16.mxu1 %v2053_v4 }
 0x146   :  { %1889 = vmatpush3.bf16.msra.mxu1 %v2053_v4 }
 0x147   :  { %1962 = vmatprep.subr.bf16.mxu1 %v2068_v10 }
 0x14d   :  { %1891 = vmatmul.mubr.msk.bf16.vlgmr.msra.gmra.mrb[0].mxu1 %vm492_vm7, %v881_v9 }
 0x14e   :  { %1902 = vmatprep.mubr.msk.f32.mxu1 %vm2069_vm8, %v2070_v11 }
 0x220   :  { %v1892_v12 = vpop.f32.mrb[0].mxu1 }
 0x221   :  { %v939_v14 = vpop.f32.mrb[1].mxu1 }
 0x222   :  { %v1893_v15 = vpop.f32.mrb[2].mxu1 }
 0x223   :  { %v1966_v16 = vpack.c.bf16 %v1893_v15, %v1892_v12  ;;  %v942_v17 = vpop.f32.mrb[3].mxu1 }
 0x224   :  { %v1963_v18 = vpack.c.bf16 %v942_v17, %v939_v14 }
 0x226   :  { %1964 = vmatpush3.bf16.msra.mxu1 %v1963_v18  ;;  %v2057_v18 = vld [vmem:[%s2442_s8 + $0x18] sm:$0xff]  }
 0x227   :  { %1965 = vmatprep.subr.bf16.mxu1 %v2068_v10 }
 0x22a   :  { %1967 = vmatpush3.bf16.msra.mxu1 %v1966_v16 }
 0x22b   :  { %1968 = vmatprep.subr.bf16.mxu1 %v2068_v10 }
 0x22d   :  { %1903 = vmatmul.mubr.msk.f32.vlgmr.msra.gmra.mrb[4].mxu1 %vm492_vm7, %v2071_v19 }
 0x22e   :  { %1913 = vmatprep.mubr.msk.f32.mxu1 %vm2069_vm8, %v2070_v11 }
 0x300   :  { %v1033_v21 = vpop.f32.mrb[4].mxu1 }
 0x301   :  { %v1037_v22 = vmul.f32 0.03125, %v1033_v21  ;;  %v1904_v24 = vpop.f32.mrb[5].mxu1 }
 0x303   :  { %v1041_v25 = vrot.slane %v1037_v22, %v2343_v20 }
 0x305   :  { %v1042_v26 = vsub.f32 %v939_v14, %v1041_v25  ;;  %v1043_v27 = vsub.f32 %v942_v17, %v1041_v25  ;;  %v1044_v28 = vsub.f32 %v1892_v12, %v1041_v25  ;;  %v1045_v29 = vsub.f32 %v1893_v15, %v1041_v25 }
 0x307   :  { %v1046_v30 = vmul.f32 %v1042_v26, %v1042_v26  ;;  %v1047_v31 = vmul.f32 %v1043_v27, %v1043_v27  ;;  %v1048_v33 = vmul.f32 %v1044_v28, %v1044_v28  ;;  %v1049_v34 = vmul.f32 %v1045_v29, %v1045_v29 }
 0x309   :  { %v1969_v32 = vpack.c.bf16 %v1047_v31, %v1046_v30  ;;  %v1972_v35 = vpack.c.bf16 %v1049_v34, %v1048_v33 }
 0x30b   :  { %1970 = vmatpush3.bf16.msra.mxu1 %v1969_v32 }
 0x30c   :  { %1971 = vmatprep.subr.bf16.mxu1 %v2068_v10 }
 0x30f   :  { %1973 = vmatpush3.bf16.msra.mxu1 %v1972_v35 }
 0x310   :  { %1974 = vmatprep.subr.bf16.mxu1 %v2068_v10 }
 0x312   :  { %1914 = vmatmul.mubr.msk.f32.vlgmr.msra.gmra.mrb[6].mxu1 %vm492_vm7, %v2071_v19 }
 0x313   :  { %1948 = vmatprep.mubr.msk.f32.mxu1 %vm2069_vm8, %v2070_v11 }
 0x3e5   :  { %v1116_v40 = vpop.f32.mrb[6].mxu1 }
 0x3e6   :  { %v1120_v41 = vmul.f32 0.03125, %v1116_v40  ;;  %v1915_v42 = vpop.f32.mrb[7].mxu1 }
 0x3e8   :  { %v1121_v43 = vmax.f32 %v1120_v41, 0.0 }
 0x3ea   :  { %v1122_v44 = vadd.f32 1e-05, %v1121_v43 }
 0x3ec   :  { %2064 = vrsqrt.f32 %v1122_v44 }
 0x3f6   :  { %v2065_v45 = vpop.eup %2064 }
 0x3f7   :  { %v1127_v46 = vrot.slane %v2065_v45, %v2343_v20 }
 0x3f9   :  { %v1128_v48 = vmul.f32 %v1127_v46, %v1042_v26  ;;  %v1129_v49 = vmul.f32 %v1127_v46, %v1043_v27  ;;  %v1130_v51 = vmul.f32 %v1127_v46, %v1044_v28  ;;  %v1131_v52 = vmul.f32 %v1127_v46, %v1045_v29  ;;  %v2059_v29 = vld [vmem:[%s2442_s8 + $0x28] sm:$0xff]  }
 0x3fb   :  { %v1140_v54 = vmul.f32 %v1702_v47, %v1130_v51  ;;  %v1138_v55 = vmul.f32 %v1702_v47, %v1128_v48  ;;  %v1139_v56 = vmul.f32 %v1702_v47, %v1129_v49  ;;  %v1141_v57 = vmul.f32 %v1702_v47, %v1131_v52 }
 0x3fd   :  { %v1148_v58 = vadd.f32 %v1703_v53, %v1138_v55  ;;  %v1149_v59 = vadd.f32 %v1703_v53, %v1139_v56  ;;  %v1151_v60 = vadd.f32 %v1703_v53, %v1141_v57  ;;  %v1150_v61 = vadd.f32 %v1703_v53, %v1140_v54 }
 0x3ff   :  { %v1152_v62 = vmax.f32 %v1148_v58, 0.0  ;;  %v1153_v63 = vmax.f32 %v1149_v59, 0.0  ;;  %v1155_v0 = vmax.f32 %v1151_v60, 0.0  ;;  %v1154_v1 = vmax.f32 %v1150_v61, 0.0  ;;  %v1726_v61 = vld [vmem:[%s2445_s9] ss:$0 sm:$0xff] }
 0x401   :  { %v1156_v2 = vrot.slane %v1152_v62, 7  ;;  %v1157_v4 = vrot.slane %v1153_v63, 7  ;;  %v1159_v5 = vrot.slane %v1155_v0, 7  ;;  %v1158_v6 = vrot.slane %v1154_v1, 7 }
 0x402   :  { %v1180_v21 = vpack.c.bf16 %v1153_v63, %v1152_v62  ;;  %v1169_v22 = vrot.slane %v1153_v63, 1  ;;  %v1170_v13 = vrot.slane %v1154_v1, 1  ;;  %v1168_v24 = vrot.slane %v1152_v62, 1 }
 0x403   :  { %v1162_v7 = vsel %vm113_vm0, %v1156_v2, %v1157_v4  ;;  %v1163_v8 = vsel %vm113_vm0, %v1159_v5, %v1156_v2  ;;  %v1160_v9 = vsel %vm113_vm0, %v1158_v6, %v1159_v5  ;;  %v1161_v12 = vsel %vm113_vm0, %v1157_v4, %v1158_v6 }
 0x404   :  { %v1164_v14 = vsel %vm2152_vm1, 0.0, %v1163_v8  ;;  %v1166_v15 = vsel %vm2165_vm3, 0.0, %v1161_v12  ;;  %v1173_v25 = vsel %vm134_vm4, %v1169_v22, %v1170_v13  ;;  %v1174_v26 = vsel %vm134_vm4, %v1168_v24, %v1169_v22 }
 0x405   :  { %v1187_v16 = vpack.c.bf16 %v1162_v7, %v1164_v14  ;;  %v1188_v17 = vpack.c.bf16 %v1160_v9, %v1166_v15  ;;  %v1177_v27 = vsel %vm2192_vm5, 0.0, %v1173_v25  ;;  %v1181_v28 = vpack.c.bf16 %v1155_v0, %v1154_v1 }
 0x406   :  { %v1327_v30 = vpack.c.bf16 %v1177_v27, %v1174_v26  ;;  %v1171_v31 = vrot.slane %v1155_v0, 1 }
 0x407   :  { %1920 = vmatprep.mubr.msk.bf16.mxu0 %vm492_vm7, %v1187_v16 }
 0x408   :  { %1921 = vmatmul.mubr.msk.bf16.vlgmr.msra.gmra.mrb[4].mxu0 %vm492_vm7, %v1188_v17  ;;  %v1175_v32 = vsel %vm134_vm4, %v1171_v31, %v1168_v24  ;;  %v1172_v38 = vsel %vm134_vm4, %v1170_v13, %v1171_v31 }
 0x409   :  { %1925 = vmatpush3.bf16.msra.mxu0 %v2056_v39  ;;  %1928 = vmatprep.mubr.msk.bf16.mxu0 %vm492_vm7, %v1180_v21  ;;  %v1179_v33 = vsel %vm2217_vm6, 0.0, %v1175_v32 }
 0x40a   :  { %1926 = vmatprep.subr.bf16.mxu0 %v2057_v18  ;;  %v1328_v34 = vpack.c.bf16 %v1179_v33, %v1172_v38 }
 0x40d   :  { %1927 = vmatpush3.bf16.msra.mxu0 %v2057_v18 }
 0x40e   :  { %1932 = vmatprep.subr.bf16.mxu0 %v2058_v23 }
 0x414   :  { %1929 = vmatmul.mubr.msk.bf16.vlgmr.msra.gmra.mrb[4].mxu0 %vm492_vm7, %v1181_v28 }
 0x415   :  { %1933 = vmatpush3.bf16.msra.mxu0 %v2058_v23  ;;  %1936 = vmatprep.mubr.msk.bf16.mxu0 %vm492_vm7, %v1327_v30 }
 0x416   :  { %1934 = vmatprep.subr.bf16.mxu0 %v2059_v29 }
 0x419   :  { %1935 = vmatpush3.bf16.msra.mxu0 %v2059_v29 }
 0x420   :  { %1937 = vmatmul.mubr.msk.bf16.vlgmr.msra.gmra.mrb[4].mxu0 %vm492_vm7, %v1328_v34 }
 0x4f3   :  { %v1938_v35 = vpop.f32.mrb[4].mxu0 }
 0x4f4   :  { %v1386_v36 = vpop.f32.mrb[5].mxu0 }
 0x4f5   :  { %v1939_v37 = vpop.f32.mrb[6].mxu0 }
 0x4f6   :  { %v1978_v39 = vpack.c.bf16 %v1939_v37, %v1938_v35  ;;  %v1389_v40 = vpop.f32.mrb[7].mxu0 }
 0x4f7   :  { %v1975_v41 = vpack.c.bf16 %v1389_v40, %v1386_v36 }
 0x4f9   :  { %1976 = vmatpush3.bf16.msra.mxu1 %v1975_v41 }
 0x4fa   :  { %1977 = vmatprep.subr.bf16.mxu1 %v2068_v10 }
 0x4fd   :  { %1979 = vmatpush3.bf16.msra.mxu1 %v1978_v39 }
 0x4fe   :  { %1980 = vmatprep.subr.bf16.mxu1 %v2068_v10 }
 0x500   :  { %1949 = vmatmul.mubr.msk.f32.vlgmr.msra.gmra.mrb[8].mxu1 %vm492_vm7, %v2071_v19 }
 0x501   :  { %1959 = vmatprep.mubr.msk.f32.mxu1 %vm2069_vm8, %v2070_v11 }
 0x5d3   :  { %v1473_v3 = vpop.f32.mrb[8].mxu1 }
 0x5d4   :  { %v1477_v50 = vmul.f32 0.03125, %v1473_v3  ;;  %v1950_v42 = vpop.f32.mrb[9].mxu1 }
 0x5d6   :  { %v1481_v43 = vrot.slane %v1477_v50, %v2343_v20 }
 0x5d8   :  { %v1482_v44 = vsub.f32 %v1386_v36, %v1481_v43  ;;  %v1483_v45 = vsub.f32 %v1389_v40, %v1481_v43  ;;  %v1484_v46 = vsub.f32 %v1938_v35, %v1481_v43  ;;  %v1485_v47 = vsub.f32 %v1939_v37, %v1481_v43 }
 0x5da   :  { %v1486_v48 = vmul.f32 %v1482_v44, %v1482_v44  ;;  %v1487_v49 = vmul.f32 %v1483_v45, %v1483_v45  ;;  %v1488_v52 = vmul.f32 %v1484_v46, %v1484_v46  ;;  %v1489_v53 = vmul.f32 %v1485_v47, %v1485_v47 }
 0x5dc   :  { %v1981_v51 = vpack.c.bf16 %v1487_v49, %v1486_v48  ;;  %v1984_v54 = vpack.c.bf16 %v1489_v53, %v1488_v52 }
 0x5de   :  { %1982 = vmatpush3.bf16.msra.mxu1 %v1981_v51 }
 0x5df   :  { %1983 = vmatprep.subr.bf16.mxu1 %v2068_v10 }
 0x5e2   :  { %1985 = vmatpush3.bf16.msra.mxu1 %v1984_v54 }
 0x5e5   :  { %1960 = vmatmul.mubr.msk.f32.vlgmr.msra.gmra.mrb[10].mxu1 %vm492_vm7, %v2071_v19  ;;  %v1727_v19 = vld [vmem:[%s2446_s10] ss:$0 sm:$0xff] }
 0x6b8   :  { %v1556_v11 = vpop.f32.mrb[10].mxu1 }
 0x6b9   :  { %v1560_v55 = vmul.f32 0.03125, %v1556_v11  ;;  %v1961_v56 = vpop.f32.mrb[11].mxu1 }
 0x6bb   :  { %v1561_v57 = vmax.f32 %v1560_v55, 0.0 }
 0x6bd   :  { %v1562_v58 = vadd.f32 1e-05, %v1561_v57 }
 0x6bf   :  { %2066 = vrsqrt.f32 %v1562_v58 }
 0x6c9   :  { %v2067_v59 = vpop.eup %2066 }
 0x6ca   :  { %v1567_v60 = vrot.slane %v2067_v59, %v2343_v20 }
 0x6cc   :  { %v1568_v62 = vmul.f32 %v1567_v60, %v1482_v44  ;;  %v1569_v10 = vmul.f32 %v1567_v60, %v1483_v45  ;;  %v1570_v63 = vmul.f32 %v1567_v60, %v1484_v46  ;;  %v1571_v0 = vmul.f32 %v1567_v60, %v1485_v47 }
 0x6ce   :  { %v1578_v1 = vmul.f32 %v1726_v61, %v1568_v62  ;;  %v1579_v2 = vmul.f32 %v1726_v61, %v1569_v10  ;;  %v1580_v4 = vmul.f32 %v1726_v61, %v1570_v63  ;;  %v1581_v5 = vmul.f32 %v1726_v61, %v1571_v0 }
 0x6d0   :  { %v1588_v6 = vadd.f32 %v1727_v19, %v1578_v1  ;;  %v1589_v7 = vadd.f32 %v1727_v19, %v1579_v2  ;;  %v1590_v8 = vadd.f32 %v1727_v19, %v1580_v4  ;;  %v1591_v20 = vadd.f32 %v1727_v19, %v1581_v5 }
 0x6d2   :  { %v1592_v9 = vmax.f32 %v1588_v6, 0.0  ;;  %v1593_v12 = vmax.f32 %v1589_v7, 0.0  ;;  %v1594_v14 = vmax.f32 %v1590_v8, 0.0  ;;  %v1595_v15 = vmax.f32 %v1591_v20, 0.0 }
 0x6d4   :  { %v1732_v16 = vpack.c.bf16 %v1592_v9, %v1592_v9  ;;  %v1733_v17 = vpack.c.bf16 %v1593_v12, %v1593_v12  ;;  %v1734_v18 = vpack.c.bf16 %v1594_v14, %v1594_v14  ;;  %v1735_v21 = vpack.c.bf16 %v1595_v15, %v1595_v15 }
 0x6d6   :  { %1613 = vst.msk [vmem:[%s2447_s11] sm:$0xf] %vm1612_vm9, %v1732_v16  ;;  %1614 = vst.msk [vmem:[%s2447_s11 + $0x4] sm:$0xf] %vm1612_vm9, %v1733_v17 }
 0x6d7   :  { %1615 = vst.msk [vmem:[%s2447_s11 + $0x8] sm:$0xf] %vm1612_vm9, %v1734_v18  ;;  %1616 = vst.msk [vmem:[%s2447_s11 + $0xc] sm:$0xf] %vm1612_vm9, %v1735_v21 }

// kernel: unet_forward.19
= control target key start
LH: loop header
LB: loop body
LE: loop exit
PB: predicated region body
PF: predicated region fallthrough
CT: control target
= control target key end

     0   :  { %v15_v0 = vlaneseq  ;;  %vm250_vm0 = vcmask 130048   ;;  %vm543_vm7 = vcmask 15360   ;;  %s1028_s1 = inlined_call_operand.vmem [shape: bf16[3,16,2], index: 1, kind: input, shape index: {}]   ;;  %s1029_s0 = inlined_call_operand.vmem [shape: bf16[64,16], index: 0, kind: input, shape index: {}]   ;;  %s1030_s2 = inlined_call_operand.vmem [shape: f32[1,2], index: 2, kind: input, shape index: {}]   ;;  %s1031_s3 = inlined_call_operand.vmem [shape: f32[64,2], index: 3, kind: output, shape index: {}]  }
   0x1   :  { %v813_v1 = vld [vmem:[%s1028_s1 + $0x8] sm:$0xff]   ;;  %v748_v2 = vld [vmem:[%s1028_s1] sm:$0xff]   ;;  %v751_v9 = vld [vmem:[%s1028_s1 + $0x10] sm:$0xff]  }
   0x2   :  { %v818_v3 = vshrl.u32 %v15_v0, 7  ;;  %709 = vmatprep.subr.bf16.mxu0 %v813_v1  ;;  %v136_v4 = vld [vmem:[%s1029_s0] sm:$0xff]   ;;  %v138_v5 = vld [vmem:[%s1029_s0 + $0x8] sm:$0xff]   ;;  %699 = vmatprep.subr.bf16.mxu1 %v748_v2  ;;  %v834_v11 = vld [vmem:[%s1029_s0 + $0x18] sm:$0xff]  }
   0x3   :  { %710 = vmatpush3.bf16.msra.mxu0 %v813_v1  ;;  %v144_v6 = vunpack.c.l.bf16 %v136_v4  ;;  %v145_v7 = vunpack.c.h.bf16 %v136_v4  ;;  %v146_v8 = vunpack.c.l.bf16 %v138_v5  ;;  %700 = vmatpush3.bf16.msra.mxu1 %v748_v2  ;;  %v147_v10 = vunpack.c.h.bf16 %v138_v5  ;;  %v844_v19 = vld [vmem:[%s1029_s0 + $0x10] sm:$0xff]  }
   0x4   :  { %711 = vmatprep.mubr.msk.bf16.mxu0 %vm250_vm0, %v136_v4  ;;  %719 = vmatprep.subr.bf16.mxu0 %v751_v9  ;;  %v28_v14 = vand.u32 31, %v818_v3  ;;  %v150_v18 = vunpack.c.l.bf16 %v834_v11  ;;  %v151_v22 = vunpack.c.h.bf16 %v834_v11  ;;  %vm161_vm1 = vcmp.lt.s32.totalorder %v818_v3, 1 }
   0x5   :  { %v153_v12 = vrot.slane %v144_v6, 7  ;;  %v154_v13 = vrot.slane %v145_v7, 7  ;;  %v194_v15 = vrot.slane %v144_v6, 1  ;;  %v155_v16 = vrot.slane %v146_v8, 7  ;;  %729 = vmatprep.subr.bf16.mxu1 %v813_v1 }
   0x6   :  { %v156_v17 = vrot.slane %v147_v10, 7  ;;  %712 = vmatmul.mubr.msk.bf16.vlgmr.msra.gmra.mrb[0].mxu0 %vm250_vm0, %v138_v5  ;;  %v195_v20 = vrot.slane %v145_v7, 1  ;;  %v196_v21 = vrot.slane %v146_v8, 1  ;;  %v197_v23 = vrot.slane %v147_v10, 1 }
   0x7   :  { %720 = vmatpush3.bf16.msra.mxu0 %v751_v9  ;;  %v167_v25 = vsel %vm161_vm1, %v154_v13, %v155_v16  ;;  %v20_v26 = vadd.s32 32, %v818_v3  ;;  %vm853_vm2 = vcmp.eq.s32.totalorder %v28_v14, 0  ;;  %v160_v28 = vrot.slane %v151_v22, 7 }
   0x8   :  { %v166_v24 = vsel %vm161_vm1, %v155_v16, %v156_v17  ;;  %v168_v29 = vsel %vm161_vm1, %v153_v12, %v154_v13  ;;  %v148_v30 = vunpack.c.l.bf16 %v844_v19  ;;  %v149_v33 = vunpack.c.h.bf16 %v844_v19 }
   0x9   :  { %v239_v31 = vpack.c.bf16 %v166_v24, %v167_v25  ;;  %v56_v32 = vand.u32 31, %v20_v26  ;;  %vm202_vm3 = vcmp.lt.s32.totalorder %v818_v3, 7  ;;  %v169_v34 = vsel %vm161_vm1, %v160_v28, %v153_v12 }
   0xa   :  { %v157_v35 = vrot.slane %v148_v30, 7  ;;  %v198_v36 = vrot.slane %v148_v30, 1  ;;  %v208_v37 = vsel %vm202_vm3, %v195_v20, %v196_v21  ;;  %v186_v38 = vsel %vm853_vm2, 0.0, %v169_v34 }
   0xb   :  { %vm124_vm4 = vcmp.eq.s32.totalorder %v56_v32, 0  ;;  %v158_v39 = vrot.slane %v149_v33, 7  ;;  %v159_v40 = vrot.slane %v150_v18, 7  ;;  %v238_v41 = vpack.c.bf16 %v168_v29, %v186_v38 }
   0xc   :  { %v165_v42 = vsel %vm161_vm1, %v156_v17, %v157_v35  ;;  %v209_v43 = vsel %vm202_vm3, %v194_v15, %v195_v20  ;;  %v19_v44 = vadd.s32 24, %v818_v3  ;;  %v201_v48 = vrot.slane %v151_v22, 1 }
   0xd   :  { %v164_v45 = vsel %vm161_vm1, %v157_v35, %v158_v39  ;;  %v190_v46 = vsel %vm124_vm4, 0.0, %v165_v42  ;;  %v431_v47 = vpack.c.bf16 %v208_v37, %v209_v43  ;;  %701 = vmatprep.mubr.msk.bf16.mxu1 %vm250_vm0, %v238_v41  ;;  %v206_v51 = vsel %vm202_vm3, %v197_v23, %v198_v36 }
   0xe   :  { %v240_v49 = vpack.c.bf16 %v164_v45, %v190_v46  ;;  %v49_v50 = vand.u32 31, %v19_v44  ;;  %702 = vmatmul.mubr.msk.bf16.vlgmr.msra.gmra.mrb[0].mxu1 %vm250_vm0, %v239_v31  ;;  %v207_v52 = vsel %vm202_vm3, %v196_v21, %v197_v23  ;;  %v199_v53 = vrot.slane %v149_v33, 1 }
   0xf   :  { %721 = vmatprep.mubr.msk.bf16.mxu0 %vm250_vm0, %v431_v47  ;;  %v200_v54 = vrot.slane %v150_v18, 1  ;;  %v23_v55 = vadd.s32 56, %v818_v3  ;;  %730 = vmatpush3.bf16.msra.mxu1 %v813_v1  ;;  %v162_v56 = vsel %vm161_vm1, %v159_v40, %v160_v28  ;;  %v163_v57 = vsel %vm161_vm1, %v158_v39, %v159_v40  ;;  %v683_v3 = vld [vmem:[%s1030_s2] ss:$0 sm:$0xff] }
  0x10   :  { %705 = vmatprep.mubr.msk.bf16.mxu1 %vm250_vm0, %v240_v49  ;;  %vm131_vm5 = vcmp.eq.s32.totalorder %v49_v50, 31  ;;  %v205_v60 = vsel %vm202_vm3, %v198_v36, %v199_v53  ;;  %v210_v0 = vsel %vm202_vm3, %v201_v48, %v194_v15  ;;  %v241_v1 = vpack.c.bf16 %v162_v56, %v163_v57 }
  0x11   :  { %v230_v58 = vsel %vm131_vm5, 0.0, %v206_v51  ;;  %v204_v59 = vsel %vm202_vm3, %v199_v53, %v200_v54  ;;  %v77_v61 = vand.u32 31, %v23_v55  ;;  %v203_v2 = vsel %vm202_vm3, %v200_v54, %v201_v48 }
  0x12   :  { %v432_v62 = vpack.c.bf16 %v230_v58, %v207_v52  ;;  %v433_v63 = vpack.c.bf16 %v204_v59, %v205_v60 }
  0x13   :  { %vm135_vm6 = vcmp.eq.s32.totalorder %v77_v61, 31 }
  0x14   :  { %722 = vmatmul.mubr.msk.bf16.vlgmr.msra.gmra.mrb[0].mxu0 %vm250_vm0, %v432_v62  ;;  %v234_v4 = vsel %vm135_vm6, 0.0, %v210_v0 }
  0x15   :  { %725 = vmatprep.mubr.msk.bf16.mxu0 %vm250_vm0, %v433_v63  ;;  %v434_v5 = vpack.c.bf16 %v234_v4, %v203_v2 }
  0x16   :  { %706 = vmatmul.mubr.msk.bf16.gmra.mrb[4].mxu1 %vm250_vm0, %v241_v1 }
  0x17   :  { %715 = vmatprep.mubr.msk.bf16.mxu1 %vm250_vm0, %v844_v19 }
  0x1c   :  { %726 = vmatmul.mubr.msk.bf16.gmra.mrb[4].mxu0 %vm250_vm0, %v434_v5 }
  0x22   :  { %716 = vmatmul.mubr.msk.bf16.vlgmr.msra.gmra.mrb[4].mxu1 %vm250_vm0, %v834_v11 }
  0xe1   :  { %v703_v6 = vpop.f32.mrb[0].mxu1 }
  0xe2   :  { %v297_v7 = vpop.f32.mrb[1].mxu1 }
  0xe3   :  { %v704_v8 = vpop.f32.mrb[2].mxu1 }
  0xe4   :  { %v300_v9 = vpop.f32.mrb[3].mxu1 }
  0xe7   :  { %v723_v10 = vpop.f32.mrb[0].mxu0 }
  0xe8   :  { %v731_v12 = vadd.f32 %v723_v10, %v703_v6  ;;  %v490_v13 = vpop.f32.mrb[1].mxu0 }
  0xe9   :  { %v732_v14 = vadd.f32 %v490_v13, %v297_v7  ;;  %v724_v15 = vpop.f32.mrb[2].mxu0 }
  0xea   :  { %v908_v16 = vadd.f32 %v731_v12, %v683_v3  ;;  %v733_v17 = vadd.f32 %v724_v15, %v704_v8  ;;  %v493_v18 = vpop.f32.mrb[3].mxu0 }
  0xeb   :  { %v910_v19 = vadd.f32 %v732_v14, %v683_v3  ;;  %v734_v11 = vadd.f32 %v493_v18, %v300_v9 }
  0xec   :  { %v912_v20 = vadd.f32 %v733_v17, %v683_v3  ;;  %v550_v21 = vsel %vm543_vm7, %v908_v16, -inf }
  0xed   :  { %v916_v22 = vadd.f32 %v734_v11, %v683_v3  ;;  %551 = vmax.xlane.f32.xlu1 %v550_v21  ;;  %v544_v23 = vsel %vm543_vm7, %v910_v19, -inf }
  0xee   :  { %545 = vmax.xlane.f32.xlu0 %v544_v23  ;;  %v553_v26 = vsel %vm543_vm7, %v912_v20, -inf }
  0xef   :  { %v727_v24 = vpop.f32.mrb[4].mxu0  ;;  %v547_v28 = vsel %vm543_vm7, %v916_v22, -inf }
  0xf0   :  { %v506_v25 = vpop.f32.mrb[5].mxu0 }
  0xf1   :  { %v728_v27 = vpop.f32.mrb[6].mxu0  ;;  %554 = vmax.xlane.f32.xlu1 %v553_v26 }
  0xf2   :  { %v509_v29 = vpop.f32.mrb[7].mxu0  ;;  %548 = vmax.xlane.f32.xlu0 %v547_v28 }
  0xf5   :  { %v717_v30 = vpop.f32.mrb[4].mxu1 }
  0xf6   :  { %v735_v31 = vadd.f32 %v727_v24, %v717_v30  ;;  %v416_v32 = vpop.f32.mrb[5].mxu1 }
  0xf7   :  { %v736_v33 = vadd.f32 %v506_v25, %v416_v32  ;;  %v718_v34 = vpop.f32.mrb[6].mxu1 }
  0xf8   :  { %v737_v35 = vadd.f32 %v728_v27, %v718_v34  ;;  %v419_v36 = vpop.f32.mrb[7].mxu1  ;;  %v926_v39 = vadd.f32 %v735_v31, %v683_v3 }
  0xf9   :  { %v924_v37 = vadd.f32 %v736_v33, %v683_v3  ;;  %v738_v38 = vadd.f32 %v509_v29, %v419_v36 }
  0xfa   :  { %v932_v42 = vadd.f32 %v737_v35, %v683_v3  ;;  %v562_v44 = vsel %vm543_vm7, %v926_v39, -inf }
  0xfb   :  { %v928_v40 = vadd.f32 %v738_v38, %v683_v3  ;;  %v556_v41 = vsel %vm543_vm7, %v924_v37, -inf }
  0xfc   :  { %557 = vmax.xlane.f32.xlu0 %v556_v41  ;;  %v565_v45 = vsel %vm543_vm7, %v932_v42, -inf }
  0xfd   :  { %v559_v43 = vsel %vm543_vm7, %v928_v40, -inf }
  0xfe   :  { %560 = vmax.xlane.f32.xlu1 %v559_v43 }
 0x100   :  { %563 = vmax.xlane.f32.xlu0 %v562_v44 }
 0x102   :  { %566 = vmax.xlane.f32.xlu1 %v565_v45 }
 0x17a   :  { %v940_v46 = vpop.xlane.xlu1 %551 }
 0x17b   :  { %v570_v47 = vsub.f32 %v908_v16, %v940_v46  ;;  %v944_v48 = vpop.xlane.xlu0 %545 }
 0x17c   :  { %v568_v49 = vsub.f32 %v910_v19, %v944_v48 }
 0x17d   :  { %v580_v50 = vmul.f32 1.442695, %v570_v47 }
 0x17e   :  { %v576_v51 = vmul.f32 1.442695, %v568_v49  ;;  %v948_v52 = vpop.xlane.xlu1 %554 }
 0x17f   :  { %758 = vpow2.f32 %v580_v50  ;;  %v571_v53 = vsub.f32 %v912_v20, %v948_v52  ;;  %v952_v54 = vpop.xlane.xlu0 %548 }
 0x180   :  { %v569_v55 = vsub.f32 %v916_v22, %v952_v54  ;;  %760 = vpow2.f32 %v576_v51 }
 0x181   :  { %v582_v56 = vmul.f32 1.442695, %v571_v53 }
 0x182   :  { %v578_v57 = vmul.f32 1.442695, %v569_v55 }
 0x183   :  { %762 = vpow2.f32 %v582_v56 }
 0x184   :  { %764 = vpow2.f32 %v578_v57 }
 0x189   :  { %v759_v58 = vpop.eup %758  ;;  %v956_v59 = vpop.xlane.xlu0 %557 }
 0x18a   :  { %v598_v60 = vsel %vm543_vm7, %v759_v58, 0.0  ;;  %v761_v61 = vpop.eup %760  ;;  %v572_v62 = vsub.f32 %v924_v37, %v956_v59 }
 0x18b   :  { %599 = vadd.xlane.f32.xlu0 %v598_v60  ;;  %v961_v63 = vpop.xlane.xlu1 %560  ;;  %v592_v5 = vsel %vm543_vm7, %v761_v61, 0.0 }
 0x18c   :  { %v584_v1 = vmul.f32 1.442695, %v572_v62  ;;  %v573_v2 = vsub.f32 %v928_v40, %v961_v63 }
 0x18d   :  { %v763_v0 = vpop.eup %762  ;;  %v965_v4 = vpop.xlane.xlu0 %563 }
 0x18e   :  { %v601_v6 = vsel %vm543_vm7, %v763_v0, 0.0  ;;  %v765_v7 = vpop.eup %764  ;;  %766 = vpow2.f32 %v584_v1  ;;  %v586_v8 = vmul.f32 1.442695, %v573_v2  ;;  %v574_v9 = vsub.f32 %v926_v39, %v965_v4 }
 0x18f   :  { %593 = vadd.xlane.f32.xlu0 %v592_v5  ;;  %602 = vadd.xlane.f32.xlu1 %v601_v6  ;;  %v971_v3 = vpop.xlane.xlu1 %566  ;;  %v595_v13 = vsel %vm543_vm7, %v765_v7, 0.0 }
 0x190   :  { %768 = vpow2.f32 %v586_v8  ;;  %v588_v10 = vmul.f32 1.442695, %v574_v9  ;;  %v575_v12 = vsub.f32 %v932_v42, %v971_v3 }
 0x192   :  { %770 = vpow2.f32 %v588_v10  ;;  %v590_v14 = vmul.f32 1.442695, %v575_v12 }
 0x193   :  { %596 = vadd.xlane.f32.xlu1 %v595_v13 }
 0x194   :  { %772 = vpow2.f32 %v590_v14 }
 0x198   :  { %v767_v15 = vpop.eup %766 }
 0x199   :  { %v604_v17 = vsel %vm543_vm7, %v767_v15, 0.0 }
 0x19a   :  { %v769_v18 = vpop.eup %768  ;;  %605 = vadd.xlane.f32.xlu0 %v604_v17 }
 0x19b   :  { %v607_v11 = vsel %vm543_vm7, %v769_v18, 0.0 }
 0x19c   :  { %v771_v21 = vpop.eup %770  ;;  %608 = vadd.xlane.f32.xlu1 %v607_v11 }
 0x19d   :  { %v610_v23 = vsel %vm543_vm7, %v771_v21, 0.0 }
 0x19e   :  { %v773_v24 = vpop.eup %772  ;;  %611 = vadd.xlane.f32.xlu0 %v610_v23 }
 0x19f   :  { %v613_v25 = vsel %vm543_vm7, %v773_v24, 0.0 }
 0x1a0   :  { %614 = vadd.xlane.f32.xlu1 %v613_v25 }
 0x218   :  { %v600_v26 = vpop.xlane.xlu0 %599 }
 0x219   :  { %774 = vlog2.f32 %v600_v26 }
 0x21c   :  { %v594_v27 = vpop.xlane.xlu0 %593  ;;  %v603_v28 = vpop.xlane.xlu1 %602 }
 0x21d   :  { %776 = vlog2.f32 %v594_v27 }
 0x21e   :  { %778 = vlog2.f32 %v603_v28 }
 0x220   :  { %v597_v29 = vpop.xlane.xlu1 %596 }
 0x221   :  { %780 = vlog2.f32 %v597_v29 }
 0x223   :  { %v775_v30 = vpop.eup %774 }
 0x224   :  { %v621_v31 = vmul.f32 0.6931472, %v775_v30 }
 0x226   :  { %v634_v32 = vadd.f32 %v621_v31, %v940_v46 }
 0x227   :  { %v777_v33 = vpop.eup %776  ;;  %v606_v38 = vpop.xlane.xlu0 %605 }
 0x228   :  { %v779_v34 = vpop.eup %778  ;;  %v642_v35 = vsub.f32 %v908_v16, %v634_v32  ;;  %v617_v36 = vmul.f32 0.6931472, %v777_v33  ;;  %782 = vlog2.f32 %v606_v38 }
 0x229   :  { %v623_v41 = vmul.f32 0.6931472, %v779_v34  ;;  %v609_v44 = vpop.xlane.xlu1 %608 }
 0x22a   :  { %650 = vst.msk [vmem:[%s1031_s3 + $0x10] sm:$0xff] %vm543_vm7, %v642_v35  ;;  %v632_v43 = vadd.f32 %v617_v36, %v944_v48  ;;  %784 = vlog2.f32 %v609_v44 }
 0x22b   :  { %v781_v45 = vpop.eup %780  ;;  %v635_v47 = vadd.f32 %v623_v41, %v948_v52  ;;  %v612_v16 = vpop.xlane.xlu0 %611 }
 0x22c   :  { %v640_v46 = vsub.f32 %v910_v19, %v632_v43  ;;  %v619_v49 = vmul.f32 0.6931472, %v781_v45  ;;  %786 = vlog2.f32 %v612_v16 }
 0x22d   :  { %v643_v50 = vsub.f32 %v912_v20, %v635_v47  ;;  %v615_v48 = vpop.xlane.xlu1 %614 }
 0x22e   :  { %648 = vst.msk [vmem:[%s1031_s3] sm:$0xff] %vm543_vm7, %v640_v46  ;;  %v633_v51 = vadd.f32 %v619_v49, %v952_v54  ;;  %788 = vlog2.f32 %v615_v48 }
 0x22f   :  { %651 = vst.msk [vmem:[%s1031_s3 + $0x18] sm:$0xff] %vm543_vm7, %v643_v50 }
 0x230   :  { %v641_v19 = vsub.f32 %v916_v22, %v633_v51 }
 0x232   :  { %649 = vst.msk [vmem:[%s1031_s3 + $0x8] sm:$0xff] %vm543_vm7, %v641_v19  ;;  %v783_v20 = vpop.eup %782 }
 0x233   :  { %v625_v52 = vmul.f32 0.6931472, %v783_v20 }
 0x234   :  { %v785_v53 = vpop.eup %784 }
 0x235   :  { %v636_v55 = vadd.f32 %v625_v52, %v956_v59  ;;  %v627_v54 = vmul.f32 0.6931472, %v785_v53 }
 0x236   :  { %v787_v56 = vpop.eup %786 }
 0x237   :  { %v644_v57 = vsub.f32 %v924_v37, %v636_v55  ;;  %v637_v58 = vadd.f32 %v627_v54, %v961_v63  ;;  %v629_v60 = vmul.f32 0.6931472, %v787_v56 }
 0x238   :  { %v789_v61 = vpop.eup %788 }
 0x239   :  { %652 = vst.msk [vmem:[%s1031_s3 + $0x20] sm:$0xff] %vm543_vm7, %v644_v57  ;;  %v645_v22 = vsub.f32 %v928_v40, %v637_v58  ;;  %v638_v62 = vadd.f32 %v629_v60, %v965_v4  ;;  %v631_v0 = vmul.f32 0.6931472, %v789_v61 }
 0x23b   :  { %653 = vst.msk [vmem:[%s1031_s3 + $0x28] sm:$0xff] %vm543_vm7, %v645_v22  ;;  %v646_v37 = vsub.f32 %v926_v39, %v638_v62  ;;  %v639_v59 = vadd.f32 %v631_v0, %v971_v3 }
 0x23d   :  { %654 = vst.msk [vmem:[%s1031_s3 + $0x30] sm:$0xff] %vm543_vm7, %v646_v37  ;;  %v647_v63 = vsub.f32 %v932_v42, %v639_v59 }
 0x23f   :  { %655 = vst.msk [vmem:[%s1031_s3 + $0x38] sm:$0xff] %vm543_vm7, %v647_v63 }

// kernel: unet_forward.18
= control target key start
LH: loop header
LB: loop body
LE: loop exit
PB: predicated region body
PF: predicated region fallthrough
CT: control target
= control target key end

     0   :  { %v39_v0 = vlaneseq  ;;  %vm284_vm2 = vcmask 261120   ;;  %vm658_vm7 = vcmask 130048   ;;  %vm2663_vm8 = vmmov 0   ;;  %s3169_s2 = inlined_call_operand.vmem [shape: bf16[3,32,16], index: 2, kind: input, shape index: {}]   ;;  %s3170_s0 = inlined_call_operand.vmem [shape: bf16[64,32], index: 0, kind: input, shape index: {}]   ;;  %s3171_s4 = inlined_call_operand.vmem [shape: bf16[3,16,16], index: 4, kind: input, shape index: {}]   ;;  %s3172_s5 = inlined_call_operand.vmem [shape: bf16[3,16,16], index: 5, kind: input, shape index: {}]   ;;  %s3173_s3 = inlined_call_operand.vmem [shape: f32[1,16], index: 3, kind: input, shape index: {}]   ;;  %s3174_s1 = inlined_call_operand.vmem [shape: bf16[64,16], index: 1, kind: input, shape index: {}]   ;;  %s3175_s8 = inlined_call_operand.vmem [shape: bf16[3,16,16], index: 8, kind: input, shape index: {}]   ;;  %s3176_s6 = inlined_call_operand.vmem [shape: f32[1,16], index: 6, kind: input, shape index: {}]   ;;  %s3177_s7 = inlined_call_operand.vmem [shape: f32[1,16], index: 7, kind: input, shape index: {}]   ;;  %s3178_s9 = inlined_call_operand.vmem [shape: f32[1,16], index: 9, kind: input, shape index: {}]   ;;  %s3179_s10 = inlined_call_operand.vmem [shape: f32[1,16], index: 10, kind: input, shape index: {}]   ;;  %s3180_s11 = inlined_call_operand.vmem [shape: bf16[64,16], index: 11, kind: output, shape index: {}]  }
   0x1   :  { %v2627_v1 = vld [vmem:[%s3169_s2] sm:$0xff]   ;;  %v2628_v2 = vld [vmem:[%s3169_s2 + $0x8] sm:$0xff]   ;;  %v2740_v5 = vld [vmem:[%s3170_s0 + $0x18] sm:$0xff]   ;;  %vm1284_vm9 = vcmask 523264   ;;  %vm2073_vm10 = vcmask 125952  }
   0x2   :  { %v2732_v3 = vshrl.u32 %v39_v0, 7  ;;  %2301 = vmatprep.subr.bf16.mxu0 %v2627_v1  ;;  %v160_v4 = vld [vmem:[%s3170_s0] sm:$0xff]   ;;  %v162_v6 = vld [vmem:[%s3170_s0 + $0x8] sm:$0xff]   ;;  %v175_v10 = vunpack.c.h.bf16 %v2740_v5  ;;  %v2630_v13 = vld [vmem:[%s3169_s2 + $0x10] sm:$0xff]   ;;  %v174_v32 = vunpack.c.l.bf16 %v2740_v5 }
   0x3   :  { %2302 = vmatpush3.bf16.msra.mxu0 %v2627_v1  ;;  %v168_v8 = vunpack.c.l.bf16 %v160_v4  ;;  %v169_v9 = vunpack.c.h.bf16 %v160_v4  ;;  %v170_v11 = vunpack.c.l.bf16 %v162_v6  ;;  %v171_v12 = vunpack.c.h.bf16 %v162_v6  ;;  %v164_v19 = vld [vmem:[%s3170_s0 + $0x10] sm:$0xff]   ;;  %v2631_v33 = vld [vmem:[%s3169_s2 + $0x18] sm:$0xff]   ;;  %v2633_v43 = vld [vmem:[%s3169_s2 + $0x20] sm:$0xff]  }
   0x4   :  { %v52_v7 = vand.u32 31, %v2732_v3  ;;  %2303 = vmatprep.subr.bf16.mxu0 %v2628_v2  ;;  %vm185_vm0 = vcmp.lt.s32.totalorder %v2732_v3, 1  ;;  %v184_v17 = vrot.slane %v175_v10, 7  ;;  %v44_v25 = vadd.s32 32, %v2732_v3  ;;  %v2636_v48 = vld [vmem:[%s3169_s2 + $0x28] sm:$0xff]  }
   0x5   :  { %v177_v15 = vrot.slane %v168_v8, 7  ;;  %v178_v16 = vrot.slane %v169_v9, 7  ;;  %v179_v18 = vrot.slane %v170_v11, 7  ;;  %v180_v22 = vrot.slane %v171_v12, 7 }
   0x6   :  { %vm2751_vm1 = vcmp.eq.s32.totalorder %v52_v7, 0  ;;  %v172_v28 = vunpack.c.l.bf16 %v164_v19  ;;  %v173_v29 = vunpack.c.h.bf16 %v164_v19  ;;  %v80_v31 = vand.u32 31, %v44_v25 }
   0x7   :  { %2304 = vmatpush3.bf16.msra.mxu0 %v2628_v2  ;;  %v192_v20 = vsel %vm185_vm0, %v177_v15, %v178_v16  ;;  %v193_v21 = vsel %vm185_vm0, %v184_v17, %v177_v15  ;;  %v191_v24 = vsel %vm185_vm0, %v178_v16, %v179_v18  ;;  %v190_v27 = vsel %vm185_vm0, %v179_v18, %v180_v22  ;;  %v2116_v15 = vld [vmem:[%s3173_s3] ss:$0 sm:$0xff] }
   0x8   :  { %v210_v23 = vsel %vm2751_vm1, 0.0, %v193_v21  ;;  %2313 = vmatprep.subr.bf16.mxu0 %v2630_v13  ;;  %v265_v30 = vpack.c.bf16 %v190_v27, %v191_v24  ;;  %v181_v34 = vrot.slane %v172_v28, 7  ;;  %v182_v35 = vrot.slane %v173_v29, 7 }
   0x9   :  { %v264_v26 = vpack.c.bf16 %v192_v20, %v210_v23  ;;  %vm2777_vm3 = vcmp.eq.s32.totalorder %v80_v31, 0  ;;  %v183_v37 = vrot.slane %v174_v32, 7  ;;  %v218_v46 = vrot.slane %v168_v8, 1 }
   0xa   :  { %v188_v38 = vsel %vm185_vm0, %v181_v34, %v182_v35  ;;  %v189_v39 = vsel %vm185_vm0, %v180_v22, %v181_v34  ;;  %v219_v47 = vrot.slane %v169_v9, 1  ;;  %v220_v49 = vrot.slane %v170_v11, 1 }
   0xb   :  { %2305 = vmatprep.mubr.msk.bf16.mxu0 %vm284_vm2, %v264_v26  ;;  %v214_v40 = vsel %vm2777_vm3, 0.0, %v189_v39  ;;  %v186_v41 = vsel %vm185_vm0, %v183_v37, %v184_v17  ;;  %v187_v42 = vsel %vm185_vm0, %v182_v35, %v183_v37  ;;  %v43_v50 = vadd.s32 24, %v2732_v3 }
   0xc   :  { %2306 = vmatmul.mubr.msk.bf16.vlgmr.msra.gmra.mrb[0].mxu0 %vm284_vm2, %v265_v30  ;;  %v266_v44 = vpack.c.bf16 %v188_v38, %v214_v40  ;;  %v267_v45 = vpack.c.bf16 %v186_v41, %v187_v42  ;;  %vm226_vm4 = vcmp.lt.s32.totalorder %v2732_v3, 7  ;;  %v221_v51 = vrot.slane %v171_v12, 1  ;;  %v2637_v12 = vld [vmem:[%s3171_s4] sm:$0xff]  }
   0xd   :  { %2314 = vmatpush3.bf16.msra.mxu0 %v2630_v13  ;;  %v222_v52 = vrot.slane %v172_v28, 1  ;;  %v232_v53 = vsel %vm226_vm4, %v219_v47, %v220_v49  ;;  %v233_v54 = vsel %vm226_vm4, %v218_v46, %v219_v47  ;;  %v73_v55 = vand.u32 31, %v43_v50  ;;  %2337 = vmatprep.subr.bf16.mxu1 %v2637_v12  ;;  %v2847_v13 = vld [vmem:[%s3171_s4 + $0x8] sm:$0xff]  }
   0xe   :  { %2315 = vmatprep.subr.bf16.mxu0 %v2631_v33  ;;  %2309 = vmatprep.mubr.msk.bf16.mxu0 %vm284_vm2, %v266_v44  ;;  %v471_v56 = vpack.c.bf16 %v232_v53, %v233_v54  ;;  %v223_v59 = vrot.slane %v173_v29, 1  ;;  %v224_v60 = vrot.slane %v174_v32, 1  ;;  %v47_v61 = vadd.s32 56, %v2732_v3 }
   0xf   :  { %v230_v57 = vsel %vm226_vm4, %v221_v51, %v222_v52  ;;  %vm2810_vm5 = vcmp.eq.s32.totalorder %v73_v55, 31  ;;  %v231_v62 = vsel %vm226_vm4, %v220_v49, %v221_v51  ;;  %v225_v0 = vrot.slane %v175_v10, 1  ;;  %2338 = vmatpush3.bf16.msra.mxu1 %v2637_v12 }
  0x10   :  { %v254_v63 = vsel %vm2810_vm5, 0.0, %v230_v57  ;;  %v228_v1 = vsel %vm226_vm4, %v223_v59, %v224_v60  ;;  %v229_v2 = vsel %vm226_vm4, %v222_v52, %v223_v59  ;;  %2347 = vmatprep.subr.bf16.mxu1 %v2847_v13 }
  0x11   :  { %2316 = vmatpush3.bf16.msra.mxu0 %v2631_v33  ;;  %v473_v7 = vpack.c.bf16 %v228_v1, %v229_v2  ;;  %v234_v9 = vsel %vm226_vm4, %v225_v0, %v218_v46 }
  0x12   :  { %2325 = vmatprep.subr.bf16.mxu0 %v2633_v43 }
  0x14   :  { %2310 = vmatmul.mubr.msk.bf16.gmra.mrb[4].mxu0 %vm284_vm2, %v267_v45 }
  0x15   :  { %2317 = vmatprep.mubr.msk.bf16.mxu0 %vm284_vm2, %v160_v4  ;;  %v101_v4 = vand.u32 31, %v47_v61 }
  0x17   :  { %vm2828_vm6 = vcmp.eq.s32.totalorder %v101_v4, 31 }
  0x18   :  { %v258_v10 = vsel %vm2828_vm6, 0.0, %v234_v9 }
  0x1c   :  { %2318 = vmatmul.mubr.msk.bf16.vlgmr.msra.gmra.mrb[0].mxu0 %vm284_vm2, %v162_v6  ;;  %v472_v6 = vpack.c.bf16 %v254_v63, %v231_v62 }
  0x1d   :  { %2326 = vmatpush3.bf16.msra.mxu0 %v2633_v43  ;;  %2321 = vmatprep.mubr.msk.bf16.mxu0 %vm284_vm2, %v164_v19 }
  0x1e   :  { %2327 = vmatprep.subr.bf16.mxu0 %v2636_v48 }
  0x21   :  { %2328 = vmatpush3.bf16.msra.mxu0 %v2636_v48 }
  0x24   :  { %2322 = vmatmul.mubr.msk.bf16.gmra.mrb[4].mxu0 %vm284_vm2, %v2740_v5  ;;  %v227_v5 = vsel %vm226_vm4, %v224_v60, %v225_v0 }
  0x25   :  { %2329 = vmatprep.mubr.msk.bf16.mxu0 %vm284_vm2, %v471_v56  ;;  %v474_v11 = vpack.c.bf16 %v258_v10, %v227_v5 }
  0x2c   :  { %2330 = vmatmul.mubr.msk.bf16.vlgmr.msra.gmra.mrb[0].mxu0 %vm284_vm2, %v472_v6 }
  0x2d   :  { %2333 = vmatprep.mubr.msk.bf16.mxu0 %vm284_vm2, %v473_v7 }
  0x34   :  { %2334 = vmatmul.mubr.msk.bf16.gmra.mrb[4].mxu0 %vm284_vm2, %v474_v11 }
  0xff   :  { %v2331_v16 = vpop.f32.mrb[0].mxu0 }
 0x100   :  { %v2853_v17 = vadd.f32 %v2331_v16, %v2116_v15  ;;  %v538_v18 = vpop.f32.mrb[1].mxu0  ;;  %v2639_v16 = vld [vmem:[%s3171_s4 + $0x10] sm:$0xff]  }
 0x101   :  { %v2855_v19 = vadd.f32 %v2116_v15, %v538_v18  ;;  %v2332_v20 = vpop.f32.mrb[2].mxu0 }
 0x102   :  { %v2857_v21 = vadd.f32 %v2332_v20, %v2116_v15  ;;  %v541_v22 = vpop.f32.mrb[3].mxu0  ;;  %v593_v23 = vrot.slane %v2853_v17, 7  ;;  %v617_v24 = vrot.slane %v2853_v17, 1 }
 0x103   :  { %v2861_v25 = vadd.f32 %v2116_v15, %v541_v22  ;;  %v591_v26 = vrot.slane %v2855_v19, 7  ;;  %v615_v30 = vrot.slane %v2855_v19, 1 }
 0x104   :  { %v594_v27 = vrot.slane %v2857_v21, 7  ;;  %v618_v28 = vrot.slane %v2857_v21, 1  ;;  %v640_v29 = vpack.c.bf16 %v2857_v21, %v2853_v17 }
 0x105   :  { %v592_v31 = vrot.slane %v2861_v25, 7  ;;  %v616_v32 = vrot.slane %v2861_v25, 1  ;;  %v639_v33 = vpack.c.bf16 %v2861_v25, %v2855_v19 }
 0x106   :  { %v627_v34 = vsel %vm226_vm4, %v617_v24, %v618_v28  ;;  %v603_v35 = vsel %vm185_vm0, %v593_v23, %v594_v27 }
 0x107   :  { %v2335_v37 = vpop.f32.mrb[4].mxu0  ;;  %v605_v38 = vsel %vm185_vm0, %v591_v26, %v592_v31  ;;  %v604_v39 = vsel %vm185_vm0, %v592_v31, %v593_v23  ;;  %v628_v40 = vsel %vm226_vm4, %v616_v32, %v617_v24  ;;  %v629_v41 = vsel %vm226_vm4, %v615_v30, %v616_v32  ;;  %v2640_v23 = vld [vmem:[%s3172_s5] sm:$0xff]   ;;  %v919_v31 = vld [vmem:[%s3174_s1 + $0x8] sm:$0xff]  }
 0x108   :  { %v589_v42 = vadd.f32 %v2335_v37, %v2116_v15  ;;  %v554_v43 = vpop.f32.mrb[5].mxu0  ;;  %v647_v44 = vpack.c.bf16 %v603_v35, %v604_v39  ;;  %v819_v45 = vpack.c.bf16 %v628_v40, %v629_v41  ;;  %v917_v24 = vld [vmem:[%s3174_s1] sm:$0xff]   ;;  %v927_v37 = vunpack.c.l.bf16 %v919_v31 }
 0x109   :  { %v587_v46 = vadd.f32 %v2116_v15, %v554_v43  ;;  %v2336_v47 = vpop.f32.mrb[6].mxu0  ;;  %v925_v25 = vunpack.c.l.bf16 %v917_v24 }
 0x10a   :  { %v590_v48 = vadd.f32 %v2336_v47, %v2116_v15  ;;  %v557_v49 = vpop.f32.mrb[7].mxu0  ;;  %v597_v50 = vrot.slane %v589_v42, 7  ;;  %v621_v54 = vrot.slane %v589_v42, 1  ;;  %v935_v43 = vrot.slane %v927_v37, 7 }
 0x10b   :  { %v595_v51 = vrot.slane %v587_v46, 7  ;;  %v619_v52 = vrot.slane %v587_v46, 1  ;;  %v588_v53 = vadd.f32 %v2116_v15, %v557_v49 }
 0x10c   :  { %v598_v55 = vrot.slane %v590_v48, 7  ;;  %v622_v56 = vrot.slane %v590_v48, 1  ;;  %v642_v57 = vpack.c.bf16 %v590_v48, %v589_v42 }
 0x10d   :  { %v626_v59 = vsel %vm226_vm4, %v618_v28, %v619_v52  ;;  %v596_v60 = vrot.slane %v588_v53, 7  ;;  %v620_v61 = vrot.slane %v588_v53, 1  ;;  %v641_v62 = vpack.c.bf16 %v588_v53, %v587_v46 }
 0x10e   :  { %v634_v63 = vsel %vm2810_vm5, 0.0, %v626_v59  ;;  %v606_v0 = vsel %vm185_vm0, %v598_v55, %v591_v26  ;;  %v602_v1 = vsel %vm185_vm0, %v594_v27, %v595_v51  ;;  %v599_v2 = vsel %vm185_vm0, %v597_v50, %v598_v55 }
 0x10f   :  { %v820_v4 = vpack.c.bf16 %v634_v63, %v627_v34  ;;  %v607_v6 = vsel %vm2751_vm1, 0.0, %v606_v0  ;;  %v601_v7 = vsel %vm185_vm0, %v595_v51, %v596_v60  ;;  %v611_v9 = vsel %vm2777_vm3, 0.0, %v602_v1 }
 0x110   :  { %v646_v5 = vpack.c.bf16 %v605_v38, %v607_v6  ;;  %v648_v10 = vpack.c.bf16 %v601_v7, %v611_v9  ;;  %v600_v11 = vsel %vm185_vm0, %v596_v60, %v597_v50  ;;  %v624_v12 = vsel %vm226_vm4, %v620_v61, %v621_v54 }
 0x111   :  { %v649_v15 = vpack.c.bf16 %v599_v2, %v600_v11  ;;  %v625_v17 = vsel %vm226_vm4, %v619_v52, %v620_v61  ;;  %v623_v18 = vsel %vm226_vm4, %v621_v54, %v622_v56  ;;  %v630_v19 = vsel %vm226_vm4, %v622_v56, %v615_v30  ;;  %v921_v30 = vld [vmem:[%s3174_s1 + $0x10] sm:$0xff]  }
 0x112   :  { %2339 = vmatprep.mubr.msk.bf16.mxu1 %vm658_vm7, %v646_v5  ;;  %v821_v20 = vpack.c.bf16 %v624_v12, %v625_v17  ;;  %v638_v21 = vsel %vm2828_vm6, 0.0, %v630_v19  ;;  %v926_v27 = vunpack.c.h.bf16 %v917_v24  ;;  %v933_v28 = vrot.slane %v925_v25, 7  ;;  %v2644_v56 = vld [vmem:[%s3172_s5 + $0x10] sm:$0xff]  }
 0x113   :  { %2340 = vmatmul.mubr.msk.bf16.vlgmr.msra.gmra.mrb[0].mxu1 %vm658_vm7, %v647_v44  ;;  %v822_v22 = vpack.c.bf16 %v638_v21, %v623_v18  ;;  %v929_v35 = vunpack.c.l.bf16 %v921_v30  ;;  %v928_v38 = vunpack.c.h.bf16 %v919_v31  ;;  %v930_v41 = vunpack.c.h.bf16 %v921_v30 }
 0x114   :  { %2343 = vmatprep.mubr.msk.bf16.mxu1 %vm658_vm7, %v648_v10  ;;  %2348 = vmatpush3.bf16.msra.mxu1 %v2847_v13  ;;  %v2933_v13 = vld [vmem:[%s3174_s1 + $0x18] sm:$0xff]   ;;  %v934_v32 = vrot.slane %v926_v27, 7  ;;  %v957_v61 = vrot.slane %v925_v25, 1  ;;  %v959_v63 = vrot.slane %v927_v37, 1  ;;  %v2665_v37 = vmov 1.0  }
 0x115   :  { %2357 = vmatprep.subr.bf16.mxu1 %v2639_v16  ;;  %v932_v26 = vunpack.c.h.bf16 %v2933_v13  ;;  %v937_v42 = vrot.slane %v929_v35, 7  ;;  %v938_v46 = vrot.slane %v930_v41, 7  ;;  %v931_v50 = vunpack.c.l.bf16 %v2933_v13 }
 0x116   :  { %v947_v39 = vsel %vm185_vm0, %v933_v28, %v934_v32  ;;  %v946_v48 = vsel %vm185_vm0, %v934_v32, %v935_v43  ;;  %v961_v0 = vrot.slane %v929_v35, 1  ;;  %v960_v1 = vrot.slane %v928_v38, 1 }
 0x117   :  { %v943_v51 = vsel %vm185_vm0, %v937_v42, %v938_v46  ;;  %v939_v55 = vrot.slane %v931_v50, 7  ;;  %v962_v9 = vrot.slane %v930_v41, 1  ;;  %v963_v5 = vrot.slane %v931_v50, 1 }
 0x118   :  { %v968_v7 = vsel %vm226_vm4, %v960_v1, %v961_v0  ;;  %v969_v10 = vsel %vm226_vm4, %v959_v63, %v960_v1  ;;  %v3040_v1 = vld [vmem:[%s3175_s8 + $0x8] sm:$0xff]  }
 0x119   :  { %v942_v59 = vsel %vm185_vm0, %v938_v46, %v939_v55  ;;  %v976_v11 = vsel %vm2810_vm5, 0.0, %v968_v7  ;;  %v966_v12 = vsel %vm226_vm4, %v962_v9, %v963_v5 }
 0x11a   :  { %v1177_v17 = vpack.c.bf16 %v976_v11, %v969_v10  ;;  %v2161_v11 = vld [vmem:[%s3176_s6] ss:$0 sm:$0xff] }
 0x11b   :  { %2344 = vmatmul.mubr.msk.bf16.gmra.mrb[4].mxu1 %vm658_vm7, %v649_v15  ;;  %v967_v15 = vsel %vm226_vm4, %v961_v0, %v962_v9  ;;  %v2647_v0 = vld [vmem:[%s3175_s8] sm:$0xff]  }
 0x11c   :  { %2349 = vmatprep.mubr.msk.bf16.mxu1 %vm658_vm7, %v639_v33  ;;  %v2641_v33 = vld [vmem:[%s3172_s5 + $0x8] sm:$0xff]   ;;  %v1178_v18 = vpack.c.bf16 %v966_v12, %v967_v15 }
 0x123   :  { %2350 = vmatmul.mubr.msk.bf16.vlgmr.msra.gmra.mrb[0].mxu1 %vm658_vm7, %v640_v29  ;;  %v940_v29 = vrot.slane %v932_v26, 7 }
 0x124   :  { %2353 = vmatprep.mubr.msk.bf16.mxu1 %vm658_vm7, %v641_v62  ;;  %2358 = vmatpush3.bf16.msra.mxu1 %v2639_v16  ;;  %v958_v62 = vrot.slane %v926_v27, 1  ;;  %v964_v16 = vrot.slane %v932_v26, 1 }
 0x125   :  { %2367 = vmatprep.subr.bf16.mxu1 %v2640_v23  ;;  %v948_v34 = vsel %vm185_vm0, %v940_v29, %v933_v28 }
 0x126   :  { %v949_v40 = vsel %vm2751_vm1, 0.0, %v948_v34  ;;  %v970_v2 = vsel %vm226_vm4, %v958_v62, %v959_v63  ;;  %v972_v19 = vsel %vm226_vm4, %v964_v16, %v957_v61 }
 0x127   :  { %v984_v44 = vpack.c.bf16 %v947_v39, %v949_v40  ;;  %v980_v21 = vsel %vm2828_vm6, 0.0, %v972_v19 }
 0x12b   :  { %2354 = vmatmul.mubr.msk.bf16.gmra.mrb[4].mxu1 %vm658_vm7, %v642_v57  ;;  %v941_v57 = vsel %vm185_vm0, %v939_v55, %v940_v29 }
 0x12c   :  { %2359 = vmatprep.mubr.msk.bf16.mxu1 %vm658_vm7, %v819_v45  ;;  %v936_v45 = vrot.slane %v928_v38, 7  ;;  %v987_v60 = vpack.c.bf16 %v941_v57, %v942_v59  ;;  %v3026_v38 = vsub.s32 0, %v2732_v3 }
 0x12e   :  { %v944_v47 = vsel %vm185_vm0, %v936_v45, %v937_v42  ;;  %v945_v49 = vsel %vm185_vm0, %v935_v43, %v936_v45 }
 0x12f   :  { %v953_v52 = vsel %vm2777_vm3, 0.0, %v944_v47  ;;  %v985_v53 = vpack.c.bf16 %v945_v49, %v946_v48 }
 0x130   :  { %v986_v54 = vpack.c.bf16 %v943_v51, %v953_v52 }
 0x133   :  { %2360 = vmatmul.mubr.msk.bf16.vlgmr.msra.gmra.mrb[0].mxu1 %vm658_vm7, %v820_v4  ;;  %v971_v4 = vsel %vm226_vm4, %v957_v61, %v958_v62 }
 0x134   :  { %2363 = vmatprep.mubr.msk.bf16.mxu1 %vm658_vm7, %v821_v20  ;;  %2368 = vmatpush3.bf16.msra.mxu1 %v2640_v23  ;;  %v1176_v6 = vpack.c.bf16 %v970_v2, %v971_v4  ;;  %v965_v20 = vsel %vm226_vm4, %v963_v5, %v964_v16  ;;  %v2662_v23 = vmov 0.0|0.0  }
 0x135   :  { %2377 = vmatprep.subr.bf16.mxu1 %v2641_v33  ;;  %2503 = vmatprep.subr.bf16.mxu0 %v2662_v23 }
 0x13b   :  { %2364 = vmatmul.mubr.msk.bf16.gmra.mrb[4].mxu1 %vm658_vm7, %v822_v22  ;;  %v1179_v22 = vpack.c.bf16 %v980_v21, %v965_v20 }
 0x13c   :  { %2369 = vmatprep.mubr.msk.bf16.mxu1 %vm658_vm7, %v984_v44 }
 0x143   :  { %2370 = vmatmul.mubr.msk.bf16.vlgmr.msra.gmra.mrb[0].mxu1 %vm658_vm7, %v985_v53 }
 0x144   :  { %2378 = vmatpush3.bf16.msra.mxu1 %v2641_v33  ;;  %2373 = vmatprep.mubr.msk.bf16.mxu1 %vm658_vm7, %v986_v54 }
 0x145   :  { %2387 = vmatprep.subr.bf16.mxu1 %v2644_v56 }
 0x14b   :  { %2374 = vmatmul.mubr.msk.bf16.gmra.mrb[4].mxu1 %vm658_vm7, %v987_v60 }
 0x14c   :  { %2379 = vmatprep.mubr.msk.bf16.mxu1 %vm658_vm7, %v917_v24  ;;  %v2664_v24 = vmov 0.0  }
 0x14d   :  { %2413 = vmatprep.mubr.msk.f32.mxu0 %vm2663_vm8, %v2664_v24 }
 0x153   :  { %2380 = vmatmul.mubr.msk.bf16.vlgmr.msra.gmra.mrb[0].mxu1 %vm658_vm7, %v919_v31 }
 0x154   :  { %2388 = vmatpush3.bf16.msra.mxu1 %v2644_v56  ;;  %2383 = vmatprep.mubr.msk.bf16.mxu1 %vm658_vm7, %v921_v30 }
 0x155   :  { %2527 = vmatprep.subr.bf16.mxu1 %v2662_v23 }
 0x15b   :  { %2384 = vmatmul.mubr.msk.bf16.gmra.mrb[4].mxu1 %vm658_vm7, %v2933_v13 }
 0x15c   :  { %2389 = vmatprep.mubr.msk.bf16.mxu1 %vm658_vm7, %v1176_v6 }
 0x163   :  { %2390 = vmatmul.mubr.msk.bf16.vlgmr.msra.gmra.mrb[0].mxu1 %vm658_vm7, %v1177_v17 }
 0x164   :  { %2393 = vmatprep.mubr.msk.bf16.mxu1 %vm658_vm7, %v1178_v18  ;;  %v2162_v18 = vld [vmem:[%s3177_s7] ss:$0 sm:$0xff] }
 0x16b   :  { %2394 = vmatmul.mubr.msk.bf16.gmra.mrb[4].mxu1 %vm658_vm7, %v1179_v22 }
 0x16c   :  { %2481 = vmatprep.mubr.msk.f32.mxu1 %vm2663_vm8, %v2664_v24 }
 0x236   :  { %v2391_v13 = vpop.f32.mrb[0].mxu1 }
 0x237   :  { %v1235_v25 = vpop.f32.mrb[1].mxu1 }
 0x238   :  { %v2392_v26 = vpop.f32.mrb[2].mxu1 }
 0x239   :  { %v2507_v27 = vpack.c.bf16 %v2392_v26, %v2391_v13  ;;  %v1238_v28 = vpop.f32.mrb[3].mxu1 }
 0x23a   :  { %v2504_v29 = vpack.c.bf16 %v1238_v28, %v1235_v25 }
 0x23c   :  { %2505 = vmatpush3.bf16.msra.mxu0 %v2504_v29 }
 0x23d   :  { %2506 = vmatprep.subr.bf16.mxu0 %v2662_v23 }
 0x23e   :  { %v2395_v30 = vpop.f32.mrb[4].mxu1 }
 0x23f   :  { %v1251_v31 = vpop.f32.mrb[5].mxu1 }
 0x240   :  { %v2396_v32 = vpop.f32.mrb[6].mxu1  ;;  %2508 = vmatpush3.bf16.msra.mxu0 %v2507_v27 }
 0x241   :  { %v2513_v33 = vpack.c.bf16 %v2396_v32, %v2395_v30  ;;  %v1254_v34 = vpop.f32.mrb[7].mxu1  ;;  %2509 = vmatprep.subr.bf16.mxu0 %v2662_v23 }
 0x242   :  { %v2510_v35 = vpack.c.bf16 %v1254_v34, %v1251_v31 }
 0x244   :  { %2511 = vmatpush3.bf16.msra.mxu0 %v2510_v35 }
 0x245   :  { %2512 = vmatprep.subr.bf16.mxu0 %v2662_v23 }
 0x248   :  { %2514 = vmatpush3.bf16.msra.mxu0 %v2513_v33 }
 0x249   :  { %2515 = vmatprep.subr.bf16.mxu0 %v2662_v23 }
 0x24b   :  { %2414 = vmatmul.mubr.msk.f32.vlgmr.msra.gmra.mrb[8].mxu0 %vm1284_vm9, %v2665_v37 }
 0x24c   :  { %2432 = vmatprep.mubr.msk.f32.mxu0 %vm2663_vm8, %v2664_v24 }
 0x31e   :  { %v1354_v39 = vpop.f32.mrb[8].mxu0 }
 0x31f   :  { %v1358_v40 = vmul.f32 0.015625, %v1354_v39  ;;  %v2415_v41 = vpop.f32.mrb[9].mxu0 }
 0x321   :  { %v1362_v42 = vrot.slane %v1358_v40, %v3026_v38 }
 0x323   :  { %v1363_v43 = vsub.f32 %v1235_v25, %v1362_v42  ;;  %v1364_v44 = vsub.f32 %v1238_v28, %v1362_v42  ;;  %v1365_v45 = vsub.f32 %v2391_v13, %v1362_v42  ;;  %v1366_v46 = vsub.f32 %v2392_v26, %v1362_v42 }
 0x324   :  { %v1367_v47 = vsub.f32 %v1251_v31, %v1362_v42  ;;  %v1368_v48 = vsub.f32 %v1254_v34, %v1362_v42  ;;  %v1369_v49 = vsub.f32 %v2395_v30, %v1362_v42  ;;  %v1370_v50 = vsub.f32 %v2396_v32, %v1362_v42 }
 0x325   :  { %v1371_v51 = vmul.f32 %v1363_v43, %v1363_v43  ;;  %v1372_v52 = vmul.f32 %v1364_v44, %v1364_v44  ;;  %v1373_v54 = vmul.f32 %v1365_v45, %v1365_v45  ;;  %v1374_v55 = vmul.f32 %v1366_v46, %v1366_v46 }
 0x326   :  { %v1375_v57 = vmul.f32 %v1367_v47, %v1367_v47  ;;  %v1376_v59 = vmul.f32 %v1368_v48, %v1368_v48  ;;  %v1377_v61 = vmul.f32 %v1369_v49, %v1369_v49  ;;  %v1378_v62 = vmul.f32 %v1370_v50, %v1370_v50 }
 0x327   :  { %v2516_v53 = vpack.c.bf16 %v1372_v52, %v1371_v51  ;;  %v2519_v56 = vpack.c.bf16 %v1374_v55, %v1373_v54 }
 0x328   :  { %v2522_v60 = vpack.c.bf16 %v1376_v59, %v1375_v57  ;;  %v2525_v63 = vpack.c.bf16 %v1378_v62, %v1377_v61 }
 0x329   :  { %2517 = vmatpush3.bf16.msra.mxu0 %v2516_v53 }
 0x32a   :  { %2518 = vmatprep.subr.bf16.mxu0 %v2662_v23 }
 0x32d   :  { %2520 = vmatpush3.bf16.msra.mxu0 %v2519_v56 }
 0x32e   :  { %2521 = vmatprep.subr.bf16.mxu0 %v2662_v23 }
 0x331   :  { %2523 = vmatpush3.bf16.msra.mxu0 %v2522_v60 }
 0x332   :  { %2524 = vmatprep.subr.bf16.mxu0 %v2662_v23 }
 0x335   :  { %2526 = vmatpush3.bf16.msra.mxu0 %v2525_v63 }
 0x336   :  { %2435 = vmatprep.subr.bf16.mxu0 %v2647_v0 }
 0x338   :  { %2433 = vmatmul.mubr.msk.f32.vlgmr.msra.gmra.mrb[10].mxu0 %vm1284_vm9, %v2665_v37 }
 0x339   :  { %2436 = vmatpush3.bf16.msra.mxu0 %v2647_v0 }
 0x33a   :  { %2445 = vmatprep.subr.bf16.mxu0 %v3040_v1 }
 0x40b   :  { %v1445_v2 = vpop.f32.mrb[10].mxu0 }
 0x40c   :  { %v1449_v4 = vmul.f32 0.015625, %v1445_v2  ;;  %v2434_v6 = vpop.f32.mrb[11].mxu0 }
 0x40e   :  { %v1450_v7 = vmax.f32 %v1449_v4, 0.0 }
 0x410   :  { %v1451_v9 = vadd.f32 1e-05, %v1450_v7 }
 0x412   :  { %2658 = vrsqrt.f32 %v1451_v9  ;;  %v2649_v9 = vld [vmem:[%s3175_s8 + $0x10] sm:$0xff]  }
 0x41c   :  { %v2659_v5 = vpop.eup %2658 }
 0x41d   :  { %v1456_v10 = vrot.slane %v2659_v5, %v3026_v38 }
 0x41f   :  { %v1457_v12 = vmul.f32 %v1456_v10, %v1363_v43  ;;  %v1458_v15 = vmul.f32 %v1456_v10, %v1364_v44  ;;  %v1464_v16 = vmul.f32 %v1456_v10, %v1370_v50  ;;  %v1459_v17 = vmul.f32 %v1456_v10, %v1365_v45 }
 0x420   :  { %v1460_v19 = vmul.f32 %v1456_v10, %v1366_v46  ;;  %v1461_v20 = vmul.f32 %v1456_v10, %v1367_v47  ;;  %v1462_v21 = vmul.f32 %v1456_v10, %v1368_v48  ;;  %v1463_v22 = vmul.f32 %v1456_v10, %v1369_v49 }
 0x421   :  { %v1471_v13 = vmul.f32 %v2161_v11, %v1457_v12  ;;  %v1472_v25 = vmul.f32 %v2161_v11, %v1458_v15  ;;  %v1478_v26 = vmul.f32 %v2161_v11, %v1464_v16  ;;  %v1473_v27 = vmul.f32 %v2161_v11, %v1459_v17 }
 0x422   :  { %v1474_v28 = vmul.f32 %v2161_v11, %v1460_v19  ;;  %v1475_v29 = vmul.f32 %v2161_v11, %v1461_v20  ;;  %v1476_v30 = vmul.f32 %v2161_v11, %v1462_v21  ;;  %v1477_v31 = vmul.f32 %v2161_v11, %v1463_v22 }
 0x423   :  { %v1485_v32 = vadd.f32 %v2162_v18, %v1471_v13  ;;  %v1486_v33 = vadd.f32 %v2162_v18, %v1472_v25  ;;  %v1492_v34 = vadd.f32 %v2162_v18, %v1478_v26  ;;  %v1487_v35 = vadd.f32 %v2162_v18, %v1473_v27 }
 0x424   :  { %v1488_v39 = vadd.f32 %v2162_v18, %v1474_v28  ;;  %v1489_v40 = vadd.f32 %v2162_v18, %v1475_v29  ;;  %v1490_v41 = vadd.f32 %v2162_v18, %v1476_v30  ;;  %v1491_v42 = vadd.f32 %v2162_v18, %v1477_v31 }
 0x425   :  { %v3050_v43 = vmax.f32 %v1485_v32, 0.0  ;;  %v1494_v44 = vmax.f32 %v1486_v33, 0.0  ;;  %v3052_v45 = vmax.f32 %v1492_v34, 0.0  ;;  %v1495_v46 = vmax.f32 %v1487_v35, 0.0 }
 0x426   :  { %v1496_v47 = vmax.f32 %v1488_v39, 0.0  ;;  %v1497_v48 = vmax.f32 %v1489_v40, 0.0  ;;  %v1498_v49 = vmax.f32 %v1490_v41, 0.0  ;;  %v1499_v61 = vmax.f32 %v1491_v42, 0.0 }
 0x427   :  { %v1501_v50 = vrot.slane %v3050_v43, 7  ;;  %v1502_v51 = vrot.slane %v1494_v44, 7  ;;  %v1508_v52 = vrot.slane %v3052_v45, 7  ;;  %v1503_v53 = vrot.slane %v1495_v46, 7 }
 0x428   :  { %v1504_v54 = vrot.slane %v1496_v47, 7  ;;  %v1505_v55 = vrot.slane %v1497_v48, 7  ;;  %v1506_v56 = vrot.slane %v1498_v49, 7  ;;  %v1507_v5 = vrot.slane %v1499_v61, 7 }
 0x429   :  { %v1515_v57 = vsel %vm185_vm0, %v1501_v50, %v1502_v51  ;;  %v1516_v59 = vsel %vm185_vm0, %v1508_v52, %v1501_v50  ;;  %v1514_v60 = vsel %vm185_vm0, %v1502_v51, %v1503_v53  ;;  %v1549_v12 = vpack.c.bf16 %v1494_v44, %v3050_v43 }
 0x42a   :  { %v1517_v62 = vsel %vm2751_vm1, 0.0, %v1516_v59  ;;  %v1513_v63 = vsel %vm185_vm0, %v1503_v53, %v1504_v54  ;;  %v1511_v0 = vsel %vm185_vm0, %v1505_v55, %v1506_v56  ;;  %v1512_v2 = vsel %vm185_vm0, %v1504_v54, %v1505_v55 }
 0x42b   :  { %v1556_v4 = vpack.c.bf16 %v1515_v57, %v1517_v62  ;;  %v1521_v6 = vsel %vm2777_vm3, 0.0, %v1512_v2  ;;  %v1557_v7 = vpack.c.bf16 %v1513_v63, %v1514_v60  ;;  %v1509_v36 = vsel %vm185_vm0, %v1507_v5, %v1508_v52 }
 0x42c   :  { %v1558_v14 = vpack.c.bf16 %v1511_v0, %v1521_v6  ;;  %v1510_v10 = vsel %vm185_vm0, %v1506_v56, %v1507_v5  ;;  %v1550_v15 = vpack.c.bf16 %v1496_v47, %v1495_v46  ;;  %v1551_v16 = vpack.c.bf16 %v1498_v49, %v1497_v48 }
 0x42d   :  { %2437 = vmatprep.mubr.msk.bf16.mxu0 %vm658_vm7, %v1556_v4  ;;  %v1559_v11 = vpack.c.bf16 %v1509_v36, %v1510_v10  ;;  %v1526_v17 = vrot.slane %v1494_v44, 1  ;;  %v1527_v18 = vrot.slane %v1495_v46, 1  ;;  %v1529_v19 = vrot.slane %v1497_v48, 1 }
 0x42e   :  { %2438 = vmatmul.mubr.msk.bf16.vlgmr.msra.gmra.mrb[12].mxu0 %vm658_vm7, %v1557_v7  ;;  %v1528_v20 = vrot.slane %v1496_v47, 1  ;;  %v1552_v13 = vpack.c.bf16 %v3052_v45, %v1499_v61  ;;  %v1530_v27 = vrot.slane %v1498_v49, 1  ;;  %v1531_v28 = vrot.slane %v1499_v61, 1 }
 0x42f   :  { %2441 = vmatprep.mubr.msk.bf16.mxu0 %vm658_vm7, %v1558_v14  ;;  %2446 = vmatpush3.bf16.msra.mxu0 %v3040_v1  ;;  %v1525_v1 = vrot.slane %v3050_v43, 1  ;;  %v1538_v21 = vsel %vm226_vm4, %v1526_v17, %v1527_v18  ;;  %v1532_v33 = vrot.slane %v3052_v45, 1 }
 0x430   :  { %2455 = vmatprep.subr.bf16.mxu0 %v2649_v9  ;;  %v1536_v26 = vsel %vm226_vm4, %v1528_v20, %v1529_v19  ;;  %v1537_v29 = vsel %vm226_vm4, %v1527_v18, %v1528_v20  ;;  %v1534_v31 = vsel %vm226_vm4, %v1530_v27, %v1531_v28  ;;  %v1535_v32 = vsel %vm226_vm4, %v1529_v19, %v1530_v27 }
 0x431   :  { %v1539_v22 = vsel %vm226_vm4, %v1525_v1, %v1526_v17  ;;  %v1544_v30 = vsel %vm2810_vm5, 0.0, %v1536_v26  ;;  %v1730_v35 = vpack.c.bf16 %v1534_v31, %v1535_v32  ;;  %v1540_v39 = vsel %vm226_vm4, %v1532_v33, %v1525_v1 }
 0x432   :  { %v1728_v25 = vpack.c.bf16 %v1538_v21, %v1539_v22  ;;  %v1729_v34 = vpack.c.bf16 %v1544_v30, %v1537_v29  ;;  %v1533_v58 = vsel %vm226_vm4, %v1531_v28, %v1532_v33  ;;  %v1548_v40 = vsel %vm2828_vm6, 0.0, %v1540_v39  ;;  %v2184_v21 = vld [vmem:[%s3178_s9] ss:$0 sm:$0xff] }
 0x433   :  { %v1731_v41 = vpack.c.bf16 %v1548_v40, %v1533_v58 }
 0x436   :  { %2442 = vmatmul.mubr.msk.bf16.gmra.mrb[16].mxu0 %vm658_vm7, %v1559_v11 }
 0x437   :  { %2447 = vmatprep.mubr.msk.bf16.mxu0 %vm658_vm7, %v1549_v12 }
 0x43e   :  { %2448 = vmatmul.mubr.msk.bf16.vlgmr.msra.gmra.mrb[12].mxu0 %vm658_vm7, %v1550_v15 }
 0x43f   :  { %2451 = vmatprep.mubr.msk.bf16.mxu0 %vm658_vm7, %v1551_v16  ;;  %2456 = vmatpush3.bf16.msra.mxu0 %v2649_v9 }
 0x446   :  { %2452 = vmatmul.mubr.msk.bf16.gmra.mrb[16].mxu0 %vm658_vm7, %v1552_v13 }
 0x447   :  { %2457 = vmatprep.mubr.msk.bf16.mxu0 %vm658_vm7, %v1728_v25 }
 0x44e   :  { %2458 = vmatmul.mubr.msk.bf16.vlgmr.msra.gmra.mrb[12].mxu0 %vm658_vm7, %v1729_v34 }
 0x44f   :  { %2461 = vmatprep.mubr.msk.bf16.mxu0 %vm658_vm7, %v1730_v35 }
 0x456   :  { %2462 = vmatmul.mubr.msk.bf16.gmra.mrb[16].mxu0 %vm658_vm7, %v1731_v41 }
 0x521   :  { %v2459_v42 = vpop.f32.mrb[12].mxu0 }
 0x522   :  { %v1787_v43 = vpop.f32.mrb[13].mxu0 }
 0x523   :  { %v2460_v44 = vpop.f32.mrb[14].mxu0 }
 0x524   :  { %v2531_v45 = vpack.c.bf16 %v2460_v44, %v2459_v42  ;;  %v1790_v46 = vpop.f32.mrb[15].mxu0 }
 0x525   :  { %v2528_v47 = vpack.c.bf16 %v1790_v46, %v1787_v43 }
 0x527   :  { %2529 = vmatpush3.bf16.msra.mxu1 %v2528_v47 }
 0x528   :  { %2530 = vmatprep.subr.bf16.mxu1 %v2662_v23 }
 0x529   :  { %v2463_v48 = vpop.f32.mrb[16].mxu0 }
 0x52a   :  { %v1803_v49 = vpop.f32.mrb[17].mxu0 }
 0x52b   :  { %v2464_v50 = vpop.f32.mrb[18].mxu0  ;;  %2532 = vmatpush3.bf16.msra.mxu1 %v2531_v45 }
 0x52c   :  { %v2537_v3 = vpack.c.bf16 %v2464_v50, %v2463_v48  ;;  %v1806_v51 = vpop.f32.mrb[19].mxu0  ;;  %2533 = vmatprep.subr.bf16.mxu1 %v2662_v23 }
 0x52d   :  { %v2534_v8 = vpack.c.bf16 %v1806_v51, %v1803_v49 }
 0x52f   :  { %2535 = vmatpush3.bf16.msra.mxu1 %v2534_v8 }
 0x530   :  { %2536 = vmatprep.subr.bf16.mxu1 %v2662_v23 }
 0x533   :  { %2538 = vmatpush3.bf16.msra.mxu1 %v2537_v3 }
 0x534   :  { %2539 = vmatprep.subr.bf16.mxu1 %v2662_v23 }
 0x536   :  { %2482 = vmatmul.mubr.msk.f32.vlgmr.msra.gmra.mrb[8].mxu1 %vm1284_vm9, %v2665_v37 }
 0x537   :  { %2500 = vmatprep.mubr.msk.f32.mxu1 %vm2663_vm8, %v2664_v24 }
 0x609   :  { %v1894_v52 = vpop.f32.mrb[8].mxu1 }
 0x60a   :  { %v1898_v53 = vmul.f32 0.015625, %v1894_v52  ;;  %v2483_v54 = vpop.f32.mrb[9].mxu1 }
 0x60c   :  { %v1902_v55 = vrot.slane %v1898_v53, %v3026_v38 }
 0x60e   :  { %v1903_v56 = vsub.f32 %v1787_v43, %v1902_v55  ;;  %v1904_v57 = vsub.f32 %v1790_v46, %v1902_v55  ;;  %v1905_v59 = vsub.f32 %v2459_v42, %v1902_v55  ;;  %v1906_v60 = vsub.f32 %v2460_v44, %v1902_v55 }
 0x60f   :  { %v1907_v61 = vsub.f32 %v1803_v49, %v1902_v55  ;;  %v1908_v62 = vsub.f32 %v1806_v51, %v1902_v55  ;;  %v1909_v63 = vsub.f32 %v2463_v48, %v1902_v55  ;;  %v1910_v0 = vsub.f32 %v2464_v50, %v1902_v55 }
 0x610   :  { %v1911_v2 = vmul.f32 %v1903_v56, %v1903_v56  ;;  %v1912_v4 = vmul.f32 %v1904_v57, %v1904_v57  ;;  %v1913_v7 = vmul.f32 %v1905_v59, %v1905_v59  ;;  %v1914_v9 = vmul.f32 %v1906_v60, %v1906_v60 }
 0x611   :  { %v1915_v14 = vmul.f32 %v1907_v61, %v1907_v61  ;;  %v1916_v5 = vmul.f32 %v1908_v62, %v1908_v62  ;;  %v1917_v10 = vmul.f32 %v1909_v63, %v1909_v63  ;;  %v1918_v11 = vmul.f32 %v1910_v0, %v1910_v0 }
 0x612   :  { %v2540_v6 = vpack.c.bf16 %v1912_v4, %v1911_v2  ;;  %v2543_v24 = vpack.c.bf16 %v1914_v9, %v1913_v7 }
 0x613   :  { %v2546_v36 = vpack.c.bf16 %v1916_v5, %v1915_v14  ;;  %v2549_v12 = vpack.c.bf16 %v1918_v11, %v1917_v10 }
 0x614   :  { %2541 = vmatpush3.bf16.msra.mxu1 %v2540_v6 }
 0x615   :  { %2542 = vmatprep.subr.bf16.mxu1 %v2662_v23 }
 0x618   :  { %2544 = vmatpush3.bf16.msra.mxu1 %v2543_v24 }
 0x619   :  { %2545 = vmatprep.subr.bf16.mxu1 %v2662_v23 }
 0x61c   :  { %2547 = vmatpush3.bf16.msra.mxu1 %v2546_v36 }
 0x61d   :  { %2548 = vmatprep.subr.bf16.mxu1 %v2662_v23 }
 0x620   :  { %2550 = vmatpush3.bf16.msra.mxu1 %v2549_v12 }
 0x623   :  { %2501 = vmatmul.mubr.msk.f32.vlgmr.msra.gmra.mrb[10].mxu1 %vm1284_vm9, %v2665_v37  ;;  %v2185_v37 = vld [vmem:[%s3179_s10] ss:$0 sm:$0xff] }
 0x6f6   :  { %v1985_v15 = vpop.f32.mrb[10].mxu1 }
 0x6f7   :  { %v1989_v16 = vmul.f32 0.015625, %v1985_v15  ;;  %v2502_v1 = vpop.f32.mrb[11].mxu1 }
 0x6f9   :  { %v1990_v17 = vmax.f32 %v1989_v16, 0.0 }
 0x6fb   :  { %v1991_v18 = vadd.f32 1e-05, %v1990_v17 }
 0x6fd   :  { %2660 = vrsqrt.f32 %v1991_v18 }
 0x707   :  { %v2661_v19 = vpop.eup %2660 }
 0x708   :  { %v1996_v20 = vrot.slane %v2661_v19, %v3026_v38 }
 0x70a   :  { %v1997_v23 = vmul.f32 %v1996_v20, %v1903_v56  ;;  %v1998_v22 = vmul.f32 %v1996_v20, %v1904_v57  ;;  %v1999_v13 = vmul.f32 %v1996_v20, %v1905_v59  ;;  %v2000_v25 = vmul.f32 %v1996_v20, %v1906_v60 }
 0x70b   :  { %v2001_v26 = vmul.f32 %v1996_v20, %v1907_v61  ;;  %v2002_v27 = vmul.f32 %v1996_v20, %v1908_v62  ;;  %v2003_v28 = vmul.f32 %v1996_v20, %v1909_v63  ;;  %v2004_v29 = vmul.f32 %v1996_v20, %v1910_v0 }
 0x70c   :  { %v2011_v30 = vmul.f32 %v2184_v21, %v1997_v23  ;;  %v2012_v31 = vmul.f32 %v2184_v21, %v1998_v22  ;;  %v2013_v38 = vmul.f32 %v2184_v21, %v1999_v13  ;;  %v2014_v32 = vmul.f32 %v2184_v21, %v2000_v25 }
 0x70d   :  { %v2015_v33 = vmul.f32 %v2184_v21, %v2001_v26  ;;  %v2016_v34 = vmul.f32 %v2184_v21, %v2002_v27  ;;  %v2017_v35 = vmul.f32 %v2184_v21, %v2003_v28  ;;  %v2018_v39 = vmul.f32 %v2184_v21, %v2004_v29 }
 0x70e   :  { %v2025_v58 = vadd.f32 %v2185_v37, %v2011_v30  ;;  %v2026_v40 = vadd.f32 %v2185_v37, %v2012_v31  ;;  %v2027_v41 = vadd.f32 %v2185_v37, %v2013_v38  ;;  %v2028_v42 = vadd.f32 %v2185_v37, %v2014_v32 }
 0x70f   :  { %v2029_v43 = vadd.f32 %v2185_v37, %v2015_v33  ;;  %v2030_v44 = vadd.f32 %v2185_v37, %v2016_v34  ;;  %v2031_v45 = vadd.f32 %v2185_v37, %v2017_v35  ;;  %v2032_v46 = vadd.f32 %v2185_v37, %v2018_v39 }
 0x710   :  { %v2033_v47 = vmax.f32 %v2025_v58, 0.0  ;;  %v2034_v48 = vmax.f32 %v2026_v40, 0.0  ;;  %v2035_v49 = vmax.f32 %v2027_v41, 0.0  ;;  %v2036_v50 = vmax.f32 %v2028_v42, 0.0 }
 0x711   :  { %v2037_v3 = vmax.f32 %v2029_v43, 0.0  ;;  %v2038_v51 = vmax.f32 %v2030_v44, 0.0  ;;  %v2039_v8 = vmax.f32 %v2031_v45, 0.0  ;;  %v2040_v52 = vmax.f32 %v2032_v46, 0.0 }
 0x712   :  { %v2194_v53 = vpack.c.bf16 %v2033_v47, %v2033_v47  ;;  %v2195_v54 = vpack.c.bf16 %v2034_v48, %v2034_v48  ;;  %v2196_v55 = vpack.c.bf16 %v2035_v49, %v2035_v49  ;;  %v2197_v56 = vpack.c.bf16 %v2036_v50, %v2036_v50 }
 0x713   :  { %v2198_v57 = vpack.c.bf16 %v2037_v3, %v2037_v3  ;;  %v2199_v59 = vpack.c.bf16 %v2038_v51, %v2038_v51  ;;  %v2200_v60 = vpack.c.bf16 %v2039_v8, %v2039_v8  ;;  %v2201_v61 = vpack.c.bf16 %v2040_v52, %v2040_v52 }
 0x714   :  { %2074 = vst.msk [vmem:[%s3180_s11] sm:$0xf] %vm2073_vm10, %v2194_v53  ;;  %2075 = vst.msk [vmem:[%s3180_s11 + $0x4] sm:$0xf] %vm2073_vm10, %v2195_v54 }
 0x715   :  { %2076 = vst.msk [vmem:[%s3180_s11 + $0x8] sm:$0xf] %vm2073_vm10, %v2196_v55  ;;  %2077 = vst.msk [vmem:[%s3180_s11 + $0xc] sm:$0xf] %vm2073_vm10, %v2197_v56 }
 0x716   :  { %2078 = vst.msk [vmem:[%s3180_s11 + $0x10] sm:$0xf] %vm2073_vm10, %v2198_v57  ;;  %2079 = vst.msk [vmem:[%s3180_s11 + $0x14] sm:$0xf] %vm2073_vm10, %v2199_v59 }
 0x717   :  { %2080 = vst.msk [vmem:[%s3180_s11 + $0x18] sm:$0xf] %vm2073_vm10, %v2200_v60  ;;  %2081 = vst.msk [vmem:[%s3180_s11 + $0x1c] sm:$0xf] %vm2073_vm10, %v2201_v61 }

</bundles_post_ra>
